<compile_context>
chip_gen: v7x
topology: tpu7x:2x2x1
jax: 0.10.0
libtpu: 0.0.40
codegen_flags: <defaults>
</compile_context>

<pallas_src>
import functools
import math

import jax
import jax.numpy as jnp
from jax import lax
from jax.experimental import pallas as pl
from jax.experimental.pallas import tpu as pltpu


# ----------------------------------------------------------------------------
# Config (stands in for `args` of the PyTorch module)
# ----------------------------------------------------------------------------
class Args:
    batchSize = 4
    numb_block = 8          # sequence length L (number of blocks)
    block_size = 3          # bits per block
    block_class = 8         # 2 ** block_size
    truncated = 8           # number of feedback rounds
    d_model_trx = 32
    N_trx = 2
    heads_trx = 2
    dropout = 0.0           # eval -> no dropout
    reloc = 0
    custom_attn = True
    multclass = False
    temp = 1.0


N_PER_LAYER = 12  # params per encoder layer in the flat parameter list
PKEYS = ("emb_w", "emb_b", "out_w", "out_b",
         "wqkv", "bqkv", "wo", "ff1", "ff1_b", "ff2", "vecb")
NPK = len(PKEYS)


# ----------------------------------------------------------------------------
# Parameter construction (deterministic, synthetic) + positional encoding
# TODO(synk): exact BERT / PositionalEncoder_fixed definitions are external to
# the given module; a standard post-LN transformer encoder is used here.
# ----------------------------------------------------------------------------
def _init_linear(key, fan_in, fan_out):
    w = jax.random.normal(key, (fan_in, fan_out), jnp.float32) * 0.02
    b = jnp.zeros((1, fan_out), jnp.float32)
    return w, b


def init_bert_flat(key, in_size, d_model, n_layers, out_size):
    """Flat list: [emb_w, emb_b, out_w, out_b] + n_layers *
    [wqkv, bqkv, wo, bo, ln1_g, ln1_b, ff1_w, ff1_b, ff2_w, ff2_b, ln2_g, ln2_b]."""
    keys = jax.random.split(key, 2 + n_layers)
    emb_w, emb_b = _init_linear(keys[0], in_size, d_model)
    out_w, out_b = _init_linear(keys[1], d_model, out_size)
    flat = [emb_w, emb_b, out_w, out_b]
    for i in range(n_layers):
        lk = jax.random.split(keys[2 + i], 4)
        wqkv, bqkv = _init_linear(lk[0], d_model, 3 * d_model)
        wo, bo = _init_linear(lk[1], d_model, d_model)
        w1, bb1 = _init_linear(lk[2], d_model, 4 * d_model)
        w2, bb2 = _init_linear(lk[3], 4 * d_model, d_model)
        g1 = jnp.ones((1, d_model), jnp.float32)
        b1 = jnp.zeros((1, d_model), jnp.float32)
        g2 = jnp.ones((1, d_model), jnp.float32)
        b2 = jnp.zeros((1, d_model), jnp.float32)
        flat += [wqkv, bqkv, wo, bo, g1, b1, w1, bb1, w2, bb2, g2, b2]
    return flat


def pack_bert_params(flat, n_layers):
    """Pack the flat per-layer parameter list into ~10 stacked slabs."""
    emb_w, emb_b, out_w, out_b = flat[:4]
    wqkv, bqkv, wo, ff1, ff1_b, ff2, vecb = [], [], [], [], [], [], []
    for li in range(n_layers):
        p = flat[4 + N_PER_LAYER * li: 4 + N_PER_LAYER * (li + 1)]
        # p = [wqkv, bqkv, wo, bo, g1, b1, ff1_w, ff1_b, ff2_w, ff2_b, g2, b2]
        wqkv.append(p[0]); bqkv.append(p[1])
        wo.append(p[2])
        ff1.append(p[6]); ff1_b.append(p[7])
        ff2.append(p[8])
        # vecb rows: [bo, ln1_g, ln1_b, ff2_b, ln2_g, ln2_b]  -> (6, d_model)
        vecb.append(jnp.concatenate([p[3], p[4], p[5], p[9], p[10], p[11]], axis=0))
    return {
        "emb_w": emb_w, "emb_b": emb_b, "out_w": out_w, "out_b": out_b,
        "wqkv": jnp.stack(wqkv),      # (nl, d, 3d)
        "bqkv": jnp.stack(bqkv),      # (nl, 1, 3d)
        "wo": jnp.stack(wo),          # (nl, d, d)
        "ff1": jnp.stack(ff1),        # (nl, d, 4d)
        "ff1_b": jnp.stack(ff1_b),    # (nl, 1, 4d)
        "ff2": jnp.stack(ff2),        # (nl, 4d, d)
        "vecb": jnp.stack(vecb),      # (nl, 6, d)
    }


def positional_encoding(max_len, d_model):
    pos = jnp.arange(max_len, dtype=jnp.float32)[:, None]
    i = jnp.arange(0, d_model, 2, dtype=jnp.float32)
    div = jnp.exp(-math.log(10000.0) * i / d_model)
    pe = jnp.zeros((max_len, d_model), jnp.float32)
    pe = pe.at[:, 0::2].set(jnp.sin(pos * div))
    pe = pe.at[:, 1::2].set(jnp.cos(pos * div))
    return pe


# ----------------------------------------------------------------------------
# In-kernel building blocks
# ----------------------------------------------------------------------------
def _layernorm(x, g, b, eps=1e-5):
    mu = jnp.mean(x, axis=-1, keepdims=True)
    var = jnp.mean((x - mu) * (x - mu), axis=-1, keepdims=True)
    return (x - mu) * lax.rsqrt(var + eps) * g + b


def _encoder(x, prm, pe_tok, attn_bias, *, n_layers, heads, d_model, mod):
    """Post-LN transformer encoder on the token slab x: (B*L, F_in).

    Weights are indexed from packed refs at the point of use (short live
    ranges); per-head outputs are concatenated and projected with one GEMM.
    """
    dh = d_model // heads
    scale = 1.0 / math.sqrt(dh)

    h = jnp.dot(x, prm["emb_w"][...], preferred_element_type=jnp.float32) + prm["emb_b"][...]
    h = h * math.sqrt(d_model) + pe_tok

    for li in range(n_layers):
        vecb = prm["vecb"][li]                       # (6, d): bo,g1,b1,ff2_b,g2,b2

        # fused QKV projection: one (B*L, d) x (d, 3d) GEMM
        qkv = (jnp.dot(h, prm["wqkv"][li], preferred_element_type=jnp.float32)
               + prm["bqkv"][li])

        o_heads = []
        for hd in range(heads):
            q = qkv[:, hd * dh:(hd + 1) * dh]
            k = qkv[:, d_model + hd * dh:d_model + (hd + 1) * dh]
            v = qkv[:, 2 * d_model + hd * dh:2 * d_model + (hd + 1) * dh]
            # scores over ALL B*L rows; precomputed additive block-diagonal bias
            s = lax.dot_general(q, k, (((1,), (1,)), ((), ())),
                                preferred_element_type=jnp.float32) * scale + attn_bias
            s = s - jnp.max(s, axis=-1, keepdims=True)
            e = jnp.exp(s)
            p_att = e * pl.reciprocal(jnp.sum(e, axis=-1, keepdims=True), approx=True)
            o_heads.append(jnp.dot(p_att, v, preferred_element_type=jnp.float32))

        # single full-width output projection (replaces per-head partial GEMMs)
        o = (jnp.dot(jnp.concatenate(o_heads, axis=1), prm["wo"][li],
                     preferred_element_type=jnp.float32) + vecb[0:1, :])

        h = _layernorm(h + o, vecb[1:2, :], vecb[2:3, :])
        f = jnp.maximum(jnp.dot(h, prm["ff1"][li], preferred_element_type=jnp.float32)
                        + prm["ff1_b"][li], 0.0)
        f = jnp.dot(f, prm["ff2"][li], preferred_element_type=jnp.float32) + vecb[3:4, :]
        h = _layernorm(h + f, vecb[4:5, :], vecb[5:6, :])

    out = jnp.dot(h, prm["out_w"][...], preferred_element_type=jnp.float32) + prm["out_b"][...]
    if mod == "rec":
        # exact softmax (keeps belief values stable against the 0.99 threshold)
        out = out - jnp.max(out, axis=-1, keepdims=True)
        e = jnp.exp(out)
        out = e / jnp.sum(e, axis=-1, keepdims=True)
    return out


# ----------------------------------------------------------------------------
# Fused per-round kernel: one grid step == one feedback round.
# ----------------------------------------------------------------------------
def _rfc_round_kernel(thr_ref, bvec_ref, noise_ref, pe_ref, attn_bias_ref,
                      group_ref, sel_ref, *rest,
                      B, L, T, C, BS, d_model, heads, n_t_layers, n_r_layers):
    t_prm = dict(zip(PKEYS, rest[:NPK]))
    r_prm = dict(zip(PKEYS, rest[NPK:2 * NPK]))
    belief_ref = rest[2 * NPK]                 # output, VMEM-resident all rounds
    mask_scr = rest[2 * NPK + 1]               # (B*L, 1)  convergence mask (0/1)
    parity_scr = rest[2 * NPK + 2]             # (B*L, T)  accumulated parity_all
    src_scr = rest[2 * NPK + 3]                # (B*L, BS + 2*(T-1)) frozen Tmodel src
    recv_scr = rest[2 * NPK + 4]               # (B*L, T + C)        frozen Rmodel input
    done_ref = rest[2 * NPK + 5]               # SMEM (1,) int32 converged-row count

    BL = B * L
    idx = pl.program_id(0)

    @pl.when(idx == 0)
    def _init():
        belief_ref[...] = jnp.full((BL, C), 1.0 / C, dtype=jnp.float32)
        mask_scr[...] = jnp.zeros_like(mask_scr)
        parity_scr[...] = jnp.zeros_like(parity_scr)
        src_scr[...] = jnp.zeros_like(src_scr)
        recv_scr[...] = jnp.zeros_like(recv_scr)
        done_ref[0] = jnp.int32(0)

    # Early exit: once every (batch, block) row is masked, all rows are frozen,
    # so skipping the remaining rounds is exact.  Pure scalar compare from SMEM.
    not_done = done_ref[0] < BL

    @pl.when(not_done)
    def _round():
        mask_col = mask_scr[...] > 0.5                 # (B*L, 1) frozen rows
        pe_tok = pe_ref[...]
        attn_bias = attn_bias_ref[...]                 # (B*L, B*L) 0 / -1e30
        group = group_ref[...]                         # (B*L, B*L) same-block-pos 0/1
        noise = noise_ref[...]                         # (B*L, T)

        sel = sel_ref[0]                               # (3, T) round selectors
        eq_row = sel[0:1, :]                           # (1, T)   j == idx
        le_row = sel[1:2, :]                           # (1, T)   j <= idx
        lt_row = sel[2:3, :T - 1]                      # (1, T-1) j <  idx

        # ---- Tmodel source slab: full-width build, ONE where, ONE store -----
        src_new = jnp.concatenate(
            [bvec_ref[...], parity_scr[:, :T - 1], noise[:, :T - 1] * lt_row], axis=1)
        src = jnp.where(mask_col, src_scr[...], src_new)
        src_scr[...] = src

        # ---- Tmodel + power constraint (fused batch-stat matmul, N=2) --------
        t_out = _encoder(src, t_prm, pe_tok, attn_bias,
                         n_layers=n_t_layers, heads=heads,
                         d_model=d_model, mod="trx")              # (B*L, 1)
        stats = jnp.dot(group, jnp.concatenate([t_out, t_out * t_out], axis=1),
                        preferred_element_type=jnp.float32) * (1.0 / B)
        mean = stats[:, 0:1]
        # unbiased variance; requires batchSize > 1 (matches torch.std default)
        var = jnp.maximum(stats[:, 1:2] - mean * mean, 0.0) * (B / (B - 1.0))
        parity = (t_out - mean) / (jnp.sqrt(var) + 1e-8)          # (B*L, 1)
        # TODO(synk): args.reloc == 1 Power_reallocate scaling omitted.

        parity_all = parity_scr[...] + parity * eq_row
        parity_scr[...] = parity_all

        # ---- Rmodel input slab: full-width build, ONE where, ONE store -------
        recv_new = jnp.concatenate([parity_all + noise * le_row, belief_ref[...]],
                                   axis=1)
        received = jnp.where(mask_col, recv_scr[...], recv_new)
        recv_scr[...] = received

        # ---- Rmodel + belief / mask update -----------------------------------
        belief_new = _encoder(received, r_prm, pe_tok, attn_bias,
                              n_layers=n_r_layers, heads=heads,
                              d_model=d_model, mod="rec")         # (B*L, C)
        belief = jnp.where(mask_col, belief_ref[...], belief_new)
        belief_ref[...] = belief

        new_mask = (jnp.max(belief, axis=-1, keepdims=True)
                    > thr_ref[0]).astype(jnp.float32)
        mask_scr[...] = new_mask
        done_ref[0] = jnp.sum(new_mask).astype(jnp.int32)


# ----------------------------------------------------------------------------
# Wrapper: one jitted function = one fused pallas_call over the round loop.
# ----------------------------------------------------------------------------
def make_rfc_forward(args):
    B, L, T, C = args.batchSize, args.numb_block, args.truncated, args.block_class
    BS = args.block_size
    BL = B * L
    d_model = args.d_model_trx
    heads = args.heads_trx
    n_t_layers = args.N_trx
    n_r_layers = args.N_trx + 1
    src_w = BS + 2 * (T - 1)
    recv_w = C + T

    # ---- round-invariant constants (hoisted out of the kernel) --------------
    r = jnp.arange(BL)
    same_batch = (r[:, None] // L) == (r[None, :] // L)
    attn_bias = jnp.where(same_batch, 0.0, -1e30).astype(jnp.float32)   # additive mask
    group = ((r[:, None] % L) == (r[None, :] % L)).astype(jnp.float32)  # batch-stat GEMM

    ii = jnp.arange(T)[:, None]
    jj = jnp.arange(T)[None, :]
    round_sel = jnp.stack([(jj == ii).astype(jnp.float32),   # onehot(idx)
                           (jj <= ii).astype(jnp.float32),   # j <= idx
                           (jj < ii).astype(jnp.float32)],   # j <  idx
                          axis=1)                            # (T, 3, T)

    kernel = functools.partial(
        _rfc_round_kernel, B=B, L=L, T=T, C=C, BS=BS, d_model=d_model,
        heads=heads, n_t_layers=n_t_layers, n_r_layers=n_r_layers)

    def _const_spec(x):
        nd = x.ndim
        return pl.BlockSpec(tuple(x.shape), lambda t, _nd=nd: (0,) * _nd)

    @jax.jit
    def forward(t_params, r_params, belief_threshold, bVec, fwd_noise_par, pe):
        bvec_md = (2.0 * bVec.astype(jnp.float32) - 1.0).reshape(BL, BS)
        noise_tok = fwd_noise_par.astype(jnp.float32).reshape(BL, T)
        pe_tok = jnp.tile(pe.astype(jnp.float32), (B, 1))     # (B*L, d_model)
        thr = jnp.asarray(belief_threshold, jnp.float32).reshape(1)

        t_list = [t_params[k] for k in PKEYS]
        r_list = [r_params[k] for k in PKEYS]
        inputs = ([thr, bvec_md, noise_tok, pe_tok, attn_bias, group, round_sel]
                  + t_list + r_list)

        in_specs = (
            [pl.BlockSpec(memory_space=pltpu.MemorySpace.SMEM)]            # thr scalar
            + [_const_spec(x) for x in (bvec_md, noise_tok, pe_tok, attn_bias, group)]
            + [pl.BlockSpec((1, 3, T), lambda t: (t, 0, 0))]               # per-round sel
            + [_const_spec(x) for x in t_list + r_list])                   # resident weights

        belief_flat = pl.pallas_call(
            kernel,
            grid=(T,),
            in_specs=in_specs,
            out_specs=pl.BlockSpec((BL, C), lambda t: (0, 0)),
            out_shape=jax.ShapeDtypeStruct((BL, C), jnp.float32),
            scratch_shapes=[
                pltpu.VMEM((BL, 1), jnp.float32),       # mask
                pltpu.VMEM((BL, T), jnp.float32),       # parity_all
                pltpu.VMEM((BL, src_w), jnp.float32),   # frozen Tmodel src
                pltpu.VMEM((BL, recv_w), jnp.float32),  # frozen Rmodel received
                pltpu.SMEM((1,), jnp.int32),            # converged-row count
            ],
            compiler_params=pltpu.CompilerParams(
                dimension_semantics=("arbitrary",)),
        )(*inputs)

        belief = belief_flat.reshape(B, L, C)
        mask = jnp.max(belief, axis=-1) > belief_threshold
        return belief, mask

    return forward


# ----------------------------------------------------------------------------
if __name__ == "__main__":
    args = Args()
    key = jax.random.PRNGKey(0)
    k_params, k_bits, k_noise = jax.random.split(key, 3)
    kt, kr = jax.random.split(k_params)

    in_T = args.block_size + 2 * (args.truncated - 1)      # Tmodel input size
    in_R = args.block_class + args.truncated               # Rmodel input size
    t_flat = init_bert_flat(kt, in_T, args.d_model_trx, args.N_trx, 1)
    r_flat = init_bert_flat(kr, in_R, args.d_model_trx, args.N_trx + 1,
                            args.block_class)
    t_packed = pack_bert_params(t_flat, args.N_trx)
    r_packed = pack_bert_params(r_flat, args.N_trx + 1)
    pe = positional_encoding(args.numb_block, args.d_model_trx)

    bVec = jax.random.bernoulli(
        k_bits, 0.5, (args.batchSize, args.numb_block, args.block_size)
    ).astype(jnp.float32)
    fwd_noise_par = 0.1 * jax.random.normal(
        k_noise, (args.batchSize, args.numb_block, args.truncated), jnp.float32)

    forward = make_rfc_forward(args)
    belief, mask = forward(t_packed, r_packed, jnp.float32(0.99),
                           bVec, fwd_noise_par, pe)
    jax.block_until_ready(belief)

    assert belief.shape == (args.batchSize, args.numb_block, args.block_class)
    assert mask.shape == (args.batchSize, args.numb_block)
    assert bool(jnp.all(jnp.isfinite(belief)))
    print("KERNEL_OK")
</pallas_src>

<mosaic_0001>
module attributes {stable_mosaic.version = 11 : i64} {
  func.func @_rfc_round_kernel(%arg0: i32, %arg1: memref<1xf32, #tpu.memory_space<smem>>, %arg2: memref<32x3xf32, #tpu.memory_space<vmem>>, %arg3: memref<32x8xf32, #tpu.memory_space<vmem>>, %arg4: memref<32x32xf32, #tpu.memory_space<vmem>>, %arg5: memref<32x32xf32, #tpu.memory_space<vmem>>, %arg6: memref<32x32xf32, #tpu.memory_space<vmem>>, %arg7: memref<1x3x8xf32, #tpu.memory_space<vmem>>, %arg8: memref<17x32xf32, #tpu.memory_space<vmem>>, %arg9: memref<1x32xf32, #tpu.memory_space<vmem>>, %arg10: memref<32x1xf32, #tpu.memory_space<vmem>>, %arg11: memref<1x1xf32, #tpu.memory_space<vmem>>, %arg12: memref<2x32x96xf32, #tpu.memory_space<vmem>>, %arg13: memref<2x1x96xf32, #tpu.memory_space<vmem>>, %arg14: memref<2x32x32xf32, #tpu.memory_space<vmem>>, %arg15: memref<2x32x128xf32, #tpu.memory_space<vmem>>, %arg16: memref<2x1x128xf32, #tpu.memory_space<vmem>>, %arg17: memref<2x128x32xf32, #tpu.memory_space<vmem>>, %arg18: memref<2x6x32xf32, #tpu.memory_space<vmem>>, %arg19: memref<16x32xf32, #tpu.memory_space<vmem>>, %arg20: memref<1x32xf32, #tpu.memory_space<vmem>>, %arg21: memref<32x8xf32, #tpu.memory_space<vmem>>, %arg22: memref<1x8xf32, #tpu.memory_space<vmem>>, %arg23: memref<3x32x96xf32, #tpu.memory_space<vmem>>, %arg24: memref<3x1x96xf32, #tpu.memory_space<vmem>>, %arg25: memref<3x32x32xf32, #tpu.memory_space<vmem>>, %arg26: memref<3x32x128xf32, #tpu.memory_space<vmem>>, %arg27: memref<3x1x128xf32, #tpu.memory_space<vmem>>, %arg28: memref<3x128x32xf32, #tpu.memory_space<vmem>>, %arg29: memref<3x6x32xf32, #tpu.memory_space<vmem>>, %arg30: memref<32x8xf32, #tpu.memory_space<vmem>>, %arg31: memref<32x1xf32, #tpu.memory_space<vmem>>, %arg32: memref<32x8xf32, #tpu.memory_space<vmem>>, %arg33: memref<32x17xf32, #tpu.memory_space<vmem>>, %arg34: memref<32x16xf32, #tpu.memory_space<vmem>>, %arg35: memref<1xi32, #tpu.memory_space<smem>>) attributes {dimension_semantics = [#tpu.dimension_semantics<arbitrary>], iteration_bounds = array<i64: 8>, scalar_prefetch = 0 : i64, scratch_operands = 5 : i64, tpu.core_type = #tpu.core_type<tc>, window_params = [{transform_indices = @transform_0, window_bounds = array<i64: 1>}, {pipeline_mode = #tpu.pipeline_mode<synchronous>, transform_indices = @transform_1, window_bounds = array<i64: 32, 3>}, {pipeline_mode = #tpu.pipeline_mode<synchronous>, transform_indices = @transform_2, window_bounds = array<i64: 32, 8>}, {pipeline_mode = #tpu.pipeline_mode<synchronous>, transform_indices = @transform_3, window_bounds = array<i64: 32, 32>}, {pipeline_mode = #tpu.pipeline_mode<synchronous>, transform_indices = @transform_4, window_bounds = array<i64: 32, 32>}, {pipeline_mode = #tpu.pipeline_mode<synchronous>, transform_indices = @transform_5, window_bounds = array<i64: 32, 32>}, {transform_indices = @transform_6, window_bounds = array<i64: 1, 3, 8>}, {pipeline_mode = #tpu.pipeline_mode<synchronous>, transform_indices = @transform_7, window_bounds = array<i64: 17, 32>}, {pipeline_mode = #tpu.pipeline_mode<synchronous>, transform_indices = @transform_8, window_bounds = array<i64: 1, 32>}, {pipeline_mode = #tpu.pipeline_mode<synchronous>, transform_indices = @transform_9, window_bounds = array<i64: 32, 1>}, {pipeline_mode = #tpu.pipeline_mode<synchronous>, transform_indices = @transform_10, window_bounds = array<i64: 1, 1>}, {pipeline_mode = #tpu.pipeline_mode<synchronous>, transform_indices = @transform_11, window_bounds = array<i64: 2, 32, 96>}, {pipeline_mode = #tpu.pipeline_mode<synchronous>, transform_indices = @transform_12, window_bounds = array<i64: 2, 1, 96>}, {pipeline_mode = #tpu.pipeline_mode<synchronous>, transform_indices = @transform_13, window_bounds = array<i64: 2, 32, 32>}, {pipeline_mode = #tpu.pipeline_mode<synchronous>, transform_indices = @transform_14, window_bounds = array<i64: 2, 32, 128>}, {pipeline_mode = #tpu.pipeline_mode<synchronous>, transform_indices = @transform_15, window_bounds = array<i64: 2, 1, 128>}, {pipeline_mode = #tpu.pipeline_mode<synchronous>, transform_indices = @transform_16, window_bounds = array<i64: 2, 128, 32>}, {pipeline_mode = #tpu.pipeline_mode<synchronous>, transform_indices = @transform_17, window_bounds = array<i64: 2, 6, 32>}, {pipeline_mode = #tpu.pipeline_mode<synchronous>, transform_indices = @transform_18, window_bounds = array<i64: 16, 32>}, {pipeline_mode = #tpu.pipeline_mode<synchronous>, transform_indices = @transform_19, window_bounds = array<i64: 1, 32>}, {pipeline_mode = #tpu.pipeline_mode<synchronous>, transform_indices = @transform_20, window_bounds = array<i64: 32, 8>}, {pipeline_mode = #tpu.pipeline_mode<synchronous>, transform_indices = @transform_21, window_bounds = array<i64: 1, 8>}, {pipeline_mode = #tpu.pipeline_mode<synchronous>, transform_indices = @transform_22, window_bounds = array<i64: 3, 32, 96>}, {pipeline_mode = #tpu.pipeline_mode<synchronous>, transform_indices = @transform_23, window_bounds = array<i64: 3, 1, 96>}, {pipeline_mode = #tpu.pipeline_mode<synchronous>, transform_indices = @transform_24, window_bounds = array<i64: 3, 32, 32>}, {pipeline_mode = #tpu.pipeline_mode<synchronous>, transform_indices = @transform_25, window_bounds = array<i64: 3, 32, 128>}, {pipeline_mode = #tpu.pipeline_mode<synchronous>, transform_indices = @transform_26, window_bounds = array<i64: 3, 1, 128>}, {pipeline_mode = #tpu.pipeline_mode<synchronous>, transform_indices = @transform_27, window_bounds = array<i64: 3, 128, 32>}, {pipeline_mode = #tpu.pipeline_mode<synchronous>, transform_indices = @transform_28, window_bounds = array<i64: 3, 6, 32>}, {pipeline_mode = #tpu.pipeline_mode<synchronous>, transform_indices = @transform_29, window_bounds = array<i64: 32, 8>}]} {
    %c0_i32 = arith.constant 0 : i32
    %0 = arith.cmpi eq, %arg0, %c0_i32 : i32
    %1 = arith.extui %0 : i1 to i32
    %c0_i32_0 = arith.constant 0 : i32
    %2 = arith.cmpi ne, %1, %c0_i32_0 : i32
    scf.if %2 {
      %cst = arith.constant 1.250000e-01 : f32
      %7 = vector.broadcast %cst : f32 to vector<32x8xf32>
      %c0_2 = arith.constant 0 : index
      %c0_3 = arith.constant 0 : index
      %8 = vector.load %arg30[%c0_2, %c0_3] : memref<32x8xf32, #tpu.memory_space<vmem>>, vector<32x8xf32>
      tpu.vector_store %arg30[%c0_2, %c0_3], %7 {strides = array<i32>} : memref<32x8xf32, #tpu.memory_space<vmem>>, vector<32x8xf32>,
      %cst_4 = arith.constant 0.000000e+00 : f32
      %9 = vector.broadcast %cst_4 : f32 to vector<32x1xf32>
      %c0_5 = arith.constant 0 : index
      %c0_6 = arith.constant 0 : index
      %10 = vector.load %arg31[%c0_5, %c0_6] : memref<32x1xf32, #tpu.memory_space<vmem>>, vector<32x1xf32>
      tpu.vector_store %arg31[%c0_5, %c0_6], %9 {strides = array<i32>} : memref<32x1xf32, #tpu.memory_space<vmem>>, vector<32x1xf32>,
      %cst_7 = arith.constant 0.000000e+00 : f32
      %11 = vector.broadcast %cst_7 : f32 to vector<32x8xf32>
      %c0_8 = arith.constant 0 : index
      %c0_9 = arith.constant 0 : index
      %12 = vector.load %arg32[%c0_8, %c0_9] : memref<32x8xf32, #tpu.memory_space<vmem>>, vector<32x8xf32>
      tpu.vector_store %arg32[%c0_8, %c0_9], %11 {strides = array<i32>} : memref<32x8xf32, #tpu.memory_space<vmem>>, vector<32x8xf32>,
      %cst_10 = arith.constant 0.000000e+00 : f32
      %13 = vector.broadcast %cst_10 : f32 to vector<32x17xf32>
      %c0_11 = arith.constant 0 : index
      %c0_12 = arith.constant 0 : index
      %14 = vector.load %arg33[%c0_11, %c0_12] : memref<32x17xf32, #tpu.memory_space<vmem>>, vector<32x17xf32>
      tpu.vector_store %arg33[%c0_11, %c0_12], %13 {strides = array<i32>} : memref<32x17xf32, #tpu.memory_space<vmem>>, vector<32x17xf32>,
      %cst_13 = arith.constant 0.000000e+00 : f32
      %15 = vector.broadcast %cst_13 : f32 to vector<32x16xf32>
      %c0_14 = arith.constant 0 : index
      %c0_15 = arith.constant 0 : index
      %16 = vector.load %arg34[%c0_14, %c0_15] : memref<32x16xf32, #tpu.memory_space<vmem>>, vector<32x16xf32>
      tpu.vector_store %arg34[%c0_14, %c0_15], %15 {strides = array<i32>} : memref<32x16xf32, #tpu.memory_space<vmem>>, vector<32x16xf32>,
      %c0_i32_16 = arith.constant 0 : i32
      %c0_17 = arith.constant 0 : index
      %17 = memref.load %arg35[%c0_17] : memref<1xi32, #tpu.memory_space<smem>>
      memref.store %c0_i32_16, %arg35[%c0_17] : memref<1xi32, #tpu.memory_space<smem>>
    } else {
    }
    %c0 = arith.constant 0 : index
    %3 = memref.load %arg35[%c0] : memref<1xi32, #tpu.memory_space<smem>>
    %c32_i32 = arith.constant 32 : i32
    %4 = arith.cmpi slt, %3, %c32_i32 : i32
    %5 = arith.extui %4 : i1 to i32
    %c0_i32_1 = arith.constant 0 : i32
    %6 = arith.cmpi ne, %5, %c0_i32_1 : i32
    scf.if %6 {
      %c0_2 = arith.constant 0 : index
      %c0_3 = arith.constant 0 : index
      %7 = vector.load %arg31[%c0_2, %c0_3] : memref<32x1xf32, #tpu.memory_space<vmem>>, vector<32x1xf32>
      %cst = arith.constant 5.000000e-01 : f32
      %8 = vector.broadcast %cst : f32 to vector<32x1xf32>
      %9 = arith.cmpf ogt, %7, %8 : vector<32x1xf32>
      %c0_4 = arith.constant 0 : index
      %c0_5 = arith.constant 0 : index
      %10 = vector.load %arg4[%c0_4, %c0_5] : memref<32x32xf32, #tpu.memory_space<vmem>>, vector<32x32xf32>
      %c0_6 = arith.constant 0 : index
      %c0_7 = arith.constant 0 : index
      %11 = vector.load %arg5[%c0_6, %c0_7] : memref<32x32xf32, #tpu.memory_space<vmem>>, vector<32x32xf32>
      %c0_8 = arith.constant 0 : index
      %c0_9 = arith.constant 0 : index
      %12 = vector.load %arg6[%c0_8, %c0_9] : memref<32x32xf32, #tpu.memory_space<vmem>>, vector<32x32xf32>
      %c0_10 = arith.constant 0 : index
      %c0_11 = arith.constant 0 : index
      %13 = vector.load %arg3[%c0_10, %c0_11] : memref<32x8xf32, #tpu.memory_space<vmem>>, vector<32x8xf32>
      %c0_12 = arith.constant 0 : index
      %c0_13 = arith.constant 0 : index
      %c0_14 = arith.constant 0 : index
      %14 = vector.load %arg7[%c0_12, %c0_13, %c0_14] : memref<1x3x8xf32, #tpu.memory_space<vmem>>, vector<1x3x8xf32>
      %15 = vector.shape_cast %14 : vector<1x3x8xf32> to vector<3x8xf32>
      %16 = vector.extract_strided_slice %15 {offsets = [0, 0], sizes = [1, 8], strides = [1, 1]} : vector<3x8xf32> to vector<1x8xf32>
      %17 = vector.extract_strided_slice %15 {offsets = [1, 0], sizes = [1, 8], strides = [1, 1]} : vector<3x8xf32> to vector<1x8xf32>
      %18 = vector.extract_strided_slice %15 {offsets = [2, 0], sizes = [1, 7], strides = [1, 1]} : vector<3x8xf32> to vector<1x7xf32>
      %c0_15 = arith.constant 0 : index
      %c0_16 = arith.constant 0 : index
      %19 = vector.load %arg2[%c0_15, %c0_16] : memref<32x3xf32, #tpu.memory_space<vmem>>, vector<32x3xf32>
      %c0_17 = arith.constant 0 : index
      %c0_18 = arith.constant 0 : index
      %20 = vector.load %arg32[%c0_17, %c0_18] : memref<32x8xf32, #tpu.memory_space<vmem>>, vector<32x7xf32>
      %21 = vector.extract_strided_slice %13 {offsets = [0, 0], sizes = [32, 7], strides = [1, 1]} : vector<32x8xf32> to vector<32x7xf32>
      %22 = vector.broadcast %18 : vector<1x7xf32> to vector<32x7xf32>
      %23 = arith.mulf %21, %22 : vector<32x7xf32>
      %24 = tpu.concatenate %19, %20, %23 in 1 : vector<32x3xf32>, vector<32x7xf32>, vector<32x7xf32> -> vector<32x17xf32>
      %c0_19 = arith.constant 0 : index
      %c0_20 = arith.constant 0 : index
      %25 = vector.load %arg33[%c0_19, %c0_20] : memref<32x17xf32, #tpu.memory_space<vmem>>, vector<32x17xf32>
      %26 = vector.shape_cast %9 : vector<32x1xi1> to vector<32x1xi1>
      %27 = vector.broadcast %26 : vector<32x1xi1> to vector<32x17xi1>
      %28 = arith.select %27, %25, %24 : vector<32x17xi1>, vector<32x17xf32>
      %c0_21 = arith.constant 0 : index
      %c0_22 = arith.constant 0 : index
      %29 = vector.load %arg33[%c0_21, %c0_22] : memref<32x17xf32, #tpu.memory_space<vmem>>, vector<32x17xf32>
      tpu.vector_store %arg33[%c0_21, %c0_22], %28 {strides = array<i32>} : memref<32x17xf32, #tpu.memory_space<vmem>>, vector<32x17xf32>,
      %c0_23 = arith.constant 0 : index
      %c0_24 = arith.constant 0 : index
      %30 = vector.load %arg8[%c0_23, %c0_24] : memref<17x32xf32, #tpu.memory_space<vmem>>, vector<17x32xf32>
      %cst_25 = arith.constant dense<0.000000e+00> : vector<32x32xf32>
      %31 = tpu.matmul %28, %30, %cst_25 {dimension_numbers = #tpu.dot_dimension_numbers<[1], [0], [0], [1], [0, 0, 1, 1], [], []>} : vector<32x17xf32>, vector<17x32xf32>, vector<32x32xf32> -> vector<32x32xf32>
      %c0_26 = arith.constant 0 : index
      %c0_27 = arith.constant 0 : index
      %32 = vector.load %arg9[%c0_26, %c0_27] : memref<1x32xf32, #tpu.memory_space<vmem>>, vector<1x32xf32>
      %33 = vector.broadcast %32 : vector<1x32xf32> to vector<32x32xf32>
      %34 = arith.addf %31, %33 : vector<32x32xf32>
      %cst_28 = arith.constant 5.65685415 : f32
      %35 = vector.broadcast %cst_28 : f32 to vector<32x32xf32>
      %36 = arith.mulf %34, %35 : vector<32x32xf32>
      %37 = arith.addf %36, %10 : vector<32x32xf32>
      %c0_29 = arith.constant 0 : index
      %c0_30 = arith.constant 0 : index
      %c0_31 = arith.constant 0 : index
      %38 = vector.load %arg18[%c0_29, %c0_30, %c0_31] : memref<2x6x32xf32, #tpu.memory_space<vmem>>, vector<1x6x32xf32>
      %39 = vector.shape_cast %38 : vector<1x6x32xf32> to vector<6x32xf32>
      %c0_32 = arith.constant 0 : index
      %c0_33 = arith.constant 0 : index
      %c0_34 = arith.constant 0 : index
      %40 = vector.load %arg12[%c0_32, %c0_33, %c0_34] : memref<2x32x96xf32, #tpu.memory_space<vmem>>, vector<1x32x96xf32>
      %41 = vector.shape_cast %40 : vector<1x32x96xf32> to vector<32x96xf32>
      %cst_35 = arith.constant dense<0.000000e+00> : vector<32x96xf32>
      %42 = tpu.matmul %37, %41, %cst_35 {dimension_numbers = #tpu.dot_dimension_numbers<[1], [0], [0], [1], [0, 0, 1, 1], [], []>} : vector<32x32xf32>, vector<32x96xf32>, vector<32x96xf32> -> vector<32x96xf32>
      %c0_36 = arith.constant 0 : index
      %c0_37 = arith.constant 0 : index
      %c0_38 = arith.constant 0 : index
      %43 = vector.load %arg13[%c0_36, %c0_37, %c0_38] : memref<2x1x96xf32, #tpu.memory_space<vmem>>, vector<1x1x96xf32>
      %44 = vector.shape_cast %43 : vector<1x1x96xf32> to vector<1x96xf32>
      %45 = vector.broadcast %44 : vector<1x96xf32> to vector<32x96xf32>
      %46 = arith.addf %42, %45 : vector<32x96xf32>
      %47 = vector.extract_strided_slice %46 {offsets = [0, 0], sizes = [32, 16], strides = [1, 1]} : vector<32x96xf32> to vector<32x16xf32>
      %48 = vector.extract_strided_slice %46 {offsets = [0, 32], sizes = [32, 16], strides = [1, 1]} : vector<32x96xf32> to vector<32x16xf32>
      %49 = vector.extract_strided_slice %46 {offsets = [0, 64], sizes = [32, 16], strides = [1, 1]} : vector<32x96xf32> to vector<32x16xf32>
      %cst_39 = arith.constant dense<0.000000e+00> : vector<32x32xf32>
      %50 = tpu.matmul %47, %48, %cst_39 {dimension_numbers = #tpu.dot_dimension_numbers<[1], [1], [0], [0], [0, 0, 1, 0], [], []>} : vector<32x16xf32>, vector<32x16xf32>, vector<32x32xf32> -> vector<32x32xf32>
      %cst_40 = arith.constant 2.500000e-01 : f32
      %51 = vector.broadcast %cst_40 : f32 to vector<32x32xf32>
      %52 = arith.mulf %50, %51 : vector<32x32xf32>
      %53 = arith.addf %52, %11 : vector<32x32xf32>
      %cst_41 = arith.constant dense<0xFF800000> : vector<32xf32>
      %54 = vector.multi_reduction <maximumf>, %53, %cst_41 [1] : vector<32x32xf32> to vector<32xf32>
      %55 = vector.shape_cast %54 : vector<32xf32> to vector<32x1xf32>
      %56 = vector.broadcast %55 : vector<32x1xf32> to vector<32x32xf32>
      %57 = arith.subf %53, %56 : vector<32x32xf32>
      %58 = math.exp %57 : vector<32x32xf32>
      %cst_42 = arith.constant dense<0.000000e+00> : vector<32xf32>
      %59 = vector.multi_reduction <add>, %58, %cst_42 [1] : vector<32x32xf32> to vector<32xf32>
      %60 = vector.shape_cast %59 : vector<32xf32> to vector<32x1xf32>
      %61 = tpu.reciprocal %60 {approx = true} : vector<32x1xf32> -> vector<32x1xf32>
      %62 = vector.broadcast %61 : vector<32x1xf32> to vector<32x32xf32>
      %63 = arith.mulf %58, %62 : vector<32x32xf32>
      %cst_43 = arith.constant dense<0.000000e+00> : vector<32x16xf32>
      %64 = tpu.matmul %63, %49, %cst_43 {dimension_numbers = #tpu.dot_dimension_numbers<[1], [0], [0], [1], [0, 0, 1, 1], [], []>} : vector<32x32xf32>, vector<32x16xf32>, vector<32x16xf32> -> vector<32x16xf32>
      %65 = vector.extract_strided_slice %46 {offsets = [0, 16], sizes = [32, 16], strides = [1, 1]} : vector<32x96xf32> to vector<32x16xf32>
      %66 = vector.extract_strided_slice %46 {offsets = [0, 48], sizes = [32, 16], strides = [1, 1]} : vector<32x96xf32> to vector<32x16xf32>
      %67 = vector.extract_strided_slice %46 {offsets = [0, 80], sizes = [32, 16], strides = [1, 1]} : vector<32x96xf32> to vector<32x16xf32>
      %cst_44 = arith.constant dense<0.000000e+00> : vector<32x32xf32>
      %68 = tpu.matmul %65, %66, %cst_44 {dimension_numbers = #tpu.dot_dimension_numbers<[1], [1], [0], [0], [0, 0, 1, 0], [], []>} : vector<32x16xf32>, vector<32x16xf32>, vector<32x32xf32> -> vector<32x32xf32>
      %cst_45 = arith.constant 2.500000e-01 : f32
      %69 = vector.broadcast %cst_45 : f32 to vector<32x32xf32>
      %70 = arith.mulf %68, %69 : vector<32x32xf32>
      %71 = arith.addf %70, %11 : vector<32x32xf32>
      %cst_46 = arith.constant dense<0xFF800000> : vector<32xf32>
      %72 = vector.multi_reduction <maximumf>, %71, %cst_46 [1] : vector<32x32xf32> to vector<32xf32>
      %73 = vector.shape_cast %72 : vector<32xf32> to vector<32x1xf32>
      %74 = vector.broadcast %73 : vector<32x1xf32> to vector<32x32xf32>
      %75 = arith.subf %71, %74 : vector<32x32xf32>
      %76 = math.exp %75 : vector<32x32xf32>
      %cst_47 = arith.constant dense<0.000000e+00> : vector<32xf32>
      %77 = vector.multi_reduction <add>, %76, %cst_47 [1] : vector<32x32xf32> to vector<32xf32>
      %78 = vector.shape_cast %77 : vector<32xf32> to vector<32x1xf32>
      %79 = tpu.reciprocal %78 {approx = true} : vector<32x1xf32> -> vector<32x1xf32>
      %80 = vector.broadcast %79 : vector<32x1xf32> to vector<32x32xf32>
      %81 = arith.mulf %76, %80 : vector<32x32xf32>
      %cst_48 = arith.constant dense<0.000000e+00> : vector<32x16xf32>
      %82 = tpu.matmul %81, %67, %cst_48 {dimension_numbers = #tpu.dot_dimension_numbers<[1], [0], [0], [1], [0, 0, 1, 1], [], []>} : vector<32x32xf32>, vector<32x16xf32>, vector<32x16xf32> -> vector<32x16xf32>
      %83 = tpu.concatenate %64, %82 in 1 : vector<32x16xf32>, vector<32x16xf32> -> vector<32x32xf32>
      %c0_49 = arith.constant 0 : index
      %c0_50 = arith.constant 0 : index
      %c0_51 = arith.constant 0 : index
      %84 = vector.load %arg14[%c0_49, %c0_50, %c0_51] : memref<2x32x32xf32, #tpu.memory_space<vmem>>, vector<1x32x32xf32>
      %85 = vector.shape_cast %84 : vector<1x32x32xf32> to vector<32x32xf32>
      %cst_52 = arith.constant dense<0.000000e+00> : vector<32x32xf32>
      %86 = tpu.matmul %83, %85, %cst_52 {dimension_numbers = #tpu.dot_dimension_numbers<[1], [0], [0], [1], [0, 0, 1, 1], [], []>} : vector<32x32xf32>, vector<32x32xf32>, vector<32x32xf32> -> vector<32x32xf32>
      %87 = vector.extract_strided_slice %39 {offsets = [0, 0], sizes = [1, 32], strides = [1, 1]} : vector<6x32xf32> to vector<1x32xf32>
      %88 = vector.broadcast %87 : vector<1x32xf32> to vector<32x32xf32>
      %89 = arith.addf %86, %88 : vector<32x32xf32>
      %90 = arith.addf %37, %89 : vector<32x32xf32>
      %91 = vector.extract_strided_slice %39 {offsets = [1, 0], sizes = [1, 32], strides = [1, 1]} : vector<6x32xf32> to vector<1x32xf32>
      %92 = vector.extract_strided_slice %39 {offsets = [2, 0], sizes = [1, 32], strides = [1, 1]} : vector<6x32xf32> to vector<1x32xf32>
      %cst_53 = arith.constant dense<0.000000e+00> : vector<32xf32>
      %93 = vector.multi_reduction <add>, %90, %cst_53 [1] : vector<32x32xf32> to vector<32xf32>
      %94 = vector.shape_cast %93 : vector<32xf32> to vector<32x1xf32>
      %cst_54 = arith.constant 3.200000e+01 : f32
      %95 = vector.broadcast %cst_54 : f32 to vector<32x1xf32>
      %96 = arith.divf %94, %95 : vector<32x1xf32>
      %97 = vector.broadcast %96 : vector<32x1xf32> to vector<32x32xf32>
      %98 = arith.subf %90, %97 : vector<32x32xf32>
      %99 = vector.broadcast %96 : vector<32x1xf32> to vector<32x32xf32>
      %100 = arith.subf %90, %99 : vector<32x32xf32>
      %101 = arith.mulf %98, %100 : vector<32x32xf32>
      %cst_55 = arith.constant dense<0.000000e+00> : vector<32xf32>
      %102 = vector.multi_reduction <add>, %101, %cst_55 [1] : vector<32x32xf32> to vector<32xf32>
      %103 = vector.shape_cast %102 : vector<32xf32> to vector<32x1xf32>
      %cst_56 = arith.constant 3.200000e+01 : f32
      %104 = vector.broadcast %cst_56 : f32 to vector<32x1xf32>
      %105 = arith.divf %103, %104 : vector<32x1xf32>
      %106 = vector.broadcast %96 : vector<32x1xf32> to vector<32x32xf32>
      %107 = arith.subf %90, %106 : vector<32x32xf32>
      %cst_57 = arith.constant 9.99999974E-6 : f32
      %108 = vector.broadcast %cst_57 : f32 to vector<32x1xf32>
      %109 = arith.addf %105, %108 : vector<32x1xf32>
      %110 = math.rsqrt %109 : vector<32x1xf32>
      %111 = vector.broadcast %110 : vector<32x1xf32> to vector<32x32xf32>
      %112 = arith.mulf %107, %111 : vector<32x32xf32>
      %113 = vector.broadcast %91 : vector<1x32xf32> to vector<32x32xf32>
      %114 = arith.mulf %112, %113 : vector<32x32xf32>
      %115 = vector.broadcast %92 : vector<1x32xf32> to vector<32x32xf32>
      %116 = arith.addf %114, %115 : vector<32x32xf32>
      %c0_58 = arith.constant 0 : index
      %c0_59 = arith.constant 0 : index
      %c0_60 = arith.constant 0 : index
      %117 = vector.load %arg15[%c0_58, %c0_59, %c0_60] : memref<2x32x128xf32, #tpu.memory_space<vmem>>, vector<1x32x128xf32>
      %118 = vector.shape_cast %117 : vector<1x32x128xf32> to vector<32x128xf32>
      %cst_61 = arith.constant dense<0.000000e+00> : vector<32x128xf32>
      %119 = tpu.matmul %116, %118, %cst_61 {dimension_numbers = #tpu.dot_dimension_numbers<[1], [0], [0], [1], [0, 0, 1, 1], [], []>} : vector<32x32xf32>, vector<32x128xf32>, vector<32x128xf32> -> vector<32x128xf32>
      %c0_62 = arith.constant 0 : index
      %c0_63 = arith.constant 0 : index
      %c0_64 = arith.constant 0 : index
      %120 = vector.load %arg16[%c0_62, %c0_63, %c0_64] : memref<2x1x128xf32, #tpu.memory_space<vmem>>, vector<1x1x128xf32>
      %121 = vector.shape_cast %120 : vector<1x1x128xf32> to vector<1x128xf32>
      %122 = vector.broadcast %121 : vector<1x128xf32> to vector<32x128xf32>
      %123 = arith.addf %119, %122 : vector<32x128xf32>
      %cst_65 = arith.constant 0.000000e+00 : f32
      %124 = vector.broadcast %cst_65 : f32 to vector<32x128xf32>
      %125 = arith.maximumf %123, %124 : vector<32x128xf32>
      %c0_66 = arith.constant 0 : index
      %c0_67 = arith.constant 0 : index
      %c0_68 = arith.constant 0 : index
      %126 = vector.load %arg17[%c0_66, %c0_67, %c0_68] : memref<2x128x32xf32, #tpu.memory_space<vmem>>, vector<1x128x32xf32>
      %127 = vector.shape_cast %126 : vector<1x128x32xf32> to vector<128x32xf32>
      %cst_69 = arith.constant dense<0.000000e+00> : vector<32x32xf32>
      %128 = tpu.matmul %125, %127, %cst_69 {dimension_numbers = #tpu.dot_dimension_numbers<[1], [0], [0], [1], [0, 0, 1, 1], [], []>} : vector<32x128xf32>, vector<128x32xf32>, vector<32x32xf32> -> vector<32x32xf32>
      %129 = vector.extract_strided_slice %39 {offsets = [3, 0], sizes = [1, 32], strides = [1, 1]} : vector<6x32xf32> to vector<1x32xf32>
      %130 = vector.broadcast %129 : vector<1x32xf32> to vector<32x32xf32>
      %131 = arith.addf %128, %130 : vector<32x32xf32>
      %132 = arith.addf %116, %131 : vector<32x32xf32>
      %133 = vector.extract_strided_slice %39 {offsets = [4, 0], sizes = [1, 32], strides = [1, 1]} : vector<6x32xf32> to vector<1x32xf32>
      %134 = vector.extract_strided_slice %39 {offsets = [5, 0], sizes = [1, 32], strides = [1, 1]} : vector<6x32xf32> to vector<1x32xf32>
      %cst_70 = arith.constant dense<0.000000e+00> : vector<32xf32>
      %135 = vector.multi_reduction <add>, %132, %cst_70 [1] : vector<32x32xf32> to vector<32xf32>
      %136 = vector.shape_cast %135 : vector<32xf32> to vector<32x1xf32>
      %cst_71 = arith.constant 3.200000e+01 : f32
      %137 = vector.broadcast %cst_71 : f32 to vector<32x1xf32>
      %138 = arith.divf %136, %137 : vector<32x1xf32>
      %139 = vector.broadcast %138 : vector<32x1xf32> to vector<32x32xf32>
      %140 = arith.subf %132, %139 : vector<32x32xf32>
      %141 = vector.broadcast %138 : vector<32x1xf32> to vector<32x32xf32>
      %142 = arith.subf %132, %141 : vector<32x32xf32>
      %143 = arith.mulf %140, %142 : vector<32x32xf32>
      %cst_72 = arith.constant dense<0.000000e+00> : vector<32xf32>
      %144 = vector.multi_reduction <add>, %143, %cst_72 [1] : vector<32x32xf32> to vector<32xf32>
      %145 = vector.shape_cast %144 : vector<32xf32> to vector<32x1xf32>
      %cst_73 = arith.constant 3.200000e+01 : f32
      %146 = vector.broadcast %cst_73 : f32 to vector<32x1xf32>
      %147 = arith.divf %145, %146 : vector<32x1xf32>
      %148 = vector.broadcast %138 : vector<32x1xf32> to vector<32x32xf32>
      %149 = arith.subf %132, %148 : vector<32x32xf32>
      %cst_74 = arith.constant 9.99999974E-6 : f32
      %150 = vector.broadcast %cst_74 : f32 to vector<32x1xf32>
      %151 = arith.addf %147, %150 : vector<32x1xf32>
      %152 = math.rsqrt %151 : vector<32x1xf32>
      %153 = vector.broadcast %152 : vector<32x1xf32> to vector<32x32xf32>
      %154 = arith.mulf %149, %153 : vector<32x32xf32>
      %155 = vector.broadcast %133 : vector<1x32xf32> to vector<32x32xf32>
      %156 = arith.mulf %154, %155 : vector<32x32xf32>
      %157 = vector.broadcast %134 : vector<1x32xf32> to vector<32x32xf32>
      %158 = arith.addf %156, %157 : vector<32x32xf32>
      %c1 = arith.constant 1 : index
      %c0_75 = arith.constant 0 : index
      %c0_76 = arith.constant 0 : index
      %159 = vector.load %arg18[%c1, %c0_75, %c0_76] : memref<2x6x32xf32, #tpu.memory_space<vmem>>, vector<1x6x32xf32>
      %160 = vector.shape_cast %159 : vector<1x6x32xf32> to vector<6x32xf32>
      %c1_77 = arith.constant 1 : index
      %c0_78 = arith.constant 0 : index
      %c0_79 = arith.constant 0 : index
      %161 = vector.load %arg12[%c1_77, %c0_78, %c0_79] : memref<2x32x96xf32, #tpu.memory_space<vmem>>, vector<1x32x96xf32>
      %162 = vector.shape_cast %161 : vector<1x32x96xf32> to vector<32x96xf32>
      %cst_80 = arith.constant dense<0.000000e+00> : vector<32x96xf32>
      %163 = tpu.matmul %158, %162, %cst_80 {dimension_numbers = #tpu.dot_dimension_numbers<[1], [0], [0], [1], [0, 0, 1, 1], [], []>} : vector<32x32xf32>, vector<32x96xf32>, vector<32x96xf32> -> vector<32x96xf32>
      %c1_81 = arith.constant 1 : index
      %c0_82 = arith.constant 0 : index
      %c0_83 = arith.constant 0 : index
      %164 = vector.load %arg13[%c1_81, %c0_82, %c0_83] : memref<2x1x96xf32, #tpu.memory_space<vmem>>, vector<1x1x96xf32>
      %165 = vector.shape_cast %164 : vector<1x1x96xf32> to vector<1x96xf32>
      %166 = vector.broadcast %165 : vector<1x96xf32> to vector<32x96xf32>
      %167 = arith.addf %163, %166 : vector<32x96xf32>
      %168 = vector.extract_strided_slice %167 {offsets = [0, 0], sizes = [32, 16], strides = [1, 1]} : vector<32x96xf32> to vector<32x16xf32>
      %169 = vector.extract_strided_slice %167 {offsets = [0, 32], sizes = [32, 16], strides = [1, 1]} : vector<32x96xf32> to vector<32x16xf32>
      %170 = vector.extract_strided_slice %167 {offsets = [0, 64], sizes = [32, 16], strides = [1, 1]} : vector<32x96xf32> to vector<32x16xf32>
      %cst_84 = arith.constant dense<0.000000e+00> : vector<32x32xf32>
      %171 = tpu.matmul %168, %169, %cst_84 {dimension_numbers = #tpu.dot_dimension_numbers<[1], [1], [0], [0], [0, 0, 1, 0], [], []>} : vector<32x16xf32>, vector<32x16xf32>, vector<32x32xf32> -> vector<32x32xf32>
      %cst_85 = arith.constant 2.500000e-01 : f32
      %172 = vector.broadcast %cst_85 : f32 to vector<32x32xf32>
      %173 = arith.mulf %171, %172 : vector<32x32xf32>
      %174 = arith.addf %173, %11 : vector<32x32xf32>
      %cst_86 = arith.constant dense<0xFF800000> : vector<32xf32>
      %175 = vector.multi_reduction <maximumf>, %174, %cst_86 [1] : vector<32x32xf32> to vector<32xf32>
      %176 = vector.shape_cast %175 : vector<32xf32> to vector<32x1xf32>
      %177 = vector.broadcast %176 : vector<32x1xf32> to vector<32x32xf32>
      %178 = arith.subf %174, %177 : vector<32x32xf32>
      %179 = math.exp %178 : vector<32x32xf32>
      %cst_87 = arith.constant dense<0.000000e+00> : vector<32xf32>
      %180 = vector.multi_reduction <add>, %179, %cst_87 [1] : vector<32x32xf32> to vector<32xf32>
      %181 = vector.shape_cast %180 : vector<32xf32> to vector<32x1xf32>
      %182 = tpu.reciprocal %181 {approx = true} : vector<32x1xf32> -> vector<32x1xf32>
      %183 = vector.broadcast %182 : vector<32x1xf32> to vector<32x32xf32>
      %184 = arith.mulf %179, %183 : vector<32x32xf32>
      %cst_88 = arith.constant dense<0.000000e+00> : vector<32x16xf32>
      %185 = tpu.matmul %184, %170, %cst_88 {dimension_numbers = #tpu.dot_dimension_numbers<[1], [0], [0], [1], [0, 0, 1, 1], [], []>} : vector<32x32xf32>, vector<32x16xf32>, vector<32x16xf32> -> vector<32x16xf32>
      %186 = vector.extract_strided_slice %167 {offsets = [0, 16], sizes = [32, 16], strides = [1, 1]} : vector<32x96xf32> to vector<32x16xf32>
      %187 = vector.extract_strided_slice %167 {offsets = [0, 48], sizes = [32, 16], strides = [1, 1]} : vector<32x96xf32> to vector<32x16xf32>
      %188 = vector.extract_strided_slice %167 {offsets = [0, 80], sizes = [32, 16], strides = [1, 1]} : vector<32x96xf32> to vector<32x16xf32>
      %cst_89 = arith.constant dense<0.000000e+00> : vector<32x32xf32>
      %189 = tpu.matmul %186, %187, %cst_89 {dimension_numbers = #tpu.dot_dimension_numbers<[1], [1], [0], [0], [0, 0, 1, 0], [], []>} : vector<32x16xf32>, vector<32x16xf32>, vector<32x32xf32> -> vector<32x32xf32>
      %cst_90 = arith.constant 2.500000e-01 : f32
      %190 = vector.broadcast %cst_90 : f32 to vector<32x32xf32>
      %191 = arith.mulf %189, %190 : vector<32x32xf32>
      %192 = arith.addf %191, %11 : vector<32x32xf32>
      %cst_91 = arith.constant dense<0xFF800000> : vector<32xf32>
      %193 = vector.multi_reduction <maximumf>, %192, %cst_91 [1] : vector<32x32xf32> to vector<32xf32>
      %194 = vector.shape_cast %193 : vector<32xf32> to vector<32x1xf32>
      %195 = vector.broadcast %194 : vector<32x1xf32> to vector<32x32xf32>
      %196 = arith.subf %192, %195 : vector<32x32xf32>
      %197 = math.exp %196 : vector<32x32xf32>
      %cst_92 = arith.constant dense<0.000000e+00> : vector<32xf32>
      %198 = vector.multi_reduction <add>, %197, %cst_92 [1] : vector<32x32xf32> to vector<32xf32>
      %199 = vector.shape_cast %198 : vector<32xf32> to vector<32x1xf32>
      %200 = tpu.reciprocal %199 {approx = true} : vector<32x1xf32> -> vector<32x1xf32>
      %201 = vector.broadcast %200 : vector<32x1xf32> to vector<32x32xf32>
      %202 = arith.mulf %197, %201 : vector<32x32xf32>
      %cst_93 = arith.constant dense<0.000000e+00> : vector<32x16xf32>
      %203 = tpu.matmul %202, %188, %cst_93 {dimension_numbers = #tpu.dot_dimension_numbers<[1], [0], [0], [1], [0, 0, 1, 1], [], []>} : vector<32x32xf32>, vector<32x16xf32>, vector<32x16xf32> -> vector<32x16xf32>
      %204 = tpu.concatenate %185, %203 in 1 : vector<32x16xf32>, vector<32x16xf32> -> vector<32x32xf32>
      %c1_94 = arith.constant 1 : index
      %c0_95 = arith.constant 0 : index
      %c0_96 = arith.constant 0 : index
      %205 = vector.load %arg14[%c1_94, %c0_95, %c0_96] : memref<2x32x32xf32, #tpu.memory_space<vmem>>, vector<1x32x32xf32>
      %206 = vector.shape_cast %205 : vector<1x32x32xf32> to vector<32x32xf32>
      %cst_97 = arith.constant dense<0.000000e+00> : vector<32x32xf32>
      %207 = tpu.matmul %204, %206, %cst_97 {dimension_numbers = #tpu.dot_dimension_numbers<[1], [0], [0], [1], [0, 0, 1, 1], [], []>} : vector<32x32xf32>, vector<32x32xf32>, vector<32x32xf32> -> vector<32x32xf32>
      %208 = vector.extract_strided_slice %160 {offsets = [0, 0], sizes = [1, 32], strides = [1, 1]} : vector<6x32xf32> to vector<1x32xf32>
      %209 = vector.broadcast %208 : vector<1x32xf32> to vector<32x32xf32>
      %210 = arith.addf %207, %209 : vector<32x32xf32>
      %211 = arith.addf %158, %210 : vector<32x32xf32>
      %212 = vector.extract_strided_slice %160 {offsets = [1, 0], sizes = [1, 32], strides = [1, 1]} : vector<6x32xf32> to vector<1x32xf32>
      %213 = vector.extract_strided_slice %160 {offsets = [2, 0], sizes = [1, 32], strides = [1, 1]} : vector<6x32xf32> to vector<1x32xf32>
      %cst_98 = arith.constant dense<0.000000e+00> : vector<32xf32>
      %214 = vector.multi_reduction <add>, %211, %cst_98 [1] : vector<32x32xf32> to vector<32xf32>
      %215 = vector.shape_cast %214 : vector<32xf32> to vector<32x1xf32>
      %cst_99 = arith.constant 3.200000e+01 : f32
      %216 = vector.broadcast %cst_99 : f32 to vector<32x1xf32>
      %217 = arith.divf %215, %216 : vector<32x1xf32>
      %218 = vector.broadcast %217 : vector<32x1xf32> to vector<32x32xf32>
      %219 = arith.subf %211, %218 : vector<32x32xf32>
      %220 = vector.broadcast %217 : vector<32x1xf32> to vector<32x32xf32>
      %221 = arith.subf %211, %220 : vector<32x32xf32>
      %222 = arith.mulf %219, %221 : vector<32x32xf32>
      %cst_100 = arith.constant dense<0.000000e+00> : vector<32xf32>
      %223 = vector.multi_reduction <add>, %222, %cst_100 [1] : vector<32x32xf32> to vector<32xf32>
      %224 = vector.shape_cast %223 : vector<32xf32> to vector<32x1xf32>
      %cst_101 = arith.constant 3.200000e+01 : f32
      %225 = vector.broadcast %cst_101 : f32 to vector<32x1xf32>
      %226 = arith.divf %224, %225 : vector<32x1xf32>
      %227 = vector.broadcast %217 : vector<32x1xf32> to vector<32x32xf32>
      %228 = arith.subf %211, %227 : vector<32x32xf32>
      %cst_102 = arith.constant 9.99999974E-6 : f32
      %229 = vector.broadcast %cst_102 : f32 to vector<32x1xf32>
      %230 = arith.addf %226, %229 : vector<32x1xf32>
      %231 = math.rsqrt %230 : vector<32x1xf32>
      %232 = vector.broadcast %231 : vector<32x1xf32> to vector<32x32xf32>
      %233 = arith.mulf %228, %232 : vector<32x32xf32>
      %234 = vector.broadcast %212 : vector<1x32xf32> to vector<32x32xf32>
      %235 = arith.mulf %233, %234 : vector<32x32xf32>
      %236 = vector.broadcast %213 : vector<1x32xf32> to vector<32x32xf32>
      %237 = arith.addf %235, %236 : vector<32x32xf32>
      %c1_103 = arith.constant 1 : index
      %c0_104 = arith.constant 0 : index
      %c0_105 = arith.constant 0 : index
      %238 = vector.load %arg15[%c1_103, %c0_104, %c0_105] : memref<2x32x128xf32, #tpu.memory_space<vmem>>, vector<1x32x128xf32>
      %239 = vector.shape_cast %238 : vector<1x32x128xf32> to vector<32x128xf32>
      %cst_106 = arith.constant dense<0.000000e+00> : vector<32x128xf32>
      %240 = tpu.matmul %237, %239, %cst_106 {dimension_numbers = #tpu.dot_dimension_numbers<[1], [0], [0], [1], [0, 0, 1, 1], [], []>} : vector<32x32xf32>, vector<32x128xf32>, vector<32x128xf32> -> vector<32x128xf32>
      %c1_107 = arith.constant 1 : index
      %c0_108 = arith.constant 0 : index
      %c0_109 = arith.constant 0 : index
      %241 = vector.load %arg16[%c1_107, %c0_108, %c0_109] : memref<2x1x128xf32, #tpu.memory_space<vmem>>, vector<1x1x128xf32>
      %242 = vector.shape_cast %241 : vector<1x1x128xf32> to vector<1x128xf32>
      %243 = vector.broadcast %242 : vector<1x128xf32> to vector<32x128xf32>
      %244 = arith.addf %240, %243 : vector<32x128xf32>
      %cst_110 = arith.constant 0.000000e+00 : f32
      %245 = vector.broadcast %cst_110 : f32 to vector<32x128xf32>
      %246 = arith.maximumf %244, %245 : vector<32x128xf32>
      %c1_111 = arith.constant 1 : index
      %c0_112 = arith.constant 0 : index
      %c0_113 = arith.constant 0 : index
      %247 = vector.load %arg17[%c1_111, %c0_112, %c0_113] : memref<2x128x32xf32, #tpu.memory_space<vmem>>, vector<1x128x32xf32>
      %248 = vector.shape_cast %247 : vector<1x128x32xf32> to vector<128x32xf32>
      %cst_114 = arith.constant dense<0.000000e+00> : vector<32x32xf32>
      %249 = tpu.matmul %246, %248, %cst_114 {dimension_numbers = #tpu.dot_dimension_numbers<[1], [0], [0], [1], [0, 0, 1, 1], [], []>} : vector<32x128xf32>, vector<128x32xf32>, vector<32x32xf32> -> vector<32x32xf32>
      %250 = vector.extract_strided_slice %160 {offsets = [3, 0], sizes = [1, 32], strides = [1, 1]} : vector<6x32xf32> to vector<1x32xf32>
      %251 = vector.broadcast %250 : vector<1x32xf32> to vector<32x32xf32>
      %252 = arith.addf %249, %251 : vector<32x32xf32>
      %253 = arith.addf %237, %252 : vector<32x32xf32>
      %254 = vector.extract_strided_slice %160 {offsets = [4, 0], sizes = [1, 32], strides = [1, 1]} : vector<6x32xf32> to vector<1x32xf32>
      %255 = vector.extract_strided_slice %160 {offsets = [5, 0], sizes = [1, 32], strides = [1, 1]} : vector<6x32xf32> to vector<1x32xf32>
      %cst_115 = arith.constant dense<0.000000e+00> : vector<32xf32>
      %256 = vector.multi_reduction <add>, %253, %cst_115 [1] : vector<32x32xf32> to vector<32xf32>
      %257 = vector.shape_cast %256 : vector<32xf32> to vector<32x1xf32>
      %cst_116 = arith.constant 3.200000e+01 : f32
      %258 = vector.broadcast %cst_116 : f32 to vector<32x1xf32>
      %259 = arith.divf %257, %258 : vector<32x1xf32>
      %260 = vector.broadcast %259 : vector<32x1xf32> to vector<32x32xf32>
      %261 = arith.subf %253, %260 : vector<32x32xf32>
      %262 = vector.broadcast %259 : vector<32x1xf32> to vector<32x32xf32>
      %263 = arith.subf %253, %262 : vector<32x32xf32>
      %264 = arith.mulf %261, %263 : vector<32x32xf32>
      %cst_117 = arith.constant dense<0.000000e+00> : vector<32xf32>
      %265 = vector.multi_reduction <add>, %264, %cst_117 [1] : vector<32x32xf32> to vector<32xf32>
      %266 = vector.shape_cast %265 : vector<32xf32> to vector<32x1xf32>
      %cst_118 = arith.constant 3.200000e+01 : f32
      %267 = vector.broadcast %cst_118 : f32 to vector<32x1xf32>
      %268 = arith.divf %266, %267 : vector<32x1xf32>
      %269 = vector.broadcast %259 : vector<32x1xf32> to vector<32x32xf32>
      %270 = arith.subf %253, %269 : vector<32x32xf32>
      %cst_119 = arith.constant 9.99999974E-6 : f32
      %271 = vector.broadcast %cst_119 : f32 to vector<32x1xf32>
      %272 = arith.addf %268, %271 : vector<32x1xf32>
      %273 = math.rsqrt %272 : vector<32x1xf32>
      %274 = vector.broadcast %273 : vector<32x1xf32> to vector<32x32xf32>
      %275 = arith.mulf %270, %274 : vector<32x32xf32>
      %276 = vector.broadcast %254 : vector<1x32xf32> to vector<32x32xf32>
      %277 = arith.mulf %275, %276 : vector<32x32xf32>
      %278 = vector.broadcast %255 : vector<1x32xf32> to vector<32x32xf32>
      %279 = arith.addf %277, %278 : vector<32x32xf32>
      %c0_120 = arith.constant 0 : index
      %c0_121 = arith.constant 0 : index
      %280 = vector.load %arg10[%c0_120, %c0_121] : memref<32x1xf32, #tpu.memory_space<vmem>>, vector<32x1xf32>
      %cst_122 = arith.constant dense<0.000000e+00> : vector<32x1xf32>
      %281 = tpu.matmul %279, %280, %cst_122 {dimension_numbers = #tpu.dot_dimension_numbers<[1], [0], [0], [1], [0, 0, 1, 1], [], []>} : vector<32x32xf32>, vector<32x1xf32>, vector<32x1xf32> -> vector<32x1xf32>
      %c0_123 = arith.constant 0 : index
      %c0_124 = arith.constant 0 : index
      %282 = vector.load %arg11[%c0_123, %c0_124] : memref<1x1xf32, #tpu.memory_space<vmem>>, vector<1x1xf32>
      %283 = vector.broadcast %282 : vector<1x1xf32> to vector<32x1xf32>
      %284 = arith.addf %281, %283 : vector<32x1xf32>
      %285 = arith.mulf %284, %284 : vector<32x1xf32>
      %286 = tpu.concatenate %284, %285 in 1 : vector<32x1xf32>, vector<32x1xf32> -> vector<32x2xf32>
      %cst_125 = arith.constant dense<0.000000e+00> : vector<32x2xf32>
      %287 = tpu.matmul %12, %286, %cst_125 {dimension_numbers = #tpu.dot_dimension_numbers<[1], [0], [0], [1], [0, 0, 1, 1], [], []>} : vector<32x32xf32>, vector<32x2xf32>, vector<32x2xf32> -> vector<32x2xf32>
      %cst_126 = arith.constant 2.500000e-01 : f32
      %288 = vector.broadcast %cst_126 : f32 to vector<32x2xf32>
      %289 = arith.mulf %287, %288 : vector<32x2xf32>
      %290 = vector.extract_strided_slice %289 {offsets = [0, 0], sizes = [32, 1], strides = [1, 1]} : vector<32x2xf32> to vector<32x1xf32>
      %291 = vector.extract_strided_slice %289 {offsets = [0, 1], sizes = [32, 1], strides = [1, 1]} : vector<32x2xf32> to vector<32x1xf32>
      %292 = arith.mulf %290, %290 : vector<32x1xf32>
      %293 = arith.subf %291, %292 : vector<32x1xf32>
      %cst_127 = arith.constant 0.000000e+00 : f32
      %294 = vector.broadcast %cst_127 : f32 to vector<32x1xf32>
      %295 = arith.maximumf %293, %294 : vector<32x1xf32>
      %cst_128 = arith.constant 1.33333337 : f32
      %296 = vector.broadcast %cst_128 : f32 to vector<32x1xf32>
      %297 = arith.mulf %295, %296 : vector<32x1xf32>
      %298 = arith.subf %284, %290 : vector<32x1xf32>
      %299 = math.sqrt %297 : vector<32x1xf32>
      %cst_129 = arith.constant 9.99999993E-9 : f32
      %300 = vector.broadcast %cst_129 : f32 to vector<32x1xf32>
      %301 = arith.addf %299, %300 : vector<32x1xf32>
      %302 = arith.divf %298, %301 : vector<32x1xf32>
      %c0_130 = arith.constant 0 : index
      %c0_131 = arith.constant 0 : index
      %303 = vector.load %arg32[%c0_130, %c0_131] : memref<32x8xf32, #tpu.memory_space<vmem>>, vector<32x8xf32>
      %304 = vector.broadcast %302 : vector<32x1xf32> to vector<32x8xf32>
      %305 = vector.broadcast %16 : vector<1x8xf32> to vector<32x8xf32>
      %306 = arith.mulf %304, %305 : vector<32x8xf32>
      %307 = arith.addf %303, %306 : vector<32x8xf32>
      %c0_132 = arith.constant 0 : index
      %c0_133 = arith.constant 0 : index
      %308 = vector.load %arg32[%c0_132, %c0_133] : memref<32x8xf32, #tpu.memory_space<vmem>>, vector<32x8xf32>
      tpu.vector_store %arg32[%c0_132, %c0_133], %307 {strides = array<i32>} : memref<32x8xf32, #tpu.memory_space<vmem>>, vector<32x8xf32>,
      %309 = vector.broadcast %17 : vector<1x8xf32> to vector<32x8xf32>
      %310 = arith.mulf %13, %309 : vector<32x8xf32>
      %311 = arith.addf %307, %310 : vector<32x8xf32>
      %c0_134 = arith.constant 0 : index
      %c0_135 = arith.constant 0 : index
      %312 = vector.load %arg30[%c0_134, %c0_135] : memref<32x8xf32, #tpu.memory_space<vmem>>, vector<32x8xf32>
      %313 = tpu.concatenate %311, %312 in 1 : vector<32x8xf32>, vector<32x8xf32> -> vector<32x16xf32>
      %c0_136 = arith.constant 0 : index
      %c0_137 = arith.constant 0 : index
      %314 = vector.load %arg34[%c0_136, %c0_137] : memref<32x16xf32, #tpu.memory_space<vmem>>, vector<32x16xf32>
      %315 = vector.shape_cast %9 : vector<32x1xi1> to vector<32x1xi1>
      %316 = vector.broadcast %315 : vector<32x1xi1> to vector<32x16xi1>
      %317 = arith.select %316, %314, %313 : vector<32x16xi1>, vector<32x16xf32>
      %c0_138 = arith.constant 0 : index
      %c0_139 = arith.constant 0 : index
      %318 = vector.load %arg34[%c0_138, %c0_139] : memref<32x16xf32, #tpu.memory_space<vmem>>, vector<32x16xf32>
      tpu.vector_store %arg34[%c0_138, %c0_139], %317 {strides = array<i32>} : memref<32x16xf32, #tpu.memory_space<vmem>>, vector<32x16xf32>,
      %c0_140 = arith.constant 0 : index
      %c0_141 = arith.constant 0 : index
      %319 = vector.load %arg19[%c0_140, %c0_141] : memref<16x32xf32, #tpu.memory_space<vmem>>, vector<16x32xf32>
      %cst_142 = arith.constant dense<0.000000e+00> : vector<32x32xf32>
      %320 = tpu.matmul %317, %319, %cst_142 {dimension_numbers = #tpu.dot_dimension_numbers<[1], [0], [0], [1], [0, 0, 1, 1], [], []>} : vector<32x16xf32>, vector<16x32xf32>, vector<32x32xf32> -> vector<32x32xf32>
      %c0_143 = arith.constant 0 : index
      %c0_144 = arith.constant 0 : index
      %321 = vector.load %arg20[%c0_143, %c0_144] : memref<1x32xf32, #tpu.memory_space<vmem>>, vector<1x32xf32>
      %322 = vector.broadcast %321 : vector<1x32xf32> to vector<32x32xf32>
      %323 = arith.addf %320, %322 : vector<32x32xf32>
      %cst_145 = arith.constant 5.65685415 : f32
      %324 = vector.broadcast %cst_145 : f32 to vector<32x32xf32>
      %325 = arith.mulf %323, %324 : vector<32x32xf32>
      %326 = arith.addf %325, %10 : vector<32x32xf32>
      %c0_146 = arith.constant 0 : index
      %c0_147 = arith.constant 0 : index
      %c0_148 = arith.constant 0 : index
      %327 = vector.load %arg29[%c0_146, %c0_147, %c0_148] : memref<3x6x32xf32, #tpu.memory_space<vmem>>, vector<1x6x32xf32>
      %328 = vector.shape_cast %327 : vector<1x6x32xf32> to vector<6x32xf32>
      %c0_149 = arith.constant 0 : index
      %c0_150 = arith.constant 0 : index
      %c0_151 = arith.constant 0 : index
      %329 = vector.load %arg23[%c0_149, %c0_150, %c0_151] : memref<3x32x96xf32, #tpu.memory_space<vmem>>, vector<1x32x96xf32>
      %330 = vector.shape_cast %329 : vector<1x32x96xf32> to vector<32x96xf32>
      %cst_152 = arith.constant dense<0.000000e+00> : vector<32x96xf32>
      %331 = tpu.matmul %326, %330, %cst_152 {dimension_numbers = #tpu.dot_dimension_numbers<[1], [0], [0], [1], [0, 0, 1, 1], [], []>} : vector<32x32xf32>, vector<32x96xf32>, vector<32x96xf32> -> vector<32x96xf32>
      %c0_153 = arith.constant 0 : index
      %c0_154 = arith.constant 0 : index
      %c0_155 = arith.constant 0 : index
      %332 = vector.load %arg24[%c0_153, %c0_154, %c0_155] : memref<3x1x96xf32, #tpu.memory_space<vmem>>, vector<1x1x96xf32>
      %333 = vector.shape_cast %332 : vector<1x1x96xf32> to vector<1x96xf32>
      %334 = vector.broadcast %333 : vector<1x96xf32> to vector<32x96xf32>
      %335 = arith.addf %331, %334 : vector<32x96xf32>
      %336 = vector.extract_strided_slice %335 {offsets = [0, 0], sizes = [32, 16], strides = [1, 1]} : vector<32x96xf32> to vector<32x16xf32>
      %337 = vector.extract_strided_slice %335 {offsets = [0, 32], sizes = [32, 16], strides = [1, 1]} : vector<32x96xf32> to vector<32x16xf32>
      %338 = vector.extract_strided_slice %335 {offsets = [0, 64], sizes = [32, 16], strides = [1, 1]} : vector<32x96xf32> to vector<32x16xf32>
      %cst_156 = arith.constant dense<0.000000e+00> : vector<32x32xf32>
      %339 = tpu.matmul %336, %337, %cst_156 {dimension_numbers = #tpu.dot_dimension_numbers<[1], [1], [0], [0], [0, 0, 1, 0], [], []>} : vector<32x16xf32>, vector<32x16xf32>, vector<32x32xf32> -> vector<32x32xf32>
      %cst_157 = arith.constant 2.500000e-01 : f32
      %340 = vector.broadcast %cst_157 : f32 to vector<32x32xf32>
      %341 = arith.mulf %339, %340 : vector<32x32xf32>
      %342 = arith.addf %341, %11 : vector<32x32xf32>
      %cst_158 = arith.constant dense<0xFF800000> : vector<32xf32>
      %343 = vector.multi_reduction <maximumf>, %342, %cst_158 [1] : vector<32x32xf32> to vector<32xf32>
      %344 = vector.shape_cast %343 : vector<32xf32> to vector<32x1xf32>
      %345 = vector.broadcast %344 : vector<32x1xf32> to vector<32x32xf32>
      %346 = arith.subf %342, %345 : vector<32x32xf32>
      %347 = math.exp %346 : vector<32x32xf32>
      %cst_159 = arith.constant dense<0.000000e+00> : vector<32xf32>
      %348 = vector.multi_reduction <add>, %347, %cst_159 [1] : vector<32x32xf32> to vector<32xf32>
      %349 = vector.shape_cast %348 : vector<32xf32> to vector<32x1xf32>
      %350 = tpu.reciprocal %349 {approx = true} : vector<32x1xf32> -> vector<32x1xf32>
      %351 = vector.broadcast %350 : vector<32x1xf32> to vector<32x32xf32>
      %352 = arith.mulf %347, %351 : vector<32x32xf32>
      %cst_160 = arith.constant dense<0.000000e+00> : vector<32x16xf32>
      %353 = tpu.matmul %352, %338, %cst_160 {dimension_numbers = #tpu.dot_dimension_numbers<[1], [0], [0], [1], [0, 0, 1, 1], [], []>} : vector<32x32xf32>, vector<32x16xf32>, vector<32x16xf32> -> vector<32x16xf32>
      %354 = vector.extract_strided_slice %335 {offsets = [0, 16], sizes = [32, 16], strides = [1, 1]} : vector<32x96xf32> to vector<32x16xf32>
      %355 = vector.extract_strided_slice %335 {offsets = [0, 48], sizes = [32, 16], strides = [1, 1]} : vector<32x96xf32> to vector<32x16xf32>
      %356 = vector.extract_strided_slice %335 {offsets = [0, 80], sizes = [32, 16], strides = [1, 1]} : vector<32x96xf32> to vector<32x16xf32>
      %cst_161 = arith.constant dense<0.000000e+00> : vector<32x32xf32>
      %357 = tpu.matmul %354, %355, %cst_161 {dimension_numbers = #tpu.dot_dimension_numbers<[1], [1], [0], [0], [0, 0, 1, 0], [], []>} : vector<32x16xf32>, vector<32x16xf32>, vector<32x32xf32> -> vector<32x32xf32>
      %cst_162 = arith.constant 2.500000e-01 : f32
      %358 = vector.broadcast %cst_162 : f32 to vector<32x32xf32>
      %359 = arith.mulf %357, %358 : vector<32x32xf32>
      %360 = arith.addf %359, %11 : vector<32x32xf32>
      %cst_163 = arith.constant dense<0xFF800000> : vector<32xf32>
      %361 = vector.multi_reduction <maximumf>, %360, %cst_163 [1] : vector<32x32xf32> to vector<32xf32>
      %362 = vector.shape_cast %361 : vector<32xf32> to vector<32x1xf32>
      %363 = vector.broadcast %362 : vector<32x1xf32> to vector<32x32xf32>
      %364 = arith.subf %360, %363 : vector<32x32xf32>
      %365 = math.exp %364 : vector<32x32xf32>
      %cst_164 = arith.constant dense<0.000000e+00> : vector<32xf32>
      %366 = vector.multi_reduction <add>, %365, %cst_164 [1] : vector<32x32xf32> to vector<32xf32>
      %367 = vector.shape_cast %366 : vector<32xf32> to vector<32x1xf32>
      %368 = tpu.reciprocal %367 {approx = true} : vector<32x1xf32> -> vector<32x1xf32>
      %369 = vector.broadcast %368 : vector<32x1xf32> to vector<32x32xf32>
      %370 = arith.mulf %365, %369 : vector<32x32xf32>
      %cst_165 = arith.constant dense<0.000000e+00> : vector<32x16xf32>
      %371 = tpu.matmul %370, %356, %cst_165 {dimension_numbers = #tpu.dot_dimension_numbers<[1], [0], [0], [1], [0, 0, 1, 1], [], []>} : vector<32x32xf32>, vector<32x16xf32>, vector<32x16xf32> -> vector<32x16xf32>
      %372 = tpu.concatenate %353, %371 in 1 : vector<32x16xf32>, vector<32x16xf32> -> vector<32x32xf32>
      %c0_166 = arith.constant 0 : index
      %c0_167 = arith.constant 0 : index
      %c0_168 = arith.constant 0 : index
      %373 = vector.load %arg25[%c0_166, %c0_167, %c0_168] : memref<3x32x32xf32, #tpu.memory_space<vmem>>, vector<1x32x32xf32>
      %374 = vector.shape_cast %373 : vector<1x32x32xf32> to vector<32x32xf32>
      %cst_169 = arith.constant dense<0.000000e+00> : vector<32x32xf32>
      %375 = tpu.matmul %372, %374, %cst_169 {dimension_numbers = #tpu.dot_dimension_numbers<[1], [0], [0], [1], [0, 0, 1, 1], [], []>} : vector<32x32xf32>, vector<32x32xf32>, vector<32x32xf32> -> vector<32x32xf32>
      %376 = vector.extract_strided_slice %328 {offsets = [0, 0], sizes = [1, 32], strides = [1, 1]} : vector<6x32xf32> to vector<1x32xf32>
      %377 = vector.broadcast %376 : vector<1x32xf32> to vector<32x32xf32>
      %378 = arith.addf %375, %377 : vector<32x32xf32>
      %379 = arith.addf %326, %378 : vector<32x32xf32>
      %380 = vector.extract_strided_slice %328 {offsets = [1, 0], sizes = [1, 32], strides = [1, 1]} : vector<6x32xf32> to vector<1x32xf32>
      %381 = vector.extract_strided_slice %328 {offsets = [2, 0], sizes = [1, 32], strides = [1, 1]} : vector<6x32xf32> to vector<1x32xf32>
      %cst_170 = arith.constant dense<0.000000e+00> : vector<32xf32>
      %382 = vector.multi_reduction <add>, %379, %cst_170 [1] : vector<32x32xf32> to vector<32xf32>
      %383 = vector.shape_cast %382 : vector<32xf32> to vector<32x1xf32>
      %cst_171 = arith.constant 3.200000e+01 : f32
      %384 = vector.broadcast %cst_171 : f32 to vector<32x1xf32>
      %385 = arith.divf %383, %384 : vector<32x1xf32>
      %386 = vector.broadcast %385 : vector<32x1xf32> to vector<32x32xf32>
      %387 = arith.subf %379, %386 : vector<32x32xf32>
      %388 = vector.broadcast %385 : vector<32x1xf32> to vector<32x32xf32>
      %389 = arith.subf %379, %388 : vector<32x32xf32>
      %390 = arith.mulf %387, %389 : vector<32x32xf32>
      %cst_172 = arith.constant dense<0.000000e+00> : vector<32xf32>
      %391 = vector.multi_reduction <add>, %390, %cst_172 [1] : vector<32x32xf32> to vector<32xf32>
      %392 = vector.shape_cast %391 : vector<32xf32> to vector<32x1xf32>
      %cst_173 = arith.constant 3.200000e+01 : f32
      %393 = vector.broadcast %cst_173 : f32 to vector<32x1xf32>
      %394 = arith.divf %392, %393 : vector<32x1xf32>
      %395 = vector.broadcast %385 : vector<32x1xf32> to vector<32x32xf32>
      %396 = arith.subf %379, %395 : vector<32x32xf32>
      %cst_174 = arith.constant 9.99999974E-6 : f32
      %397 = vector.broadcast %cst_174 : f32 to vector<32x1xf32>
      %398 = arith.addf %394, %397 : vector<32x1xf32>
      %399 = math.rsqrt %398 : vector<32x1xf32>
      %400 = vector.broadcast %399 : vector<32x1xf32> to vector<32x32xf32>
      %401 = arith.mulf %396, %400 : vector<32x32xf32>
      %402 = vector.broadcast %380 : vector<1x32xf32> to vector<32x32xf32>
      %403 = arith.mulf %401, %402 : vector<32x32xf32>
      %404 = vector.broadcast %381 : vector<1x32xf32> to vector<32x32xf32>
      %405 = arith.addf %403, %404 : vector<32x32xf32>
      %c0_175 = arith.constant 0 : index
      %c0_176 = arith.constant 0 : index
      %c0_177 = arith.constant 0 : index
      %406 = vector.load %arg26[%c0_175, %c0_176, %c0_177] : memref<3x32x128xf32, #tpu.memory_space<vmem>>, vector<1x32x128xf32>
      %407 = vector.shape_cast %406 : vector<1x32x128xf32> to vector<32x128xf32>
      %cst_178 = arith.constant dense<0.000000e+00> : vector<32x128xf32>
      %408 = tpu.matmul %405, %407, %cst_178 {dimension_numbers = #tpu.dot_dimension_numbers<[1], [0], [0], [1], [0, 0, 1, 1], [], []>} : vector<32x32xf32>, vector<32x128xf32>, vector<32x128xf32> -> vector<32x128xf32>
      %c0_179 = arith.constant 0 : index
      %c0_180 = arith.constant 0 : index
      %c0_181 = arith.constant 0 : index
      %409 = vector.load %arg27[%c0_179, %c0_180, %c0_181] : memref<3x1x128xf32, #tpu.memory_space<vmem>>, vector<1x1x128xf32>
      %410 = vector.shape_cast %409 : vector<1x1x128xf32> to vector<1x128xf32>
      %411 = vector.broadcast %410 : vector<1x128xf32> to vector<32x128xf32>
      %412 = arith.addf %408, %411 : vector<32x128xf32>
      %cst_182 = arith.constant 0.000000e+00 : f32
      %413 = vector.broadcast %cst_182 : f32 to vector<32x128xf32>
      %414 = arith.maximumf %412, %413 : vector<32x128xf32>
      %c0_183 = arith.constant 0 : index
      %c0_184 = arith.constant 0 : index
      %c0_185 = arith.constant 0 : index
      %415 = vector.load %arg28[%c0_183, %c0_184, %c0_185] : memref<3x128x32xf32, #tpu.memory_space<vmem>>, vector<1x128x32xf32>
      %416 = vector.shape_cast %415 : vector<1x128x32xf32> to vector<128x32xf32>
      %cst_186 = arith.constant dense<0.000000e+00> : vector<32x32xf32>
      %417 = tpu.matmul %414, %416, %cst_186 {dimension_numbers = #tpu.dot_dimension_numbers<[1], [0], [0], [1], [0, 0, 1, 1], [], []>} : vector<32x128xf32>, vector<128x32xf32>, vector<32x32xf32> -> vector<32x32xf32>
      %418 = vector.extract_strided_slice %328 {offsets = [3, 0], sizes = [1, 32], strides = [1, 1]} : vector<6x32xf32> to vector<1x32xf32>
      %419 = vector.broadcast %418 : vector<1x32xf32> to vector<32x32xf32>
      %420 = arith.addf %417, %419 : vector<32x32xf32>
      %421 = arith.addf %405, %420 : vector<32x32xf32>
      %422 = vector.extract_strided_slice %328 {offsets = [4, 0], sizes = [1, 32], strides = [1, 1]} : vector<6x32xf32> to vector<1x32xf32>
      %423 = vector.extract_strided_slice %328 {offsets = [5, 0], sizes = [1, 32], strides = [1, 1]} : vector<6x32xf32> to vector<1x32xf32>
      %cst_187 = arith.constant dense<0.000000e+00> : vector<32xf32>
      %424 = vector.multi_reduction <add>, %421, %cst_187 [1] : vector<32x32xf32> to vector<32xf32>
      %425 = vector.shape_cast %424 : vector<32xf32> to vector<32x1xf32>
      %cst_188 = arith.constant 3.200000e+01 : f32
      %426 = vector.broadcast %cst_188 : f32 to vector<32x1xf32>
      %427 = arith.divf %425, %426 : vector<32x1xf32>
      %428 = vector.broadcast %427 : vector<32x1xf32> to vector<32x32xf32>
      %429 = arith.subf %421, %428 : vector<32x32xf32>
      %430 = vector.broadcast %427 : vector<32x1xf32> to vector<32x32xf32>
      %431 = arith.subf %421, %430 : vector<32x32xf32>
      %432 = arith.mulf %429, %431 : vector<32x32xf32>
      %cst_189 = arith.constant dense<0.000000e+00> : vector<32xf32>
      %433 = vector.multi_reduction <add>, %432, %cst_189 [1] : vector<32x32xf32> to vector<32xf32>
      %434 = vector.shape_cast %433 : vector<32xf32> to vector<32x1xf32>
      %cst_190 = arith.constant 3.200000e+01 : f32
      %435 = vector.broadcast %cst_190 : f32 to vector<32x1xf32>
      %436 = arith.divf %434, %435 : vector<32x1xf32>
      %437 = vector.broadcast %427 : vector<32x1xf32> to vector<32x32xf32>
      %438 = arith.subf %421, %437 : vector<32x32xf32>
      %cst_191 = arith.constant 9.99999974E-6 : f32
      %439 = vector.broadcast %cst_191 : f32 to vector<32x1xf32>
      %440 = arith.addf %436, %439 : vector<32x1xf32>
      %441 = math.rsqrt %440 : vector<32x1xf32>
      %442 = vector.broadcast %441 : vector<32x1xf32> to vector<32x32xf32>
      %443 = arith.mulf %438, %442 : vector<32x32xf32>
      %444 = vector.broadcast %422 : vector<1x32xf32> to vector<32x32xf32>
      %445 = arith.mulf %443, %444 : vector<32x32xf32>
      %446 = vector.broadcast %423 : vector<1x32xf32> to vector<32x32xf32>
      %447 = arith.addf %445, %446 : vector<32x32xf32>
      %c1_192 = arith.constant 1 : index
      %c0_193 = arith.constant 0 : index
      %c0_194 = arith.constant 0 : index
      %448 = vector.load %arg29[%c1_192, %c0_193, %c0_194] : memref<3x6x32xf32, #tpu.memory_space<vmem>>, vector<1x6x32xf32>
      %449 = vector.shape_cast %448 : vector<1x6x32xf32> to vector<6x32xf32>
      %c1_195 = arith.constant 1 : index
      %c0_196 = arith.constant 0 : index
      %c0_197 = arith.constant 0 : index
      %450 = vector.load %arg23[%c1_195, %c0_196, %c0_197] : memref<3x32x96xf32, #tpu.memory_space<vmem>>, vector<1x32x96xf32>
      %451 = vector.shape_cast %450 : vector<1x32x96xf32> to vector<32x96xf32>
      %cst_198 = arith.constant dense<0.000000e+00> : vector<32x96xf32>
      %452 = tpu.matmul %447, %451, %cst_198 {dimension_numbers = #tpu.dot_dimension_numbers<[1], [0], [0], [1], [0, 0, 1, 1], [], []>} : vector<32x32xf32>, vector<32x96xf32>, vector<32x96xf32> -> vector<32x96xf32>
      %c1_199 = arith.constant 1 : index
      %c0_200 = arith.constant 0 : index
      %c0_201 = arith.constant 0 : index
      %453 = vector.load %arg24[%c1_199, %c0_200, %c0_201] : memref<3x1x96xf32, #tpu.memory_space<vmem>>, vector<1x1x96xf32>
      %454 = vector.shape_cast %453 : vector<1x1x96xf32> to vector<1x96xf32>
      %455 = vector.broadcast %454 : vector<1x96xf32> to vector<32x96xf32>
      %456 = arith.addf %452, %455 : vector<32x96xf32>
      %457 = vector.extract_strided_slice %456 {offsets = [0, 0], sizes = [32, 16], strides = [1, 1]} : vector<32x96xf32> to vector<32x16xf32>
      %458 = vector.extract_strided_slice %456 {offsets = [0, 32], sizes = [32, 16], strides = [1, 1]} : vector<32x96xf32> to vector<32x16xf32>
      %459 = vector.extract_strided_slice %456 {offsets = [0, 64], sizes = [32, 16], strides = [1, 1]} : vector<32x96xf32> to vector<32x16xf32>
      %cst_202 = arith.constant dense<0.000000e+00> : vector<32x32xf32>
      %460 = tpu.matmul %457, %458, %cst_202 {dimension_numbers = #tpu.dot_dimension_numbers<[1], [1], [0], [0], [0, 0, 1, 0], [], []>} : vector<32x16xf32>, vector<32x16xf32>, vector<32x32xf32> -> vector<32x32xf32>
      %cst_203 = arith.constant 2.500000e-01 : f32
      %461 = vector.broadcast %cst_203 : f32 to vector<32x32xf32>
      %462 = arith.mulf %460, %461 : vector<32x32xf32>
      %463 = arith.addf %462, %11 : vector<32x32xf32>
      %cst_204 = arith.constant dense<0xFF800000> : vector<32xf32>
      %464 = vector.multi_reduction <maximumf>, %463, %cst_204 [1] : vector<32x32xf32> to vector<32xf32>
      %465 = vector.shape_cast %464 : vector<32xf32> to vector<32x1xf32>
      %466 = vector.broadcast %465 : vector<32x1xf32> to vector<32x32xf32>
      %467 = arith.subf %463, %466 : vector<32x32xf32>
      %468 = math.exp %467 : vector<32x32xf32>
      %cst_205 = arith.constant dense<0.000000e+00> : vector<32xf32>
      %469 = vector.multi_reduction <add>, %468, %cst_205 [1] : vector<32x32xf32> to vector<32xf32>
      %470 = vector.shape_cast %469 : vector<32xf32> to vector<32x1xf32>
      %471 = tpu.reciprocal %470 {approx = true} : vector<32x1xf32> -> vector<32x1xf32>
      %472 = vector.broadcast %471 : vector<32x1xf32> to vector<32x32xf32>
      %473 = arith.mulf %468, %472 : vector<32x32xf32>
      %cst_206 = arith.constant dense<0.000000e+00> : vector<32x16xf32>
      %474 = tpu.matmul %473, %459, %cst_206 {dimension_numbers = #tpu.dot_dimension_numbers<[1], [0], [0], [1], [0, 0, 1, 1], [], []>} : vector<32x32xf32>, vector<32x16xf32>, vector<32x16xf32> -> vector<32x16xf32>
      %475 = vector.extract_strided_slice %456 {offsets = [0, 16], sizes = [32, 16], strides = [1, 1]} : vector<32x96xf32> to vector<32x16xf32>
      %476 = vector.extract_strided_slice %456 {offsets = [0, 48], sizes = [32, 16], strides = [1, 1]} : vector<32x96xf32> to vector<32x16xf32>
      %477 = vector.extract_strided_slice %456 {offsets = [0, 80], sizes = [32, 16], strides = [1, 1]} : vector<32x96xf32> to vector<32x16xf32>
      %cst_207 = arith.constant dense<0.000000e+00> : vector<32x32xf32>
      %478 = tpu.matmul %475, %476, %cst_207 {dimension_numbers = #tpu.dot_dimension_numbers<[1], [1], [0], [0], [0, 0, 1, 0], [], []>} : vector<32x16xf32>, vector<32x16xf32>, vector<32x32xf32> -> vector<32x32xf32>
      %cst_208 = arith.constant 2.500000e-01 : f32
      %479 = vector.broadcast %cst_208 : f32 to vector<32x32xf32>
      %480 = arith.mulf %478, %479 : vector<32x32xf32>
      %481 = arith.addf %480, %11 : vector<32x32xf32>
      %cst_209 = arith.constant dense<0xFF800000> : vector<32xf32>
      %482 = vector.multi_reduction <maximumf>, %481, %cst_209 [1] : vector<32x32xf32> to vector<32xf32>
      %483 = vector.shape_cast %482 : vector<32xf32> to vector<32x1xf32>
      %484 = vector.broadcast %483 : vector<32x1xf32> to vector<32x32xf32>
      %485 = arith.subf %481, %484 : vector<32x32xf32>
      %486 = math.exp %485 : vector<32x32xf32>
      %cst_210 = arith.constant dense<0.000000e+00> : vector<32xf32>
      %487 = vector.multi_reduction <add>, %486, %cst_210 [1] : vector<32x32xf32> to vector<32xf32>
      %488 = vector.shape_cast %487 : vector<32xf32> to vector<32x1xf32>
      %489 = tpu.reciprocal %488 {approx = true} : vector<32x1xf32> -> vector<32x1xf32>
      %490 = vector.broadcast %489 : vector<32x1xf32> to vector<32x32xf32>
      %491 = arith.mulf %486, %490 : vector<32x32xf32>
      %cst_211 = arith.constant dense<0.000000e+00> : vector<32x16xf32>
      %492 = tpu.matmul %491, %477, %cst_211 {dimension_numbers = #tpu.dot_dimension_numbers<[1], [0], [0], [1], [0, 0, 1, 1], [], []>} : vector<32x32xf32>, vector<32x16xf32>, vector<32x16xf32> -> vector<32x16xf32>
      %493 = tpu.concatenate %474, %492 in 1 : vector<32x16xf32>, vector<32x16xf32> -> vector<32x32xf32>
      %c1_212 = arith.constant 1 : index
      %c0_213 = arith.constant 0 : index
      %c0_214 = arith.constant 0 : index
      %494 = vector.load %arg25[%c1_212, %c0_213, %c0_214] : memref<3x32x32xf32, #tpu.memory_space<vmem>>, vector<1x32x32xf32>
      %495 = vector.shape_cast %494 : vector<1x32x32xf32> to vector<32x32xf32>
      %cst_215 = arith.constant dense<0.000000e+00> : vector<32x32xf32>
      %496 = tpu.matmul %493, %495, %cst_215 {dimension_numbers = #tpu.dot_dimension_numbers<[1], [0], [0], [1], [0, 0, 1, 1], [], []>} : vector<32x32xf32>, vector<32x32xf32>, vector<32x32xf32> -> vector<32x32xf32>
      %497 = vector.extract_strided_slice %449 {offsets = [0, 0], sizes = [1, 32], strides = [1, 1]} : vector<6x32xf32> to vector<1x32xf32>
      %498 = vector.broadcast %497 : vector<1x32xf32> to vector<32x32xf32>
      %499 = arith.addf %496, %498 : vector<32x32xf32>
      %500 = arith.addf %447, %499 : vector<32x32xf32>
      %501 = vector.extract_strided_slice %449 {offsets = [1, 0], sizes = [1, 32], strides = [1, 1]} : vector<6x32xf32> to vector<1x32xf32>
      %502 = vector.extract_strided_slice %449 {offsets = [2, 0], sizes = [1, 32], strides = [1, 1]} : vector<6x32xf32> to vector<1x32xf32>
      %cst_216 = arith.constant dense<0.000000e+00> : vector<32xf32>
      %503 = vector.multi_reduction <add>, %500, %cst_216 [1] : vector<32x32xf32> to vector<32xf32>
      %504 = vector.shape_cast %503 : vector<32xf32> to vector<32x1xf32>
      %cst_217 = arith.constant 3.200000e+01 : f32
      %505 = vector.broadcast %cst_217 : f32 to vector<32x1xf32>
      %506 = arith.divf %504, %505 : vector<32x1xf32>
      %507 = vector.broadcast %506 : vector<32x1xf32> to vector<32x32xf32>
      %508 = arith.subf %500, %507 : vector<32x32xf32>
      %509 = vector.broadcast %506 : vector<32x1xf32> to vector<32x32xf32>
      %510 = arith.subf %500, %509 : vector<32x32xf32>
      %511 = arith.mulf %508, %510 : vector<32x32xf32>
      %cst_218 = arith.constant dense<0.000000e+00> : vector<32xf32>
      %512 = vector.multi_reduction <add>, %511, %cst_218 [1] : vector<32x32xf32> to vector<32xf32>
      %513 = vector.shape_cast %512 : vector<32xf32> to vector<32x1xf32>
      %cst_219 = arith.constant 3.200000e+01 : f32
      %514 = vector.broadcast %cst_219 : f32 to vector<32x1xf32>
      %515 = arith.divf %513, %514 : vector<32x1xf32>
      %516 = vector.broadcast %506 : vector<32x1xf32> to vector<32x32xf32>
      %517 = arith.subf %500, %516 : vector<32x32xf32>
      %cst_220 = arith.constant 9.99999974E-6 : f32
      %518 = vector.broadcast %cst_220 : f32 to vector<32x1xf32>
      %519 = arith.addf %515, %518 : vector<32x1xf32>
      %520 = math.rsqrt %519 : vector<32x1xf32>
      %521 = vector.broadcast %520 : vector<32x1xf32> to vector<32x32xf32>
      %522 = arith.mulf %517, %521 : vector<32x32xf32>
      %523 = vector.broadcast %501 : vector<1x32xf32> to vector<32x32xf32>
      %524 = arith.mulf %522, %523 : vector<32x32xf32>
      %525 = vector.broadcast %502 : vector<1x32xf32> to vector<32x32xf32>
      %526 = arith.addf %524, %525 : vector<32x32xf32>
      %c1_221 = arith.constant 1 : index
      %c0_222 = arith.constant 0 : index
      %c0_223 = arith.constant 0 : index
      %527 = vector.load %arg26[%c1_221, %c0_222, %c0_223] : memref<3x32x128xf32, #tpu.memory_space<vmem>>, vector<1x32x128xf32>
      %528 = vector.shape_cast %527 : vector<1x32x128xf32> to vector<32x128xf32>
      %cst_224 = arith.constant dense<0.000000e+00> : vector<32x128xf32>
      %529 = tpu.matmul %526, %528, %cst_224 {dimension_numbers = #tpu.dot_dimension_numbers<[1], [0], [0], [1], [0, 0, 1, 1], [], []>} : vector<32x32xf32>, vector<32x128xf32>, vector<32x128xf32> -> vector<32x128xf32>
      %c1_225 = arith.constant 1 : index
      %c0_226 = arith.constant 0 : index
      %c0_227 = arith.constant 0 : index
      %530 = vector.load %arg27[%c1_225, %c0_226, %c0_227] : memref<3x1x128xf32, #tpu.memory_space<vmem>>, vector<1x1x128xf32>
      %531 = vector.shape_cast %530 : vector<1x1x128xf32> to vector<1x128xf32>
      %532 = vector.broadcast %531 : vector<1x128xf32> to vector<32x128xf32>
      %533 = arith.addf %529, %532 : vector<32x128xf32>
      %cst_228 = arith.constant 0.000000e+00 : f32
      %534 = vector.broadcast %cst_228 : f32 to vector<32x128xf32>
      %535 = arith.maximumf %533, %534 : vector<32x128xf32>
      %c1_229 = arith.constant 1 : index
      %c0_230 = arith.constant 0 : index
      %c0_231 = arith.constant 0 : index
      %536 = vector.load %arg28[%c1_229, %c0_230, %c0_231] : memref<3x128x32xf32, #tpu.memory_space<vmem>>, vector<1x128x32xf32>
      %537 = vector.shape_cast %536 : vector<1x128x32xf32> to vector<128x32xf32>
      %cst_232 = arith.constant dense<0.000000e+00> : vector<32x32xf32>
      %538 = tpu.matmul %535, %537, %cst_232 {dimension_numbers = #tpu.dot_dimension_numbers<[1], [0], [0], [1], [0, 0, 1, 1], [], []>} : vector<32x128xf32>, vector<128x32xf32>, vector<32x32xf32> -> vector<32x32xf32>
      %539 = vector.extract_strided_slice %449 {offsets = [3, 0], sizes = [1, 32], strides = [1, 1]} : vector<6x32xf32> to vector<1x32xf32>
      %540 = vector.broadcast %539 : vector<1x32xf32> to vector<32x32xf32>
      %541 = arith.addf %538, %540 : vector<32x32xf32>
      %542 = arith.addf %526, %541 : vector<32x32xf32>
      %543 = vector.extract_strided_slice %449 {offsets = [4, 0], sizes = [1, 32], strides = [1, 1]} : vector<6x32xf32> to vector<1x32xf32>
      %544 = vector.extract_strided_slice %449 {offsets = [5, 0], sizes = [1, 32], strides = [1, 1]} : vector<6x32xf32> to vector<1x32xf32>
      %cst_233 = arith.constant dense<0.000000e+00> : vector<32xf32>
      %545 = vector.multi_reduction <add>, %542, %cst_233 [1] : vector<32x32xf32> to vector<32xf32>
      %546 = vector.shape_cast %545 : vector<32xf32> to vector<32x1xf32>
      %cst_234 = arith.constant 3.200000e+01 : f32
      %547 = vector.broadcast %cst_234 : f32 to vector<32x1xf32>
      %548 = arith.divf %546, %547 : vector<32x1xf32>
      %549 = vector.broadcast %548 : vector<32x1xf32> to vector<32x32xf32>
      %550 = arith.subf %542, %549 : vector<32x32xf32>
      %551 = vector.broadcast %548 : vector<32x1xf32> to vector<32x32xf32>
      %552 = arith.subf %542, %551 : vector<32x32xf32>
      %553 = arith.mulf %550, %552 : vector<32x32xf32>
      %cst_235 = arith.constant dense<0.000000e+00> : vector<32xf32>
      %554 = vector.multi_reduction <add>, %553, %cst_235 [1] : vector<32x32xf32> to vector<32xf32>
      %555 = vector.shape_cast %554 : vector<32xf32> to vector<32x1xf32>
      %cst_236 = arith.constant 3.200000e+01 : f32
      %556 = vector.broadcast %cst_236 : f32 to vector<32x1xf32>
      %557 = arith.divf %555, %556 : vector<32x1xf32>
      %558 = vector.broadcast %548 : vector<32x1xf32> to vector<32x32xf32>
      %559 = arith.subf %542, %558 : vector<32x32xf32>
      %cst_237 = arith.constant 9.99999974E-6 : f32
      %560 = vector.broadcast %cst_237 : f32 to vector<32x1xf32>
      %561 = arith.addf %557, %560 : vector<32x1xf32>
      %562 = math.rsqrt %561 : vector<32x1xf32>
      %563 = vector.broadcast %562 : vector<32x1xf32> to vector<32x32xf32>
      %564 = arith.mulf %559, %563 : vector<32x32xf32>
      %565 = vector.broadcast %543 : vector<1x32xf32> to vector<32x32xf32>
      %566 = arith.mulf %564, %565 : vector<32x32xf32>
      %567 = vector.broadcast %544 : vector<1x32xf32> to vector<32x32xf32>
      %568 = arith.addf %566, %567 : vector<32x32xf32>
      %c2 = arith.constant 2 : index
      %c0_238 = arith.constant 0 : index
      %c0_239 = arith.constant 0 : index
      %569 = vector.load %arg29[%c2, %c0_238, %c0_239] : memref<3x6x32xf32, #tpu.memory_space<vmem>>, vector<1x6x32xf32>
      %570 = vector.shape_cast %569 : vector<1x6x32xf32> to vector<6x32xf32>
      %c2_240 = arith.constant 2 : index
      %c0_241 = arith.constant 0 : index
      %c0_242 = arith.constant 0 : index
      %571 = vector.load %arg23[%c2_240, %c0_241, %c0_242] : memref<3x32x96xf32, #tpu.memory_space<vmem>>, vector<1x32x96xf32>
      %572 = vector.shape_cast %571 : vector<1x32x96xf32> to vector<32x96xf32>
      %cst_243 = arith.constant dense<0.000000e+00> : vector<32x96xf32>
      %573 = tpu.matmul %568, %572, %cst_243 {dimension_numbers = #tpu.dot_dimension_numbers<[1], [0], [0], [1], [0, 0, 1, 1], [], []>} : vector<32x32xf32>, vector<32x96xf32>, vector<32x96xf32> -> vector<32x96xf32>
      %c2_244 = arith.constant 2 : index
      %c0_245 = arith.constant 0 : index
      %c0_246 = arith.constant 0 : index
      %574 = vector.load %arg24[%c2_244, %c0_245, %c0_246] : memref<3x1x96xf32, #tpu.memory_space<vmem>>, vector<1x1x96xf32>
      %575 = vector.shape_cast %574 : vector<1x1x96xf32> to vector<1x96xf32>
      %576 = vector.broadcast %575 : vector<1x96xf32> to vector<32x96xf32>
      %577 = arith.addf %573, %576 : vector<32x96xf32>
      %578 = vector.extract_strided_slice %577 {offsets = [0, 0], sizes = [32, 16], strides = [1, 1]} : vector<32x96xf32> to vector<32x16xf32>
      %579 = vector.extract_strided_slice %577 {offsets = [0, 32], sizes = [32, 16], strides = [1, 1]} : vector<32x96xf32> to vector<32x16xf32>
      %580 = vector.extract_strided_slice %577 {offsets = [0, 64], sizes = [32, 16], strides = [1, 1]} : vector<32x96xf32> to vector<32x16xf32>
      %cst_247 = arith.constant dense<0.000000e+00> : vector<32x32xf32>
      %581 = tpu.matmul %578, %579, %cst_247 {dimension_numbers = #tpu.dot_dimension_numbers<[1], [1], [0], [0], [0, 0, 1, 0], [], []>} : vector<32x16xf32>, vector<32x16xf32>, vector<32x32xf32> -> vector<32x32xf32>
      %cst_248 = arith.constant 2.500000e-01 : f32
      %582 = vector.broadcast %cst_248 : f32 to vector<32x32xf32>
      %583 = arith.mulf %581, %582 : vector<32x32xf32>
      %584 = arith.addf %583, %11 : vector<32x32xf32>
      %cst_249 = arith.constant dense<0xFF800000> : vector<32xf32>
      %585 = vector.multi_reduction <maximumf>, %584, %cst_249 [1] : vector<32x32xf32> to vector<32xf32>
      %586 = vector.shape_cast %585 : vector<32xf32> to vector<32x1xf32>
      %587 = vector.broadcast %586 : vector<32x1xf32> to vector<32x32xf32>
      %588 = arith.subf %584, %587 : vector<32x32xf32>
      %589 = math.exp %588 : vector<32x32xf32>
      %cst_250 = arith.constant dense<0.000000e+00> : vector<32xf32>
      %590 = vector.multi_reduction <add>, %589, %cst_250 [1] : vector<32x32xf32> to vector<32xf32>
      %591 = vector.shape_cast %590 : vector<32xf32> to vector<32x1xf32>
      %592 = tpu.reciprocal %591 {approx = true} : vector<32x1xf32> -> vector<32x1xf32>
      %593 = vector.broadcast %592 : vector<32x1xf32> to vector<32x32xf32>
      %594 = arith.mulf %589, %593 : vector<32x32xf32>
      %cst_251 = arith.constant dense<0.000000e+00> : vector<32x16xf32>
      %595 = tpu.matmul %594, %580, %cst_251 {dimension_numbers = #tpu.dot_dimension_numbers<[1], [0], [0], [1], [0, 0, 1, 1], [], []>} : vector<32x32xf32>, vector<32x16xf32>, vector<32x16xf32> -> vector<32x16xf32>
      %596 = vector.extract_strided_slice %577 {offsets = [0, 16], sizes = [32, 16], strides = [1, 1]} : vector<32x96xf32> to vector<32x16xf32>
      %597 = vector.extract_strided_slice %577 {offsets = [0, 48], sizes = [32, 16], strides = [1, 1]} : vector<32x96xf32> to vector<32x16xf32>
      %598 = vector.extract_strided_slice %577 {offsets = [0, 80], sizes = [32, 16], strides = [1, 1]} : vector<32x96xf32> to vector<32x16xf32>
      %cst_252 = arith.constant dense<0.000000e+00> : vector<32x32xf32>
      %599 = tpu.matmul %596, %597, %cst_252 {dimension_numbers = #tpu.dot_dimension_numbers<[1], [1], [0], [0], [0, 0, 1, 0], [], []>} : vector<32x16xf32>, vector<32x16xf32>, vector<32x32xf32> -> vector<32x32xf32>
      %cst_253 = arith.constant 2.500000e-01 : f32
      %600 = vector.broadcast %cst_253 : f32 to vector<32x32xf32>
      %601 = arith.mulf %599, %600 : vector<32x32xf32>
      %602 = arith.addf %601, %11 : vector<32x32xf32>
      %cst_254 = arith.constant dense<0xFF800000> : vector<32xf32>
      %603 = vector.multi_reduction <maximumf>, %602, %cst_254 [1] : vector<32x32xf32> to vector<32xf32>
      %604 = vector.shape_cast %603 : vector<32xf32> to vector<32x1xf32>
      %605 = vector.broadcast %604 : vector<32x1xf32> to vector<32x32xf32>
      %606 = arith.subf %602, %605 : vector<32x32xf32>
      %607 = math.exp %606 : vector<32x32xf32>
      %cst_255 = arith.constant dense<0.000000e+00> : vector<32xf32>
      %608 = vector.multi_reduction <add>, %607, %cst_255 [1] : vector<32x32xf32> to vector<32xf32>
      %609 = vector.shape_cast %608 : vector<32xf32> to vector<32x1xf32>
      %610 = tpu.reciprocal %609 {approx = true} : vector<32x1xf32> -> vector<32x1xf32>
      %611 = vector.broadcast %610 : vector<32x1xf32> to vector<32x32xf32>
      %612 = arith.mulf %607, %611 : vector<32x32xf32>
      %cst_256 = arith.constant dense<0.000000e+00> : vector<32x16xf32>
      %613 = tpu.matmul %612, %598, %cst_256 {dimension_numbers = #tpu.dot_dimension_numbers<[1], [0], [0], [1], [0, 0, 1, 1], [], []>} : vector<32x32xf32>, vector<32x16xf32>, vector<32x16xf32> -> vector<32x16xf32>
      %614 = tpu.concatenate %595, %613 in 1 : vector<32x16xf32>, vector<32x16xf32> -> vector<32x32xf32>
      %c2_257 = arith.constant 2 : index
      %c0_258 = arith.constant 0 : index
      %c0_259 = arith.constant 0 : index
      %615 = vector.load %arg25[%c2_257, %c0_258, %c0_259] : memref<3x32x32xf32, #tpu.memory_space<vmem>>, vector<1x32x32xf32>
      %616 = vector.shape_cast %615 : vector<1x32x32xf32> to vector<32x32xf32>
      %cst_260 = arith.constant dense<0.000000e+00> : vector<32x32xf32>
      %617 = tpu.matmul %614, %616, %cst_260 {dimension_numbers = #tpu.dot_dimension_numbers<[1], [0], [0], [1], [0, 0, 1, 1], [], []>} : vector<32x32xf32>, vector<32x32xf32>, vector<32x32xf32> -> vector<32x32xf32>
      %618 = vector.extract_strided_slice %570 {offsets = [0, 0], sizes = [1, 32], strides = [1, 1]} : vector<6x32xf32> to vector<1x32xf32>
      %619 = vector.broadcast %618 : vector<1x32xf32> to vector<32x32xf32>
      %620 = arith.addf %617, %619 : vector<32x32xf32>
      %621 = arith.addf %568, %620 : vector<32x32xf32>
      %622 = vector.extract_strided_slice %570 {offsets = [1, 0], sizes = [1, 32], strides = [1, 1]} : vector<6x32xf32> to vector<1x32xf32>
      %623 = vector.extract_strided_slice %570 {offsets = [2, 0], sizes = [1, 32], strides = [1, 1]} : vector<6x32xf32> to vector<1x32xf32>
      %cst_261 = arith.constant dense<0.000000e+00> : vector<32xf32>
      %624 = vector.multi_reduction <add>, %621, %cst_261 [1] : vector<32x32xf32> to vector<32xf32>
      %625 = vector.shape_cast %624 : vector<32xf32> to vector<32x1xf32>
      %cst_262 = arith.constant 3.200000e+01 : f32
      %626 = vector.broadcast %cst_262 : f32 to vector<32x1xf32>
      %627 = arith.divf %625, %626 : vector<32x1xf32>
      %628 = vector.broadcast %627 : vector<32x1xf32> to vector<32x32xf32>
      %629 = arith.subf %621, %628 : vector<32x32xf32>
      %630 = vector.broadcast %627 : vector<32x1xf32> to vector<32x32xf32>
      %631 = arith.subf %621, %630 : vector<32x32xf32>
      %632 = arith.mulf %629, %631 : vector<32x32xf32>
      %cst_263 = arith.constant dense<0.000000e+00> : vector<32xf32>
      %633 = vector.multi_reduction <add>, %632, %cst_263 [1] : vector<32x32xf32> to vector<32xf32>
      %634 = vector.shape_cast %633 : vector<32xf32> to vector<32x1xf32>
      %cst_264 = arith.constant 3.200000e+01 : f32
      %635 = vector.broadcast %cst_264 : f32 to vector<32x1xf32>
      %636 = arith.divf %634, %635 : vector<32x1xf32>
      %637 = vector.broadcast %627 : vector<32x1xf32> to vector<32x32xf32>
      %638 = arith.subf %621, %637 : vector<32x32xf32>
      %cst_265 = arith.constant 9.99999974E-6 : f32
      %639 = vector.broadcast %cst_265 : f32 to vector<32x1xf32>
      %640 = arith.addf %636, %639 : vector<32x1xf32>
      %641 = math.rsqrt %640 : vector<32x1xf32>
      %642 = vector.broadcast %641 : vector<32x1xf32> to vector<32x32xf32>
      %643 = arith.mulf %638, %642 : vector<32x32xf32>
      %644 = vector.broadcast %622 : vector<1x32xf32> to vector<32x32xf32>
      %645 = arith.mulf %643, %644 : vector<32x32xf32>
      %646 = vector.broadcast %623 : vector<1x32xf32> to vector<32x32xf32>
      %647 = arith.addf %645, %646 : vector<32x32xf32>
      %c2_266 = arith.constant 2 : index
      %c0_267 = arith.constant 0 : index
      %c0_268 = arith.constant 0 : index
      %648 = vector.load %arg26[%c2_266, %c0_267, %c0_268] : memref<3x32x128xf32, #tpu.memory_space<vmem>>, vector<1x32x128xf32>
      %649 = vector.shape_cast %648 : vector<1x32x128xf32> to vector<32x128xf32>
      %cst_269 = arith.constant dense<0.000000e+00> : vector<32x128xf32>
      %650 = tpu.matmul %647, %649, %cst_269 {dimension_numbers = #tpu.dot_dimension_numbers<[1], [0], [0], [1], [0, 0, 1, 1], [], []>} : vector<32x32xf32>, vector<32x128xf32>, vector<32x128xf32> -> vector<32x128xf32>
      %c2_270 = arith.constant 2 : index
      %c0_271 = arith.constant 0 : index
      %c0_272 = arith.constant 0 : index
      %651 = vector.load %arg27[%c2_270, %c0_271, %c0_272] : memref<3x1x128xf32, #tpu.memory_space<vmem>>, vector<1x1x128xf32>
      %652 = vector.shape_cast %651 : vector<1x1x128xf32> to vector<1x128xf32>
      %653 = vector.broadcast %652 : vector<1x128xf32> to vector<32x128xf32>
      %654 = arith.addf %650, %653 : vector<32x128xf32>
      %cst_273 = arith.constant 0.000000e+00 : f32
      %655 = vector.broadcast %cst_273 : f32 to vector<32x128xf32>
      %656 = arith.maximumf %654, %655 : vector<32x128xf32>
      %c2_274 = arith.constant 2 : index
      %c0_275 = arith.constant 0 : index
      %c0_276 = arith.constant 0 : index
      %657 = vector.load %arg28[%c2_274, %c0_275, %c0_276] : memref<3x128x32xf32, #tpu.memory_space<vmem>>, vector<1x128x32xf32>
      %658 = vector.shape_cast %657 : vector<1x128x32xf32> to vector<128x32xf32>
      %cst_277 = arith.constant dense<0.000000e+00> : vector<32x32xf32>
      %659 = tpu.matmul %656, %658, %cst_277 {dimension_numbers = #tpu.dot_dimension_numbers<[1], [0], [0], [1], [0, 0, 1, 1], [], []>} : vector<32x128xf32>, vector<128x32xf32>, vector<32x32xf32> -> vector<32x32xf32>
      %660 = vector.extract_strided_slice %570 {offsets = [3, 0], sizes = [1, 32], strides = [1, 1]} : vector<6x32xf32> to vector<1x32xf32>
      %661 = vector.broadcast %660 : vector<1x32xf32> to vector<32x32xf32>
      %662 = arith.addf %659, %661 : vector<32x32xf32>
      %663 = arith.addf %647, %662 : vector<32x32xf32>
      %664 = vector.extract_strided_slice %570 {offsets = [4, 0], sizes = [1, 32], strides = [1, 1]} : vector<6x32xf32> to vector<1x32xf32>
      %665 = vector.extract_strided_slice %570 {offsets = [5, 0], sizes = [1, 32], strides = [1, 1]} : vector<6x32xf32> to vector<1x32xf32>
      %cst_278 = arith.constant dense<0.000000e+00> : vector<32xf32>
      %666 = vector.multi_reduction <add>, %663, %cst_278 [1] : vector<32x32xf32> to vector<32xf32>
      %667 = vector.shape_cast %666 : vector<32xf32> to vector<32x1xf32>
      %cst_279 = arith.constant 3.200000e+01 : f32
      %668 = vector.broadcast %cst_279 : f32 to vector<32x1xf32>
      %669 = arith.divf %667, %668 : vector<32x1xf32>
      %670 = vector.broadcast %669 : vector<32x1xf32> to vector<32x32xf32>
      %671 = arith.subf %663, %670 : vector<32x32xf32>
      %672 = vector.broadcast %669 : vector<32x1xf32> to vector<32x32xf32>
      %673 = arith.subf %663, %672 : vector<32x32xf32>
      %674 = arith.mulf %671, %673 : vector<32x32xf32>
      %cst_280 = arith.constant dense<0.000000e+00> : vector<32xf32>
      %675 = vector.multi_reduction <add>, %674, %cst_280 [1] : vector<32x32xf32> to vector<32xf32>
      %676 = vector.shape_cast %675 : vector<32xf32> to vector<32x1xf32>
      %cst_281 = arith.constant 3.200000e+01 : f32
      %677 = vector.broadcast %cst_281 : f32 to vector<32x1xf32>
      %678 = arith.divf %676, %677 : vector<32x1xf32>
      %679 = vector.broadcast %669 : vector<32x1xf32> to vector<32x32xf32>
      %680 = arith.subf %663, %679 : vector<32x32xf32>
      %cst_282 = arith.constant 9.99999974E-6 : f32
      %681 = vector.broadcast %cst_282 : f32 to vector<32x1xf32>
      %682 = arith.addf %678, %681 : vector<32x1xf32>
      %683 = math.rsqrt %682 : vector<32x1xf32>
      %684 = vector.broadcast %683 : vector<32x1xf32> to vector<32x32xf32>
      %685 = arith.mulf %680, %684 : vector<32x32xf32>
      %686 = vector.broadcast %664 : vector<1x32xf32> to vector<32x32xf32>
      %687 = arith.mulf %685, %686 : vector<32x32xf32>
      %688 = vector.broadcast %665 : vector<1x32xf32> to vector<32x32xf32>
      %689 = arith.addf %687, %688 : vector<32x32xf32>
      %c0_283 = arith.constant 0 : index
      %c0_284 = arith.constant 0 : index
      %690 = vector.load %arg21[%c0_283, %c0_284] : memref<32x8xf32, #tpu.memory_space<vmem>>, vector<32x8xf32>
      %cst_285 = arith.constant dense<0.000000e+00> : vector<32x8xf32>
      %691 = tpu.matmul %689, %690, %cst_285 {dimension_numbers = #tpu.dot_dimension_numbers<[1], [0], [0], [1], [0, 0, 1, 1], [], []>} : vector<32x32xf32>, vector<32x8xf32>, vector<32x8xf32> -> vector<32x8xf32>
      %c0_286 = arith.constant 0 : index
      %c0_287 = arith.constant 0 : index
      %692 = vector.load %arg22[%c0_286, %c0_287] : memref<1x8xf32, #tpu.memory_space<vmem>>, vector<1x8xf32>
      %693 = vector.broadcast %692 : vector<1x8xf32> to vector<32x8xf32>
      %694 = arith.addf %691, %693 : vector<32x8xf32>
      %cst_288 = arith.constant dense<0xFF800000> : vector<32xf32>
      %695 = vector.multi_reduction <maximumf>, %694, %cst_288 [1] : vector<32x8xf32> to vector<32xf32>
      %696 = vector.shape_cast %695 : vector<32xf32> to vector<32x1xf32>
      %697 = vector.broadcast %696 : vector<32x1xf32> to vector<32x8xf32>
      %698 = arith.subf %694, %697 : vector<32x8xf32>
      %699 = math.exp %698 : vector<32x8xf32>
      %cst_289 = arith.constant dense<0.000000e+00> : vector<32xf32>
      %700 = vector.multi_reduction <add>, %699, %cst_289 [1] : vector<32x8xf32> to vector<32xf32>
      %701 = vector.shape_cast %700 : vector<32xf32> to vector<32x1xf32>
      %702 = vector.broadcast %701 : vector<32x1xf32> to vector<32x8xf32>
      %703 = arith.divf %699, %702 : vector<32x8xf32>
      %c0_290 = arith.constant 0 : index
      %c0_291 = arith.constant 0 : index
      %704 = vector.load %arg30[%c0_290, %c0_291] : memref<32x8xf32, #tpu.memory_space<vmem>>, vector<32x8xf32>
      %705 = vector.shape_cast %9 : vector<32x1xi1> to vector<32x1xi1>
      %706 = vector.broadcast %705 : vector<32x1xi1> to vector<32x8xi1>
      %707 = arith.select %706, %704, %703 : vector<32x8xi1>, vector<32x8xf32>
      %c0_292 = arith.constant 0 : index
      %c0_293 = arith.constant 0 : index
      %708 = vector.load %arg30[%c0_292, %c0_293] : memref<32x8xf32, #tpu.memory_space<vmem>>, vector<32x8xf32>
      tpu.vector_store %arg30[%c0_292, %c0_293], %707 {strides = array<i32>} : memref<32x8xf32, #tpu.memory_space<vmem>>, vector<32x8xf32>,
      %cst_294 = arith.constant dense<0xFF800000> : vector<32xf32>
      %709 = vector.multi_reduction <maximumf>, %707, %cst_294 [1] : vector<32x8xf32> to vector<32xf32>
      %710 = vector.shape_cast %709 : vector<32xf32> to vector<32x1xf32>
      %c0_295 = arith.constant 0 : index
      %711 = memref.load %arg1[%c0_295] : memref<1xf32, #tpu.memory_space<smem>>
      %712 = vector.broadcast %711 : f32 to vector<32x1xf32>
      %713 = arith.cmpf ogt, %710, %712 : vector<32x1xf32>
      %714 = arith.extui %713 : vector<32x1xi1> to vector<32x1xi32>
      %715 = arith.sitofp %714 : vector<32x1xi32> to vector<32x1xf32>
      %c0_296 = arith.constant 0 : index
      %c0_297 = arith.constant 0 : index
      %716 = vector.load %arg31[%c0_296, %c0_297] : memref<32x1xf32, #tpu.memory_space<vmem>>, vector<32x1xf32>
      tpu.vector_store %arg31[%c0_296, %c0_297], %715 {strides = array<i32>} : memref<32x1xf32, #tpu.memory_space<vmem>>, vector<32x1xf32>,
      %717 = vector.shape_cast %715 : vector<32x1xf32> to vector<1x32x1xf32>
      %cst_298 = arith.constant dense<0.000000e+00> : vector<1xf32>
      %718 = vector.multi_reduction <add>, %717, %cst_298 [1, 2] : vector<1x32x1xf32> to vector<1xf32>
      %719 = vector.shape_cast %718 : vector<1xf32> to vector<1x1x1xf32>
      %720 = vector.extract %719[0, 0, 0] : f32 from vector<1x1x1xf32>
      %721 = arith.fptosi %720 : f32 to i32
      %c0_299 = arith.constant 0 : index
      %722 = memref.load %arg35[%c0_299] : memref<1xi32, #tpu.memory_space<smem>>
      memref.store %721, %arg35[%c0_299] : memref<1xi32, #tpu.memory_space<smem>>
    } else {
    }
    return
  }
  func.func @transform_0(%arg0: i32) -> i32 {
    %c0_i32 = arith.constant 0 : i32
    %c0_i32_0 = arith.constant 0 : i32
    return %c0_i32 : i32
  }
  func.func @transform_1(%arg0: i32) -> (i32, i32) {
    %c0_i32 = arith.constant 0 : i32
    %c0_i32_0 = arith.constant 0 : i32
    %c0_i32_1 = arith.constant 0 : i32
    return %c0_i32, %c0_i32_0 : i32, i32
  }
  func.func @transform_2(%arg0: i32) -> (i32, i32) {
    %c0_i32 = arith.constant 0 : i32
    %c0_i32_0 = arith.constant 0 : i32
    %c0_i32_1 = arith.constant 0 : i32
    return %c0_i32, %c0_i32_0 : i32, i32
  }
  func.func @transform_3(%arg0: i32) -> (i32, i32) {
    %c0_i32 = arith.constant 0 : i32
    %c0_i32_0 = arith.constant 0 : i32
    %c0_i32_1 = arith.constant 0 : i32
    return %c0_i32, %c0_i32_0 : i32, i32
  }
  func.func @transform_4(%arg0: i32) -> (i32, i32) {
    %c0_i32 = arith.constant 0 : i32
    %c0_i32_0 = arith.constant 0 : i32
    %c0_i32_1 = arith.constant 0 : i32
    return %c0_i32, %c0_i32_0 : i32, i32
  }
  func.func @transform_5(%arg0: i32) -> (i32, i32) {
    %c0_i32 = arith.constant 0 : i32
    %c0_i32_0 = arith.constant 0 : i32
    %c0_i32_1 = arith.constant 0 : i32
    return %c0_i32, %c0_i32_0 : i32, i32
  }
  func.func @transform_6(%arg0: i32) -> (i32, i32, i32) {
    %c0_i32 = arith.constant 0 : i32
    %c0_i32_0 = arith.constant 0 : i32
    %c0_i32_1 = arith.constant 0 : i32
    return %arg0, %c0_i32, %c0_i32_0 : i32, i32, i32
  }
  func.func @transform_7(%arg0: i32) -> (i32, i32) {
    %c0_i32 = arith.constant 0 : i32
    %c0_i32_0 = arith.constant 0 : i32
    %c0_i32_1 = arith.constant 0 : i32
    return %c0_i32, %c0_i32_0 : i32, i32
  }
  func.func @transform_8(%arg0: i32) -> (i32, i32) {
    %c0_i32 = arith.constant 0 : i32
    %c0_i32_0 = arith.constant 0 : i32
    %c0_i32_1 = arith.constant 0 : i32
    return %c0_i32, %c0_i32_0 : i32, i32
  }
  func.func @transform_9(%arg0: i32) -> (i32, i32) {
    %c0_i32 = arith.constant 0 : i32
    %c0_i32_0 = arith.constant 0 : i32
    %c0_i32_1 = arith.constant 0 : i32
    return %c0_i32, %c0_i32_0 : i32, i32
  }
  func.func @transform_10(%arg0: i32) -> (i32, i32) {
    %c0_i32 = arith.constant 0 : i32
    %c0_i32_0 = arith.constant 0 : i32
    %c0_i32_1 = arith.constant 0 : i32
    return %c0_i32, %c0_i32_0 : i32, i32
  }
  func.func @transform_11(%arg0: i32) -> (i32, i32, i32) {
    %c0_i32 = arith.constant 0 : i32
    %c0_i32_0 = arith.constant 0 : i32
    %c0_i32_1 = arith.constant 0 : i32
    %c0_i32_2 = arith.constant 0 : i32
    return %c0_i32, %c0_i32_0, %c0_i32_1 : i32, i32, i32
  }
  func.func @transform_12(%arg0: i32) -> (i32, i32, i32) {
    %c0_i32 = arith.constant 0 : i32
    %c0_i32_0 = arith.constant 0 : i32
    %c0_i32_1 = arith.constant 0 : i32
    %c0_i32_2 = arith.constant 0 : i32
    return %c0_i32, %c0_i32_0, %c0_i32_1 : i32, i32, i32
  }
  func.func @transform_13(%arg0: i32) -> (i32, i32, i32) {
    %c0_i32 = arith.constant 0 : i32
    %c0_i32_0 = arith.constant 0 : i32
    %c0_i32_1 = arith.constant 0 : i32
    %c0_i32_2 = arith.constant 0 : i32
    return %c0_i32, %c0_i32_0, %c0_i32_1 : i32, i32, i32
  }
  func.func @transform_14(%arg0: i32) -> (i32, i32, i32) {
    %c0_i32 = arith.constant 0 : i32
    %c0_i32_0 = arith.constant 0 : i32
    %c0_i32_1 = arith.constant 0 : i32
    %c0_i32_2 = arith.constant 0 : i32
    return %c0_i32, %c0_i32_0, %c0_i32_1 : i32, i32, i32
  }
  func.func @transform_15(%arg0: i32) -> (i32, i32, i32) {
    %c0_i32 = arith.constant 0 : i32
    %c0_i32_0 = arith.constant 0 : i32
    %c0_i32_1 = arith.constant 0 : i32
    %c0_i32_2 = arith.constant 0 : i32
    return %c0_i32, %c0_i32_0, %c0_i32_1 : i32, i32, i32
  }
  func.func @transform_16(%arg0: i32) -> (i32, i32, i32) {
    %c0_i32 = arith.constant 0 : i32
    %c0_i32_0 = arith.constant 0 : i32
    %c0_i32_1 = arith.constant 0 : i32
    %c0_i32_2 = arith.constant 0 : i32
    return %c0_i32, %c0_i32_0, %c0_i32_1 : i32, i32, i32
  }
  func.func @transform_17(%arg0: i32) -> (i32, i32, i32) {
    %c0_i32 = arith.constant 0 : i32
    %c0_i32_0 = arith.constant 0 : i32
    %c0_i32_1 = arith.constant 0 : i32
    %c0_i32_2 = arith.constant 0 : i32
    return %c0_i32, %c0_i32_0, %c0_i32_1 : i32, i32, i32
  }
  func.func @transform_18(%arg0: i32) -> (i32, i32) {
    %c0_i32 = arith.constant 0 : i32
    %c0_i32_0 = arith.constant 0 : i32
    %c0_i32_1 = arith.constant 0 : i32
    return %c0_i32, %c0_i32_0 : i32, i32
  }
  func.func @transform_19(%arg0: i32) -> (i32, i32) {
    %c0_i32 = arith.constant 0 : i32
    %c0_i32_0 = arith.constant 0 : i32
    %c0_i32_1 = arith.constant 0 : i32
    return %c0_i32, %c0_i32_0 : i32, i32
  }
  func.func @transform_20(%arg0: i32) -> (i32, i32) {
    %c0_i32 = arith.constant 0 : i32
    %c0_i32_0 = arith.constant 0 : i32
    %c0_i32_1 = arith.constant 0 : i32
    return %c0_i32, %c0_i32_0 : i32, i32
  }
  func.func @transform_21(%arg0: i32) -> (i32, i32) {
    %c0_i32 = arith.constant 0 : i32
    %c0_i32_0 = arith.constant 0 : i32
    %c0_i32_1 = arith.constant 0 : i32
    return %c0_i32, %c0_i32_0 : i32, i32
  }
  func.func @transform_22(%arg0: i32) -> (i32, i32, i32) {
    %c0_i32 = arith.constant 0 : i32
    %c0_i32_0 = arith.constant 0 : i32
    %c0_i32_1 = arith.constant 0 : i32
    %c0_i32_2 = arith.constant 0 : i32
    return %c0_i32, %c0_i32_0, %c0_i32_1 : i32, i32, i32
  }
  func.func @transform_23(%arg0: i32) -> (i32, i32, i32) {
    %c0_i32 = arith.constant 0 : i32
    %c0_i32_0 = arith.constant 0 : i32
    %c0_i32_1 = arith.constant 0 : i32
    %c0_i32_2 = arith.constant 0 : i32
    return %c0_i32, %c0_i32_0, %c0_i32_1 : i32, i32, i32
  }
  func.func @transform_24(%arg0: i32) -> (i32, i32, i32) {
    %c0_i32 = arith.constant 0 : i32
    %c0_i32_0 = arith.constant 0 : i32
    %c0_i32_1 = arith.constant 0 : i32
    %c0_i32_2 = arith.constant 0 : i32
    return %c0_i32, %c0_i32_0, %c0_i32_1 : i32, i32, i32
  }
  func.func @transform_25(%arg0: i32) -> (i32, i32, i32) {
    %c0_i32 = arith.constant 0 : i32
    %c0_i32_0 = arith.constant 0 : i32
    %c0_i32_1 = arith.constant 0 : i32
    %c0_i32_2 = arith.constant 0 : i32
    return %c0_i32, %c0_i32_0, %c0_i32_1 : i32, i32, i32
  }
  func.func @transform_26(%arg0: i32) -> (i32, i32, i32) {
    %c0_i32 = arith.constant 0 : i32
    %c0_i32_0 = arith.constant 0 : i32
    %c0_i32_1 = arith.constant 0 : i32
    %c0_i32_2 = arith.constant 0 : i32
    return %c0_i32, %c0_i32_0, %c0_i32_1 : i32, i32, i32
  }
  func.func @transform_27(%arg0: i32) -> (i32, i32, i32) {
    %c0_i32 = arith.constant 0 : i32
    %c0_i32_0 = arith.constant 0 : i32
    %c0_i32_1 = arith.constant 0 : i32
    %c0_i32_2 = arith.constant 0 : i32
    return %c0_i32, %c0_i32_0, %c0_i32_1 : i32, i32, i32
  }
  func.func @transform_28(%arg0: i32) -> (i32, i32, i32) {
    %c0_i32 = arith.constant 0 : i32
    %c0_i32_0 = arith.constant 0 : i32
    %c0_i32_1 = arith.constant 0 : i32
    %c0_i32_2 = arith.constant 0 : i32
    return %c0_i32, %c0_i32_0, %c0_i32_1 : i32, i32, i32
  }
  func.func @transform_29(%arg0: i32) -> (i32, i32) {
    %c0_i32 = arith.constant 0 : i32
    %c0_i32_0 = arith.constant 0 : i32
    %c0_i32_1 = arith.constant 0 : i32
    return %c0_i32, %c0_i32_0 : i32, i32
  }
}

</mosaic_0001>

<bundles_post_ra>
// kernel: forward.1
= control target key start
LH: loop header
LB: loop body
LE: loop exit
PB: predicated region body
PF: predicated region fallthrough
CT: control target
= control target key end

     0   :  { %s10287_s6 = smov 1   ;;  %s10288_s10 = smov 2   ;;  %s11926_s0 = inlined_call_operand.smem [shape: u32[30], index: -1, kind: input, shape index: {}] }
   0x1   :  { %s10340_s5 = sld [smem:[%s11926_s0]]   ;;  %s10289_s14 = smov 3  }
   0x2   :  { %s10345_s9 = sld [smem:[%s11926_s0 + %s10287_s6]]   ;;  %s10290_s18 = smov 4  }
   0x3   :  { %s10350_s13 = sld [smem:[%s11926_s0 + %s10288_s10]]   ;;  %s10291_s22 = smov 5  }
   0x4   :  { %s10355_s17 = sld [smem:[%s11926_s0 + %s10289_s14]]   ;;  %s10292_s26 = smov 6  }
   0x5   :  { %s10360_s21 = sld [smem:[%s11926_s0 + %s10290_s18]]   ;;  %s10293_s30 = smov 7  }
   0x6   :  { %s10365_s25 = sld [smem:[%s11926_s0 + %s10291_s22]]   ;;  %s10294_s4 = smov 8  }
   0x7   :  { %s10370_s29 = sld [smem:[%s11926_s0 + %s10292_s26]]   ;;  %s10295_s10 = smov 9  }
   0x8   :  { %s10375_s3 = sld [smem:[%s11926_s0 + %s10293_s30]]   ;;  %s10296_s15 = smov 10  }
   0x9   :  { %s10380_s8 = sld [smem:[%s11926_s0 + %s10294_s4]]   ;;  %s10297_s20 = smov 11  }
   0xa   :  { %s10385_s14 = sld [smem:[%s11926_s0 + %s10295_s10]]   ;;  %s10298_s26 = smov 12  }
   0xb   :  { %s7696_s19 = sld [smem:[%s11926_s0 + %s10296_s15]]   ;;  %s10299_s1 = smov 13  }
   0xc   :  { %11940 = sst [smem:[#allocation9_spill]] %s10365_s25  ;;  %s10300_s7 = smov 14  }
   0xd   :  { %s10393_s24 = sld [smem:[%s11926_s0 + %s10297_s20]]   ;;  %s10301_s15 = smov 15  }
   0xe   :  { %s10398_s30 = sld [smem:[%s11926_s0 + %s10298_s26]]   ;;  %s10302_s22 = smov 16  }
   0xf   :  { %s10403_s6 = sld [smem:[%s11926_s0 + %s10299_s1]]   ;;  %s10303_s28 = smov 17  }
  0x10   :  { %11941 = sst [smem:[#allocation10_spill]] %s10385_s14  ;;  %s10305_s16 = smov 19  }
  0x11   :  { %s10408_s12 = sld [smem:[%s11926_s0 + %s10300_s7]]   ;;  %v65_v0 = vstv %s7696_s19  ;;  %s10304_s7 = smov 18  }
  0x12   :  { %s10413_s20 = sld [smem:[%s11926_s0 + %s10301_s15]]   ;;  %66 = vst [vmem:[#allocation8] sm:$0x1] %v65_v0  ;;  %s10306_s19 = smov 20  }
  0x13   :  { %s10418_s27 = sld [smem:[%s11926_s0 + %s10302_s22]]  }
  0x14   :  { %s10423_s4 = sld [smem:[%s11926_s0 + %s10303_s28]]   ;;  %s10307_s28 = smov 21  }
  0x15   :  { %s10428_s15 = sld [smem:[%s11926_s0 + %s10304_s7]]   ;;  %s10308_s7 = smov 22  }
  0x16   :  { %s10433_s22 = sld [smem:[%s11926_s0 + %s10305_s16]]   ;;  %s10309_s16 = smov 23  }
  0x17   :  { %s10438_s1 = sld [smem:[%s11926_s0 + %s10306_s19]]   ;;  %s10310_s19 = smov 24  }
  0x18   :  { %11942 = sst [smem:[#allocation11_spill]] %s10413_s20 }
  0x19   :  { %s10443_s20 = sld [smem:[%s11926_s0 + %s10307_s28]]   ;;  %s10311_s28 = smov 25  }
  0x1a   :  { %s10448_s25 = sld [smem:[%s11926_s0 + %s10308_s7]]   ;;  %s10312_s7 = smov 26  }
  0x1b   :  { %11943 = sst [smem:[#allocation12_spill]] %s10428_s15 }
  0x1c   :  { %11944 = sst [smem:[#allocation13_spill]] %s10433_s22  ;;  %s10313_s22 = smov 27  }
  0x1d   :  { %11945 = sst [smem:[#allocation14_spill]] %s10438_s1  ;;  %s10314_s1 = smov 28  }
  0x1e   :  { %s10453_s23 = sld [smem:[%s11926_s0 + %s10309_s16]]  }
  0x1f   :  { %11946 = sst [smem:[#allocation15_spill]] %s10443_s20  ;;  %s10315_s20 = smov 29  }
  0x20   :  { %11947 = sst [smem:[#allocation16_spill]] %s10448_s25  ;;  %s10486_s25 = smov 0  }
  0x21   :  { %s10458_s14 = sld [smem:[%s11926_s0 + %s10310_s19]]  }
  0x22   :  { %s10463_s10 = sld [smem:[%s11926_s0 + %s10311_s28]]  }
  0x23   :  { %s10468_s15 = sld [smem:[%s11926_s0 + %s10312_s7]]  }
  0x24   :  { %11948 = sst [smem:[#allocation17_spill]] %s10453_s23 }
  0x25   :  { %s10473_s23 = sld [smem:[%s11926_s0 + %s10313_s22]]  }
  0x26   :  { %64 = sst [smem:[#allocation7]] %s10340_s5 }
  0x27   :  { %11949 = sst [smem:[#allocation18_spill]] %s10458_s14 }
  0x28   :  { %11950 = sst [smem:[#allocation19_spill]] %s10463_s10 }
  0x29   :  { %s10478_s14 = sld [smem:[%s11926_s0 + %s10314_s1]]  }
  0x2a   :  { %s10483_s10 = sld [smem:[%s11926_s0 + %s10315_s20]]  }
  0x2b LB: > { %s7716_s7 = sadd.s32 4294967295, %s10285_s25   ;;  %p7719_p0 = scmp.ge.s32.totalorder %s10285_s25, 1  ;;  %s10285_s25 = sphi %s10486_s25, %s72_s25  }
  0x2c   : > { %p814_p1 = scmp.lt.s32.totalorder %s10285_s25, 9 }
  0x2e   : > { %p815_p2 = pnand %p7719_p0, %p814_p1 }
  0x2f   : > { %p884_p3 = scmp.lt.s32.totalorder (!%p815_p2), %s7716_s7, 7  ;;  %p7721_p4 = scmp.ne.s32.totalorder (!%p815_p2), %s7716_s7, 0 }
  0x30   : > { %818 = sbr.rel (%p815_p2) target bundleno = 16382 (0x3ffe), region = 136 }
  0x37   : > { %s885_s0 = scalar_select %p884_p3, %s7716_s7, 7 }
  0x38   : > { %891 = sbr.rel (%p7721_p4) target bundleno = 67 (0x43), region = 140  ;;  %vm892_vm0 = vcmask (!%p7721_p4), 64512   ;;  %vm897_vm1 = vcmask (!%p7721_p4), 7168   ;;  %v10316_v1 = vmov (!%p7721_p4), 0.125   ;;  %s10317_s22 = smov (!%p7721_p4), 0   ;;  %v10318_v2 = vmov (!%p7721_p4), 0.0  }
  0x39   : > { %s7720_s11 = sshll.u32 %s885_s0, 2  ;;  %893 = vst.msk [vmem:[%s10483_s10] sm:$0xff] (!%p7721_p4), %vm892_vm0, %v10316_v1  ;;  %894 = vst.msk [vmem:[%s10483_s10 + $0x8] sm:$0xff] (!%p7721_p4), %vm892_vm0, %v10316_v1  ;;  %917 = sst [smem:[#allocation6]] (!%p7721_p4), %s10317_s22  ;;  %vm906_vm2 = vcmask (!%p7721_p4), 138240   ;;  %vm911_vm3 = vcmask (!%p7721_p4), 130048  }
  0x3a   : > { %s10495_s5 = scalar_lea.vmem %s10370_s29, %s7720_s11  ;;  %895 = vst.msk [vmem:[%s10483_s10 + $0x10] sm:$0xff] (!%p7721_p4), %vm892_vm0, %v10316_v1  ;;  %896 = vst.msk [vmem:[%s10483_s10 + $0x18] sm:$0xff] (!%p7721_p4), %vm892_vm0, %v10316_v1 }
  0x3b   : > { %898 = vst.msk [vmem:[#allocation2] sm:$0xff] (!%p7721_p4), %vm897_vm1, %v10318_v2  ;;  %899 = vst.msk [vmem:[#allocation2 + $0x8] sm:$0xff] (!%p7721_p4), %vm897_vm1, %v10318_v2 }
  0x3c   : > { %900 = vst.msk [vmem:[#allocation2 + $0x10] sm:$0xff] (!%p7721_p4), %vm897_vm1, %v10318_v2  ;;  %901 = vst.msk [vmem:[#allocation2 + $0x18] sm:$0xff] (!%p7721_p4), %vm897_vm1, %v10318_v2 }
  0x3d   : > { %902 = vst.msk [vmem:[#allocation3] sm:$0xff] (!%p7721_p4), %vm892_vm0, %v10318_v2  ;;  %903 = vst.msk [vmem:[#allocation3 + $0x8] sm:$0xff] (!%p7721_p4), %vm892_vm0, %v10318_v2 }
  0x3e   : > { %904 = vst.msk [vmem:[#allocation3 + $0x10] sm:$0xff] (!%p7721_p4), %vm892_vm0, %v10318_v2  ;;  %905 = vst.msk [vmem:[#allocation3 + $0x18] sm:$0xff] (!%p7721_p4), %vm892_vm0, %v10318_v2 }
  0x3f   : > { %907 = vst.msk [vmem:[#allocation4] sm:$0xff] %vm906_vm2, %v10318_v2  ;;  %908 = vst.msk [vmem:[#allocation4 + $0x8] sm:$0xff] %vm906_vm2, %v10318_v2 }
  0x40   : > { %909 = vst.msk [vmem:[#allocation4 + $0x10] sm:$0xff] %vm906_vm2, %v10318_v2  ;;  %910 = vst.msk [vmem:[#allocation4 + $0x18] sm:$0xff] %vm906_vm2, %v10318_v2 }
  0x41   : > { %912 = vst.msk [vmem:[#allocation5] sm:$0xff] %vm911_vm3, %v10318_v2  ;;  %913 = vst.msk [vmem:[#allocation5 + $0x8] sm:$0xff] %vm911_vm3, %v10318_v2 }
  0x42   : > { %914 = vst.msk [vmem:[#allocation5 + $0x10] sm:$0xff] %vm911_vm3, %v10318_v2  ;;  %915 = vst.msk [vmem:[#allocation5 + $0x18] sm:$0xff] %vm911_vm3, %v10318_v2 }
  0x43 PF: > { %s918_s16 = sld [smem:[#allocation6]] }
  0x49   : > { %p7722_p5 = scmp.ge.s32.totalorder %s918_s16, 32 }
  0x4a   : > { %v952_v3 = vld [vmem:[#allocation3] sm:$0xff] (!%p7722_p5)  ;;  %v956_v5 = vlaneseq (!%p7722_p5)  ;;  %v10319_v6 = vmov (!%p7722_p5), 0   ;;  %s10320_s18 = smov (!%p7722_p5), 3   ;;  %v924_v7 = vld [vmem:[#allocation2 + $0x8] sm:$0xff] (!%p7722_p5)  ;;  %v926_v16 = vld [vmem:[#allocation2 + $0x18] sm:$0xff] (!%p7722_p5)  ;;  %s10321_s1 = smov (!%p7722_p5), 10  }
  0x4b   : > { %922 = sbr.rel (%p7722_p5) target bundleno = 16382 (0x3ffe), region = 144  ;;  %v923_v4 = vld [vmem:[#allocation2] sm:$0xff] (!%p7722_p5)  ;;  %9770 = vset.pattern.permute.xlu0 (!%p7722_p5), %v10319_v6  ;;  %968 = vrot.lane.b32.xlu1 (!%p7722_p5), %v952_v3, %s10320_s18  ;;  %v953_v9 = vld [vmem:[#allocation3 + $0x8] sm:$0xff] (!%p7722_p5)  ;;  %vm928_vm5 = vcmp.gt.f32.partialorder (!%p7722_p5), %v924_v7, 0.5  ;;  %v925_v20 = vld [vmem:[#allocation2 + $0x10] sm:$0xff] (!%p7722_p5)  ;;  %vm930_vm6 = vcmp.gt.f32.partialorder (!%p7722_p5), %v926_v16, 0.5 }
  0x4c   : > { %vm927_vm4 = vcmp.gt.f32.partialorder (!%p7722_p5), %v923_v4, 0.5  ;;  %v10510_v10 = vshrl.u32 (!%p7722_p5), %v956_v5, 7  ;;  %9771 = vset.pattern.permute.xlu1 (!%p7722_p5), %v10319_v6  ;;  %v947_v11 = vld [vmem:[%s10495_s5] sm:$0x7] (!%p7722_p5)  ;;  %v1011_v12 = vsel (!%p7722_p5), %vm928_vm5, 1, %v10319_v6  ;;  %v944_v13 = vld [vmem:[%s10350_s13 + $0x8] sm:$0xff] (!%p7722_p5) }
  0x4d   : > { %v1010_v8 = vsel (!%p7722_p5), %vm927_vm4, 1, %v10319_v6  ;;  %v943_v15 = vld [vmem:[%s10350_s13] sm:$0xff] (!%p7722_p5)  ;;  %v1040_v18 = vld [vmem:[%s10375_s3 + $0x8] sm:$0xff] (!%p7722_p5)  ;;  %vm929_vm7 = vcmp.gt.f32.partialorder (!%p7722_p5), %v925_v20, 0.5  ;;  %v1013_v24 = vsel (!%p7722_p5), %vm930_vm6, 1, %v10319_v6  ;;  %vm1061_vm8 = vcmask (!%p7722_p5), 1040384  }
  0x4e   : > { %1015 = vperm.xlu0 (!%p7722_p5), %9770, %v1010_v8   ;;  %v10515_v14 = vsub.s32 (!%p7722_p5), 2, %v10510_v10  ;;  %v1039_v17 = vld [vmem:[%s10375_s3] sm:$0xff] (!%p7722_p5)  ;;  %v1041_v25 = vld [vmem:[%s10375_s3 + $0x10] sm:$0x1] (!%p7722_p5)  ;;  %v1012_v26 = vsel (!%p7722_p5), %vm929_vm7, 1, %v10319_v6  ;;  %v955_v27 = vld [vmem:[#allocation3 + $0x18] sm:$0xff] (!%p7722_p5) }
  0x4f   : > { %970 = vrot.lane.b32.xlu1 (!%p7722_p5), %v953_v9, %s10320_s18  ;;  %v9198_v21 = vpack.c.bf16 (!%p7722_p5), %v1040_v18, %v1039_v17  ;;  %v946_v28 = vld [vmem:[%s10350_s13 + $0x18] sm:$0xff] (!%p7722_p5)  ;;  %v954_v29 = vld [vmem:[#allocation3 + $0x10] sm:$0xff] (!%p7722_p5)  ;;  %v949_v35 = vld [vmem:[%s10345_s9 + $0x8] sm:$0xff] (!%p7722_p5)  ;;  %vm996_vm9 = vcmask (!%p7722_p5), 23552   ;;  %vm1001_vm10 = vcmask (!%p7722_p5), 80896   ;;  %vm1034_vm11 = vcmask (!%p7722_p5), 138240  }
  0x50   : > { %v959_v19 = vrot.slane (!%p7722_p5), %v947_v11, %v10515_v14  ;;  %v945_v30 = vld [vmem:[%s10350_s13 + $0x10] sm:$0xff] (!%p7722_p5)  ;;  %v1007_v39 = vld [vmem:[#allocation4 + $0x8] sm:$0xff] (!%p7722_p5)  ;;  %v948_v41 = vld [vmem:[%s10345_s9] sm:$0xff] (!%p7722_p5)  ;;  %vm1170_vm0 = vcmask (!%p7722_p5), 261120   ;;  %vm1280_vm1 = vcmask (!%p7722_p5), 130048   ;;  %s10322_s19 = smov (!%p7722_p5), 96  }
  0x51   : > { %9199 = vmatprep.subr.bf16.mxu0 (!%p7722_p5), %v9198_v21  ;;  %v1006_v44 = vld [vmem:[#allocation4] sm:$0xff] (!%p7722_p5)  ;;  %v951_v51 = vld [vmem:[%s10345_s9 + $0x18] sm:$0xff] (!%p7722_p5)  ;;  %v950_v55 = vld [vmem:[%s10345_s9 + $0x10] sm:$0xff] (!%p7722_p5)  ;;  %s10323_s26 = smov (!%p7722_p5), 64   ;;  %s10324_s20 = smov (!%p7722_p5), 80   ;;  %vm3590_vm3 = vcmask (!%p7722_p5), 7168  }
  0x52   : > { %1018 = vperm.xlu0 %9770, %v1011_v12   ;;  %v961_v22 = vmul.f32 %v959_v19, %v944_v13  ;;  %v960_v23 = vmul.f32 %v959_v19, %v943_v15  ;;  %9201 = vmatpush3.bf16.msra.mxu0 %v9198_v21  ;;  %v963_v31 = vmul.f32 %v959_v19, %v946_v28  ;;  %v1009_v56 = vld [vmem:[#allocation4 + $0x18] sm:$0xff]  ;;  %v1008_v58 = vld [vmem:[#allocation4 + $0x10] sm:$0xff]  ;;  %v1159_v1 = vld [vmem:[%s10393_s24] sm:$0xff]  ;;  %s10325_s28 = smov 112   ;;  %s11938_s2 = smov 48  }
  0x53   : > { %8458 = vmatprep.subr.msk.mxu0 %vm1061_vm8, %v1041_v25  ;;  %v962_v32 = vmul.f32 %v959_v19, %v945_v30  ;;  %v1160_v2 = vld [vmem:[%s10393_s24 + $0x8] sm:$0xff]  ;;  %v1161_v4 = vld [vmem:[%s10393_s24 + $0x10] sm:$0xff]  ;;  %v1162_v5 = vld [vmem:[%s10393_s24 + $0x18] sm:$0xff]  ;;  %s11936_s7 = smov 16   ;;  %s11953_s0 = sld [smem:[#allocation11_spill]] }
  0x54   : > { %986 = vrot.lane.b32.xlu1 %v961_v22, %s10321_s1  ;;  %v9202_v3 = vpack.c.bf16 %v1160_v2, %v1159_v1  ;;  %v9206_v6 = vpack.c.bf16 %v1162_v5, %v1161_v4  ;;  %v7723_v7 = vld [vmem:[%s10380_s8] ss:$0 sm:$0xff]  ;;  %v932_v16 = vld [vmem:[%s10355_s17 + $0x8] sm:$0xff]  ;;  %vm10617_vm2 = vmpackc.low %vm1280_vm1, %vm1280_vm1  ;;  %s11954_s11 = sld [smem:[#allocation10_spill]]  ;;  %s11955_s22 = sld [smem:[#allocation9_spill]] }
  0x55   : > { %v931_v15 = vld [vmem:[%s10355_s17] sm:$0xff]  ;;  %v10645_v1 = vld [vmem:[%s10360_s21 + $0x10] sm:$0xff]  ;;  %v10649_v5 = vld [vmem:[%s10360_s21 + $0x18] sm:$0xff]  ;;  %s10328_s16 = smov 1  }
  0x56   : > { %984 = vrot.lane.b32.xlu0 %v960_v23, %s10321_s1  ;;  %8459 = vmatpush3.msk.msra.mxu0 %vm1061_vm8, %v1041_v25  ;;  %v933_v25 = vld [vmem:[%s10355_s17 + $0x10] sm:$0xff]  ;;  %v7729_v30 = vld [vmem:[%s10398_s30] ss:$0 sm:$0xff] }
  0x57   : > { %9203 = vmatprep.subr.bf16.mxu0 %v9202_v3 }
  0x58   : > { %1024 = vperm.xlu1 %9771, %v1013_v24  }
  0x5a   : > { %1021 = vperm.xlu0 %9770, %v1012_v26   ;;  %v934_v26 = vld [vmem:[%s10355_s17 + $0x18] sm:$0xff] }
  0x5c   : > { %974 = vrot.lane.b32.xlu1 %v955_v27, %s10320_s18 }
  0x5e   : > { %972 = vrot.lane.b32.xlu0 %v954_v29, %s10320_s18  ;;  %s10329_s18 = smov 127  }
  0x60   : > { %990 = vrot.lane.b32.xlu1 %v963_v31, %s10321_s1 }
  0x62   : > { %988 = vrot.lane.b32.xlu0 %v962_v32, %s10321_s1  ;;  %s11956_s1 = sld [smem:[#allocation12_spill]] }
  0xbd   : > { %v969_v33 = vpop.permute.xlu1 %968 }
  0xbe   : > { %v997_v45 = vsel %vm996_vm9, %v948_v41, %v969_v33 }
  0xc1   : > { %v971_v34 = vpop.permute.xlu1 %970 }
  0xc2   : > { %v998_v37 = vsel %vm996_vm9, %v949_v35, %v971_v34 }
  0xc6   : > { %v987_v38 = vpop.permute.xlu1 %986 }
  0xc7   : > { %v1003_v42 = vsel %vm1001_vm10, %v998_v37, %v987_v38 }
  0xcd   : > { %v10528_v36 = vpop.permute.xlu0 %1015 }
  0xce   : > { %vm1026_vm13 = vcmp.eq.s32.totalorder %v10528_v36, 1 }
  0xd1   : > { %v10531_v40 = vpop.permute.xlu0 %1018 }
  0xd2   : > { %vm1027_vm12 = vcmp.eq.s32.totalorder %v10531_v40, 1 }
  0xd3   : > { %v1031_v43 = vsel %vm1027_vm12, %v1007_v39, %v1003_v42 }
  0xd4   : > { %1036 = vst.msk [vmem:[#allocation4 + $0x8] sm:$0xff] %vm1034_vm11, %v1031_v43 }
  0xd5   : > { %v985_v46 = vpop.permute.xlu0 %984 }
  0xd6   : > { %v1002_v47 = vsel %vm1001_vm10, %v997_v45, %v985_v46 }
  0xd7   : > { %v1030_v48 = vsel %vm1026_vm13, %v1006_v44, %v1002_v47  ;;  %v10544_v49 = vpop.permute.xlu1 %1024 }
  0xd8   : > { %1035 = vst.msk [vmem:[#allocation4] sm:$0xff] %vm1034_vm11, %v1030_v48  ;;  %8460 = vmatprep.mubr.msk.f32.mxu0 %vm1034_vm11, %v1030_v48  ;;  %vm1029_vm14 = vcmp.eq.s32.totalorder %v10544_v49, 1  ;;  %v10331_v49 = vmov 0.0  }
  0xd9   : > { %8461 = vmatmul.mubr.msk.f32.vlgmr.msra.gmra.mrb[0].mxu0 %vm1034_vm11, %v1031_v43  ;;  %v10549_v50 = vpop.permute.xlu0 %1021 }
  0xda   : > { %vm1028_vm15 = vcmp.eq.s32.totalorder %v10549_v50, 1  ;;  %9205 = vmatpush3.bf16.msra.mxu0 %v9202_v3 }
  0xdb   : > { %v975_v52 = vpop.permute.xlu1 %974  ;;  %9207 = vmatprep.subr.bf16.mxu0 %v9206_v6 }
  0xdc   : > { %v1000_v54 = vsel %vm996_vm9, %v951_v51, %v975_v52 }
  0xdd   : > { %v973_v53 = vpop.permute.xlu0 %972 }
  0xde   : > { %v999_v59 = vsel %vm996_vm9, %v950_v55, %v973_v53  ;;  %9209 = vmatpush3.bf16.msra.mxu0 %v9206_v6  ;;  %v10636_v55 = vld [vmem:[%s10360_s21 + $0x8] sm:$0xff] }
  0xdf   : > { %v991_v57 = vpop.permute.xlu1 %990 }
  0xe0   : > { %v1005_v60 = vsel %vm1001_vm10, %v1000_v54, %v991_v57 }
  0xe1   : > { %v989_v61 = vpop.permute.xlu0 %988  ;;  %v1033_v63 = vsel %vm1029_vm14, %v1009_v56, %v1005_v60 }
  0xe2   : > { %v1004_v62 = vsel %vm1001_vm10, %v999_v59, %v989_v61  ;;  %1038 = vst.msk [vmem:[#allocation4 + $0x18] sm:$0xff] %vm1034_vm11, %v1033_v63 }
  0xe3   : > { %v1032_v0 = vsel %vm1028_vm15, %v1008_v58, %v1004_v62  ;;  %v10639_v58 = vld [vmem:[%s10360_s21] sm:$0xff] }
  0xe4   : > { %1037 = vst.msk [vmem:[#allocation4 + $0x10] sm:$0xff] %vm1034_vm11, %v1032_v0  ;;  %8463 = vmatprep.mubr.msk.f32.mxu0 %vm1034_vm11, %v1032_v0 }
  0xe5   : > { %8464 = vmatmul.mubr.msk.f32.gmra.mrb[2].mxu0 %vm1034_vm11, %v1033_v63 }
 0x1ac   : > { %v8462_v8 = vpop.f32.mrb[0].mxu0 }
 0x1ad   : > { %v1137_v9 = vadd.f32 %v8462_v8, %v7723_v7  ;;  %v1131_v11 = vpop.f32.mrb[1].mxu0 }
 0x1ae   : > { %v1132_v12 = vadd.f32 %v7723_v7, %v1131_v11 }
 0x1af   : > { %v1151_v13 = vmul.f32 5.656854, %v1137_v9 }
 0x1b0   : > { %v1150_v17 = vmul.f32 5.656854, %v1132_v12 }
 0x1b1   : > { %v10576_v19 = vadd.f32 %v1151_v13, %v932_v16 }
 0x1b2   : > { %v10574_v18 = vadd.f32 %v1150_v17, %v931_v15 }
 0x1b4   : > { %8474 = vmatprep.mubr.msk.f32.mxu0 %vm1170_vm0, %v10574_v18 }
 0x1b5   : > { %8475 = vmatmul.mubr.msk.f32.vlgmr.msra.gmra.mrb[4].mxu0 %vm1170_vm0, %v10576_v19 }
 0x1b8   : > { %v8465_v20 = vpop.f32.mrb[2].mxu0 }
 0x1b9   : > { %v1147_v21 = vadd.f32 %v8465_v20, %v7723_v7  ;;  %v1141_v22 = vpop.f32.mrb[3].mxu0 }
 0x1ba   : > { %v1142_v23 = vadd.f32 %v7723_v7, %v1141_v22 }
 0x1bb   : > { %v1153_v24 = vmul.f32 5.656854, %v1147_v21 }
 0x1bc   : > { %v1152_v27 = vmul.f32 5.656854, %v1142_v23 }
 0x1bd   : > { %v10586_v29 = vadd.f32 %v1153_v24, %v934_v26 }
 0x1be   : > { %v10584_v28 = vadd.f32 %v1152_v27, %v933_v25 }
 0x1c0   : > { %8477 = vmatprep.mubr.msk.f32.mxu0 %vm1170_vm0, %v10584_v28 }
 0x1c1   : > { %8478 = vmatmul.mubr.msk.f32.gmra.mrb[6].mxu0 %vm1170_vm0, %v10586_v29 }
 0x288   : > { %v8476_v31 = vpop.f32.mrb[4].mxu0 }
 0x289   : > { %v10593_v32 = vadd.f32 %v8476_v31, %v7729_v30  ;;  %v1249_v33 = vpop.f32.mrb[5].mxu0 }
 0x28a   : > { %v10595_v34 = vadd.f32 %v7729_v30, %v1249_v33 }
 0x28c   : > { %8488 = vmatprep.mubr.msk.f32.mxu0 %vm1280_vm1, %v10595_v34  ;;  %v10601_v35 = vpack.i.bf16 %v10593_v32, %v10595_v34 }
 0x28e   : > { %9773 = vrot.lane.b32.xlu0 %v10601_v35, %s10322_s19 }
 0x294   : > { %v8479_v37 = vpop.f32.mrb[6].mxu0 }
 0x295   : > { %v10605_v38 = vadd.f32 %v8479_v37, %v7729_v30  ;;  %v1259_v39 = vpop.f32.mrb[7].mxu0 }
 0x296   : > { %v10607_v41 = vadd.f32 %v7729_v30, %v1259_v39 }
 0x298   : > { %v10611_v42 = vpack.i.bf16 %v10605_v38, %v10607_v41 }
 0x29a   : > { %9778 = vrot.lane.b32.xlu1 %v10611_v42, %s10322_s19 }
 0x300   : > { %v9774_v43 = vpop.permute.xlu0 %9773 }
 0x301   : > { %v9776_v44 = vunpack.i.h.bf16 %v9774_v43  ;;  %v9775_v45 = vunpack.i.l.bf16 %v9774_v43 }
 0x303   : > { %v9210_v47 = vpack.c.bf16 %v9776_v44, %v9775_v45 }
 0x305   : > { %9212 = vmatprep.subr.msk.bf16.mxu0 %vm10617_vm2, %v9210_v47 }
 0x306   : > { %9215 = vmatpush3.bf16.xpose.msk.msra.mxu0 %vm10617_vm2, %v9210_v47 }
 0x30c   : > { %v9779_v48 = vpop.permute.xlu1 %9778 }
 0x30d   : > { %v9781_v51 = vunpack.i.h.bf16 %v9779_v48  ;;  %v9780_v52 = vunpack.i.l.bf16 %v9779_v48 }
 0x30f   : > { %v9216_v53 = vpack.c.bf16 %v9781_v51, %v9780_v52 }
 0x311   : > { %9218 = vmatprep.subr.msk.bf16.mxu0 %vm10617_vm2, %v9216_v53 }
 0x312   : > { %9221 = vmatpush3.bf16.xpose.msk.msra.mxu0 %vm10617_vm2, %v9216_v53 }
 0x319   : > { %8489 = vmatmul.mubr.msk.f32.vlgmr.msra.gmra.mrb[8].mxu0 %vm1280_vm1, %v10593_v32 }
 0x31a   : > { %8491 = vmatprep.mubr.msk.f32.mxu0 %vm1280_vm1, %v10607_v41 }
 0x31d   : > { %8492 = vmatmul.mubr.msk.f32.gmra.mrb[10].mxu0 %vm1280_vm1, %v10605_v38 }
 0x3ec   : > { %v8490_v54 = vpop.f32.mrb[8].mxu0 }
 0x3ed   : > { %v1383_v56 = vmul.f32 0.25, %v8490_v54  ;;  %v1363_v57 = vpop.f32.mrb[9].mxu0 }
 0x3ee   : > { %v1382_v59 = vmul.f32 0.25, %v1363_v57 }
 0x3ef   : > { %v1387_v60 = vadd.f32 %v1383_v56, %v10636_v55 }
 0x3f0   : > { %v8493_v61 = vpop.f32.mrb[10].mxu0  ;;  %v1386_v62 = vadd.f32 %v1382_v59, %v10639_v58 }
 0x3f1   : > { %v1373_v63 = vpop.f32.mrb[11].mxu0  ;;  %v1393_v0 = vsel %vm1170_vm0, %v1387_v60, -inf  ;;  %v1385_v2 = vmul.f32 0.25, %v8493_v61 }
 0x3f2   : > { %v1384_v3 = vmul.f32 0.25, %v1373_v63  ;;  %1394 = vmax.xlane.f32.xlu1 %v1393_v0  ;;  %v1390_v4 = vsel %vm1170_vm0, %v1386_v62, -inf }
 0x3f3   : > { %1391 = vmax.xlane.f32.xlu0 %v1390_v4  ;;  %v1389_v8 = vadd.f32 %v1385_v2, %v10649_v5 }
 0x3f4   : > { %v1388_v6 = vadd.f32 %v1384_v3, %v10645_v1 }
 0x3f5   : > { %v1399_v9 = vsel %vm1170_vm0, %v1389_v8, -inf }
 0x3f6   : > { %v1396_v7 = vsel %vm1170_vm0, %v1388_v6, -inf }
 0x3f7   : > { %1397 = vmax.xlane.f32.xlu0 %v1396_v7 }
 0x3fb   : > { %1400 = vmax.xlane.f32.xlu0 %v1399_v9 }
 0x403   : > { %9783 = vrot.lane.b32.xlu1 %v10601_v35, %s10323_s26 }
 0x407   : > { %9793 = vrot.lane.b32.xlu1 %v10601_v35, %s10324_s20 }
 0x47f   : > { %v1395_v11 = vpop.xlane.xlu1 %1394 }
 0x480   : > { %v1403_v12 = vsub.f32 %v1387_v60, %v1395_v11  ;;  %v1392_v13 = vpop.xlane.xlu0 %1391 }
 0x481   : > { %v1402_v15 = vsub.f32 %v1386_v62, %v1392_v13 }
 0x482   : > { %v1408_v16 = vmul.f32 1.442695, %v1403_v12 }
 0x483   : > { %v1406_v17 = vmul.f32 1.442695, %v1402_v15  ;;  %v9784_v20 = vpop.permute.xlu1 %9783 }
 0x484   : > { %9982 = vpow2.f32 %v1408_v16  ;;  %v9786_v21 = vunpack.i.h.bf16 %v9784_v20  ;;  %v9785_v22 = vunpack.i.l.bf16 %v9784_v20  ;;  %v1398_v30 = vpop.xlane.xlu0 %1397 }
 0x485   : > { %9984 = vpow2.f32 %v1406_v17  ;;  %v1404_v37 = vsub.f32 %v1388_v6, %v1398_v30 }
 0x486   : > { %v9222_v23 = vpack.c.bf16 %v9786_v21, %v9785_v22 }
 0x487   : > { %v1410_v43 = vmul.f32 1.442695, %v1404_v37  ;;  %v9794_v51 = vpop.permute.xlu1 %9793 }
 0x488   : > { %9223 = vmatprep.subr.bf16.mxu1 %v9222_v23  ;;  %v1401_v31 = vpop.xlane.xlu0 %1400  ;;  %v9796_v56 = vunpack.i.h.bf16 %v9794_v51  ;;  %v9795_v57 = vunpack.i.l.bf16 %v9794_v51 }
 0x489   : > { %9225 = vmatpush3.bf16.msra.mxu1 %v9222_v23  ;;  %v1405_v33 = vsub.f32 %v1389_v8, %v1401_v31 }
 0x48a   : > { %v9230_v61 = vpack.c.bf16 %v9796_v56, %v9795_v57 }
 0x48b   : > { %v1412_v39 = vmul.f32 1.442695, %v1405_v33 }
 0x48d   : > { %9986 = vpow2.f32 %v1412_v39 }
 0x48e   : > { %v9983_v24 = vpop.eup %9982  ;;  %9988 = vpow2.f32 %v1410_v43 }
 0x48f   : > { %v9985_v25 = vpop.eup %9984  ;;  %v1417_v26 = vsel %vm1170_vm0, %v9983_v24, 0.0 }
 0x490   : > { %1418 = vadd.xlane.f32.xlu0 %v1417_v26  ;;  %v1414_v27 = vsel %vm1170_vm0, %v9985_v25, 0.0 }
 0x491   : > { %1415 = vadd.xlane.f32.xlu1 %v1414_v27 }
 0x497   : > { %v9987_v44 = vpop.eup %9986 }
 0x498   : > { %v9989_v45 = vpop.eup %9988  ;;  %v1423_v47 = vsel %vm1170_vm0, %v9987_v44, 0.0 }
 0x499   : > { %v1420_v48 = vsel %vm1170_vm0, %v9989_v45, 0.0 }
 0x4a2   : > { %9798 = vrot.lane.b32.xlu1 %v10611_v42, %s10324_s20 }
 0x4a6   : > { %9788 = vrot.lane.b32.xlu0 %v10611_v42, %s10323_s26 }
 0x4c5   : > { %1424 = vadd.xlane.f32.xlu0 %v1423_v47 }
 0x4c6   : > { %1421 = vadd.xlane.f32.xlu1 %v1420_v48 }
 0x4d7   : > { %1545 = vrot.lane.b32.xlu1 %v10593_v32, %s10325_s28 }
 0x4db   : > { %1549 = vrot.lane.b32.xlu1 %v10605_v38, %s10325_s28  ;;  %1543 = vrot.lane.b32.xlu0 %v10595_v34, %s10325_s28 }
 0x4df   : > { %1547 = vrot.lane.b32.xlu0 %v10607_v41, %s10325_s28 }
 0x51d   : > { %v1419_v52 = vpop.xlane.xlu0 %1418 }
 0x51e   : > { %9990 = vrcp.f32 %v1419_v52  ;;  %v1416_v53 = vpop.xlane.xlu1 %1415 }
 0x51f   : > { %9992 = vrcp.f32 %v1416_v53 }
 0x521   : > { %v9789_v54 = vpop.permute.xlu0 %9788 }
 0x522   : > { %v9791_v59 = vunpack.i.h.bf16 %v9789_v54  ;;  %v9790_v60 = vunpack.i.l.bf16 %v9789_v54  ;;  %v9799_v62 = vpop.permute.xlu1 %9798 }
 0x523   : > { %v9801_v63 = vunpack.i.h.bf16 %v9799_v62  ;;  %v9800_v0 = vunpack.i.l.bf16 %v9799_v62 }
 0x524   : > { %v9226_v32 = vpack.c.bf16 %v9791_v59, %v9790_v60 }
 0x525   : > { %v9236_v3 = vpack.c.bf16 %v9801_v63, %v9800_v0 }
 0x526   : > { %9227 = vmatprep.subr.bf16.mxu1 %v9226_v32 }
 0x527   : > { %9229 = vmatpush3.bf16.msra.mxu1 %v9226_v32 }
 0x528   : > { %v9991_v38 = vpop.eup %9990  ;;  %9232 = vmatprep.subr.msk.bf16.mxu1 %vm10617_vm2, %v9230_v61 }
 0x529   : > { %v9993_v34 = vpop.eup %9992  ;;  %v1431_v2 = vmul.f32 %v9991_v38, %v9983_v24 }
 0x52a   : > { %v1430_v41 = vmul.f32 %v9993_v34, %v9985_v25 }
 0x52c   : > { %8502 = vmatprep.mubr.msk.f32.mxu1 %vm1170_vm0, %v1430_v41 }
 0x52d   : > { %8503 = vmatmul.mubr.msk.f32.vlgmr.msra.gmra.mrb[0].mxu1 %vm1170_vm0, %v1431_v2 }
 0x530   : > { %9235 = vmatpush3.bf16.xpose.msk.msra.mxu1 %vm10617_vm2, %v9230_v61 }
 0x531   : > { %9238 = vmatprep.subr.msk.bf16.mxu1 %vm10617_vm2, %v9236_v3 }
 0x538   : > { %9241 = vmatpush3.bf16.xpose.msk.msra.mxu1 %vm10617_vm2, %v9236_v3 }
 0x552   : > { %v1425_v4 = vpop.xlane.xlu0 %1424 }
 0x553   : > { %9994 = vrcp.f32 %v1425_v4  ;;  %v1422_v6 = vpop.xlane.xlu1 %1421 }
 0x554   : > { %9996 = vrcp.f32 %v1422_v6 }
 0x556   : > { %v1544_v11 = vpop.permute.xlu0 %1543 }
 0x557   : > { %v1546_v13 = vpop.permute.xlu1 %1545 }
 0x55a   : > { %v1548_v15 = vpop.permute.xlu0 %1547 }
 0x55b   : > { %v1550_v16 = vpop.permute.xlu1 %1549 }
 0x55d   : > { %v9995_v7 = vpop.eup %9994 }
 0x55e   : > { %v9997_v8 = vpop.eup %9996  ;;  %v1433_v12 = vmul.f32 %v9995_v7, %v9987_v44 }
 0x55f   : > { %v1432_v9 = vmul.f32 %v9997_v8, %v9989_v45 }
 0x561   : > { %8505 = vmatprep.mubr.msk.f32.mxu1 %vm1170_vm0, %v1432_v9 }
 0x562   : > { %8506 = vmatmul.mubr.msk.f32.gmra.mrb[2].mxu1 %vm1170_vm0, %v1433_v12 }
 0x563   : > { %8516 = vmatprep.mubr.msk.f32.mxu1 %vm1280_vm1, %v1544_v11 }
 0x566   : > { %8517 = vmatmul.mubr.msk.f32.vlgmr.msra.gmra.mrb[4].mxu1 %vm1280_vm1, %v1546_v13 }
 0x567   : > { %8519 = vmatprep.mubr.msk.f32.mxu1 %vm1280_vm1, %v1548_v15 }
 0x56a   : > { %8520 = vmatmul.mubr.msk.f32.gmra.mrb[6].mxu1 %vm1280_vm1, %v1550_v16 }
 0x600   : > { %v10691_v17 = vpop.f32.mrb[0].mxu1 }
 0x601   : > { %v10693_v20 = vpop.f32.mrb[1].mxu1 }
 0x635   : > { %v10695_v21 = vpop.f32.mrb[2].mxu1 }
 0x636   : > { %v10697_v22 = vpop.f32.mrb[3].mxu1 }
 0x639   : > { %v8518_v23 = vpop.f32.mrb[4].mxu1 }
 0x63a   : > { %v1661_v24 = vmul.f32 0.25, %v8518_v23  ;;  %v1641_v25 = vpop.f32.mrb[5].mxu1 }
 0x63b   : > { %v1660_v26 = vmul.f32 0.25, %v1641_v25 }
 0x63c   : > { %v1665_v27 = vadd.f32 %v1661_v24, %v10636_v55 }
 0x63d   : > { %v8521_v30 = vpop.f32.mrb[6].mxu1  ;;  %v1664_v31 = vadd.f32 %v1660_v26, %v10639_v58 }
 0x63e   : > { %v1651_v33 = vpop.f32.mrb[7].mxu1  ;;  %v1671_v37 = vsel %vm1170_vm0, %v1665_v27, -inf  ;;  %v1663_v39 = vmul.f32 0.25, %v8521_v30 }
 0x63f   : > { %v1662_v43 = vmul.f32 0.25, %v1651_v33  ;;  %1672 = vmax.xlane.f32.xlu1 %v1671_v37  ;;  %v1668_v44 = vsel %vm1170_vm0, %v1664_v31, -inf  ;;  %v1841_v33 = vld [vmem:[%s10403_s6] sm:$0xff]  ;;  %v1842_v37 = vld [vmem:[%s10403_s6 + $0x8] sm:$0xff] }
 0x640   : > { %1669 = vmax.xlane.f32.xlu0 %v1668_v44  ;;  %v1667_v48 = vadd.f32 %v1663_v39, %v10649_v5  ;;  %v9250_v39 = vpack.c.bf16 %v1842_v37, %v1841_v33  ;;  %v1844_v44 = vld [vmem:[%s10403_s6 + $0x18] sm:$0xff]  ;;  %v2019_v33 = vld [vmem:[%s10408_s12] sm:$0xff]  ;;  %v2020_v37 = vld [vmem:[%s10408_s12 + $0x8] sm:$0xff] }
 0x641   : > { %v1666_v45 = vadd.f32 %v1662_v43, %v10645_v1  ;;  %v1843_v43 = vld [vmem:[%s10403_s6 + $0x10] sm:$0xff] }
 0x642   : > { %v1677_v55 = vsel %vm1170_vm0, %v1667_v48, -inf }
 0x643   : > { %v1674_v47 = vsel %vm1170_vm0, %v1666_v45, -inf }
 0x644   : > { %1675 = vmax.xlane.f32.xlu0 %v1674_v47 }
 0x648   : > { %1678 = vmax.xlane.f32.xlu0 %v1677_v55 }
 0x6cc   : > { %v1673_v58 = vpop.xlane.xlu1 %1672 }
 0x6cd   : > { %v1681_v51 = vsub.f32 %v1665_v27, %v1673_v58  ;;  %v1670_v52 = vpop.xlane.xlu0 %1669 }
 0x6ce   : > { %v1680_v53 = vsub.f32 %v1664_v31, %v1670_v52 }
 0x6cf   : > { %v1686_v54 = vmul.f32 1.442695, %v1681_v51 }
 0x6d0   : > { %v1684_v56 = vmul.f32 1.442695, %v1680_v53 }
 0x6d1   : > { %9998 = vpow2.f32 %v1686_v54  ;;  %v1676_v57 = vpop.xlane.xlu0 %1675 }
 0x6d2   : > { %10000 = vpow2.f32 %v1684_v56  ;;  %v1682_v59 = vsub.f32 %v1666_v45, %v1676_v57  ;;  %v9254_v45 = vpack.c.bf16 %v1844_v44, %v1843_v43  ;;  %v2021_v43 = vld [vmem:[%s10408_s12 + $0x10] sm:$0xff]  ;;  %v2022_v44 = vld [vmem:[%s10408_s12 + $0x18] sm:$0xff] }
 0x6d4   : > { %v1688_v60 = vmul.f32 1.442695, %v1682_v59 }
 0x6d5   : > { %v1679_v1 = vpop.xlane.xlu0 %1678 }
 0x6d6   : > { %10002 = vpow2.f32 %v1688_v60  ;;  %v1683_v32 = vsub.f32 %v1667_v48, %v1679_v1  ;;  %v10743_v1 = vld [vmem:[%s10423_s4] sm:$0x3f] }
 0x6d8   : > { %v1690_v61 = vmul.f32 1.442695, %v1683_v32 }
 0x6da   : > { %10004 = vpow2.f32 %v1690_v61 }
 0x6db   : > { %v9999_v5 = vpop.eup %9998 }
 0x6dc   : > { %v10001_v38 = vpop.eup %10000  ;;  %v1695_v62 = vsel %vm1170_vm0, %v9999_v5, 0.0 }
 0x6dd   : > { %1696 = vadd.xlane.f32.xlu0 %v1695_v62  ;;  %v1692_v34 = vsel %vm1170_vm0, %v10001_v38, 0.0 }
 0x6de   : > { %1693 = vadd.xlane.f32.xlu1 %v1692_v34 }
 0x6e0   : > { %v10003_v41 = vpop.eup %10002 }
 0x6e1   : > { %v1698_v63 = vsel %vm1170_vm0, %v10003_v41, 0.0 }
 0x6e2   : > { %1699 = vadd.xlane.f32.xlu1 %v1698_v63 }
 0x6e4   : > { %v10005_v0 = vpop.eup %10004 }
 0x6e5   : > { %v1701_v2 = vsel %vm1170_vm0, %v10005_v0, 0.0 }
 0x6e6   : > { %1702 = vadd.xlane.f32.xlu0 %v1701_v2 }
 0x6f3   : > { %9803 = vrot.lane.b32.xlu1 %v10601_v35, %s11938_s2 }
 0x6fc   : > { %9808 = vrot.lane.b32.xlu0 %v10611_v42, %s11938_s2 }
 0x76a   : > { %v1697_v4 = vpop.xlane.xlu0 %1696 }
 0x76b   : > { %v1694_v3 = vpop.xlane.xlu1 %1693 }
 0x76c   : > { %10006 = vrcp.f32 %v1694_v3 }
 0x76d   : > { %10008 = vrcp.f32 %v1697_v4 }
 0x76f   : > { %v1700_v6 = vpop.xlane.xlu1 %1699 }
 0x770   : > { %10010 = vrcp.f32 %v1700_v6 }
 0x773   : > { %v9804_v7 = vpop.permute.xlu1 %9803  ;;  %v1703_v8 = vpop.xlane.xlu0 %1702 }
 0x774   : > { %v9806_v9 = vunpack.i.h.bf16 %v9804_v7  ;;  %v9805_v11 = vunpack.i.l.bf16 %v9804_v7  ;;  %10012 = vrcp.f32 %v1703_v8 }
 0x776   : > { %v10007_v12 = vpop.eup %10006  ;;  %v9242_v13 = vpack.c.bf16 %v9806_v9, %v9805_v11 }
 0x777   : > { %v9809_v15 = vpop.permute.xlu0 %9808  ;;  %v1708_v16 = vmul.f32 %v10007_v12, %v10001_v38  ;;  %v10009_v24 = vpop.eup %10008 }
 0x778   : > { %v9811_v23 = vunpack.i.h.bf16 %v9809_v15  ;;  %v9810_v35 = vunpack.i.l.bf16 %v9809_v15  ;;  %9243 = vmatprep.subr.bf16.mxu0 %v9242_v13  ;;  %v1709_v26 = vmul.f32 %v10009_v24, %v9999_v5 }
 0x779   : > { %9245 = vmatpush3.bf16.msra.mxu0 %v9242_v13  ;;  %8530 = vmatprep.mubr.msk.f32.mxu0 %vm1170_vm0, %v1708_v16 }
 0x77a   : > { %v9246_v42 = vpack.c.bf16 %v9811_v23, %v9810_v35  ;;  %v10011_v25 = vpop.eup %10010 }
 0x77b   : > { %v1710_v30 = vmul.f32 %v10011_v25, %v10003_v41 }
 0x77c   : > { %9247 = vmatprep.subr.bf16.mxu0 %v9246_v42 }
 0x77d   : > { %9249 = vmatpush3.bf16.msra.mxu0 %v9246_v42 }
 0x77e   : > { %v10013_v27 = vpop.eup %10012  ;;  %9251 = vmatprep.subr.bf16.mxu0 %v9250_v39 }
 0x77f   : > { %v1711_v31 = vmul.f32 %v10013_v27, %v10005_v0 }
 0x780   : > { %8531 = vmatmul.mubr.msk.f32.vlgmr.msra.gmra.mrb[12].mxu0 %vm1170_vm0, %v1709_v26 }
 0x781   : > { %8533 = vmatprep.mubr.msk.f32.mxu0 %vm1170_vm0, %v1710_v30  ;;  %9253 = vmatpush3.bf16.msra.mxu0 %v9250_v39  ;;  %v9258_v39 = vpack.c.bf16 %v2020_v37, %v2019_v33 }
 0x782   : > { %9255 = vmatprep.subr.bf16.mxu0 %v9254_v45 }
 0x783   : > { %9259 = vmatprep.subr.bf16.mxu1 %v9258_v39 }
 0x784   : > { %8534 = vmatmul.mubr.msk.f32.gmra.mrb[14].mxu0 %vm1170_vm0, %v1711_v31  ;;  %9261 = vmatpush3.bf16.msra.mxu1 %v9258_v39 }
 0x785   : > { %9257 = vmatpush3.bf16.msra.mxu0 %v9254_v45  ;;  %v9262_v45 = vpack.c.bf16 %v2022_v44, %v2021_v43 }
 0x787   : > { %9263 = vmatprep.subr.bf16.mxu1 %v9262_v45 }
 0x788   : > { %9265 = vmatpush3.bf16.msra.mxu1 %v9262_v45  ;;  %v2145_v45 = vld [vmem:[%s10418_s27 + $0x70] sm:$0xff] }
 0x853   : > { %v8532_v47 = vpop.f32.mrb[12].mxu0 }
 0x854   : > { %v1802_v48 = vpop.f32.mrb[13].mxu0 }
 0x855   : > { %1825 = vrot.lane.b32.xlu1 %v1802_v48, %s11936_s7  ;;  %v2132_v48 = vld [vmem:[%s10418_s27 + $0x8] sm:$0xff] }
 0x857   : > { %v8535_v55 = vpop.f32.mrb[14].mxu0 }
 0x858   : > { %v1812_v58 = vpop.f32.mrb[15].mxu0 }
 0x859   : > { %1827 = vrot.lane.b32.xlu1 %v8532_v47, %s11936_s7  ;;  %1829 = vrot.lane.b32.xlu0 %v1812_v58, %s11936_s7  ;;  %v2131_v47 = vld [vmem:[%s10418_s27] sm:$0xff] }
 0x85a   : > { %v9266_v58 = vpack.c.bf16 %v2132_v48, %v2131_v47  ;;  %v2146_v47 = vld [vmem:[%s10418_s27 + $0x78] sm:$0xff]  ;;  %v7762_v48 = vld [vmem:[%s11953_s0] ss:$0 sm:$0xff] }
 0x85c   : > { %9267 = vmatprep.subr.bf16.mxu0 %v9266_v58 }
 0x85d   : > { %1831 = vrot.lane.b32.xlu1 %v8535_v55, %s11936_s7  ;;  %v2133_v55 = vld [vmem:[%s10418_s27 + $0x10] sm:$0xff] }
 0x8c7   : > { %v1826_v51 = vpop.permute.xlu1 %1825 }
 0x8c8   : > { %v1837_v52 = vsel %vm1280_vm1, %v10693_v20, %v1826_v51  ;;  %v10740_v20 = vsub.s32 0, %v10510_v10  ;;  %v2134_v51 = vld [vmem:[%s10418_s27 + $0x18] sm:$0xff] }
 0x8c9   : > { %8544 = vmatprep.mubr.msk.f32.mxu0 %vm1170_vm0, %v1837_v52  ;;  %v9270_v52 = vpack.c.bf16 %v2134_v51, %v2133_v55 }
 0x8cb   : > { %v1828_v53 = vpop.permute.xlu1 %1827  ;;  %v1830_v54 = vpop.permute.xlu0 %1829 }
 0x8cc   : > { %v1838_v56 = vsel %vm1280_vm1, %v10691_v17, %v1828_v53  ;;  %v1839_v57 = vsel %vm1280_vm1, %v10697_v22, %v1830_v54  ;;  %v1848_v17 = vrot.slane %v10743_v1, %v10740_v20  ;;  %v2135_v53 = vld [vmem:[%s10418_s27 + $0x20] sm:$0xff]  ;;  %v2136_v54 = vld [vmem:[%s10418_s27 + $0x28] sm:$0xff] }
 0x8cd   : > { %8545 = vmatmul.mubr.msk.f32.vlgmr.msra.gmra.mrb[16].mxu0 %vm1170_vm0, %v1838_v56  ;;  %v9274_v56 = vpack.c.bf16 %v2136_v54, %v2135_v53 }
 0x8ce   : > { %8547 = vmatprep.mubr.msk.f32.mxu0 %vm1170_vm0, %v1839_v57  ;;  %9269 = vmatpush3.bf16.msra.mxu0 %v9266_v58  ;;  %v2137_v57 = vld [vmem:[%s10418_s27 + $0x30] sm:$0xff] }
 0x8cf   : > { %v1832_v59 = vpop.permute.xlu1 %1831  ;;  %9271 = vmatprep.subr.bf16.mxu0 %v9270_v52 }
 0x8d0   : > { %v1840_v60 = vsel %vm1280_vm1, %v10695_v21, %v1832_v59  ;;  %v2138_v59 = vld [vmem:[%s10418_s27 + $0x38] sm:$0xff] }
 0x8d1   : > { %8548 = vmatmul.mubr.msk.f32.gmra.mrb[18].mxu0 %vm1170_vm0, %v1840_v60  ;;  %v9278_v60 = vpack.c.bf16 %v2138_v59, %v2137_v57 }
 0x8d2   : > { %9273 = vmatpush3.bf16.msra.mxu0 %v9270_v52 }
 0x8d3   : > { %9275 = vmatprep.subr.bf16.mxu0 %v9274_v56 }
 0x8d6   : > { %9277 = vmatpush3.bf16.msra.mxu0 %v9274_v56 }
 0x8d7   : > { %9279 = vmatprep.subr.bf16.mxu0 %v9278_v60 }
 0x8da   : > { %9281 = vmatpush3.bf16.msra.mxu0 %v9278_v60 }
 0x9a0   : > { %v8546_v32 = vpop.f32.mrb[16].mxu0 }
 0x9a1   : > { %v1933_v22 = vadd.f32 %v8546_v32, %v1848_v17  ;;  %v1927_v61 = vpop.f32.mrb[17].mxu0  ;;  %v2140_v32 = vld [vmem:[%s10418_s27 + $0x48] sm:$0xff] }
 0x9a2   : > { %v1928_v5 = vadd.f32 %v1927_v61, %v1848_v17  ;;  %v2141_v61 = vld [vmem:[%s10418_s27 + $0x50] sm:$0xff] }
 0x9a3   : > { %v1947_v38 = vadd.f32 %v1933_v22, %v10576_v19 }
 0x9a4   : > { %v8549_v62 = vpop.f32.mrb[18].mxu0  ;;  %v1946_v34 = vadd.f32 %v1928_v5, %v10574_v18  ;;  %v2142_v5 = vld [vmem:[%s10418_s27 + $0x58] sm:$0xff] }
 0x9a5   : > { %v1937_v21 = vpop.f32.mrb[19].mxu0  ;;  %v1953_v41 = vsel %vm1170_vm0, %v1947_v38, 0.0  ;;  %v1943_v63 = vadd.f32 %v8549_v62, %v1848_v17  ;;  %v2143_v62 = vld [vmem:[%s10418_s27 + $0x60] sm:$0xff] }
 0x9a6   : > { %v1938_v0 = vadd.f32 %v1937_v21, %v1848_v17  ;;  %1954 = vadd.xlane.f32.xlu1 %v1953_v41  ;;  %v1950_v2 = vsel %vm1170_vm0, %v1946_v34, 0.0  ;;  %v2139_v17 = vld [vmem:[%s10418_s27 + $0x40] sm:$0xff] }
 0x9a7   : > { %1951 = vadd.xlane.f32.xlu0 %v1950_v2  ;;  %v1949_v6 = vadd.f32 %v1943_v63, %v10586_v29  ;;  %v9282_v22 = vpack.c.bf16 %v2140_v32, %v2139_v17  ;;  %v10812_v32 = vsub.s32 3, %v10510_v10 }
 0x9a8   : > { %v1948_v3 = vadd.f32 %v1938_v0, %v10584_v28 }
 0x9a9   : > { %v1959_v19 = vsel %vm1170_vm0, %v1949_v6, 0.0  ;;  %9283 = vmatprep.subr.bf16.mxu0 %v9282_v22 }
 0x9aa   : > { %v1956_v4 = vsel %vm1170_vm0, %v1948_v3, 0.0  ;;  %9285 = vmatpush3.bf16.msra.mxu0 %v9282_v22  ;;  %v2150_v22 = vrot.slane %v10743_v1, %v10812_v32 }
 0x9ab   : > { %1957 = vadd.xlane.f32.xlu0 %v1956_v4 }
 0x9af   : > { %1960 = vadd.xlane.f32.xlu0 %v1959_v19 }
 0xa33   : > { %v1955_v18 = vpop.xlane.xlu1 %1954 }
 0xa34   : > { %v1964_v7 = vmul.f32 0.03125, %v1955_v18  ;;  %v1952_v8 = vpop.xlane.xlu0 %1951 }
 0xa35   : > { %v1963_v9 = vmul.f32 0.03125, %v1952_v8  ;;  %v10794_v8 = vsub.s32 1, %v10510_v10 }
 0xa36   : > { %v10755_v11 = vsub.f32 %v1947_v38, %v1964_v7  ;;  %v9286_v38 = vpack.c.bf16 %v2142_v5, %v2141_v61 }
 0xa37   : > { %v10757_v12 = vsub.f32 %v1946_v34, %v1963_v9  ;;  %v2144_v34 = vld [vmem:[%s10418_s27 + $0x68] sm:$0xff] }
 0xa38   : > { %v1958_v13 = vpop.xlane.xlu0 %1957  ;;  %v1972_v28 = vmul.f32 %v10755_v11, %v10755_v11  ;;  %9287 = vmatprep.subr.bf16.mxu0 %v9286_v38  ;;  %v9290_v21 = vpack.c.bf16 %v2144_v34, %v2143_v62 }
 0xa39   : > { %v1965_v15 = vmul.f32 0.03125, %v1958_v13  ;;  %v1971_v29 = vmul.f32 %v10757_v12, %v10757_v12  ;;  %9289 = vmatpush3.bf16.msra.mxu0 %v9286_v38 }
 0xa3a   : > { %v1978_v16 = vsel %vm1170_vm0, %v1972_v28, 0.0  ;;  %9291 = vmatprep.subr.bf16.mxu0 %v9290_v21  ;;  %v2006_v28 = vrot.slane %v10743_v1, %v10794_v8 }
 0xa3b   : > { %v10764_v23 = vsub.f32 %v1948_v3, %v1965_v15  ;;  %1979 = vadd.xlane.f32.xlu0 %v1978_v16  ;;  %v1975_v35 = vsel %vm1170_vm0, %v1971_v29, 0.0 }
 0xa3c   : > { %1976 = vadd.xlane.f32.xlu1 %v1975_v35  ;;  %v1961_v42 = vpop.xlane.xlu0 %1960 }
 0xa3d   : > { %v1966_v24 = vmul.f32 0.03125, %v1961_v42  ;;  %v1973_v25 = vmul.f32 %v10764_v23, %v10764_v23  ;;  %9293 = vmatpush3.bf16.msra.mxu0 %v9290_v21  ;;  %v2014_v42 = vrot.slane %v10743_v1, %v10515_v14 }
 0xa3f   : > { %v10769_v26 = vsub.f32 %v1949_v6, %v1966_v24  ;;  %v1981_v27 = vsel %vm1170_vm0, %v1973_v25, 0.0 }
 0xa40   : > { %1982 = vadd.xlane.f32.xlu1 %v1981_v27 }
 0xa41   : > { %v1974_v30 = vmul.f32 %v10769_v26, %v10769_v26 }
 0xa43   : > { %v1984_v31 = vsel %vm1170_vm0, %v1974_v30, 0.0 }
 0xa44   : > { %1985 = vadd.xlane.f32.xlu0 %v1984_v31 }
 0xac8   : > { %v1980_v41 = vpop.xlane.xlu0 %1979 }
 0xac9   : > { %v1988_v63 = vmul.f32 0.03125, %v1980_v41  ;;  %v1977_v0 = vpop.xlane.xlu1 %1976 }
 0xaca   : > { %v1987_v2 = vmul.f32 0.03125, %v1977_v0 }
 0xacb   : > { %v1992_v3 = vadd.f32 1e-05, %v1988_v63 }
 0xacc   : > { %v1991_v4 = vadd.f32 1e-05, %v1987_v2 }
 0xacd   : > { %10014 = vrsqrt.f32 %v1992_v3  ;;  %v1983_v6 = vpop.xlane.xlu1 %1982 }
 0xace   : > { %10016 = vrsqrt.f32 %v1991_v4  ;;  %v1989_v19 = vmul.f32 0.03125, %v1983_v6 }
 0xad0   : > { %v1993_v18 = vadd.f32 1e-05, %v1989_v19 }
 0xad1   : > { %v1986_v7 = vpop.xlane.xlu0 %1985 }
 0xad2   : > { %10018 = vrsqrt.f32 %v1993_v18  ;;  %v1990_v9 = vmul.f32 0.03125, %v1986_v7 }
 0xad4   : > { %v1994_v13 = vadd.f32 1e-05, %v1990_v9 }
 0xad6   : > { %10020 = vrsqrt.f32 %v1994_v13 }
 0xad7   : > { %v10015_v15 = vpop.eup %10014 }
 0xad8   : > { %v10017_v29 = vpop.eup %10016  ;;  %v2000_v16 = vmul.f32 %v10015_v15, %v10755_v11 }
 0xad9   : > { %v1999_v35 = vmul.f32 %v10017_v29, %v10757_v12 }
 0xada   : > { %v2008_v24 = vmul.f32 %v2006_v28, %v2000_v16 }
 0xadb   : > { %v2007_v25 = vmul.f32 %v2006_v28, %v1999_v35 }
 0xadc   : > { %v10019_v27 = vpop.eup %10018  ;;  %v2016_v33 = vadd.f32 %v2014_v42, %v2008_v24 }
 0xadd   : > { %v2015_v30 = vadd.f32 %v2014_v42, %v2007_v25  ;;  %v2001_v31 = vmul.f32 %v10019_v27, %v10764_v23  ;;  %v9294_v23 = vpack.c.bf16 %v2146_v47, %v2145_v45  ;;  %v7768_v45 = vld [vmem:[%s10393_s24 + $0x20] sm:$0xff]  ;;  %v7769_v47 = vld [vmem:[%s10393_s24 + $0x28] sm:$0xff] }
 0xadf   : > { %8558 = vmatprep.mubr.msk.f32.mxu1 %vm1170_vm0, %v2015_v30  ;;  %v2009_v37 = vmul.f32 %v2006_v28, %v2001_v31  ;;  %9295 = vmatprep.subr.bf16.mxu0 %v9294_v23 }
 0xae0   : > { %v10021_v39 = vpop.eup %10020  ;;  %8559 = vmatmul.mubr.msk.f32.vlgmr.msra.gmra.mrb[8].mxu1 %vm1170_vm0, %v2016_v33  ;;  %9297 = vmatpush3.bf16.msra.mxu0 %v9294_v23  ;;  %v9298_v23 = vpack.c.bf16 %v7769_v47, %v7768_v45 }
 0xae1   : > { %v2017_v11 = vadd.f32 %v2014_v42, %v2009_v37  ;;  %v2002_v12 = vmul.f32 %v10021_v39, %v10769_v26 }
 0xae2   : > { %9299 = vmatprep.subr.bf16.mxu1 %v9298_v23 }
 0xae3   : > { %8561 = vmatprep.mubr.msk.f32.mxu1 %vm1170_vm0, %v2017_v11  ;;  %v2010_v43 = vmul.f32 %v2006_v28, %v2002_v12  ;;  %9301 = vmatpush3.bf16.msra.mxu1 %v9298_v23 }
 0xae5   : > { %v2018_v44 = vadd.f32 %v2014_v42, %v2010_v43 }
 0xae7   : > { %8562 = vmatmul.mubr.msk.f32.gmra.mrb[10].mxu1 %vm1170_vm0, %v2018_v44 }
 0xbb3   : > { %v8560_v55 = vpop.f32.mrb[8].mxu1 }
 0xbb4   : > { %v2114_v58 = vadd.f32 %v8560_v55, %v7762_v48  ;;  %v2108_v51 = vpop.f32.mrb[9].mxu1  ;;  %v7771_v55 = vld [vmem:[%s10393_s24 + $0x38] sm:$0xff] }
 0xbb5   : > { %v2109_v52 = vadd.f32 %v7762_v48, %v2108_v51 }
 0xbb6   : > { %v2128_v54 = vmax.f32 %v2114_v58, 0.0 }
 0xbb7   : > { %v2127_v53 = vmax.f32 %v2109_v52, 0.0 }
 0xbb9   : > { %8596 = vmatprep.mubr.f32.mxu0 %v2127_v53 }
 0xbba   : > { %v8563_v26 = vpop.f32.mrb[10].mxu1  ;;  %8597 = vmatmul.mubr.f32.vlgmr.msra.gmra.mrb[20].mxu0 %v2128_v54 }
 0xbbb   : > { %v2124_v56 = vadd.f32 %v8563_v26, %v7762_v48  ;;  %v2118_v57 = vpop.f32.mrb[11].mxu1 }
 0xbbc   : > { %v2119_v59 = vadd.f32 %v7762_v48, %v2118_v57  ;;  %v7770_v48 = vld [vmem:[%s10393_s24 + $0x30] sm:$0xff] }
 0xbbd   : > { %v2130_v17 = vmax.f32 %v2124_v56, 0.0  ;;  %v9302_v58 = vpack.c.bf16 %v7771_v55, %v7770_v48 }
 0xbbe   : > { %v2129_v60 = vmax.f32 %v2119_v59, 0.0 }
 0xbbf   : > { %9303 = vmatprep.subr.bf16.mxu1 %v9302_v58 }
 0xbc0   : > { %8599 = vmatprep.mubr.f32.mxu0 %v2129_v60  ;;  %9305 = vmatpush3.bf16.msra.mxu1 %v9302_v58 }
 0xbc1   : > { %8600 = vmatmul.mubr.f32.gmra.mrb[22].mxu0 %v2130_v17 }
 0xc8d   : > { %v8598_v61 = vpop.f32.mrb[20].mxu0 }
 0xc8e   : > { %v2223_v5 = vadd.f32 %v8598_v61, %v2150_v22  ;;  %v2217_v38 = vpop.f32.mrb[21].mxu0 }
 0xc8f   : > { %v2218_v62 = vadd.f32 %v2217_v38, %v2150_v22  ;;  %v10832_v38 = vsub.s32 5, %v10510_v10 }
 0xc90   : > { %v2237_v34 = vadd.f32 %v2223_v5, %v2016_v33 }
 0xc91   : > { %v2236_v21 = vadd.f32 %v2218_v62, %v2015_v30 }
 0xc92   : > { %v2243_v41 = vsel %vm1170_vm0, %v2237_v34, 0.0 }
 0xc93   : > { %2244 = vadd.xlane.f32.xlu0 %v2243_v41  ;;  %v2240_v63 = vsel %vm1170_vm0, %v2236_v21, 0.0 }
 0xc94   : > { %2241 = vadd.xlane.f32.xlu1 %v2240_v63  ;;  %v8601_v0 = vpop.f32.mrb[22].mxu0 }
 0xc95   : > { %v2233_v2 = vadd.f32 %v8601_v0, %v2150_v22  ;;  %v2227_v3 = vpop.f32.mrb[23].mxu0  ;;  %v2303_v0 = vrot.slane %v10743_v1, %v10832_v38 }
 0xc96   : > { %v2228_v4 = vadd.f32 %v2227_v3, %v2150_v22  ;;  %v10829_v22 = vsub.s32 4, %v10510_v10 }
 0xc97   : > { %v2239_v6 = vadd.f32 %v2233_v2, %v2018_v44 }
 0xc98   : > { %v2238_v19 = vadd.f32 %v2228_v4, %v2017_v11  ;;  %v2295_v62 = vrot.slane %v10743_v1, %v10829_v22 }
 0xc99   : > { %v2249_v18 = vsel %vm1170_vm0, %v2239_v6, 0.0 }
 0xc9a   : > { %2250 = vadd.xlane.f32.xlu0 %v2249_v18  ;;  %v2246_v7 = vsel %vm1170_vm0, %v2238_v19, 0.0 }
 0xc9b   : > { %2247 = vadd.xlane.f32.xlu1 %v2246_v7 }
 0xd20   : > { %v2245_v9 = vpop.xlane.xlu0 %2244 }
 0xd21   : > { %v2253_v13 = vmul.f32 0.03125, %v2245_v9  ;;  %v2242_v28 = vpop.xlane.xlu1 %2241 }
 0xd22   : > { %v2252_v15 = vmul.f32 0.03125, %v2242_v28 }
 0xd23   : > { %v2257_v29 = vsub.f32 %v2237_v34, %v2253_v13 }
 0xd24   : > { %v2256_v16 = vsub.f32 %v2236_v21, %v2252_v15  ;;  %v7773_v15 = vld [vmem:[%s10398_s30 + $0x1] ss:$0 sm:$0xff] }
 0xd25   : > { %v2261_v35 = vmul.f32 %v2257_v29, %v2257_v29 }
 0xd26   : > { %v2260_v42 = vmul.f32 %v2256_v16, %v2256_v16 }
 0xd27   : > { %v2251_v24 = vpop.xlane.xlu0 %2250  ;;  %v2267_v25 = vsel %vm1170_vm0, %v2261_v35, 0.0 }
 0xd28   : > { %v2255_v27 = vmul.f32 0.03125, %v2251_v24  ;;  %v2248_v30 = vpop.xlane.xlu1 %2247  ;;  %2268 = vadd.xlane.f32.xlu0 %v2267_v25  ;;  %v2264_v31 = vsel %vm1170_vm0, %v2260_v42, 0.0 }
 0xd29   : > { %v2254_v33 = vmul.f32 0.03125, %v2248_v30  ;;  %2265 = vadd.xlane.f32.xlu1 %v2264_v31 }
 0xd2a   : > { %v2259_v37 = vsub.f32 %v2239_v6, %v2255_v27 }
 0xd2b   : > { %v2258_v39 = vsub.f32 %v2238_v19, %v2254_v33 }
 0xd2c   : > { %v2263_v11 = vmul.f32 %v2259_v37, %v2259_v37 }
 0xd2d   : > { %v2262_v12 = vmul.f32 %v2258_v39, %v2258_v39 }
 0xd2e   : > { %v2273_v43 = vsel %vm1170_vm0, %v2263_v11, 0.0 }
 0xd2f   : > { %2274 = vadd.xlane.f32.xlu0 %v2273_v43  ;;  %v2270_v44 = vsel %vm1170_vm0, %v2262_v12, 0.0 }
 0xd30   : > { %2271 = vadd.xlane.f32.xlu1 %v2270_v44 }
 0xdb5   : > { %v2269_v51 = vpop.xlane.xlu0 %2268 }
 0xdb6   : > { %v2277_v52 = vmul.f32 0.03125, %v2269_v51  ;;  %v2266_v53 = vpop.xlane.xlu1 %2265 }
 0xdb7   : > { %v2276_v54 = vmul.f32 0.03125, %v2266_v53 }
 0xdb8   : > { %v2281_v26 = vadd.f32 1e-05, %v2277_v52 }
 0xdb9   : > { %v2280_v56 = vadd.f32 1e-05, %v2276_v54 }
 0xdba   : > { %10022 = vrsqrt.f32 %v2281_v26 }
 0xdbb   : > { %10024 = vrsqrt.f32 %v2280_v56 }
 0xdbc   : > { %v2275_v57 = vpop.xlane.xlu0 %2274 }
 0xdbd   : > { %v2279_v59 = vmul.f32 0.03125, %v2275_v57  ;;  %v2272_v60 = vpop.xlane.xlu1 %2271 }
 0xdbe   : > { %v2278_v17 = vmul.f32 0.03125, %v2272_v60 }
 0xdbf   : > { %v2283_v61 = vadd.f32 1e-05, %v2279_v59 }
 0xdc0   : > { %v2282_v5 = vadd.f32 1e-05, %v2278_v17 }
 0xdc1   : > { %10026 = vrsqrt.f32 %v2283_v61 }
 0xdc2   : > { %10028 = vrsqrt.f32 %v2282_v5 }
 0xdc4   : > { %v10023_v34 = vpop.eup %10022 }
 0xdc5   : > { %v10025_v21 = vpop.eup %10024  ;;  %v2289_v41 = vmul.f32 %v10023_v34, %v2257_v29 }
 0xdc6   : > { %v2288_v63 = vmul.f32 %v10025_v21, %v2256_v16 }
 0xdc7   : > { %v2297_v2 = vmul.f32 %v2295_v62, %v2289_v41 }
 0xdc8   : > { %v2296_v3 = vmul.f32 %v2295_v62, %v2288_v63  ;;  %v10255_v63 = vld [vmem:[%s10360_s21] sm:$0xff] }
 0xdc9   : > { %v10840_v19 = vadd.f32 %v2303_v0, %v2297_v2 }
 0xdca   : > { %v10838_v4 = vadd.f32 %v2303_v0, %v2296_v3 }
 0xdcb   : > { %v10027_v6 = vpop.eup %10026 }
 0xdcc   : > { %v10029_v10 = vpop.eup %10028  ;;  %8610 = vmatprep.mubr.msk.f32.mxu1 %vm1170_vm0, %v10838_v4  ;;  %v2291_v18 = vmul.f32 %v10027_v6, %v2259_v37 }
 0xdcd   : > { %8611 = vmatmul.mubr.msk.f32.vlgmr.msra.gmra.mrb[12].mxu1 %vm1170_vm0, %v10840_v19  ;;  %v2290_v7 = vmul.f32 %v10029_v10, %v2258_v39 }
 0xdce   : > { %v2299_v9 = vmul.f32 %v2295_v62, %v2291_v18 }
 0xdcf   : > { %v2298_v13 = vmul.f32 %v2295_v62, %v2290_v7  ;;  %v10254_v62 = vld [vmem:[%s10360_s21 + $0x8] sm:$0xff] }
 0xdd0   : > { %v10848_v28 = vadd.f32 %v2303_v0, %v2299_v9 }
 0xdd1   : > { %v10846_v1 = vadd.f32 %v2303_v0, %v2298_v13 }
 0xdd3   : > { %8613 = vmatprep.mubr.msk.f32.mxu1 %vm1170_vm0, %v10846_v1 }
 0xdd4   : > { %8614 = vmatmul.mubr.msk.f32.gmra.mrb[14].mxu1 %vm1170_vm0, %v10848_v28 }
 0xea0   : > { %v8612_v29 = vpop.f32.mrb[12].mxu1 }
 0xea1   : > { %v2407_v16 = vadd.f32 %v8612_v29, %v7773_v15  ;;  %v2401_v35 = vpop.f32.mrb[13].mxu1  ;;  %v10256_v29 = vld [vmem:[%s10360_s21 + $0x10] sm:$0xff] }
 0xea2   : > { %v2402_v42 = vadd.f32 %v7773_v15, %v2401_v35 }
 0xea4   : > { %8624 = vmatprep.mubr.msk.f32.mxu1 %vm1280_vm1, %v2402_v42  ;;  %v10856_v24 = vpack.i.bf16 %v2407_v16, %v2402_v42 }
 0xea6   : > { %9813 = vrot.lane.b32.xlu1 %v10856_v24, %s10322_s19 }
 0xea7   : > { %v8615_v25 = vpop.f32.mrb[14].mxu1 }
 0xea8   : > { %v2417_v27 = vadd.f32 %v8615_v25, %v7773_v15  ;;  %v2411_v30 = vpop.f32.mrb[15].mxu1 }
 0xea9   : > { %v2412_v31 = vadd.f32 %v7773_v15, %v2411_v30 }
 0xeaa   : > { %9823 = vrot.lane.b32.xlu1 %v10856_v24, %s10324_s20 }
 0xeab   : > { %v10862_v33 = vpack.i.bf16 %v2417_v27, %v2412_v31 }
 0xead   : > { %9818 = vrot.lane.b32.xlu0 %v10862_v33, %s10322_s19 }
 0xeae   : > { %9828 = vrot.lane.b32.xlu1 %v10862_v33, %s10324_s20 }
 0xeb1   : > { %2694 = vrot.lane.b32.xlu0 %v2402_v42, %s10325_s28 }
 0xeb2   : > { %2696 = vrot.lane.b32.xlu1 %v2407_v16, %s10325_s28 }
 0xeb5   : > { %2698 = vrot.lane.b32.xlu0 %v2412_v31, %s10325_s28 }
 0xeb6   : > { %2700 = vrot.lane.b32.xlu1 %v2417_v27, %s10325_s28 }
 0xf18   : > { %v9814_v37 = vpop.permute.xlu1 %9813 }
 0xf19   : > { %v9816_v39 = vunpack.i.h.bf16 %v9814_v37  ;;  %v9815_v11 = vunpack.i.l.bf16 %v9814_v37 }
 0xf1b   : > { %v9306_v12 = vpack.c.bf16 %v9816_v39, %v9815_v11 }
 0xf1c   : > { %v9824_v43 = vpop.permute.xlu1 %9823 }
 0xf1d   : > { %v9826_v44 = vunpack.i.h.bf16 %v9824_v43  ;;  %v9825_v45 = vunpack.i.l.bf16 %v9824_v43  ;;  %9308 = vmatprep.subr.msk.bf16.mxu1 %vm10617_vm2, %v9306_v12 }
 0xf1e   : > { %9311 = vmatpush3.bf16.xpose.msk.msra.mxu1 %vm10617_vm2, %v9306_v12 }
 0xf1f   : > { %v9326_v47 = vpack.c.bf16 %v9826_v44, %v9825_v45  ;;  %v9819_v23 = vpop.permute.xlu0 %9818 }
 0xf20   : > { %v9821_v48 = vunpack.i.h.bf16 %v9819_v23  ;;  %v9820_v55 = vunpack.i.l.bf16 %v9819_v23  ;;  %v9829_v58 = vpop.permute.xlu1 %9828 }
 0xf21   : > { %v9831_v51 = vunpack.i.h.bf16 %v9829_v58  ;;  %v9830_v52 = vunpack.i.l.bf16 %v9829_v58  ;;  %9328 = vmatprep.subr.msk.bf16.mxu0 %vm10617_vm2, %v9326_v47 }
 0xf22   : > { %v9312_v53 = vpack.c.bf16 %v9821_v48, %v9820_v55  ;;  %9331 = vmatpush3.bf16.xpose.msk.msra.mxu0 %vm10617_vm2, %v9326_v47 }
 0xf23   : > { %v9332_v54 = vpack.c.bf16 %v9831_v51, %v9830_v52  ;;  %v2695_v26 = vpop.permute.xlu0 %2694 }
 0xf24   : > { %9314 = vmatprep.subr.msk.bf16.mxu1 %vm10617_vm2, %v9312_v53  ;;  %8652 = vmatprep.mubr.msk.f32.mxu0 %vm1280_vm1, %v2695_v26  ;;  %v2697_v56 = vpop.permute.xlu1 %2696 }
 0xf25   : > { %9334 = vmatprep.subr.msk.bf16.mxu0 %vm10617_vm2, %v9332_v54 }
 0xf26   : > { %9317 = vmatpush3.bf16.xpose.msk.msra.mxu1 %vm10617_vm2, %v9312_v53 }
 0xf27   : > { %v2699_v57 = vpop.permute.xlu0 %2698 }
 0xf28   : > { %v2701_v59 = vpop.permute.xlu1 %2700 }
 0xf2a   : > { %9337 = vmatpush3.bf16.xpose.msk.msra.mxu0 %vm10617_vm2, %v9332_v54 }
 0xf2d   : > { %8625 = vmatmul.mubr.msk.f32.vlgmr.msra.gmra.mrb[16].mxu1 %vm1280_vm1, %v2407_v16 }
 0xf2e   : > { %8627 = vmatprep.mubr.msk.f32.mxu1 %vm1280_vm1, %v2412_v31  ;;  %v10257_v31 = vld [vmem:[%s10360_s21 + $0x18] sm:$0xff] }
 0xf31   : > { %8628 = vmatmul.mubr.msk.f32.gmra.mrb[18].mxu1 %vm1280_vm1, %v2417_v27  ;;  %8653 = vmatmul.mubr.msk.f32.vlgmr.msra.gmra.mrb[24].mxu0 %vm1280_vm1, %v2697_v56 }
 0xf32   : > { %8655 = vmatprep.mubr.msk.f32.mxu0 %vm1280_vm1, %v2699_v57 }
 0xf35   : > { %8656 = vmatmul.mubr.msk.f32.gmra.mrb[26].mxu0 %vm1280_vm1, %v2701_v59 }
0x1000   : > { %v8626_v60 = vpop.f32.mrb[16].mxu1 }
0x1001   : > { %v2534_v17 = vmul.f32 0.25, %v8626_v60  ;;  %v2514_v61 = vpop.f32.mrb[17].mxu1 }
0x1002   : > { %v2533_v5 = vmul.f32 0.25, %v2514_v61 }
0x1003   : > { %v2538_v34 = vadd.f32 %v10254_v62, %v2534_v17 }
0x1004   : > { %v8629_v21 = vpop.f32.mrb[18].mxu1  ;;  %v8654_v41 = vpop.f32.mrb[24].mxu0  ;;  %v2537_v0 = vadd.f32 %v10255_v63, %v2533_v5 }
0x1005   : > { %v2524_v2 = vpop.f32.mrb[19].mxu1  ;;  %v2792_v3 = vpop.f32.mrb[25].mxu0  ;;  %v2544_v6 = vsel %vm1170_vm0, %v2538_v34, -inf  ;;  %v2536_v10 = vmul.f32 0.25, %v8629_v21  ;;  %v2812_v35 = vmul.f32 0.25, %v8654_v41 }
0x1006   : > { %v2535_v18 = vmul.f32 0.25, %v2524_v2  ;;  %v2811_v7 = vmul.f32 0.25, %v2792_v3  ;;  %2545 = vmax.xlane.f32.xlu1 %v2544_v6  ;;  %v2541_v9 = vsel %vm1170_vm0, %v2537_v0, -inf }
0x1007   : > { %2542 = vmax.xlane.f32.xlu0 %v2541_v9  ;;  %v2540_v37 = vadd.f32 %v10257_v31, %v2536_v10  ;;  %v2816_v44 = vadd.f32 %v10254_v62, %v2812_v35 }
0x1008   : > { %v8657_v13 = vpop.f32.mrb[26].mxu0  ;;  %v2815_v15 = vadd.f32 %v10255_v63, %v2811_v7  ;;  %v10900_v16 = vadd.f32 %v10256_v29, %v2535_v18 }
0x1009   : > { %v2802_v42 = vpop.f32.mrb[27].mxu0  ;;  %v2814_v11 = vmul.f32 0.25, %v8657_v13  ;;  %v2550_v43 = vsel %vm1170_vm0, %v2540_v37, -inf  ;;  %v2822_v45 = vsel %vm1170_vm0, %v2816_v44, -inf }
0x100a   : > { %v2813_v25 = vmul.f32 0.25, %v2802_v42  ;;  %v2819_v27 = vsel %vm1170_vm0, %v2815_v15, -inf  ;;  %v2547_v30 = vsel %vm1170_vm0, %v10900_v16, -inf }
0x100b   : > { %2820 = vmax.xlane.f32.xlu1 %v2819_v27  ;;  %2548 = vmax.xlane.f32.xlu0 %v2547_v30  ;;  %v2818_v47 = vadd.f32 %v10257_v31, %v2814_v11 }
0x100c   : > { %v10906_v39 = vadd.f32 %v10256_v29, %v2813_v25 }
0x100d   : > { %v2828_v23 = vsel %vm1170_vm0, %v2818_v47, -inf }
0x100e   : > { %v2825_v12 = vsel %vm1170_vm0, %v10906_v39, -inf }
0x100f   : > { %2826 = vmax.xlane.f32.xlu1 %v2825_v12  ;;  %2551 = vmax.xlane.f32.xlu0 %v2550_v43 }
0x1013   : > { %2823 = vmax.xlane.f32.xlu0 %v2822_v45 }
0x1017   : > { %2829 = vmax.xlane.f32.xlu0 %v2828_v23 }
0x1020   : > { %9833 = vrot.lane.b32.xlu1 %v10856_v24, %s10323_s26 }
0x1093   : > { %v2546_v48 = vpop.xlane.xlu1 %2545 }
0x1094   : > { %v2554_v55 = vsub.f32 %v2538_v34, %v2546_v48  ;;  %v2543_v58 = vpop.xlane.xlu0 %2542 }
0x1095   : > { %v2553_v51 = vsub.f32 %v2537_v0, %v2543_v58 }
0x1096   : > { %v2559_v52 = vmul.f32 1.442695, %v2554_v55 }
0x1097   : > { %v2557_v53 = vmul.f32 1.442695, %v2553_v51 }
0x1098   : > { %10030 = vpow2.f32 %v2559_v52  ;;  %v2821_v54 = vpop.xlane.xlu1 %2820  ;;  %v2549_v26 = vpop.xlane.xlu0 %2548 }
0x1099   : > { %10032 = vpow2.f32 %v2557_v53  ;;  %v2831_v56 = vsub.f32 %v2815_v15, %v2821_v54  ;;  %v2555_v31 = vsub.f32 %v10900_v16, %v2549_v26 }
0x109b   : > { %v2835_v57 = vmul.f32 1.442695, %v2831_v56 }
0x109c   : > { %v2827_v59 = vpop.xlane.xlu1 %2826  ;;  %v2552_v60 = vpop.xlane.xlu0 %2551 }
0x109d   : > { %10034 = vpow2.f32 %v2835_v57  ;;  %v2556_v17 = vsub.f32 %v2540_v37, %v2552_v60  ;;  %v2561_v37 = vmul.f32 1.442695, %v2555_v31  ;;  %v2833_v11 = vsub.f32 %v10906_v39, %v2827_v59 }
0x109f   : > { %v2563_v0 = vmul.f32 1.442695, %v2556_v17  ;;  %v2839_v12 = vmul.f32 1.442695, %v2833_v11 }
0x10a0   : > { %v9834_v61 = vpop.permute.xlu1 %9833  ;;  %v2824_v5 = vpop.xlane.xlu0 %2823 }
0x10a1   : > { %v9836_v62 = vunpack.i.h.bf16 %v9834_v61  ;;  %v9835_v21 = vunpack.i.l.bf16 %v9834_v61  ;;  %v2832_v41 = vsub.f32 %v2816_v44, %v2824_v5 }
0x10a2   : > { %v10915_v34 = vpop.eup %10030 }
0x10a3   : > { %v10033_v63 = vpop.eup %10032  ;;  %v2837_v2 = vmul.f32 1.442695, %v2832_v41  ;;  %v2568_v3 = vsel %vm1170_vm0, %v10915_v34, 0.0  ;;  %v9318_v6 = vpack.c.bf16 %v9836_v62, %v9835_v21 }
0x10a4   : > { %2569 = vadd.xlane.f32.xlu0 %v2568_v3  ;;  %v2830_v10 = vpop.xlane.xlu0 %2829  ;;  %v2565_v18 = vsel %vm1170_vm0, %v10033_v63, 0.0 }
0x10a5   : > { %10036 = vpow2.f32 %v2837_v2  ;;  %v2834_v7 = vsub.f32 %v2818_v47, %v2830_v10  ;;  %9319 = vmatprep.subr.bf16.mxu1 %v9318_v6  ;;  %2566 = vadd.xlane.f32.xlu1 %v2565_v18 }
0x10a6   : > { %9321 = vmatpush3.bf16.msra.mxu1 %v9318_v6  ;;  %10038 = vpow2.f32 %v2563_v0 }
0x10a7   : > { %v10920_v9 = vpop.eup %10034  ;;  %v2841_v13 = vmul.f32 1.442695, %v2834_v7 }
0x10a8   : > { %v2843_v15 = vsel %vm1170_vm0, %v10920_v9, 0.0 }
0x10a9   : > { %2844 = vadd.xlane.f32.xlu1 %v2843_v15  ;;  %10040 = vpow2.f32 %v2841_v13 }
0x10aa   : > { %10042 = vpow2.f32 %v2561_v37  ;;  %v7805_v37 = vld [vmem:[%s10403_s6 + $0x38] sm:$0xff] }
0x10ab   : > { %10044 = vpow2.f32 %v2839_v12 }
0x10af   : > { %v10924_v29 = vpop.eup %10036 }
0x10b0   : > { %v2846_v35 = vsel %vm1170_vm0, %v10924_v29, 0.0  ;;  %v10928_v42 = vpop.eup %10038 }
0x10b1   : > { %2847 = vadd.xlane.f32.xlu0 %v2846_v35  ;;  %v2574_v25 = vsel %vm1170_vm0, %v10928_v42, 0.0 }
0x10b3   : > { %v10932_v27 = vpop.eup %10040 }
0x10b4   : > { %v2852_v30 = vsel %vm1170_vm0, %v10932_v27, 0.0  ;;  %v10043_v43 = vpop.eup %10042 }
0x10b5   : > { %2575 = vadd.xlane.f32.xlu0 %v2574_v25  ;;  %v2571_v44 = vsel %vm1170_vm0, %v10043_v43, 0.0  ;;  %v10045_v45 = vpop.eup %10044  ;;  %v7802_v25 = vld [vmem:[%s10403_s6 + $0x20] sm:$0xff] }
0x10b6   : > { %v2849_v47 = vsel %vm1170_vm0, %v10045_v45, 0.0 }
0x10b9   : > { %2853 = vadd.xlane.f32.xlu0 %v2852_v30  ;;  %v7803_v30 = vld [vmem:[%s10403_s6 + $0x28] sm:$0xff] }
0x10ba   : > { %9843 = vrot.lane.b32.xlu1 %v10856_v24, %s11938_s2  ;;  %v9346_v31 = vpack.c.bf16 %v7803_v30, %v7802_v25 }
0x10cf   : > { %9838 = vrot.lane.b32.xlu0 %v10862_v33, %s10323_s26 }
0x10de   : > { %2572 = vadd.xlane.f32.xlu1 %v2571_v44 }
0x10e2   : > { %2850 = vadd.xlane.f32.xlu1 %v2849_v47 }
0x10f3   : > { %9848 = vrot.lane.b32.xlu1 %v10862_v33, %s11938_s2 }
0x1131   : > { %v2570_v16 = vpop.xlane.xlu0 %2569 }
0x1132   : > { %v2567_v24 = vpop.xlane.xlu1 %2566 }
0x1133   : > { %10046 = vrcp.f32 %v2567_v24 }
0x1134   : > { %10048 = vrcp.f32 %v2570_v16 }
0x1136   : > { %v2845_v55 = vpop.xlane.xlu1 %2844 }
0x1137   : > { %10050 = vrcp.f32 %v2845_v55 }
0x113a   : > { %v9844_v52 = vpop.permute.xlu1 %9843 }
0x113b   : > { %v9846_v54 = vunpack.i.h.bf16 %v9844_v52  ;;  %v9845_v26 = vunpack.i.l.bf16 %v9844_v52 }
0x113d   : > { %v10047_v39 = vpop.eup %10046  ;;  %v9338_v60 = vpack.c.bf16 %v9846_v54, %v9845_v26 }
0x113e   : > { %v2848_v23 = vpop.xlane.xlu0 %2847  ;;  %v2581_v48 = vmul.f32 %v10047_v39, %v10033_v63  ;;  %v10049_v33 = vpop.eup %10048 }
0x113f   : > { %v2582_v17 = vmul.f32 %v10049_v33, %v10915_v34 }
0x1140   : > { %8638 = vmatprep.mubr.msk.f32.mxu1 %vm1170_vm0, %v2581_v48 }
0x1141   : > { %v10051_v21 = vpop.eup %10050 }
0x1142   : > { %v2576_v58 = vpop.xlane.xlu0 %2575  ;;  %v2859_v18 = vmul.f32 %v10051_v21, %v10920_v9  ;;  %v7804_v9 = vld [vmem:[%s10403_s6 + $0x30] sm:$0xff] }
0x1143   : > { %10052 = vrcp.f32 %v2576_v58  ;;  %v9350_v11 = vpack.c.bf16 %v7805_v37, %v7804_v9 }
0x1146   : > { %v2854_v51 = vpop.xlane.xlu0 %2853 }
0x114a   : > { %v9839_v53 = vpop.permute.xlu0 %9838 }
0x114b   : > { %v9841_v56 = vunpack.i.h.bf16 %v9839_v53  ;;  %v9840_v57 = vunpack.i.l.bf16 %v9839_v53  ;;  %v10976_v53 = vld [vmem:[%s10423_s4 + $0x8] sm:$0x3f] }
0x114c   : > { %v3000_v54 = vrot.slane %v10976_v53, %v10740_v20 }
0x114d   : > { %v9322_v59 = vpack.c.bf16 %v9841_v56, %v9840_v57  ;;  %v10053_v0 = vpop.eup %10052 }
0x114e   : > { %v2584_v6 = vmul.f32 %v10053_v0, %v10928_v42 }
0x114f   : > { %9323 = vmatprep.subr.bf16.mxu1 %v9322_v59 }
0x1150   : > { %9325 = vmatpush3.bf16.msra.mxu1 %v9322_v59 }
0x1151   : > { %9339 = vmatprep.subr.bf16.mxu1 %v9338_v60 }
0x1153   : > { %8639 = vmatmul.mubr.msk.f32.vlgmr.msra.gmra.mrb[20].mxu1 %vm1170_vm0, %v2582_v17 }
0x1154   : > { %9341 = vmatpush3.bf16.msra.mxu1 %v9338_v60 }
0x116b   : > { %v2573_v61 = vpop.xlane.xlu1 %2572 }
0x116c   : > { %10054 = vrcp.f32 %v2573_v61 }
0x116d   : > { %10056 = vrcp.f32 %v2848_v23 }
0x116f   : > { %v2851_v5 = vpop.xlane.xlu1 %2850 }
0x1170   : > { %10058 = vrcp.f32 %v2851_v5 }
0x1171   : > { %10060 = vrcp.f32 %v2854_v51 }
0x1173   : > { %v9849_v62 = vpop.permute.xlu1 %9848 }
0x1174   : > { %v9851_v41 = vunpack.i.h.bf16 %v9849_v62  ;;  %v9850_v63 = vunpack.i.l.bf16 %v9849_v62 }
0x1176   : > { %v10055_v2 = vpop.eup %10054  ;;  %v9342_v3 = vpack.c.bf16 %v9851_v41, %v9850_v63 }
0x1177   : > { %v2583_v34 = vmul.f32 %v10055_v2, %v10043_v43  ;;  %v10057_v10 = vpop.eup %10056 }
0x1178   : > { %9343 = vmatprep.subr.bf16.mxu1 %v9342_v3  ;;  %v2860_v13 = vmul.f32 %v10057_v10, %v10924_v29 }
0x1179   : > { %8641 = vmatprep.mubr.msk.f32.mxu1 %vm1170_vm0, %v2583_v34  ;;  %9345 = vmatpush3.bf16.msra.mxu1 %v9342_v3 }
0x117a   : > { %v10059_v7 = vpop.eup %10058  ;;  %8642 = vmatmul.mubr.msk.f32.gmra.mrb[22].mxu1 %vm1170_vm0, %v2584_v6  ;;  %9347 = vmatprep.subr.bf16.mxu1 %v9346_v31 }
0x117b   : > { %8666 = vmatprep.mubr.msk.f32.mxu1 %vm1170_vm0, %v2859_v18  ;;  %v10061_v15 = vpop.eup %10060  ;;  %v2861_v35 = vmul.f32 %v10059_v7, %v10045_v45 }
0x117c   : > { %v2862_v42 = vmul.f32 %v10061_v15, %v10932_v27 }
0x117e   : > { %8667 = vmatmul.mubr.msk.f32.vlgmr.msra.gmra.mrb[24].mxu1 %vm1170_vm0, %v2860_v13 }
0x117f   : > { %8669 = vmatprep.mubr.msk.f32.mxu1 %vm1170_vm0, %v2861_v35  ;;  %9349 = vmatpush3.bf16.msra.mxu1 %v9346_v31 }
0x1180   : > { %9351 = vmatprep.subr.bf16.mxu1 %v9350_v11 }
0x1182   : > { %8670 = vmatmul.mubr.msk.f32.gmra.mrb[26].mxu1 %vm1170_vm0, %v2862_v42 }
0x1183   : > { %9353 = vmatpush3.bf16.msra.mxu1 %v9350_v11 }
0x1226   : > { %v8640_v29 = vpop.f32.mrb[20].mxu1 }
0x1227   : > { %v2675_v12 = vpop.f32.mrb[21].mxu1 }
0x124d   : > { %v8643_v43 = vpop.f32.mrb[22].mxu1 }
0x124e   : > { %v2685_v44 = vpop.f32.mrb[23].mxu1 }
0x1251   : > { %v8668_v45 = vpop.f32.mrb[24].mxu1 }
0x1252   : > { %2978 = vrot.lane.b32.xlu1 %v8668_v45, %s11936_s7  ;;  %v2953_v27 = vpop.f32.mrb[25].mxu1  ;;  %v7812_v45 = vld [vmem:[%s10408_s12 + $0x30] sm:$0xff] }
0x1253   : > { %2976 = vrot.lane.b32.xlu0 %v2953_v27, %s11936_s7  ;;  %v7813_v27 = vld [vmem:[%s10408_s12 + $0x38] sm:$0xff] }
0x1255   : > { %v8671_v47 = vpop.f32.mrb[26].mxu1 }
0x1256   : > { %2982 = vrot.lane.b32.xlu1 %v8671_v47, %s11936_s7  ;;  %v2963_v24 = vpop.f32.mrb[27].mxu1  ;;  %v9358_v47 = vpack.c.bf16 %v7813_v27, %v7812_v45 }
0x1257   : > { %2980 = vrot.lane.b32.xlu0 %v2963_v24, %s11936_s7  ;;  %v7820_v24 = vld [vmem:[%s10418_s27 + $0x80] sm:$0xff] }
0x12c4   : > { %v2979_v16 = vpop.permute.xlu1 %2978 }
0x12c5   : > { %v2977_v39 = vpop.permute.xlu0 %2976  ;;  %v2989_v48 = vsel %vm1280_vm1, %v8640_v29, %v2979_v16  ;;  %v7821_v16 = vld [vmem:[%s10418_s27 + $0x88] sm:$0xff] }
0x12c6   : > { %v2988_v23 = vsel %vm1280_vm1, %v2675_v12, %v2977_v39  ;;  %v7810_v12 = vld [vmem:[%s10408_s12 + $0x20] sm:$0xff]  ;;  %v7822_v39 = vld [vmem:[%s10418_s27 + $0x90] sm:$0xff] }
0x12c7   : > { %8680 = vmatprep.mubr.msk.f32.mxu1 %vm1170_vm0, %v2988_v23  ;;  %v9362_v23 = vpack.c.bf16 %v7821_v16, %v7820_v24  ;;  %v7834_v16 = vld [vmem:[%s10418_s27 + $0xf0] sm:$0xff] }
0x12c8   : > { %8681 = vmatmul.mubr.msk.f32.vlgmr.msra.gmra.mrb[28].mxu1 %vm1170_vm0, %v2989_v48  ;;  %v2983_v55 = vpop.permute.xlu1 %2982  ;;  %v7823_v48 = vld [vmem:[%s10418_s27 + $0x98] sm:$0xff] }
0x12c9   : > { %v2981_v58 = vpop.permute.xlu0 %2980  ;;  %v2991_v52 = vsel %vm1280_vm1, %v8643_v43, %v2983_v55  ;;  %v7811_v43 = vld [vmem:[%s10408_s12 + $0x28] sm:$0xff]  ;;  %v9366_v55 = vpack.c.bf16 %v7823_v48, %v7822_v39  ;;  %9363 = vmatprep.subr.bf16.mxu1 %v9362_v23  ;;  %v7835_v39 = vld [vmem:[%s10418_s27 + $0xf8] sm:$0xff] }
0x12ca   : > { %v2990_v51 = vsel %vm1280_vm1, %v2685_v44, %v2981_v58  ;;  %v9354_v44 = vpack.c.bf16 %v7811_v43, %v7810_v12  ;;  %v7824_v58 = vld [vmem:[%s10418_s27 + $0xa0] sm:$0xff]  ;;  %9365 = vmatpush3.bf16.msra.mxu1 %v9362_v23 }
0x12cb   : > { %8683 = vmatprep.mubr.msk.f32.mxu1 %vm1170_vm0, %v2990_v51  ;;  %v7825_v51 = vld [vmem:[%s10418_s27 + $0xa8] sm:$0xff]  ;;  %9367 = vmatprep.subr.bf16.mxu1 %v9366_v55  ;;  %v7815_v23 = vld [vmem:[%s11953_s0 + $0x1] ss:$0 sm:$0xff] }
0x12cc   : > { %8684 = vmatmul.mubr.msk.f32.gmra.mrb[30].mxu1 %vm1170_vm0, %v2991_v52  ;;  %9355 = vmatprep.subr.bf16.mxu0 %v9354_v44  ;;  %v9370_v52 = vpack.c.bf16 %v7825_v51, %v7824_v58 }
0x12cd   : > { %9357 = vmatpush3.bf16.msra.mxu0 %v9354_v44 }
0x12ce   : > { %9359 = vmatprep.subr.bf16.mxu0 %v9358_v47  ;;  %9369 = vmatpush3.bf16.msra.mxu1 %v9366_v55 }
0x12cf   : > { %9371 = vmatprep.subr.bf16.mxu1 %v9370_v52 }
0x12d1   : > { %9361 = vmatpush3.bf16.msra.mxu0 %v9358_v47 }
0x12d2   : > { %9373 = vmatpush3.bf16.msra.mxu1 %v9370_v52 }
0x139b   : > { %v8682_v26 = vpop.f32.mrb[28].mxu1 }
0x139c   : > { %v3085_v56 = vadd.f32 %v8682_v26, %v3000_v54  ;;  %v3079_v57 = vpop.f32.mrb[29].mxu1  ;;  %v7827_v26 = vld [vmem:[%s10418_s27 + $0xb8] sm:$0xff] }
0x139d   : > { %v3080_v59 = vadd.f32 %v3079_v57, %v3000_v54  ;;  %v7828_v57 = vld [vmem:[%s10418_s27 + $0xc0] sm:$0xff] }
0x139e   : > { %v3099_v33 = vadd.f32 %v3085_v56, %v10840_v19 }
0x139f   : > { %v8685_v60 = vpop.f32.mrb[30].mxu1  ;;  %v3098_v17 = vadd.f32 %v3080_v59, %v10838_v4  ;;  %v7829_v59 = vld [vmem:[%s10418_s27 + $0xc8] sm:$0xff] }
0x13a0   : > { %v3089_v61 = vpop.f32.mrb[31].mxu1  ;;  %v3105_v5 = vsel %vm1170_vm0, %v3099_v33, 0.0  ;;  %v3095_v62 = vadd.f32 %v8685_v60, %v3000_v54  ;;  %v7830_v60 = vld [vmem:[%s10418_s27 + $0xd0] sm:$0xff] }
0x13a1   : > { %v3090_v21 = vadd.f32 %v3089_v61, %v3000_v54  ;;  %3106 = vadd.xlane.f32.xlu1 %v3105_v5  ;;  %v3102_v41 = vsel %vm1170_vm0, %v3098_v17, 0.0  ;;  %v7826_v54 = vld [vmem:[%s10418_s27 + $0xb0] sm:$0xff]  ;;  %v7832_v5 = vld [vmem:[%s10418_s27 + $0xe0] sm:$0xff] }
0x13a2   : > { %3103 = vadd.xlane.f32.xlu0 %v3102_v41  ;;  %v3101_v2 = vadd.f32 %v3095_v62, %v10848_v28  ;;  %v9374_v56 = vpack.c.bf16 %v7827_v26, %v7826_v54  ;;  %v7833_v62 = vld [vmem:[%s10418_s27 + $0xe8] sm:$0xff] }
0x13a3   : > { %v3100_v63 = vadd.f32 %v3090_v21, %v10846_v1  ;;  %v9386_v21 = vpack.c.bf16 %v7833_v62, %v7832_v5 }
0x13a4   : > { %v3111_v19 = vsel %vm1170_vm0, %v3101_v2, 0.0  ;;  %9375 = vmatprep.subr.bf16.mxu1 %v9374_v56 }
0x13a5   : > { %v3108_v0 = vsel %vm1170_vm0, %v3100_v63, 0.0  ;;  %9377 = vmatpush3.bf16.msra.mxu1 %v9374_v56 }
0x13a6   : > { %3109 = vadd.xlane.f32.xlu0 %v3108_v0 }
0x13aa   : > { %3112 = vadd.xlane.f32.xlu0 %v3111_v19 }
0x142e   : > { %v3107_v4 = vpop.xlane.xlu1 %3106 }
0x142f   : > { %v3115_v3 = vmul.f32 0.03125, %v3107_v4  ;;  %v3104_v34 = vpop.xlane.xlu0 %3103 }
0x1430   : > { %v3114_v6 = vmul.f32 0.03125, %v3104_v34 }
0x1431   : > { %v10988_v10 = vsub.f32 %v3099_v33, %v3115_v3  ;;  %v9378_v33 = vpack.c.bf16 %v7829_v59, %v7828_v57 }
0x1432   : > { %v10990_v18 = vsub.f32 %v3098_v17, %v3114_v6  ;;  %v7831_v17 = vld [vmem:[%s10418_s27 + $0xd8] sm:$0xff] }
0x1433   : > { %v3110_v7 = vpop.xlane.xlu0 %3109  ;;  %v3123_v1 = vmul.f32 %v10988_v10, %v10988_v10  ;;  %9379 = vmatprep.subr.bf16.mxu1 %v9378_v33  ;;  %v9382_v61 = vpack.c.bf16 %v7831_v17, %v7830_v60  ;;  %v3304_v60 = vrot.slane %v10976_v53, %v10812_v32 }
0x1434   : > { %v3116_v13 = vmul.f32 0.03125, %v3110_v7  ;;  %v3122_v28 = vmul.f32 %v10990_v18, %v10990_v18  ;;  %9381 = vmatpush3.bf16.msra.mxu1 %v9378_v33 }
0x1435   : > { %v3129_v15 = vsel %vm1170_vm0, %v3123_v1, 0.0  ;;  %9383 = vmatprep.subr.bf16.mxu1 %v9382_v61 }
0x1436   : > { %v10997_v35 = vsub.f32 %v3100_v63, %v3116_v13  ;;  %3130 = vadd.xlane.f32.xlu0 %v3129_v15  ;;  %v3126_v42 = vsel %vm1170_vm0, %v3122_v28, 0.0  ;;  %v3157_v28 = vrot.slane %v10976_v53, %v10794_v8 }
0x1437   : > { %3127 = vadd.xlane.f32.xlu1 %v3126_v42  ;;  %v3113_v25 = vpop.xlane.xlu0 %3112 }
0x1438   : > { %v3117_v30 = vmul.f32 0.03125, %v3113_v25  ;;  %v3124_v9 = vmul.f32 %v10997_v35, %v10997_v35  ;;  %9385 = vmatpush3.bf16.msra.mxu1 %v9382_v61 }
0x1439   : > { %9387 = vmatprep.subr.bf16.mxu1 %v9386_v21 }
0x143a   : > { %v11002_v31 = vsub.f32 %v3101_v2, %v3117_v30  ;;  %v3132_v37 = vsel %vm1170_vm0, %v3124_v9, 0.0  ;;  %v3165_v9 = vrot.slane %v10976_v53, %v10515_v14 }
0x143b   : > { %3133 = vadd.xlane.f32.xlu1 %v3132_v37 }
0x143c   : > { %v3125_v11 = vmul.f32 %v11002_v31, %v11002_v31  ;;  %9389 = vmatpush3.bf16.msra.mxu1 %v9386_v21 }
0x143e   : > { %v3135_v29 = vsel %vm1170_vm0, %v3125_v11, 0.0 }
0x143f   : > { %3136 = vadd.xlane.f32.xlu0 %v3135_v29 }
0x14c3   : > { %v3131_v41 = vpop.xlane.xlu0 %3130 }
0x14c4   : > { %v3139_v63 = vmul.f32 0.03125, %v3131_v41  ;;  %v3128_v0 = vpop.xlane.xlu1 %3127 }
0x14c5   : > { %v3138_v2 = vmul.f32 0.03125, %v3128_v0 }
0x14c6   : > { %v3143_v19 = vadd.f32 1e-05, %v3139_v63 }
0x14c7   : > { %v3142_v4 = vadd.f32 1e-05, %v3138_v2 }
0x14c8   : > { %10062 = vrsqrt.f32 %v3143_v19  ;;  %v3134_v3 = vpop.xlane.xlu1 %3133 }
0x14c9   : > { %10064 = vrsqrt.f32 %v3142_v4  ;;  %v3140_v34 = vmul.f32 0.03125, %v3134_v3 }
0x14cb   : > { %v3144_v6 = vadd.f32 1e-05, %v3140_v34 }
0x14cc   : > { %v3137_v7 = vpop.xlane.xlu0 %3136 }
0x14cd   : > { %10066 = vrsqrt.f32 %v3144_v6  ;;  %v3141_v1 = vmul.f32 0.03125, %v3137_v7 }
0x14cf   : > { %v3145_v13 = vadd.f32 1e-05, %v3141_v1 }
0x14d1   : > { %10068 = vrsqrt.f32 %v3145_v13 }
0x14d2   : > { %v10063_v15 = vpop.eup %10062 }
0x14d3   : > { %v10065_v42 = vpop.eup %10064  ;;  %v3151_v25 = vmul.f32 %v10063_v15, %v10988_v10 }
0x14d4   : > { %v3150_v30 = vmul.f32 %v10065_v42, %v10990_v18 }
0x14d5   : > { %v3159_v37 = vmul.f32 %v3157_v28, %v3151_v25 }
0x14d6   : > { %v3158_v11 = vmul.f32 %v3157_v28, %v3150_v30 }
0x14d7   : > { %v10067_v29 = vpop.eup %10066  ;;  %v3167_v44 = vadd.f32 %v3165_v9, %v3159_v37 }
0x14d8   : > { %v3166_v12 = vadd.f32 %v3165_v9, %v3158_v11  ;;  %v3152_v43 = vmul.f32 %v10067_v29, %v10997_v35  ;;  %v9390_v35 = vpack.c.bf16 %v7835_v39, %v7834_v16  ;;  %v3462_v39 = vld [vmem:[%s11954_s11] sm:$0xff] }
0x14da   : > { %8694 = vmatprep.mubr.msk.f32.mxu0 %vm1170_vm0, %v3166_v12  ;;  %v3160_v45 = vmul.f32 %v3157_v28, %v3152_v43  ;;  %9391 = vmatprep.subr.bf16.mxu1 %v9390_v35 }
0x14db   : > { %v10069_v27 = vpop.eup %10068  ;;  %8695 = vmatmul.mubr.msk.f32.vlgmr.msra.gmra.mrb[28].mxu0 %vm1170_vm0, %v3167_v44  ;;  %9393 = vmatpush3.bf16.msra.mxu1 %v9390_v35  ;;  %v3463_v35 = vld [vmem:[%s11954_s11 + $0x8] sm:$0xff] }
0x14dc   : > { %v3168_v10 = vadd.f32 %v3165_v9, %v3160_v45  ;;  %v3153_v18 = vmul.f32 %v10069_v27, %v11002_v31 }
0x14de   : > { %8697 = vmatprep.mubr.msk.f32.mxu0 %vm1170_vm0, %v3168_v10  ;;  %v3161_v47 = vmul.f32 %v3157_v28, %v3153_v18 }
0x14e0   : > { %v3169_v24 = vadd.f32 %v3165_v9, %v3161_v47 }
0x14e2   : > { %8698 = vmatmul.mubr.msk.f32.gmra.mrb[30].mxu0 %vm1170_vm0, %v3169_v24 }
0x15ae   : > { %v8696_v48 = vpop.f32.mrb[28].mxu0 }
0x15af   : > { %v3267_v55 = vadd.f32 %v8696_v48, %v7815_v23  ;;  %v3261_v58 = vpop.f32.mrb[29].mxu0  ;;  %v3464_v48 = vld [vmem:[%s11954_s11 + $0x10] sm:$0xff] }
0x15b0   : > { %v3262_v51 = vadd.f32 %v7815_v23, %v3261_v58 }
0x15b1   : > { %v3281_v54 = vmax.f32 %v3267_v55, 0.0  ;;  %v3465_v55 = vld [vmem:[%s11954_s11 + $0x18] sm:$0xff] }
0x15b2   : > { %v3280_v52 = vmax.f32 %v3262_v51, 0.0  ;;  %v9398_v58 = vpack.c.bf16 %v3465_v55, %v3464_v48 }
0x15b4   : > { %8732 = vmatprep.mubr.f32.mxu1 %v3280_v52 }
0x15b5   : > { %v8699_v31 = vpop.f32.mrb[30].mxu0  ;;  %8733 = vmatmul.mubr.f32.vlgmr.msra.gmra.mrb[32].mxu1 %v3281_v54 }
0x15b6   : > { %v3277_v26 = vadd.f32 %v8699_v31, %v7815_v23  ;;  %v3271_v56 = vpop.f32.mrb[31].mxu0 }
0x15b7   : > { %v3272_v57 = vadd.f32 %v7815_v23, %v3271_v56  ;;  %v9394_v23 = vpack.c.bf16 %v3463_v35, %v3462_v39 }
0x15b8   : > { %v3283_v33 = vmax.f32 %v3277_v26, 0.0 }
0x15b9   : > { %v3282_v59 = vmax.f32 %v3272_v57, 0.0  ;;  %9395 = vmatprep.subr.bf16.mxu0 %v9394_v23 }
0x15ba   : > { %9397 = vmatpush3.bf16.msra.mxu0 %v9394_v23 }
0x15bb   : > { %8735 = vmatprep.mubr.f32.mxu1 %v3282_v59  ;;  %9399 = vmatprep.subr.bf16.mxu0 %v9398_v58 }
0x15bc   : > { %8736 = vmatmul.mubr.f32.gmra.mrb[34].mxu1 %v3283_v33 }
0x15be   : > { %9401 = vmatpush3.bf16.msra.mxu0 %v9398_v58 }
0x1688   : > { %v8734_v17 = vpop.f32.mrb[32].mxu1 }
0x1689   : > { %v3377_v61 = vadd.f32 %v8734_v17, %v3304_v60  ;;  %v3371_v5 = vpop.f32.mrb[33].mxu1 }
0x168a   : > { %v3372_v62 = vadd.f32 %v3371_v5, %v3304_v60  ;;  %v3449_v5 = vrot.slane %v10976_v53, %v10829_v22 }
0x168b   : > { %v3391_v21 = vadd.f32 %v3377_v61, %v3167_v44 }
0x168c   : > { %v3390_v41 = vadd.f32 %v3372_v62, %v3166_v12 }
0x168d   : > { %v3397_v63 = vsel %vm1170_vm0, %v3391_v21, 0.0 }
0x168e   : > { %3398 = vadd.xlane.f32.xlu0 %v3397_v63  ;;  %v3394_v0 = vsel %vm1170_vm0, %v3390_v41, 0.0 }
0x168f   : > { %3395 = vadd.xlane.f32.xlu1 %v3394_v0  ;;  %v8737_v2 = vpop.f32.mrb[34].mxu1  ;;  %v3457_v0 = vrot.slane %v10976_v53, %v10832_v38  ;;  %v7836_v53 = vld [vmem:[#allocation8] ss:$0 sm:$0xff] }
0x1690   : > { %v3387_v19 = vadd.f32 %v8737_v2, %v3304_v60  ;;  %v3381_v4 = vpop.f32.mrb[35].mxu1 }
0x1691   : > { %v3382_v3 = vadd.f32 %v3381_v4, %v3304_v60 }
0x1692   : > { %v3393_v34 = vadd.f32 %v3387_v19, %v3169_v24 }
0x1693   : > { %v3392_v6 = vadd.f32 %v3382_v3, %v3168_v10 }
0x1694   : > { %v3403_v7 = vsel %vm1170_vm0, %v3393_v34, 0.0 }
0x1695   : > { %3404 = vadd.xlane.f32.xlu0 %v3403_v7  ;;  %v3400_v1 = vsel %vm1170_vm0, %v3392_v6, 0.0 }
0x1696   : > { %3401 = vadd.xlane.f32.xlu1 %v3400_v1 }
0x171b   : > { %v3399_v13 = vpop.xlane.xlu0 %3398 }
0x171c   : > { %v3407_v28 = vmul.f32 0.03125, %v3399_v13  ;;  %v3396_v15 = vpop.xlane.xlu1 %3395 }
0x171d   : > { %v3406_v42 = vmul.f32 0.03125, %v3396_v15 }
0x171e   : > { %v3411_v25 = vsub.f32 %v3391_v21, %v3407_v28 }
0x171f   : > { %v3410_v30 = vsub.f32 %v3390_v41, %v3406_v42 }
0x1720   : > { %v3415_v9 = vmul.f32 %v3411_v25, %v3411_v25 }
0x1721   : > { %v3414_v37 = vmul.f32 %v3410_v30, %v3410_v30 }
0x1722   : > { %v3405_v11 = vpop.xlane.xlu0 %3404  ;;  %v3421_v29 = vsel %vm1170_vm0, %v3415_v9, 0.0 }
0x1723   : > { %v3409_v12 = vmul.f32 0.03125, %v3405_v11  ;;  %v3402_v43 = vpop.xlane.xlu1 %3401  ;;  %3422 = vadd.xlane.f32.xlu0 %v3421_v29  ;;  %v3418_v44 = vsel %vm1170_vm0, %v3414_v37, 0.0 }
0x1724   : > { %v3408_v45 = vmul.f32 0.03125, %v3402_v43  ;;  %3419 = vadd.xlane.f32.xlu1 %v3418_v44 }
0x1725   : > { %v3413_v27 = vsub.f32 %v3393_v34, %v3409_v12 }
0x1726   : > { %v3412_v10 = vsub.f32 %v3392_v6, %v3408_v45 }
0x1727   : > { %v3417_v18 = vmul.f32 %v3413_v27, %v3413_v27 }
0x1728   : > { %v3416_v47 = vmul.f32 %v3412_v10, %v3412_v10 }
0x1729   : > { %v3427_v24 = vsel %vm1170_vm0, %v3417_v18, 0.0 }
0x172a   : > { %3428 = vadd.xlane.f32.xlu0 %v3427_v24  ;;  %v3424_v16 = vsel %vm1170_vm0, %v3416_v47, 0.0 }
0x172b   : > { %3425 = vadd.xlane.f32.xlu1 %v3424_v16 }
0x17b0   : > { %v3423_v51 = vpop.xlane.xlu0 %3422 }
0x17b1   : > { %v3431_v52 = vmul.f32 0.03125, %v3423_v51  ;;  %v3420_v54 = vpop.xlane.xlu1 %3419 }
0x17b2   : > { %v3430_v31 = vmul.f32 0.03125, %v3420_v54 }
0x17b3   : > { %v3435_v26 = vadd.f32 1e-05, %v3431_v52 }
0x17b4   : > { %v3434_v56 = vadd.f32 1e-05, %v3430_v31 }
0x17b5   : > { %10070 = vrsqrt.f32 %v3435_v26 }
0x17b6   : > { %10072 = vrsqrt.f32 %v3434_v56  ;;  %v940_v56 = vld [vmem:[%s11955_s22 + $0x8] sm:$0xff] }
0x17b7   : > { %v3429_v57 = vpop.xlane.xlu0 %3428 }
0x17b8   : > { %v3433_v59 = vmul.f32 0.03125, %v3429_v57  ;;  %v3426_v33 = vpop.xlane.xlu1 %3425  ;;  %v941_v57 = vld [vmem:[%s11955_s22 + $0x10] sm:$0xff] }
0x17b9   : > { %v3432_v60 = vmul.f32 0.03125, %v3426_v33 }
0x17ba   : > { %v3437_v17 = vadd.f32 1e-05, %v3433_v59  ;;  %v942_v59 = vld [vmem:[%s11955_s22 + $0x18] sm:$0xff] }
0x17bb   : > { %v3436_v61 = vadd.f32 1e-05, %v3432_v60 }
0x17bc   : > { %10074 = vrsqrt.f32 %v3437_v17 }
0x17bd   : > { %10076 = vrsqrt.f32 %v3436_v61 }
0x17bf   : > { %v10071_v62 = vpop.eup %10070 }
0x17c0   : > { %v10073_v21 = vpop.eup %10072  ;;  %v3443_v41 = vmul.f32 %v10071_v62, %v3411_v25 }
0x17c1   : > { %v3442_v63 = vmul.f32 %v10073_v21, %v3410_v30 }
0x17c2   : > { %v3451_v2 = vmul.f32 %v3449_v5, %v3443_v41 }
0x17c3   : > { %v3450_v19 = vmul.f32 %v3449_v5, %v3442_v63 }
0x17c4   : > { %v3459_v34 = vadd.f32 %v3457_v0, %v3451_v2 }
0x17c5   : > { %v3458_v4 = vadd.f32 %v3457_v0, %v3450_v19 }
0x17c6   : > { %v10075_v3 = vpop.eup %10074 }
0x17c7   : > { %v10077_v6 = vpop.eup %10076  ;;  %8746 = vmatprep.mubr.msk.f32.mxu0 %vm1170_vm0, %v3458_v4  ;;  %v3445_v7 = vmul.f32 %v10075_v3, %v3413_v27  ;;  %v939_v27 = vld [vmem:[%s11955_s22] sm:$0xff] }
0x17c8   : > { %8747 = vmatmul.mubr.msk.f32.vlgmr.msra.gmra.mrb[32].mxu0 %vm1170_vm0, %v3459_v34  ;;  %v3444_v1 = vmul.f32 %v10077_v6, %v3412_v10 }
0x17c9   : > { %v3453_v13 = vmul.f32 %v3449_v5, %v3445_v7 }
0x17ca   : > { %v3452_v28 = vmul.f32 %v3449_v5, %v3444_v1 }
0x17cb   : > { %v3461_v42 = vadd.f32 %v3457_v0, %v3453_v13 }
0x17cc   : > { %v3460_v15 = vadd.f32 %v3457_v0, %v3452_v28 }
0x17ce   : > { %8749 = vmatprep.mubr.msk.f32.mxu0 %vm1170_vm0, %v3460_v15 }
0x17cf   : > { %8750 = vmatmul.mubr.msk.f32.gmra.mrb[34].mxu0 %vm1170_vm0, %v3461_v42 }
0x17d0   : > { %8760 = vmatprep.mubr.msk.f32.mxu0 %vm1170_vm0, %v939_v27 }
0x189b   : > { %v8748_v25 = vpop.f32.mrb[32].mxu0 }
0x189c   : > { %v11063_v30 = vadd.f32 %v8748_v25, %v7836_v53  ;;  %v3551_v9 = vpop.f32.mrb[33].mxu0 }
0x189d   : > { %v11065_v37 = vadd.f32 %v7836_v53, %v3551_v9 }
0x189e   : > { %v3571_v11 = vmul.f32 %v11063_v30, %v11063_v30 }
0x189f   : > { %v3570_v29 = vmul.f32 %v11065_v37, %v11065_v37 }
0x18a1   : > { %v9852_v12 = vpack.i.bf16 %v3571_v11, %v3570_v29 }
0x18a2   : > { %v8751_v43 = vpop.f32.mrb[34].mxu0 }
0x18a3   : > { %v11071_v44 = vadd.f32 %v8751_v43, %v7836_v53  ;;  %9853 = vrot.lane.b32.xlu1 %v9852_v12, %s10328_s16  ;;  %v3561_v45 = vpop.f32.mrb[35].mxu0 }
0x18a4   : > { %v11075_v10 = vadd.f32 %v7836_v53, %v3561_v45 }
0x18a5   : > { %v3573_v18 = vmul.f32 %v11071_v44, %v11071_v44 }
0x18a6   : > { %v3572_v47 = vmul.f32 %v11075_v10, %v11075_v10 }
0x18a8   : > { %v9857_v24 = vpack.i.bf16 %v3573_v18, %v3572_v47 }
0x18aa   : > { %9858 = vrot.lane.b32.xlu0 %v9857_v24, %s10328_s16 }
0x1915   : > { %v9854_v16 = vpop.permute.xlu1 %9853 }
0x1916   : > { %v9856_v39 = vunpack.i.h.bf16 %v9854_v16  ;;  %v9855_v35 = vunpack.i.l.bf16 %v9854_v16 }
0x1918   : > { %v3591_v23 = vsel %vm3590_vm3, %v11065_v37, %v9855_v35  ;;  %v3592_v48 = vsel %vm3590_vm3, %v11063_v30, %v9856_v39 }
0x1919   : > { %v9402_v55 = vpack.c.bf16 %v3592_v48, %v3591_v23 }
0x191b   : > { %9403 = vmatprep.subr.bf16.mxu0 %v9402_v55 }
0x191c   : > { %9405 = vmatpush3.bf16.msra.mxu0 %v9402_v55  ;;  %v9859_v58 = vpop.permute.xlu0 %9858 }
0x191d   : > { %v9861_v51 = vunpack.i.h.bf16 %v9859_v58  ;;  %v9860_v52 = vunpack.i.l.bf16 %v9859_v58 }
0x191f   : > { %v3593_v54 = vsel %vm3590_vm3, %v11075_v10, %v9860_v52  ;;  %v3594_v31 = vsel %vm3590_vm3, %v11071_v44, %v9861_v51 }
0x1920   : > { %v9406_v26 = vpack.c.bf16 %v3594_v31, %v3593_v54 }
0x1922   : > { %9407 = vmatprep.subr.bf16.mxu0 %v9406_v26 }
0x1923   : > { %9409 = vmatpush3.bf16.msra.mxu0 %v9406_v26 }
0x1926   : > { %8761 = vmatmul.mubr.msk.f32.vlgmr.msra.gmra.mrb[36].mxu0 %vm1170_vm0, %v940_v56 }
0x1927   : > { %8763 = vmatprep.mubr.msk.f32.mxu0 %vm1170_vm0, %v941_v57 }
0x192a   : > { %8764 = vmatmul.mubr.msk.f32.gmra.mrb[38].mxu0 %vm1170_vm0, %v942_v59 }
0x19f9   : > { %v8762_v33 = vpop.f32.mrb[36].mxu0 }
0x19fa   : > { %v3673_v60 = vpop.f32.mrb[37].mxu0  ;;  %v11099_v61 = vmul.f32 0.25, %v8762_v33 }
0x19fb   : > { %v11097_v17 = vmul.f32 0.25, %v3673_v60 }
0x19fc   : > { %v3697_v63 = vmul.f32 %v11099_v61, %v11099_v61 }
0x19fd   : > { %v3696_v5 = vmul.f32 %v11097_v17, %v11097_v17  ;;  %v8765_v62 = vpop.f32.mrb[38].mxu0 }
0x19fe   : > { %v3683_v21 = vpop.f32.mrb[39].mxu0  ;;  %v11110_v2 = vmul.f32 0.25, %v8765_v62 }
0x19ff   : > { %v11103_v41 = vmul.f32 0.25, %v3683_v21  ;;  %3704 = vrot.lane.b32.xlu1 %v3696_v5, %s10328_s16 }
0x1a00   : > { %v3699_v19 = vmul.f32 %v11110_v2, %v11110_v2 }
0x1a01   : > { %v3698_v0 = vmul.f32 %v11103_v41, %v11103_v41 }
0x1a03   : > { %3706 = vrot.lane.b32.xlu1 %v3697_v63, %s10328_s16  ;;  %3708 = vrot.lane.b32.xlu0 %v3698_v0, %s10328_s16 }
0x1a07   : > { %3710 = vrot.lane.b32.xlu1 %v3699_v19, %s10328_s16  ;;  %v3728_v19 = vsub.f32 %v11065_v37, %v11097_v17  ;;  %v3731_v37 = vsub.f32 %v11071_v44, %v11110_v2  ;;  %s10330_s16 = smov 8   ;;  %v3844_v44 = vld [vmem:[%s10483_s10 + $0x18] sm:$0xff] }
0x1a71   : > { %v3705_v4 = vpop.permute.xlu1 %3704 }
0x1a72   : > { %v3716_v3 = vsub.f32 %v11097_v17, %v3705_v4 }
0x1a74   : > { %v3720_v34 = vmax.f32 %v3716_v3, 0.0 }
0x1a75   : > { %v3707_v6 = vpop.permute.xlu1 %3706  ;;  %v3709_v7 = vpop.permute.xlu0 %3708 }
0x1a76   : > { %v3724_v1 = vmul.f32 1.3333334, %v3720_v34  ;;  %v3717_v13 = vsub.f32 %v11099_v61, %v3707_v6  ;;  %v3718_v28 = vsub.f32 %v11103_v41, %v3709_v7  ;;  %v3729_v34 = vsub.f32 %v11063_v30, %v11099_v61  ;;  %v3841_v61 = vld [vmem:[%s10483_s10] sm:$0xff] }
0x1a77   : > { %v3730_v7 = vsub.f32 %v11075_v10, %v11103_v41  ;;  %v3878_v10 = vld [vmem:[%s11956_s1 + $0x8] sm:$0xff]  ;;  %v3843_v41 = vld [vmem:[%s10483_s10 + $0x10] sm:$0xff] }
0x1a78   : > { %10078 = vrsqrt.f32 %v3724_v1  ;;  %v3721_v15 = vmax.f32 %v3717_v13, 0.0  ;;  %v3722_v42 = vmax.f32 %v3718_v28, 0.0  ;;  %vm3734_vm4 = vcmp.eq.f32.partialorder %v3724_v1, inf }
0x1a79   : > { %v3711_v53 = vpop.permute.xlu1 %3710  ;;  %v3737_v27 = vand.u32 2147483648, %v3724_v1  ;;  %vm3736_vm5 = vcmp.eq.f32.partialorder %v3724_v1, 0.0 }
0x1a7a   : > { %v3725_v25 = vmul.f32 1.3333334, %v3721_v15  ;;  %v3726_v9 = vmul.f32 1.3333334, %v3722_v42  ;;  %v3719_v11 = vsub.f32 %v11110_v2, %v3711_v53  ;;  %v3842_v15 = vld [vmem:[%s10483_s10 + $0x8] sm:$0xff]  ;;  %v3877_v42 = vld [vmem:[%s11956_s1] sm:$0xff] }
0x1a7b   : > { %v9410_v53 = vpack.c.bf16 %v3878_v10, %v3877_v42  ;;  %v10258_v2 = vld [vmem:[%s10495_s5] sm:$0x7]  ;;  %s11957_s5 = sld [smem:[#allocation16_spill]] }
0x1a7c   : > { %10080 = vrsqrt.f32 %v3725_v25  ;;  %v3723_v29 = vmax.f32 %v3719_v11, 0.0  ;;  %vm3741_vm6 = vcmp.eq.f32.partialorder %v3725_v25, inf  ;;  %v3744_v23 = vand.u32 2147483648, %v3725_v25  ;;  %v3788_v11 = vld [vmem:[#allocation3] sm:$0xff] }
0x1a7d   : > { %10082 = vrsqrt.f32 %v3726_v9  ;;  %vm3743_vm7 = vcmp.eq.f32.partialorder %v3725_v25, 0.0  ;;  %vm3748_vm8 = vcmp.eq.f32.partialorder %v3726_v9, inf  ;;  %v3751_v58 = vand.u32 2147483648, %v3726_v9  ;;  %9411 = vmatprep.subr.bf16.mxu0 %v9410_v53 }
0x1a7e   : > { %v3727_v12 = vmul.f32 1.3333334, %v3723_v29  ;;  %vm3750_vm9 = vcmp.eq.f32.partialorder %v3726_v9, 0.0  ;;  %9413 = vmatpush3.bf16.msra.mxu0 %v9410_v53 }
0x1a80   : > { %10084 = vrsqrt.f32 %v3727_v12  ;;  %vm3755_vm10 = vcmp.eq.f32.partialorder %v3727_v12, inf  ;;  %v3758_v59 = vand.u32 2147483648, %v3727_v12  ;;  %vm3757_vm11 = vcmp.eq.f32.partialorder %v3727_v12, 0.0 }
0x1a81   : > { %v3993_v42 = vld [vmem:[%s11957_s5 + $0x8] sm:$0xff]  ;;  %v3995_v53 = vld [vmem:[%s11957_s5 + $0x18] sm:$0xff] }
0x1a82   : > { %v10079_v43 = vpop.eup %10078 }
0x1a83   : > { %v3733_v45 = vmul.f32 %v10079_v43, %v3724_v1 }
0x1a85   : > { %v3735_v18 = vsel %vm3734_vm4, %v3724_v1, %v3733_v45  ;;  %vm3824_vm4 = vcmask 64512   ;;  %v10259_v45 = vld [vmem:[%s10350_s13] sm:$0xff] }
0x1a86   : > { %v10081_v47 = vpop.eup %10080  ;;  %v3738_v24 = vsel %vm3736_vm5, %v3737_v27, %v3735_v18  ;;  %v3789_v18 = vld [vmem:[#allocation3 + $0x8] sm:$0xff] }
0x1a87   : > { %v10083_v16 = vpop.eup %10082  ;;  %v3760_v39 = vadd.f32 1e-08, %v3738_v24  ;;  %v3740_v35 = vmul.f32 %v10081_v47, %v3725_v25 }
0x1a88   : > { %v3747_v48 = vmul.f32 %v10083_v16, %v3726_v9  ;;  %v3790_v16 = vld [vmem:[#allocation3 + $0x10] sm:$0xff] }
0x1a89   : > { %3768 = vrot.lane.b32.xlu0 %v3760_v39, %s10329_s18  ;;  %v3742_v55 = vsel %vm3741_vm6, %v3725_v25, %v3740_v35  ;;  %v3815_v25 = vrot.slane %v10258_v2, %v10740_v20 }
0x1a8a   : > { %v10085_v51 = vpop.eup %10084  ;;  %v3745_v52 = vsel %vm3743_vm7, %v3744_v23, %v3742_v55  ;;  %v3749_v54 = vsel %vm3748_vm8, %v3726_v9, %v3747_v48  ;;  %v3832_v9 = vrot.slane %v10258_v2, %v10794_v8  ;;  %v10260_v23 = vld [vmem:[%s10350_s13 + $0x8] sm:$0xff] }
0x1a8b   : > { %v3761_v31 = vadd.f32 1e-08, %v3745_v52  ;;  %v3752_v26 = vsel %vm3750_vm9, %v3751_v58, %v3749_v54  ;;  %v3754_v56 = vmul.f32 %v10085_v51, %v3727_v12  ;;  %v10261_v58 = vld [vmem:[%s10350_s13 + $0x10] sm:$0xff] }
0x1a8c   : > { %v3762_v57 = vadd.f32 1e-08, %v3752_v26  ;;  %v3833_v27 = vmul.f32 %v10259_v45, %v3832_v9  ;;  %v3834_v48 = vmul.f32 %v10260_v23, %v3832_v9  ;;  %v3835_v51 = vmul.f32 %v10261_v58, %v3832_v9 }
0x1a8d   : > { %3770 = vrot.lane.b32.xlu1 %v3761_v31, %s10329_s18  ;;  %v3756_v33 = vsel %vm3755_vm10, %v3727_v12, %v3754_v56  ;;  %v3791_v31 = vld [vmem:[#allocation3 + $0x18] sm:$0xff]  ;;  %v3865_v56 = vld [vmem:[#allocation5] sm:$0xff] }
0x1a8e   : > { %3772 = vrot.lane.b32.xlu0 %v3762_v57, %s10329_s18  ;;  %v3759_v60 = vsel %vm3757_vm11, %v3758_v59, %v3756_v33 }
0x1a8f   : > { %v3763_v5 = vadd.f32 1e-08, %v3759_v60  ;;  %v10262_v60 = vld [vmem:[%s10350_s13 + $0x18] sm:$0xff] }
0x1a91   : > { %3774 = vrot.lane.b32.xlu1 %v3763_v5, %s10329_s18  ;;  %v3836_v5 = vmul.f32 %v10262_v60, %v3832_v9  ;;  %s11958_s18 = sld [smem:[#allocation13_spill]] }
0x1a97   : > { %v7845_v2 = vld [vmem:[%s11958_s18] ss:$0 sm:$0xff]  ;;  %s11960_s18 = sld [smem:[#allocation18_spill]] }
0x1afb   : > { %v3769_v62 = vpop.permute.xlu0 %3768 }
0x1afc   : > { %10086 = vrcp.f32 %v3769_v62 }
0x1aff   : > { %v3771_v21 = vpop.permute.xlu1 %3770 }
0x1b00   : > { %10088 = vrcp.f32 %v3771_v21  ;;  %v3773_v63 = vpop.permute.xlu0 %3772 }
0x1b01   : > { %10090 = vrcp.f32 %v3773_v63 }
0x1b03   : > { %v3775_v0 = vpop.permute.xlu1 %3774 }
0x1b04   : > { %10092 = vrcp.f32 %v3775_v0  ;;  %v3866_v0 = vld [vmem:[#allocation5 + $0x8] sm:$0xff] }
0x1b06   : > { %v10087_v4 = vpop.eup %10086 }
0x1b07   : > { %v3781_v3 = vmul.f32 %v10087_v4, %v3728_v19 }
0x1b09   : > { %3794 = vperm.xlu0 %9770, %v3781_v3   ;;  %v3867_v3 = vld [vmem:[#allocation5 + $0x10] sm:$0xff] }
0x1b0a   : > { %v10089_v6 = vpop.eup %10088 }
0x1b0b   : > { %v10091_v1 = vpop.eup %10090  ;;  %v3783_v13 = vmul.f32 %v10089_v6, %v3729_v34 }
0x1b0c   : > { %v3785_v28 = vmul.f32 %v10091_v1, %v3730_v7 }
0x1b0d   : > { %3799 = vperm.xlu1 %9771, %v3783_v13  }
0x1b0e   : > { %v10093_v17 = vpop.eup %10092  ;;  %3804 = vperm.xlu0 %9770, %v3785_v28  }
0x1b0f   : > { %v3787_v30 = vmul.f32 %v10093_v17, %v3731_v37  ;;  %v3868_v37 = vld [vmem:[#allocation5 + $0x18] sm:$0xff] }
0x1b11   : > { %3809 = vperm.xlu1 %9771, %v3787_v30  }
0x1b12   : > { %3849 = vrot.lane.b32.xlu0 %v3841_v61, %s10330_s16 }
0x1b15   : > { %3851 = vrot.lane.b32.xlu1 %v3842_v15, %s10330_s16  ;;  %v3992_v15 = vld [vmem:[%s11957_s5] sm:$0xff] }
0x1b16   : > { %3853 = vrot.lane.b32.xlu0 %v3843_v41, %s10330_s16  ;;  %v9414_v10 = vpack.c.bf16 %v3993_v42, %v3992_v15  ;;  %v3994_v41 = vld [vmem:[%s11957_s5 + $0x10] sm:$0xff] }
0x1b18   : > { %9415 = vmatprep.subr.bf16.mxu0 %v9414_v10 }
0x1b19   : > { %3855 = vrot.lane.b32.xlu1 %v3844_v44, %s10330_s16  ;;  %v9418_v44 = vpack.c.bf16 %v3995_v53, %v3994_v41  ;;  %s11959_s16 = sld [smem:[#allocation17_spill]] }
0x1b88   : > { %v3795_v29 = vpop.permute.xlu0 %3794 }
0x1b89   : > { %v3816_v12 = vmul.f32 %v3815_v25, %v3795_v29 }
0x1b8b   : > { %v3820_v43 = vadd.f32 %v3816_v12, %v3788_v11 }
0x1b8c   : > { %v3800_v47 = vpop.permute.xlu1 %3799 }
0x1b8d   : > { %3825 = vst.msk [vmem:[#allocation3] sm:$0xff] %vm3824_vm4, %v3820_v43  ;;  %v3817_v24 = vmul.f32 %v3815_v25, %v3800_v47  ;;  %v3805_v39 = vpop.permute.xlu0 %3804  ;;  %v3837_v52 = vadd.f32 %v3833_v27, %v3820_v43  ;;  %v10263_v47 = vld [vmem:[%s10355_s17] sm:$0xff] }
0x1b8e   : > { %v3818_v35 = vmul.f32 %v3815_v25, %v3805_v39  ;;  %v10264_v39 = vld [vmem:[%s10355_s17 + $0x8] sm:$0xff] }
0x1b8f   : > { %v3821_v55 = vadd.f32 %v3817_v24, %v3789_v18 }
0x1b90   : > { %v3822_v54 = vadd.f32 %v3818_v35, %v3790_v16  ;;  %v3810_v26 = vpop.permute.xlu1 %3809 }
0x1b91   : > { %3826 = vst.msk [vmem:[#allocation3 + $0x8] sm:$0xff] %vm3824_vm4, %v3821_v55  ;;  %v3819_v57 = vmul.f32 %v3815_v25, %v3810_v26  ;;  %v3850_v59 = vpop.permute.xlu0 %3849  ;;  %v3838_v62 = vadd.f32 %v3834_v48, %v3821_v55  ;;  %v10265_v55 = vld [vmem:[%s10355_s17 + $0x10] sm:$0xff] }
0x1b92   : > { %3827 = vst.msk [vmem:[#allocation3 + $0x10] sm:$0xff] %vm3824_vm4, %v3822_v54  ;;  %v3861_v33 = vsel %vm3824_vm4, %v3837_v52, %v3850_v59  ;;  %v3839_v19 = vadd.f32 %v3835_v51, %v3822_v54  ;;  %v10266_v51 = vld [vmem:[%s10355_s17 + $0x18] sm:$0xff]  ;;  %v7850_v54 = vld [vmem:[%s11959_s16] ss:$0 sm:$0xff] }
0x1b93   : > { %v3823_v21 = vadd.f32 %v3819_v57, %v3791_v31  ;;  %v3869_v63 = vsel %vm1026_vm13, %v3865_v56, %v3861_v33 }
0x1b94   : > { %3873 = vst.msk [vmem:[#allocation5] sm:$0xff] %vm1280_vm1, %v3869_v63  ;;  %8770 = vmatprep.mubr.msk.f32.mxu0 %vm1280_vm1, %v3869_v63  ;;  %v3852_v4 = vpop.permute.xlu1 %3851 }
0x1b95   : > { %3828 = vst.msk [vmem:[#allocation3 + $0x18] sm:$0xff] %vm3824_vm4, %v3823_v21  ;;  %v3862_v34 = vsel %vm3824_vm4, %v3838_v62, %v3852_v4  ;;  %v3854_v6 = vpop.permute.xlu0 %3853  ;;  %v3840_v13 = vadd.f32 %v3836_v5, %v3823_v21 }
0x1b96   : > { %v3870_v7 = vsel %vm1027_vm12, %v3866_v0, %v3862_v34  ;;  %v3863_v1 = vsel %vm3824_vm4, %v3839_v19, %v3854_v6 }
0x1b97   : > { %3874 = vst.msk [vmem:[#allocation5 + $0x8] sm:$0xff] %vm1280_vm1, %v3870_v7  ;;  %8771 = vmatmul.mubr.msk.f32.vlgmr.msra.gmra.mrb[40].mxu0 %vm1280_vm1, %v3870_v7  ;;  %v3871_v28 = vsel %vm1028_vm15, %v3867_v3, %v3863_v1 }
0x1b98   : > { %v3856_v17 = vpop.permute.xlu1 %3855  ;;  %3875 = vst.msk [vmem:[#allocation5 + $0x10] sm:$0xff] %vm1280_vm1, %v3871_v28  ;;  %8773 = vmatprep.mubr.msk.f32.mxu0 %vm1280_vm1, %v3871_v28  ;;  %9417 = vmatpush3.bf16.msra.mxu0 %v9414_v10 }
0x1b99   : > { %v3864_v30 = vsel %vm3824_vm4, %v3840_v13, %v3856_v17  ;;  %9419 = vmatprep.subr.bf16.mxu0 %v9418_v44  ;;  %v11229_v17 = vld [vmem:[%s10360_s21 + $0x8] sm:$0xff] }
0x1b9a   : > { %v3872_v61 = vsel %vm1029_vm14, %v3868_v37, %v3864_v30 }
0x1b9b   : > { %3876 = vst.msk [vmem:[#allocation5 + $0x18] sm:$0xff] %vm1280_vm1, %v3872_v61  ;;  %8774 = vmatmul.mubr.msk.f32.gmra.mrb[42].mxu0 %vm1280_vm1, %v3872_v61  ;;  %v11233_v61 = vld [vmem:[%s10360_s21] sm:$0xff] }
0x1b9c   : > { %9421 = vmatpush3.bf16.msra.mxu0 %v9418_v44 }
0x1c6a   : > { %v8772_v25 = vpop.f32.mrb[40].mxu0 }
0x1c6b   : > { %v3970_v9 = vadd.f32 %v8772_v25, %v7845_v2  ;;  %v3964_v11 = vpop.f32.mrb[41].mxu0  ;;  %v11239_v25 = vld [vmem:[%s10360_s21 + $0x10] sm:$0xff] }
0x1c6c   : > { %v3965_v29 = vadd.f32 %v7845_v2, %v3964_v11  ;;  %v11243_v11 = vld [vmem:[%s10360_s21 + $0x18] sm:$0xff] }
0x1c6d   : > { %v3984_v12 = vmul.f32 5.656854, %v3970_v9 }
0x1c6e   : > { %v3983_v43 = vmul.f32 5.656854, %v3965_v29  ;;  %v8775_v45 = vpop.f32.mrb[42].mxu0 }
0x1c6f   : > { %v3980_v27 = vadd.f32 %v8775_v45, %v7845_v2  ;;  %v3974_v18 = vpop.f32.mrb[43].mxu0  ;;  %v11175_v35 = vadd.f32 %v10264_v39, %v3984_v12 }
0x1c70   : > { %v11172_v24 = vadd.f32 %v10263_v47, %v3983_v43  ;;  %v3975_v16 = vadd.f32 %v7845_v2, %v3974_v18 }
0x1c71   : > { %v3986_v23 = vmul.f32 5.656854, %v3980_v27 }
0x1c72   : > { %v3985_v48 = vmul.f32 5.656854, %v3975_v16  ;;  %8784 = vmatprep.mubr.msk.f32.mxu0 %vm1170_vm0, %v11172_v24 }
0x1c73   : > { %8785 = vmatmul.mubr.msk.f32.vlgmr.msra.gmra.mrb[44].mxu0 %vm1170_vm0, %v11175_v35  ;;  %v11185_v52 = vadd.f32 %v10266_v51, %v3986_v23 }
0x1c74   : > { %v11182_v58 = vadd.f32 %v10265_v55, %v3985_v48 }
0x1c76   : > { %8787 = vmatprep.mubr.msk.f32.mxu0 %vm1170_vm0, %v11182_v58 }
0x1c77   : > { %8788 = vmatmul.mubr.msk.f32.gmra.mrb[46].mxu0 %vm1170_vm0, %v11185_v52 }
0x1d46   : > { %v8786_v31 = vpop.f32.mrb[44].mxu0 }
0x1d47   : > { %v11192_v26 = vadd.f32 %v8786_v31, %v7850_v54  ;;  %v4081_v56 = vpop.f32.mrb[45].mxu0 }
0x1d48   : > { %v11194_v57 = vadd.f32 %v7850_v54, %v4081_v56 }
0x1d4a   : > { %v8789_v59 = vpop.f32.mrb[46].mxu0  ;;  %8798 = vmatprep.mubr.msk.f32.mxu1 %vm1280_vm1, %v11194_v57  ;;  %v11200_v33 = vpack.i.bf16 %v11192_v26, %v11194_v57 }
0x1d4b   : > { %v11202_v60 = vadd.f32 %v8789_v59, %v7850_v54  ;;  %v4091_v5 = vpop.f32.mrb[47].mxu0 }
0x1d4c   : > { %v11204_v62 = vadd.f32 %v7850_v54, %v4091_v5  ;;  %9863 = vrot.lane.b32.xlu0 %v11200_v33, %s10322_s19 }
0x1d4e   : > { %v11210_v21 = vpack.i.bf16 %v11202_v60, %v11204_v62 }
0x1d50   : > { %9868 = vrot.lane.b32.xlu1 %v11210_v21, %s10322_s19 }
0x1dbe   : > { %v9864_v63 = vpop.permute.xlu0 %9863 }
0x1dbf   : > { %v9866_v0 = vunpack.i.h.bf16 %v9864_v63  ;;  %v9865_v19 = vunpack.i.l.bf16 %v9864_v63 }
0x1dc1   : > { %v9422_v4 = vpack.c.bf16 %v9866_v0, %v9865_v19 }
0x1dc2   : > { %v9869_v3 = vpop.permute.xlu1 %9868 }
0x1dc3   : > { %v9871_v34 = vunpack.i.h.bf16 %v9869_v3  ;;  %v9870_v6 = vunpack.i.l.bf16 %v9869_v3  ;;  %9424 = vmatprep.subr.msk.bf16.mxu1 %vm10617_vm2, %v9422_v4 }
0x1dc4   : > { %9427 = vmatpush3.bf16.xpose.msk.msra.mxu1 %vm10617_vm2, %v9422_v4 }
0x1dc5   : > { %v9428_v7 = vpack.c.bf16 %v9871_v34, %v9870_v6 }
0x1dc7   : > { %9430 = vmatprep.subr.msk.bf16.mxu1 %vm10617_vm2, %v9428_v7 }
0x1dcc   : > { %9433 = vmatpush3.bf16.xpose.msk.msra.mxu1 %vm10617_vm2, %v9428_v7 }
0x1dd3   : > { %8799 = vmatmul.mubr.msk.f32.vlgmr.msra.gmra.mrb[36].mxu1 %vm1280_vm1, %v11192_v26 }
0x1dd4   : > { %8801 = vmatprep.mubr.msk.f32.mxu1 %vm1280_vm1, %v11204_v62 }
0x1dd7   : > { %8802 = vmatmul.mubr.msk.f32.gmra.mrb[38].mxu1 %vm1280_vm1, %v11202_v60 }
0x1ea6   : > { %v8800_v1 = vpop.f32.mrb[36].mxu1 }
0x1ea7   : > { %v4214_v13 = vmul.f32 0.25, %v8800_v1  ;;  %v4194_v28 = vpop.f32.mrb[37].mxu1 }
0x1ea8   : > { %v4213_v37 = vmul.f32 0.25, %v4194_v28 }
0x1ea9   : > { %v4218_v30 = vadd.f32 %v11229_v17, %v4214_v13 }
0x1eaa   : > { %v4217_v15 = vadd.f32 %v11233_v61, %v4213_v37  ;;  %v8803_v42 = vpop.f32.mrb[38].mxu1 }
0x1eab   : > { %v4204_v10 = vpop.f32.mrb[39].mxu1  ;;  %v4224_v41 = vsel %vm1170_vm0, %v4218_v30, -inf  ;;  %v4216_v53 = vmul.f32 0.25, %v8803_v42 }
0x1eac   : > { %v4215_v44 = vmul.f32 0.25, %v4204_v10  ;;  %4225 = vmax.xlane.f32.xlu1 %v4224_v41  ;;  %v4221_v2 = vsel %vm1170_vm0, %v4217_v15, -inf }
0x1ead   : > { %4222 = vmax.xlane.f32.xlu0 %v4221_v2  ;;  %v4220_v29 = vadd.f32 %v11243_v11, %v4216_v53 }
0x1eae   : > { %v4219_v9 = vadd.f32 %v11239_v25, %v4215_v44 }
0x1eaf   : > { %v4230_v43 = vsel %vm1170_vm0, %v4220_v29, -inf }
0x1eb0   : > { %v4227_v12 = vsel %vm1170_vm0, %v4219_v9, -inf }
0x1eb1   : > { %4228 = vmax.xlane.f32.xlu0 %v4227_v12 }
0x1eb5   : > { %4231 = vmax.xlane.f32.xlu0 %v4230_v43 }
0x1ebd   : > { %9873 = vrot.lane.b32.xlu1 %v11200_v33, %s10323_s26 }
0x1ec1   : > { %9883 = vrot.lane.b32.xlu1 %v11200_v33, %s10324_s20 }
0x1f39   : > { %v4226_v45 = vpop.xlane.xlu1 %4225 }
0x1f3a   : > { %v4234_v27 = vsub.f32 %v4218_v30, %v4226_v45  ;;  %v4223_v18 = vpop.xlane.xlu0 %4222 }
0x1f3b   : > { %v4233_v47 = vsub.f32 %v4217_v15, %v4223_v18 }
0x1f3c   : > { %v4239_v16 = vmul.f32 1.442695, %v4234_v27 }
0x1f3d   : > { %v4237_v39 = vmul.f32 1.442695, %v4233_v47  ;;  %v9874_v23 = vpop.permute.xlu1 %9873 }
0x1f3e   : > { %10094 = vpow2.f32 %v4239_v16  ;;  %v9876_v48 = vunpack.i.h.bf16 %v9874_v23  ;;  %v9875_v55 = vunpack.i.l.bf16 %v9874_v23  ;;  %v4229_v5 = vpop.xlane.xlu0 %4228 }
0x1f3f   : > { %10096 = vpow2.f32 %v4237_v39  ;;  %v4235_v19 = vsub.f32 %v4219_v9, %v4229_v5 }
0x1f40   : > { %v9434_v51 = vpack.c.bf16 %v9876_v48, %v9875_v55 }
0x1f41   : > { %v4241_v3 = vmul.f32 1.442695, %v4235_v19  ;;  %v9884_v13 = vpop.permute.xlu1 %9883 }
0x1f42   : > { %9435 = vmatprep.subr.bf16.mxu0 %v9434_v51  ;;  %v4232_v63 = vpop.xlane.xlu0 %4231  ;;  %v9886_v15 = vunpack.i.h.bf16 %v9884_v13  ;;  %v9885_v42 = vunpack.i.l.bf16 %v9884_v13 }
0x1f43   : > { %9437 = vmatpush3.bf16.msra.mxu0 %v9434_v51  ;;  %v4236_v0 = vsub.f32 %v4220_v29, %v4232_v63 }
0x1f44   : > { %v9442_v53 = vpack.c.bf16 %v9886_v15, %v9885_v42 }
0x1f45   : > { %v4243_v4 = vmul.f32 1.442695, %v4236_v0 }
0x1f47   : > { %10098 = vpow2.f32 %v4243_v4 }
0x1f48   : > { %v10095_v54 = vpop.eup %10094  ;;  %10100 = vpow2.f32 %v4241_v3 }
0x1f49   : > { %v10097_v31 = vpop.eup %10096  ;;  %v4248_v56 = vsel %vm1170_vm0, %v10095_v54, 0.0 }
0x1f4a   : > { %4249 = vadd.xlane.f32.xlu0 %v4248_v56  ;;  %v4245_v59 = vsel %vm1170_vm0, %v10097_v31, 0.0 }
0x1f4b   : > { %4246 = vadd.xlane.f32.xlu1 %v4245_v59 }
0x1f51   : > { %v10099_v34 = vpop.eup %10098 }
0x1f52   : > { %v10101_v6 = vpop.eup %10100  ;;  %v4254_v7 = vsel %vm1170_vm0, %v10099_v34, 0.0 }
0x1f53   : > { %v4251_v1 = vsel %vm1170_vm0, %v10101_v6, 0.0 }
0x1f5c   : > { %9888 = vrot.lane.b32.xlu1 %v11210_v21, %s10324_s20 }
0x1f60   : > { %9878 = vrot.lane.b32.xlu0 %v11210_v21, %s10323_s26 }
0x1f7f   : > { %4255 = vadd.xlane.f32.xlu0 %v4254_v7 }
0x1f80   : > { %4252 = vadd.xlane.f32.xlu1 %v4251_v1 }
0x1f91   : > { %4376 = vrot.lane.b32.xlu1 %v11192_v26, %s10325_s28 }
0x1f95   : > { %4380 = vrot.lane.b32.xlu1 %v11202_v60, %s10325_s28  ;;  %4374 = vrot.lane.b32.xlu0 %v11194_v57, %s10325_s28 }
0x1f99   : > { %4378 = vrot.lane.b32.xlu0 %v11204_v62, %s10325_s28 }
0x1fd7   : > { %v4250_v28 = vpop.xlane.xlu0 %4249 }
0x1fd8   : > { %10102 = vrcp.f32 %v4250_v28  ;;  %v4247_v37 = vpop.xlane.xlu1 %4246 }
0x1fd9   : > { %10104 = vrcp.f32 %v4247_v37 }
0x1fdb   : > { %v9879_v30 = vpop.permute.xlu0 %9878 }
0x1fdc   : > { %v9881_v10 = vunpack.i.h.bf16 %v9879_v30  ;;  %v9880_v41 = vunpack.i.l.bf16 %v9879_v30  ;;  %v9889_v44 = vpop.permute.xlu1 %9888 }
0x1fdd   : > { %v9891_v9 = vunpack.i.h.bf16 %v9889_v44  ;;  %v9890_v29 = vunpack.i.l.bf16 %v9889_v44 }
0x1fde   : > { %v9438_v26 = vpack.c.bf16 %v9881_v10, %v9880_v41 }
0x1fdf   : > { %v9448_v12 = vpack.c.bf16 %v9891_v9, %v9890_v29 }
0x1fe0   : > { %9439 = vmatprep.subr.bf16.mxu0 %v9438_v26 }
0x1fe1   : > { %9441 = vmatpush3.bf16.msra.mxu0 %v9438_v26 }
0x1fe2   : > { %v10103_v60 = vpop.eup %10102  ;;  %9444 = vmatprep.subr.msk.bf16.mxu0 %vm10617_vm2, %v9442_v53 }
0x1fe3   : > { %v10105_v57 = vpop.eup %10104  ;;  %v4262_v2 = vmul.f32 %v10103_v60, %v10095_v54 }
0x1fe4   : > { %v4261_v62 = vmul.f32 %v10105_v57, %v10097_v31 }
0x1fe6   : > { %8812 = vmatprep.mubr.msk.f32.mxu0 %vm1170_vm0, %v4261_v62 }
0x1fe7   : > { %8813 = vmatmul.mubr.msk.f32.vlgmr.msra.gmra.mrb[48].mxu0 %vm1170_vm0, %v4262_v2 }
0x1fea   : > { %9447 = vmatpush3.bf16.xpose.msk.msra.mxu0 %vm10617_vm2, %v9442_v53 }
0x1feb   : > { %9450 = vmatprep.subr.msk.bf16.mxu0 %vm10617_vm2, %v9448_v12 }
0x1ff2   : > { %9453 = vmatpush3.bf16.xpose.msk.msra.mxu0 %vm10617_vm2, %v9448_v12 }
0x200c   : > { %v4256_v43 = vpop.xlane.xlu0 %4255 }
0x200d   : > { %10106 = vrcp.f32 %v4256_v43  ;;  %v4253_v45 = vpop.xlane.xlu1 %4252 }
0x200e   : > { %10108 = vrcp.f32 %v4253_v45 }
0x2010   : > { %v4375_v16 = vpop.permute.xlu0 %4374 }
0x2011   : > { %v4377_v23 = vpop.permute.xlu1 %4376 }
0x2014   : > { %v4379_v48 = vpop.permute.xlu0 %4378 }
0x2015   : > { %v4381_v55 = vpop.permute.xlu1 %4380 }
0x2017   : > { %v10107_v27 = vpop.eup %10106 }
0x2018   : > { %v10109_v18 = vpop.eup %10108  ;;  %v4264_v39 = vmul.f32 %v10107_v27, %v10099_v34 }
0x2019   : > { %v4263_v47 = vmul.f32 %v10109_v18, %v10101_v6 }
0x201b   : > { %8815 = vmatprep.mubr.msk.f32.mxu0 %vm1170_vm0, %v4263_v47 }
0x201c   : > { %8816 = vmatmul.mubr.msk.f32.gmra.mrb[50].mxu0 %vm1170_vm0, %v4264_v39 }
0x201d   : > { %8826 = vmatprep.mubr.msk.f32.mxu0 %vm1280_vm1, %v4375_v16 }
0x2020   : > { %8827 = vmatmul.mubr.msk.f32.vlgmr.msra.gmra.mrb[52].mxu0 %vm1280_vm1, %v4377_v23 }
0x2021   : > { %8829 = vmatprep.mubr.msk.f32.mxu0 %vm1280_vm1, %v4379_v48 }
0x2024   : > { %8830 = vmatmul.mubr.msk.f32.gmra.mrb[54].mxu0 %vm1280_vm1, %v4381_v55 }
0x20ba   : > { %v11284_v51 = vpop.f32.mrb[48].mxu0 }
0x20bb   : > { %v11286_v54 = vpop.f32.mrb[49].mxu0 }
0x20ef   : > { %v11288_v31 = vpop.f32.mrb[50].mxu0 }
0x20f0   : > { %v11290_v56 = vpop.f32.mrb[51].mxu0 }
0x20f3   : > { %v8828_v59 = vpop.f32.mrb[52].mxu0 }
0x20f4   : > { %v4492_v5 = vmul.f32 0.25, %v8828_v59  ;;  %v4472_v63 = vpop.f32.mrb[53].mxu0 }
0x20f5   : > { %v4491_v0 = vmul.f32 0.25, %v4472_v63 }
0x20f6   : > { %v4496_v19 = vadd.f32 %v11229_v17, %v4492_v5 }
0x20f7   : > { %v4495_v4 = vadd.f32 %v11233_v61, %v4491_v0  ;;  %v8831_v3 = vpop.f32.mrb[54].mxu0 }
0x20f8   : > { %v4482_v34 = vpop.f32.mrb[55].mxu0  ;;  %v4502_v6 = vsel %vm1170_vm0, %v4496_v19, -inf  ;;  %v4494_v7 = vmul.f32 0.25, %v8831_v3 }
0x20f9   : > { %v4493_v1 = vmul.f32 0.25, %v4482_v34  ;;  %4503 = vmax.xlane.f32.xlu1 %v4502_v6  ;;  %v4499_v13 = vsel %vm1170_vm0, %v4495_v4, -inf }
0x20fa   : > { %4500 = vmax.xlane.f32.xlu0 %v4499_v13  ;;  %v4498_v37 = vadd.f32 %v11243_v11, %v4494_v7  ;;  %v4672_v13 = vld [vmem:[%s11960_s18] sm:$0xff] }
0x20fb   : > { %v4497_v28 = vadd.f32 %v11239_v25, %v4493_v1 }
0x20fc   : > { %v4508_v17 = vsel %vm1170_vm0, %v4498_v37, -inf }
0x20fd   : > { %v4505_v30 = vsel %vm1170_vm0, %v4497_v28, -inf }
0x20fe   : > { %4506 = vmax.xlane.f32.xlu0 %v4505_v30  ;;  %v4674_v30 = vld [vmem:[%s11960_s18 + $0x10] sm:$0xff] }
0x2102   : > { %4509 = vmax.xlane.f32.xlu0 %v4508_v17  ;;  %v4675_v17 = vld [vmem:[%s11960_s18 + $0x18] sm:$0xff] }
0x2186   : > { %v4504_v61 = vpop.xlane.xlu1 %4503 }
0x2187   : > { %v4512_v15 = vsub.f32 %v4496_v19, %v4504_v61  ;;  %v4501_v42 = vpop.xlane.xlu0 %4500  ;;  %v9466_v61 = vpack.c.bf16 %v4675_v17, %v4674_v30 }
0x2188   : > { %v4511_v10 = vsub.f32 %v4495_v4, %v4501_v42 }
0x2189   : > { %v4517_v41 = vmul.f32 1.442695, %v4512_v15 }
0x218a   : > { %v4515_v26 = vmul.f32 1.442695, %v4511_v10 }
0x218b   : > { %10110 = vpow2.f32 %v4517_v41  ;;  %v4507_v53 = vpop.xlane.xlu0 %4506 }
0x218c   : > { %10112 = vpow2.f32 %v4515_v26  ;;  %v4513_v60 = vsub.f32 %v4497_v28, %v4507_v53  ;;  %v4673_v28 = vld [vmem:[%s11960_s18 + $0x8] sm:$0xff] }
0x218e   : > { %v4519_v44 = vmul.f32 1.442695, %v4513_v60 }
0x218f   : > { %v4510_v25 = vpop.xlane.xlu0 %4509 }
0x2190   : > { %10114 = vpow2.f32 %v4519_v44  ;;  %v4514_v11 = vsub.f32 %v4498_v37, %v4510_v25  ;;  %v9462_v37 = vpack.c.bf16 %v4673_v28, %v4672_v13 }
0x2192   : > { %v4521_v57 = vmul.f32 1.442695, %v4514_v11 }
0x2194   : > { %10116 = vpow2.f32 %v4521_v57 }
0x2195   : > { %v10111_v62 = vpop.eup %10110 }
0x2196   : > { %v10113_v2 = vpop.eup %10112  ;;  %v4526_v9 = vsel %vm1170_vm0, %v10111_v62, 0.0 }
0x2197   : > { %4527 = vadd.xlane.f32.xlu0 %v4526_v9  ;;  %v4523_v29 = vsel %vm1170_vm0, %v10113_v2, 0.0 }
0x2198   : > { %4524 = vadd.xlane.f32.xlu1 %v4523_v29 }
0x219a   : > { %v10115_v12 = vpop.eup %10114 }
0x219b   : > { %v4529_v43 = vsel %vm1170_vm0, %v10115_v12, 0.0 }
0x219c   : > { %4530 = vadd.xlane.f32.xlu1 %v4529_v43 }
0x219e   : > { %v10117_v45 = vpop.eup %10116 }
0x219f   : > { %v4532_v27 = vsel %vm1170_vm0, %v10117_v45, 0.0 }
0x21a0   : > { %4533 = vadd.xlane.f32.xlu0 %v4532_v27 }
0x21ad   : > { %9893 = vrot.lane.b32.xlu1 %v11200_v33, %s11938_s2 }
0x21b6   : > { %9898 = vrot.lane.b32.xlu0 %v11210_v21, %s11938_s2 }
0x2224   : > { %v4528_v47 = vpop.xlane.xlu0 %4527 }
0x2225   : > { %v4525_v18 = vpop.xlane.xlu1 %4524 }
0x2226   : > { %10118 = vrcp.f32 %v4525_v18 }
0x2227   : > { %10120 = vrcp.f32 %v4528_v47 }
0x2229   : > { %v4531_v16 = vpop.xlane.xlu1 %4530 }
0x222a   : > { %10122 = vrcp.f32 %v4531_v16 }
0x222d   : > { %v9894_v39 = vpop.permute.xlu1 %9893  ;;  %v4534_v23 = vpop.xlane.xlu0 %4533 }
0x222e   : > { %v9896_v48 = vunpack.i.h.bf16 %v9894_v39  ;;  %v9895_v55 = vunpack.i.l.bf16 %v9894_v39  ;;  %10124 = vrcp.f32 %v4534_v23 }
0x2230   : > { %v10119_v59 = vpop.eup %10118  ;;  %v9454_v5 = vpack.c.bf16 %v9896_v48, %v9895_v55 }
0x2231   : > { %v9899_v63 = vpop.permute.xlu0 %9898  ;;  %v4539_v0 = vmul.f32 %v10119_v59, %v10113_v2  ;;  %v10121_v4 = vpop.eup %10120 }
0x2232   : > { %v9901_v19 = vunpack.i.h.bf16 %v9899_v63  ;;  %v9900_v33 = vunpack.i.l.bf16 %v9899_v63  ;;  %9455 = vmatprep.subr.bf16.mxu1 %v9454_v5  ;;  %v4540_v34 = vmul.f32 %v10121_v4, %v10111_v62 }
0x2233   : > { %9457 = vmatpush3.bf16.msra.mxu1 %v9454_v5  ;;  %8840 = vmatprep.mubr.msk.f32.mxu1 %vm1170_vm0, %v4539_v0 }
0x2234   : > { %v9458_v21 = vpack.c.bf16 %v9901_v19, %v9900_v33  ;;  %v10123_v3 = vpop.eup %10122 }
0x2235   : > { %v4541_v7 = vmul.f32 %v10123_v3, %v10115_v12 }
0x2236   : > { %9459 = vmatprep.subr.bf16.mxu1 %v9458_v21 }
0x2237   : > { %9461 = vmatpush3.bf16.msra.mxu1 %v9458_v21 }
0x2238   : > { %v10125_v6 = vpop.eup %10124  ;;  %9463 = vmatprep.subr.bf16.mxu1 %v9462_v37 }
0x2239   : > { %v4542_v1 = vmul.f32 %v10125_v6, %v10117_v45 }
0x223a   : > { %8841 = vmatmul.mubr.msk.f32.vlgmr.msra.gmra.mrb[40].mxu1 %vm1170_vm0, %v4540_v34 }
0x223b   : > { %8843 = vmatprep.mubr.msk.f32.mxu1 %vm1170_vm0, %v4541_v7  ;;  %9465 = vmatpush3.bf16.msra.mxu1 %v9462_v37 }
0x223c   : > { %9467 = vmatprep.subr.bf16.mxu1 %v9466_v61 }
0x223e   : > { %8844 = vmatmul.mubr.msk.f32.gmra.mrb[42].mxu1 %vm1170_vm0, %v4542_v1 }
0x223f   : > { %9469 = vmatpush3.bf16.msra.mxu1 %v9466_v61 }
0x230d   : > { %v8842_v15 = vpop.f32.mrb[40].mxu1 }
0x230e   : > { %v4633_v42 = vpop.f32.mrb[41].mxu1 }
0x230f   : > { %4656 = vrot.lane.b32.xlu1 %v4633_v42, %s11936_s7 }
0x2311   : > { %v8845_v10 = vpop.f32.mrb[42].mxu1 }
0x2312   : > { %v4643_v41 = vpop.f32.mrb[43].mxu1 }
0x2313   : > { %4658 = vrot.lane.b32.xlu1 %v8842_v15, %s11936_s7  ;;  %4660 = vrot.lane.b32.xlu0 %v4643_v41, %s11936_s7  ;;  %v4961_v41 = vld [vmem:[%s10473_s23] sm:$0xff] }
0x2317   : > { %4662 = vrot.lane.b32.xlu1 %v8845_v10, %s11936_s7  ;;  %s11961_s7 = sld [smem:[#allocation19_spill]] }
0x231d   : > { %v4849_v30 = vld [vmem:[%s11961_s7] sm:$0xff]  ;;  %v4850_v17 = vld [vmem:[%s11961_s7 + $0x8] sm:$0xff]  ;;  %v4851_v15 = vld [vmem:[%s11961_s7 + $0x10] sm:$0xff] }
0x231e   : > { %v9470_v61 = vpack.c.bf16 %v4850_v17, %v4849_v30  ;;  %v4852_v42 = vld [vmem:[%s11961_s7 + $0x18] sm:$0xff] }
0x231f   : > { %v9474_v10 = vpack.c.bf16 %v4852_v42, %v4851_v15 }
0x2320   : > { %9471 = vmatprep.subr.bf16.mxu0 %v9470_v61 }
0x2321   : > { %9473 = vmatpush3.bf16.msra.mxu0 %v9470_v61 }
0x2322   : > { %9475 = vmatprep.subr.bf16.mxu0 %v9474_v10 }
0x2325   : > { %9477 = vmatpush3.bf16.msra.mxu0 %v9474_v10 }
0x2381   : > { %v4657_v26 = vpop.permute.xlu1 %4656 }
0x2382   : > { %v4668_v53 = vsel %vm1280_vm1, %v11286_v54, %v4657_v26  ;;  %v11333_v54 = vld [vmem:[%s10478_s14] sm:$0x3f]  ;;  %v4962_v26 = vld [vmem:[%s10473_s23 + $0x8] sm:$0xff] }
0x2383   : > { %8854 = vmatprep.mubr.msk.f32.mxu1 %vm1170_vm0, %v4668_v53  ;;  %v4679_v2 = vrot.slane %v11333_v54, %v10740_v20  ;;  %v4963_v53 = vld [vmem:[%s10473_s23 + $0x10] sm:$0xff] }
0x2385   : > { %v4659_v60 = vpop.permute.xlu1 %4658  ;;  %v4661_v44 = vpop.permute.xlu0 %4660 }
0x2386   : > { %v4669_v25 = vsel %vm1280_vm1, %v11284_v51, %v4659_v60  ;;  %v4670_v11 = vsel %vm1280_vm1, %v11290_v56, %v4661_v44  ;;  %v9478_v60 = vpack.c.bf16 %v4962_v26, %v4961_v41  ;;  %v4964_v44 = vld [vmem:[%s10473_s23 + $0x18] sm:$0xff]  ;;  %v4975_v26 = vld [vmem:[%s10473_s23 + $0x70] sm:$0xff] }
0x2387   : > { %8855 = vmatmul.mubr.msk.f32.vlgmr.msra.gmra.mrb[44].mxu1 %vm1170_vm0, %v4669_v25  ;;  %v9482_v25 = vpack.c.bf16 %v4964_v44, %v4963_v53  ;;  %v4976_v53 = vld [vmem:[%s10473_s23 + $0x78] sm:$0xff] }
0x2388   : > { %8857 = vmatprep.mubr.msk.f32.mxu1 %vm1170_vm0, %v4670_v11  ;;  %v4965_v11 = vld [vmem:[%s10473_s23 + $0x20] sm:$0xff]  ;;  %9479 = vmatprep.subr.bf16.mxu1 %v9478_v60 }
0x2389   : > { %v4663_v57 = vpop.permute.xlu1 %4662  ;;  %9481 = vmatpush3.bf16.msra.mxu1 %v9478_v60  ;;  %v7883_v60 = vld [vmem:[%s10468_s15] ss:$0 sm:$0xff] }
0x238a   : > { %v4671_v62 = vsel %vm1280_vm1, %v11288_v31, %v4663_v57  ;;  %v4966_v57 = vld [vmem:[%s10473_s23 + $0x28] sm:$0xff]  ;;  %9483 = vmatprep.subr.bf16.mxu1 %v9482_v25 }
0x238b   : > { %8858 = vmatmul.mubr.msk.f32.gmra.mrb[46].mxu1 %vm1170_vm0, %v4671_v62  ;;  %v9486_v62 = vpack.c.bf16 %v4966_v57, %v4965_v11 }
0x238d   : > { %9485 = vmatpush3.bf16.msra.mxu1 %v9482_v25 }
0x238e   : > { %9487 = vmatprep.subr.bf16.mxu1 %v9486_v62 }
0x2391   : > { %9489 = vmatpush3.bf16.msra.mxu1 %v9486_v62 }
0x245a   : > { %v8856_v9 = vpop.f32.mrb[44].mxu1 }
0x245b   : > { %v4764_v51 = vadd.f32 %v8856_v9, %v4679_v2  ;;  %v4758_v29 = vpop.f32.mrb[45].mxu1  ;;  %v4968_v9 = vld [vmem:[%s10473_s23 + $0x38] sm:$0xff] }
0x245c   : > { %v4759_v12 = vadd.f32 %v4758_v29, %v4679_v2  ;;  %v4969_v29 = vld [vmem:[%s10473_s23 + $0x40] sm:$0xff] }
0x245d   : > { %v4778_v56 = vadd.f32 %v4764_v51, %v11175_v35 }
0x245e   : > { %v4777_v43 = vadd.f32 %v4759_v12, %v11172_v24  ;;  %v8859_v45 = vpop.f32.mrb[46].mxu1  ;;  %v4970_v12 = vld [vmem:[%s10473_s23 + $0x48] sm:$0xff] }
0x245f   : > { %v4768_v27 = vpop.f32.mrb[47].mxu1  ;;  %v4784_v18 = vsel %vm1170_vm0, %v4778_v56, 0.0  ;;  %v4774_v31 = vadd.f32 %v8859_v45, %v4679_v2  ;;  %v4972_v45 = vld [vmem:[%s10473_s23 + $0x58] sm:$0xff] }
0x2460   : > { %v4769_v47 = vadd.f32 %v4768_v27, %v4679_v2  ;;  %4785 = vadd.xlane.f32.xlu1 %v4784_v18  ;;  %v4781_v16 = vsel %vm1170_vm0, %v4777_v43, 0.0  ;;  %v4967_v2 = vld [vmem:[%s10473_s23 + $0x30] sm:$0xff]  ;;  %v4973_v18 = vld [vmem:[%s10473_s23 + $0x60] sm:$0xff] }
0x2461   : > { %4782 = vadd.xlane.f32.xlu0 %v4781_v16  ;;  %v4780_v23 = vadd.f32 %v4774_v31, %v11185_v52  ;;  %v9490_v51 = vpack.c.bf16 %v4968_v9, %v4967_v2  ;;  %v4974_v31 = vld [vmem:[%s10473_s23 + $0x68] sm:$0xff] }
0x2462   : > { %v4779_v39 = vadd.f32 %v4769_v47, %v11182_v58  ;;  %v9502_v47 = vpack.c.bf16 %v4974_v31, %v4973_v18 }
0x2463   : > { %v4790_v35 = vsel %vm1170_vm0, %v4780_v23, 0.0  ;;  %9491 = vmatprep.subr.bf16.mxu1 %v9490_v51 }
0x2464   : > { %v4787_v48 = vsel %vm1170_vm0, %v4779_v39, 0.0  ;;  %9493 = vmatpush3.bf16.msra.mxu1 %v9490_v51 }
0x2465   : > { %4788 = vadd.xlane.f32.xlu0 %v4787_v48 }
0x2469   : > { %4791 = vadd.xlane.f32.xlu0 %v4790_v35 }
0x24ed   : > { %v4786_v24 = vpop.xlane.xlu1 %4785 }
0x24ee   : > { %v4794_v55 = vmul.f32 0.03125, %v4786_v24  ;;  %v4783_v59 = vpop.xlane.xlu0 %4782 }
0x24ef   : > { %v4793_v5 = vmul.f32 0.03125, %v4783_v59 }
0x24f0   : > { %v11345_v63 = vsub.f32 %v4778_v56, %v4794_v55  ;;  %v9494_v56 = vpack.c.bf16 %v4970_v12, %v4969_v29 }
0x24f1   : > { %v11347_v0 = vsub.f32 %v4777_v43, %v4793_v5  ;;  %v4971_v43 = vld [vmem:[%s10473_s23 + $0x50] sm:$0xff] }
0x24f2   : > { %v4789_v19 = vpop.xlane.xlu0 %4788  ;;  %v4802_v58 = vmul.f32 %v11345_v63, %v11345_v63  ;;  %9495 = vmatprep.subr.bf16.mxu1 %v9494_v56  ;;  %v9498_v27 = vpack.c.bf16 %v4972_v45, %v4971_v43  ;;  %v4980_v43 = vrot.slane %v11333_v54, %v10812_v32 }
0x24f3   : > { %v4795_v33 = vmul.f32 0.03125, %v4789_v19  ;;  %v4801_v52 = vmul.f32 %v11347_v0, %v11347_v0  ;;  %9497 = vmatpush3.bf16.msra.mxu1 %v9494_v56 }
0x24f4   : > { %v4808_v21 = vsel %vm1170_vm0, %v4802_v58, 0.0  ;;  %9499 = vmatprep.subr.bf16.mxu1 %v9498_v27 }
0x24f5   : > { %v11354_v4 = vsub.f32 %v4779_v39, %v4795_v33  ;;  %4809 = vadd.xlane.f32.xlu0 %v4808_v21  ;;  %v4805_v3 = vsel %vm1170_vm0, %v4801_v52, 0.0  ;;  %v4836_v52 = vrot.slane %v11333_v54, %v10794_v8 }
0x24f6   : > { %4806 = vadd.xlane.f32.xlu1 %v4805_v3  ;;  %v4792_v34 = vpop.xlane.xlu0 %4791 }
0x24f7   : > { %v4796_v6 = vmul.f32 0.03125, %v4792_v34  ;;  %v4803_v7 = vmul.f32 %v11354_v4, %v11354_v4  ;;  %9501 = vmatpush3.bf16.msra.mxu1 %v9498_v27 }
0x24f8   : > { %9503 = vmatprep.subr.bf16.mxu1 %v9502_v47 }
0x24f9   : > { %v11359_v1 = vsub.f32 %v4780_v23, %v4796_v6  ;;  %v4811_v13 = vsel %vm1170_vm0, %v4803_v7, 0.0  ;;  %v4844_v7 = vrot.slane %v11333_v54, %v10515_v14 }
0x24fa   : > { %4812 = vadd.xlane.f32.xlu1 %v4811_v13 }
0x24fb   : > { %v4804_v28 = vmul.f32 %v11359_v1, %v11359_v1  ;;  %9505 = vmatpush3.bf16.msra.mxu1 %v9502_v47 }
0x24fd   : > { %v4814_v37 = vsel %vm1170_vm0, %v4804_v28, 0.0 }
0x24fe   : > { %4815 = vadd.xlane.f32.xlu0 %v4814_v37 }
0x2582   : > { %v4810_v16 = vpop.xlane.xlu0 %4809 }
0x2583   : > { %v4818_v39 = vmul.f32 0.03125, %v4810_v16  ;;  %v4807_v23 = vpop.xlane.xlu1 %4806 }
0x2584   : > { %v4817_v48 = vmul.f32 0.03125, %v4807_v23 }
0x2585   : > { %v4822_v35 = vadd.f32 1e-05, %v4818_v39 }
0x2586   : > { %v4821_v24 = vadd.f32 1e-05, %v4817_v48 }
0x2587   : > { %10126 = vrsqrt.f32 %v4822_v35  ;;  %v4813_v55 = vpop.xlane.xlu1 %4812 }
0x2588   : > { %10128 = vrsqrt.f32 %v4821_v24  ;;  %v4819_v59 = vmul.f32 0.03125, %v4813_v55 }
0x258a   : > { %v4823_v5 = vadd.f32 1e-05, %v4819_v59 }
0x258b   : > { %v4816_v19 = vpop.xlane.xlu0 %4815 }
0x258c   : > { %10130 = vrsqrt.f32 %v4823_v5  ;;  %v4820_v58 = vmul.f32 0.03125, %v4816_v19 }
0x258e   : > { %v4824_v33 = vadd.f32 1e-05, %v4820_v58 }
0x2590   : > { %10132 = vrsqrt.f32 %v4824_v33 }
0x2591   : > { %v10127_v21 = vpop.eup %10126 }
0x2592   : > { %v10129_v3 = vpop.eup %10128  ;;  %v4830_v34 = vmul.f32 %v10127_v21, %v11345_v63 }
0x2593   : > { %v4829_v6 = vmul.f32 %v10129_v3, %v11347_v0 }
0x2594   : > { %v4838_v13 = vmul.f32 %v4836_v52, %v4830_v34 }
0x2595   : > { %v4837_v28 = vmul.f32 %v4836_v52, %v4829_v6 }
0x2596   : > { %v10131_v37 = vpop.eup %10130  ;;  %v4846_v61 = vadd.f32 %v4844_v7, %v4838_v13 }
0x2597   : > { %v4845_v30 = vadd.f32 %v4844_v7, %v4837_v28  ;;  %v4831_v17 = vmul.f32 %v10131_v37, %v11354_v4  ;;  %v9506_v4 = vpack.c.bf16 %v4976_v53, %v4975_v26  ;;  %v7889_v53 = vld [vmem:[%s11957_s5 + $0x20] sm:$0xff] }
0x2599   : > { %8868 = vmatprep.mubr.msk.f32.mxu0 %vm1170_vm0, %v4845_v30  ;;  %v4839_v15 = vmul.f32 %v4836_v52, %v4831_v17  ;;  %9507 = vmatprep.subr.bf16.mxu1 %v9506_v4 }
0x259a   : > { %v10133_v42 = vpop.eup %10132  ;;  %8869 = vmatmul.mubr.msk.f32.vlgmr.msra.gmra.mrb[56].mxu0 %vm1170_vm0, %v4846_v61  ;;  %9509 = vmatpush3.bf16.msra.mxu1 %v9506_v4  ;;  %v7890_v4 = vld [vmem:[%s11957_s5 + $0x28] sm:$0xff] }
0x259b   : > { %v4847_v63 = vadd.f32 %v4844_v7, %v4839_v15  ;;  %v4832_v0 = vmul.f32 %v10133_v42, %v11359_v1 }
0x259d   : > { %8871 = vmatprep.mubr.msk.f32.mxu0 %vm1170_vm0, %v4847_v63  ;;  %v4840_v10 = vmul.f32 %v4836_v52, %v4832_v0 }
0x259f   : > { %v4848_v41 = vadd.f32 %v4844_v7, %v4840_v10 }
0x25a1   : > { %8872 = vmatmul.mubr.msk.f32.gmra.mrb[58].mxu0 %vm1170_vm0, %v4848_v41 }
0x266d   : > { %v8870_v44 = vpop.f32.mrb[56].mxu0 }
0x266e   : > { %v4944_v25 = vadd.f32 %v8870_v44, %v7883_v60  ;;  %v4938_v11 = vpop.f32.mrb[57].mxu0  ;;  %v7891_v44 = vld [vmem:[%s11957_s5 + $0x30] sm:$0xff] }
0x266f   : > { %v4939_v57 = vadd.f32 %v7883_v60, %v4938_v11 }
0x2670   : > { %v4958_v2 = vmax.f32 %v4944_v25, 0.0  ;;  %v7892_v25 = vld [vmem:[%s11957_s5 + $0x38] sm:$0xff] }
0x2671   : > { %v4957_v62 = vmax.f32 %v4939_v57, 0.0  ;;  %v9514_v11 = vpack.c.bf16 %v7892_v25, %v7891_v44 }
0x2673   : > { %8906 = vmatprep.mubr.f32.mxu1 %v4957_v62 }
0x2674   : > { %v8873_v1 = vpop.f32.mrb[58].mxu0  ;;  %8907 = vmatmul.mubr.f32.vlgmr.msra.gmra.mrb[48].mxu1 %v4958_v2 }
0x2675   : > { %v4954_v9 = vadd.f32 %v8873_v1, %v7883_v60  ;;  %v4948_v51 = vpop.f32.mrb[59].mxu0 }
0x2676   : > { %v4949_v29 = vadd.f32 %v7883_v60, %v4948_v51  ;;  %v9510_v60 = vpack.c.bf16 %v7890_v4, %v7889_v53 }
0x2677   : > { %v4960_v56 = vmax.f32 %v4954_v9, 0.0 }
0x2678   : > { %v4959_v12 = vmax.f32 %v4949_v29, 0.0  ;;  %9511 = vmatprep.subr.bf16.mxu0 %v9510_v60 }
0x2679   : > { %9513 = vmatpush3.bf16.msra.mxu0 %v9510_v60 }
0x267a   : > { %8909 = vmatprep.mubr.f32.mxu1 %v4959_v12  ;;  %9515 = vmatprep.subr.bf16.mxu0 %v9514_v11 }
0x267b   : > { %8910 = vmatmul.mubr.f32.gmra.mrb[50].mxu1 %v4960_v56 }
0x267d   : > { %9517 = vmatpush3.bf16.msra.mxu0 %v9514_v11 }
0x2747   : > { %v8908_v45 = vpop.f32.mrb[48].mxu1 }
0x2748   : > { %v5053_v27 = vadd.f32 %v8908_v45, %v4980_v43  ;;  %v5047_v18 = vpop.f32.mrb[49].mxu1 }
0x2749   : > { %v5048_v31 = vadd.f32 %v5047_v18, %v4980_v43  ;;  %v5125_v18 = vrot.slane %v11333_v54, %v10829_v22 }
0x274a   : > { %v5067_v47 = vadd.f32 %v5053_v27, %v4846_v61 }
0x274b   : > { %v5066_v16 = vadd.f32 %v5048_v31, %v4845_v30 }
0x274c   : > { %v5073_v39 = vsel %vm1170_vm0, %v5067_v47, 0.0 }
0x274d   : > { %5074 = vadd.xlane.f32.xlu0 %v5073_v39  ;;  %v5070_v23 = vsel %vm1170_vm0, %v5066_v16, 0.0 }
0x274e   : > { %5071 = vadd.xlane.f32.xlu1 %v5070_v23  ;;  %v8911_v48 = vpop.f32.mrb[50].mxu1  ;;  %v5133_v23 = vrot.slane %v11333_v54, %v10832_v38 }
0x274f   : > { %v5063_v35 = vadd.f32 %v8911_v48, %v4980_v43  ;;  %v5057_v24 = vpop.f32.mrb[51].mxu1 }
0x2750   : > { %v5058_v55 = vadd.f32 %v5057_v24, %v4980_v43 }
0x2751   : > { %v5069_v59 = vadd.f32 %v5063_v35, %v4848_v41 }
0x2752   : > { %v5068_v5 = vadd.f32 %v5058_v55, %v4847_v63 }
0x2753   : > { %v5079_v19 = vsel %vm1170_vm0, %v5069_v59, 0.0 }
0x2754   : > { %5080 = vadd.xlane.f32.xlu0 %v5079_v19  ;;  %v5076_v58 = vsel %vm1170_vm0, %v5068_v5, 0.0 }
0x2755   : > { %5077 = vadd.xlane.f32.xlu1 %v5076_v58 }
0x27da   : > { %v5075_v33 = vpop.xlane.xlu0 %5074 }
0x27db   : > { %v5083_v52 = vmul.f32 0.03125, %v5075_v33  ;;  %v5072_v21 = vpop.xlane.xlu1 %5071 }
0x27dc   : > { %v5082_v3 = vmul.f32 0.03125, %v5072_v21 }
0x27dd   : > { %v5087_v34 = vsub.f32 %v5067_v47, %v5083_v52 }
0x27de   : > { %v5086_v6 = vsub.f32 %v5066_v16, %v5082_v3  ;;  %v7894_v3 = vld [vmem:[%s11959_s16 + $0x1] ss:$0 sm:$0xff] }
0x27df   : > { %v5091_v7 = vmul.f32 %v5087_v34, %v5087_v34 }
0x27e0   : > { %v5090_v13 = vmul.f32 %v5086_v6, %v5086_v6 }
0x27e1   : > { %v5081_v28 = vpop.xlane.xlu0 %5080  ;;  %v5097_v37 = vsel %vm1170_vm0, %v5091_v7, 0.0 }
0x27e2   : > { %v5085_v30 = vmul.f32 0.03125, %v5081_v28  ;;  %v5078_v17 = vpop.xlane.xlu1 %5077  ;;  %5098 = vadd.xlane.f32.xlu0 %v5097_v37  ;;  %v5094_v61 = vsel %vm1170_vm0, %v5090_v13, 0.0 }
0x27e3   : > { %v5084_v15 = vmul.f32 0.03125, %v5078_v17  ;;  %5095 = vadd.xlane.f32.xlu1 %v5094_v61 }
0x27e4   : > { %v5089_v42 = vsub.f32 %v5069_v59, %v5085_v30 }
0x27e5   : > { %v5088_v63 = vsub.f32 %v5068_v5, %v5084_v15 }
0x27e6   : > { %v5093_v0 = vmul.f32 %v5089_v42, %v5089_v42 }
0x27e7   : > { %v5092_v10 = vmul.f32 %v5088_v63, %v5088_v63 }
0x27e8   : > { %v5103_v41 = vsel %vm1170_vm0, %v5093_v0, 0.0 }
0x27e9   : > { %5104 = vadd.xlane.f32.xlu0 %v5103_v41  ;;  %v5100_v26 = vsel %vm1170_vm0, %v5092_v10, 0.0 }
0x27ea   : > { %5101 = vadd.xlane.f32.xlu1 %v5100_v26 }
0x286f   : > { %v5099_v57 = vpop.xlane.xlu0 %5098 }
0x2870   : > { %v5107_v62 = vmul.f32 0.03125, %v5099_v57  ;;  %v5096_v2 = vpop.xlane.xlu1 %5095 }
0x2871   : > { %v5106_v1 = vmul.f32 0.03125, %v5096_v2 }
0x2872   : > { %v5111_v9 = vadd.f32 1e-05, %v5107_v62 }
0x2873   : > { %v5110_v51 = vadd.f32 1e-05, %v5106_v1 }
0x2874   : > { %10134 = vrsqrt.f32 %v5111_v9 }
0x2875   : > { %10136 = vrsqrt.f32 %v5110_v51 }
0x2876   : > { %v5105_v29 = vpop.xlane.xlu0 %5104 }
0x2877   : > { %v5109_v12 = vmul.f32 0.03125, %v5105_v29  ;;  %v5102_v56 = vpop.xlane.xlu1 %5101 }
0x2878   : > { %v5108_v43 = vmul.f32 0.03125, %v5102_v56 }
0x2879   : > { %v5113_v45 = vadd.f32 1e-05, %v5109_v12 }
0x287a   : > { %v5112_v27 = vadd.f32 1e-05, %v5108_v43 }
0x287b   : > { %10138 = vrsqrt.f32 %v5113_v45 }
0x287c   : > { %10140 = vrsqrt.f32 %v5112_v27 }
0x287e   : > { %v10135_v31 = vpop.eup %10134 }
0x287f   : > { %v10137_v47 = vpop.eup %10136  ;;  %v5119_v16 = vmul.f32 %v10135_v31, %v5087_v34 }
0x2880   : > { %v5118_v39 = vmul.f32 %v10137_v47, %v5086_v6  ;;  %v11478_v47 = vld [vmem:[%s10360_s21] sm:$0xff] }
0x2881   : > { %v5127_v48 = vmul.f32 %v5125_v18, %v5119_v16 }
0x2882   : > { %v5126_v35 = vmul.f32 %v5125_v18, %v5118_v39 }
0x2883   : > { %v11418_v59 = vadd.f32 %v5133_v23, %v5127_v48 }
0x2884   : > { %v11416_v24 = vadd.f32 %v5133_v23, %v5126_v35 }
0x2885   : > { %v10139_v55 = vpop.eup %10138 }
0x2886   : > { %v10141_v5 = vpop.eup %10140  ;;  %8920 = vmatprep.mubr.msk.f32.mxu0 %vm1170_vm0, %v11416_v24  ;;  %v5121_v19 = vmul.f32 %v10139_v55, %v5089_v42 }
0x2887   : > { %8921 = vmatmul.mubr.msk.f32.vlgmr.msra.gmra.mrb[60].mxu0 %vm1170_vm0, %v11418_v59  ;;  %v5120_v58 = vmul.f32 %v10141_v5, %v5088_v63 }
0x2888   : > { %v5129_v33 = vmul.f32 %v5125_v18, %v5121_v19 }
0x2889   : > { %v5128_v52 = vmul.f32 %v5125_v18, %v5120_v58  ;;  %v11474_v18 = vld [vmem:[%s10360_s21 + $0x8] sm:$0xff] }
0x288a   : > { %v11426_v21 = vadd.f32 %v5133_v23, %v5129_v33 }
0x288b   : > { %v11424_v54 = vadd.f32 %v5133_v23, %v5128_v52  ;;  %v11484_v52 = vld [vmem:[%s10360_s21 + $0x10] sm:$0xff] }
0x288d   : > { %8923 = vmatprep.mubr.msk.f32.mxu0 %vm1170_vm0, %v11424_v54 }
0x288e   : > { %8924 = vmatmul.mubr.msk.f32.gmra.mrb[62].mxu0 %vm1170_vm0, %v11426_v21 }
0x295a   : > { %v8922_v34 = vpop.f32.mrb[60].mxu0 }
0x295b   : > { %v5237_v6 = vadd.f32 %v8922_v34, %v7894_v3  ;;  %v5231_v7 = vpop.f32.mrb[61].mxu0 }
0x295c   : > { %v5232_v13 = vadd.f32 %v7894_v3, %v5231_v7 }
0x295e   : > { %8934 = vmatprep.mubr.msk.f32.mxu0 %vm1280_vm1, %v5232_v13  ;;  %v11434_v28 = vpack.i.bf16 %v5237_v6, %v5232_v13 }
0x2960   : > { %9903 = vrot.lane.b32.xlu1 %v11434_v28, %s10322_s19 }
0x2961   : > { %v8925_v37 = vpop.f32.mrb[62].mxu0 }
0x2962   : > { %v5247_v30 = vadd.f32 %v8925_v37, %v7894_v3  ;;  %v5241_v17 = vpop.f32.mrb[63].mxu0  ;;  %v11491_v37 = vld [vmem:[%s10360_s21 + $0x18] sm:$0xff] }
0x2963   : > { %v5242_v61 = vadd.f32 %v7894_v3, %v5241_v17 }
0x2964   : > { %9913 = vrot.lane.b32.xlu1 %v11434_v28, %s10324_s20 }
0x2965   : > { %v11440_v15 = vpack.i.bf16 %v5247_v30, %v5242_v61 }
0x2967   : > { %9908 = vrot.lane.b32.xlu0 %v11440_v15, %s10322_s19 }
0x2968   : > { %9918 = vrot.lane.b32.xlu1 %v11440_v15, %s10324_s20 }
0x296b   : > { %5524 = vrot.lane.b32.xlu0 %v5232_v13, %s10325_s28 }
0x296c   : > { %5526 = vrot.lane.b32.xlu1 %v5237_v6, %s10325_s28 }
0x296f   : > { %5528 = vrot.lane.b32.xlu0 %v5242_v61, %s10325_s28 }
0x2970   : > { %5530 = vrot.lane.b32.xlu1 %v5247_v30, %s10325_s28 }
0x29d2   : > { %v9904_v42 = vpop.permute.xlu1 %9903 }
0x29d3   : > { %v9906_v63 = vunpack.i.h.bf16 %v9904_v42  ;;  %v9905_v0 = vunpack.i.l.bf16 %v9904_v42 }
0x29d5   : > { %v9518_v10 = vpack.c.bf16 %v9906_v63, %v9905_v0 }
0x29d6   : > { %v9914_v41 = vpop.permute.xlu1 %9913 }
0x29d7   : > { %v9916_v26 = vunpack.i.h.bf16 %v9914_v41  ;;  %v9915_v53 = vunpack.i.l.bf16 %v9914_v41  ;;  %9520 = vmatprep.subr.msk.bf16.mxu0 %vm10617_vm2, %v9518_v10 }
0x29d8   : > { %9523 = vmatpush3.bf16.xpose.msk.msra.mxu0 %vm10617_vm2, %v9518_v10 }
0x29d9   : > { %v9538_v4 = vpack.c.bf16 %v9916_v26, %v9915_v53  ;;  %v9909_v60 = vpop.permute.xlu0 %9908 }
0x29da   : > { %v9911_v44 = vunpack.i.h.bf16 %v9909_v60  ;;  %v9910_v25 = vunpack.i.l.bf16 %v9909_v60  ;;  %v9919_v11 = vpop.permute.xlu1 %9918 }
0x29db   : > { %v9921_v57 = vunpack.i.h.bf16 %v9919_v11  ;;  %v9920_v62 = vunpack.i.l.bf16 %v9919_v11  ;;  %9540 = vmatprep.subr.msk.bf16.mxu1 %vm10617_vm2, %v9538_v4 }
0x29dc   : > { %v9524_v2 = vpack.c.bf16 %v9911_v44, %v9910_v25  ;;  %9543 = vmatpush3.bf16.xpose.msk.msra.mxu1 %vm10617_vm2, %v9538_v4 }
0x29dd   : > { %v9544_v1 = vpack.c.bf16 %v9921_v57, %v9920_v62  ;;  %v5525_v9 = vpop.permute.xlu0 %5524 }
0x29de   : > { %9526 = vmatprep.subr.msk.bf16.mxu0 %vm10617_vm2, %v9524_v2  ;;  %8962 = vmatprep.mubr.msk.f32.mxu1 %vm1280_vm1, %v5525_v9  ;;  %v5527_v51 = vpop.permute.xlu1 %5526 }
0x29df   : > { %9546 = vmatprep.subr.msk.bf16.mxu1 %vm10617_vm2, %v9544_v1 }
0x29e0   : > { %9529 = vmatpush3.bf16.xpose.msk.msra.mxu0 %vm10617_vm2, %v9524_v2 }
0x29e1   : > { %v5529_v29 = vpop.permute.xlu0 %5528 }
0x29e2   : > { %v5531_v12 = vpop.permute.xlu1 %5530 }
0x29e4   : > { %9549 = vmatpush3.bf16.xpose.msk.msra.mxu1 %vm10617_vm2, %v9544_v1 }
0x29e7   : > { %8935 = vmatmul.mubr.msk.f32.vlgmr.msra.gmra.mrb[64].mxu0 %vm1280_vm1, %v5237_v6 }
0x29e8   : > { %8937 = vmatprep.mubr.msk.f32.mxu0 %vm1280_vm1, %v5242_v61 }
0x29eb   : > { %8938 = vmatmul.mubr.msk.f32.gmra.mrb[66].mxu0 %vm1280_vm1, %v5247_v30  ;;  %8963 = vmatmul.mubr.msk.f32.vlgmr.msra.gmra.mrb[52].mxu1 %vm1280_vm1, %v5527_v51 }
0x29ec   : > { %8965 = vmatprep.mubr.msk.f32.mxu1 %vm1280_vm1, %v5529_v29 }
0x29ef   : > { %8966 = vmatmul.mubr.msk.f32.gmra.mrb[54].mxu1 %vm1280_vm1, %v5531_v12 }
0x2aba   : > { %v8936_v56 = vpop.f32.mrb[64].mxu0 }
0x2abb   : > { %v5364_v43 = vmul.f32 0.25, %v8936_v56  ;;  %v5344_v45 = vpop.f32.mrb[65].mxu0 }
0x2abc   : > { %v5363_v27 = vmul.f32 0.25, %v5344_v45 }
0x2abd   : > { %v5368_v31 = vadd.f32 %v11474_v18, %v5364_v43 }
0x2abe   : > { %v5367_v16 = vadd.f32 %v11478_v47, %v5363_v27  ;;  %v8939_v39 = vpop.f32.mrb[66].mxu0  ;;  %v8964_v23 = vpop.f32.mrb[52].mxu1 }
0x2abf   : > { %v5354_v48 = vpop.f32.mrb[67].mxu0  ;;  %v5622_v35 = vpop.f32.mrb[53].mxu1  ;;  %v5374_v55 = vsel %vm1170_vm0, %v5368_v31, -inf  ;;  %v5366_v5 = vmul.f32 0.25, %v8939_v39  ;;  %v5642_v7 = vmul.f32 0.25, %v8964_v23 }
0x2ac0   : > { %v5365_v19 = vmul.f32 0.25, %v5354_v48  ;;  %v5641_v58 = vmul.f32 0.25, %v5622_v35  ;;  %5375 = vmax.xlane.f32.xlu1 %v5374_v55  ;;  %v5371_v33 = vsel %vm1170_vm0, %v5367_v16, -inf }
0x2ac1   : > { %5372 = vmax.xlane.f32.xlu0 %v5371_v33  ;;  %v5370_v30 = vadd.f32 %v11491_v37, %v5366_v5  ;;  %v5646_v0 = vadd.f32 %v11474_v18, %v5642_v7 }
0x2ac2   : > { %v11487_v3 = vadd.f32 %v11484_v52, %v5365_v19  ;;  %v5645_v34 = vadd.f32 %v11478_v47, %v5641_v58  ;;  %v8967_v6 = vpop.f32.mrb[54].mxu1 }
0x2ac3   : > { %v5632_v13 = vpop.f32.mrb[55].mxu1  ;;  %v5644_v10 = vmul.f32 0.25, %v8967_v6  ;;  %v5380_v26 = vsel %vm1170_vm0, %v5370_v30, -inf  ;;  %v5652_v4 = vsel %vm1170_vm0, %v5646_v0, -inf }
0x2ac4   : > { %v5643_v17 = vmul.f32 0.25, %v5632_v13  ;;  %v5649_v61 = vsel %vm1170_vm0, %v5645_v34, -inf  ;;  %v5377_v42 = vsel %vm1170_vm0, %v11487_v3, -inf }
0x2ac5   : > { %5650 = vmax.xlane.f32.xlu1 %v5649_v61  ;;  %5378 = vmax.xlane.f32.xlu0 %v5377_v42  ;;  %v5648_v53 = vadd.f32 %v11491_v37, %v5644_v10 }
0x2ac6   : > { %v11498_v63 = vadd.f32 %v11484_v52, %v5643_v17 }
0x2ac7   : > { %v5658_v60 = vsel %vm1170_vm0, %v5648_v53, -inf }
0x2ac8   : > { %v5655_v41 = vsel %vm1170_vm0, %v11498_v63, -inf }
0x2ac9   : > { %5656 = vmax.xlane.f32.xlu1 %v5655_v41  ;;  %5381 = vmax.xlane.f32.xlu0 %v5380_v26 }
0x2acd   : > { %5653 = vmax.xlane.f32.xlu0 %v5652_v4 }
0x2ad1   : > { %5659 = vmax.xlane.f32.xlu0 %v5658_v60 }
0x2ada   : > { %9923 = vrot.lane.b32.xlu1 %v11434_v28, %s10323_s26 }
0x2b4d   : > { %v5376_v44 = vpop.xlane.xlu1 %5375 }
0x2b4e   : > { %v5384_v25 = vsub.f32 %v5368_v31, %v5376_v44  ;;  %v5373_v11 = vpop.xlane.xlu0 %5372 }
0x2b4f   : > { %v5383_v57 = vsub.f32 %v5367_v16, %v5373_v11 }
0x2b50   : > { %v5389_v62 = vmul.f32 1.442695, %v5384_v25 }
0x2b51   : > { %v5387_v2 = vmul.f32 1.442695, %v5383_v57 }
0x2b52   : > { %10142 = vpow2.f32 %v5389_v62  ;;  %v5651_v1 = vpop.xlane.xlu1 %5650  ;;  %v5379_v9 = vpop.xlane.xlu0 %5378 }
0x2b53   : > { %10144 = vpow2.f32 %v5387_v2  ;;  %v5661_v51 = vsub.f32 %v5645_v34, %v5651_v1  ;;  %v5385_v41 = vsub.f32 %v11487_v3, %v5379_v9 }
0x2b55   : > { %v5665_v29 = vmul.f32 1.442695, %v5661_v51  ;;  %v5391_v26 = vmul.f32 1.442695, %v5385_v41 }
0x2b56   : > { %v5657_v12 = vpop.xlane.xlu1 %5656  ;;  %v5382_v56 = vpop.xlane.xlu0 %5381 }
0x2b57   : > { %10146 = vpow2.f32 %v5665_v29  ;;  %v5386_v43 = vsub.f32 %v5370_v30, %v5382_v56 }
0x2b59   : > { %v5393_v35 = vmul.f32 1.442695, %v5386_v43 }
0x2b5a   : > { %v9924_v45 = vpop.permute.xlu1 %9923  ;;  %v5654_v27 = vpop.xlane.xlu0 %5653 }
0x2b5b   : > { %v9926_v39 = vunpack.i.h.bf16 %v9924_v45  ;;  %v9925_v23 = vunpack.i.l.bf16 %v9924_v45  ;;  %v5662_v48 = vsub.f32 %v5646_v0, %v5654_v27 }
0x2b5c   : > { %v11509_v31 = vpop.eup %10142 }
0x2b5d   : > { %v10145_v16 = vpop.eup %10144  ;;  %v9530_v55 = vpack.c.bf16 %v9926_v39, %v9925_v23  ;;  %v5667_v5 = vmul.f32 1.442695, %v5662_v48  ;;  %v5398_v19 = vsel %vm1170_vm0, %v11509_v31, 0.0 }
0x2b5e   : > { %5399 = vadd.xlane.f32.xlu0 %v5398_v19  ;;  %v5660_v58 = vpop.xlane.xlu0 %5659  ;;  %v5395_v33 = vsel %vm1170_vm0, %v10145_v16, 0.0 }
0x2b5f   : > { %10148 = vpow2.f32 %v5667_v5  ;;  %v5664_v34 = vsub.f32 %v5648_v53, %v5660_v58  ;;  %9531 = vmatprep.subr.bf16.mxu0 %v9530_v55  ;;  %5396 = vadd.xlane.f32.xlu1 %v5395_v33  ;;  %v5663_v53 = vsub.f32 %v11498_v63, %v5657_v12 }
0x2b60   : > { %9533 = vmatpush3.bf16.msra.mxu0 %v9530_v55  ;;  %10150 = vpow2.f32 %v5393_v35 }
0x2b61   : > { %v11514_v6 = vpop.eup %10146  ;;  %v5671_v7 = vmul.f32 1.442695, %v5664_v34  ;;  %v5669_v4 = vmul.f32 1.442695, %v5663_v53  ;;  %v7923_v53 = vld [vmem:[%s11960_s18 + $0x20] sm:$0xff] }
0x2b62   : > { %v5673_v13 = vsel %vm1170_vm0, %v11514_v6, 0.0 }
0x2b63   : > { %5674 = vadd.xlane.f32.xlu1 %v5673_v13  ;;  %10152 = vpow2.f32 %v5671_v7 }
0x2b64   : > { %10154 = vpow2.f32 %v5391_v26 }
0x2b65   : > { %10156 = vpow2.f32 %v5669_v4  ;;  %v7924_v4 = vld [vmem:[%s11960_s18 + $0x28] sm:$0xff] }
0x2b69   : > { %v11518_v30 = vpop.eup %10148 }
0x2b6a   : > { %v5676_v17 = vsel %vm1170_vm0, %v11518_v30, 0.0  ;;  %v11522_v61 = vpop.eup %10150 }
0x2b6b   : > { %5677 = vadd.xlane.f32.xlu0 %v5676_v17  ;;  %v5404_v42 = vsel %vm1170_vm0, %v11522_v61, 0.0 }
0x2b6d   : > { %v11526_v0 = vpop.eup %10152 }
0x2b6e   : > { %v5682_v10 = vsel %vm1170_vm0, %v11526_v0, 0.0  ;;  %v10155_v60 = vpop.eup %10154 }
0x2b6f   : > { %5405 = vadd.xlane.f32.xlu0 %v5404_v42  ;;  %v5401_v44 = vsel %vm1170_vm0, %v10155_v60, 0.0  ;;  %v10157_v25 = vpop.eup %10156 }
0x2b70   : > { %v5679_v11 = vsel %vm1170_vm0, %v10157_v25, 0.0 }
0x2b73   : > { %5683 = vadd.xlane.f32.xlu0 %v5682_v10 }
0x2b74   : > { %9933 = vrot.lane.b32.xlu1 %v11434_v28, %s11938_s2 }
0x2b89   : > { %9928 = vrot.lane.b32.xlu0 %v11440_v15, %s10323_s26 }
0x2b98   : > { %5402 = vadd.xlane.f32.xlu1 %v5401_v44  ;;  %v7926_v44 = vld [vmem:[%s11960_s18 + $0x38] sm:$0xff] }
0x2b9c   : > { %5680 = vadd.xlane.f32.xlu1 %v5679_v11 }
0x2bad   : > { %9938 = vrot.lane.b32.xlu1 %v11440_v15, %s11938_s2  ;;  %s11962_s2 = smov 16  }
0x2beb   : > { %v5400_v3 = vpop.xlane.xlu0 %5399 }
0x2bec   : > { %v5397_v28 = vpop.xlane.xlu1 %5396 }
0x2bed   : > { %10158 = vrcp.f32 %v5397_v28 }
0x2bee   : > { %10160 = vrcp.f32 %v5400_v3 }
0x2bf0   : > { %v5675_v2 = vpop.xlane.xlu1 %5674 }
0x2bf1   : > { %10162 = vrcp.f32 %v5675_v2 }
0x2bf4   : > { %v9934_v51 = vpop.permute.xlu1 %9933 }
0x2bf5   : > { %v9936_v12 = vunpack.i.h.bf16 %v9934_v51  ;;  %v9935_v56 = vunpack.i.l.bf16 %v9934_v51 }
0x2bf7   : > { %v10159_v63 = vpop.eup %10158  ;;  %v9550_v39 = vpack.c.bf16 %v9936_v12, %v9935_v56 }
0x2bf8   : > { %v5678_v57 = vpop.xlane.xlu0 %5677  ;;  %v5411_v62 = vmul.f32 %v10159_v63, %v10145_v16  ;;  %v10161_v15 = vpop.eup %10160 }
0x2bf9   : > { %v5412_v23 = vmul.f32 %v10161_v15, %v11509_v31 }
0x2bfa   : > { %8948 = vmatprep.mubr.msk.f32.mxu0 %vm1170_vm0, %v5411_v62 }
0x2bfb   : > { %v10163_v55 = vpop.eup %10162 }
0x2bfc   : > { %v5406_v1 = vpop.xlane.xlu0 %5405  ;;  %v5689_v17 = vmul.f32 %v10163_v55, %v11514_v6  ;;  %v7925_v6 = vld [vmem:[%s11960_s18 + $0x30] sm:$0xff] }
0x2bfd   : > { %10164 = vrcp.f32 %v5406_v1  ;;  %v9562_v11 = vpack.c.bf16 %v7926_v44, %v7925_v6 }
0x2c00   : > { %v5684_v9 = vpop.xlane.xlu0 %5683 }
0x2c04   : > { %v9929_v29 = vpop.permute.xlu0 %9928 }
0x2c05   : > { %v9931_v43 = vunpack.i.h.bf16 %v9929_v29  ;;  %v9930_v45 = vunpack.i.l.bf16 %v9929_v29 }
0x2c07   : > { %v9534_v27 = vpack.c.bf16 %v9931_v43, %v9930_v45  ;;  %v10165_v58 = vpop.eup %10164  ;;  %v11570_v45 = vld [vmem:[%s10478_s14 + $0x8] sm:$0x3f] }
0x2c08   : > { %v5414_v7 = vmul.f32 %v10165_v58, %v11522_v61 }
0x2c09   : > { %9535 = vmatprep.subr.bf16.mxu0 %v9534_v27 }
0x2c0a   : > { %9537 = vmatpush3.bf16.msra.mxu0 %v9534_v27  ;;  %v5830_v27 = vrot.slane %v11570_v45, %v10740_v20 }
0x2c0b   : > { %9551 = vmatprep.subr.bf16.mxu0 %v9550_v39 }
0x2c0d   : > { %8949 = vmatmul.mubr.msk.f32.vlgmr.msra.gmra.mrb[68].mxu0 %vm1170_vm0, %v5412_v23 }
0x2c0e   : > { %9553 = vmatpush3.bf16.msra.mxu0 %v9550_v39 }
0x2c25   : > { %v5403_v48 = vpop.xlane.xlu1 %5402 }
0x2c26   : > { %10166 = vrcp.f32 %v5403_v48 }
0x2c27   : > { %10168 = vrcp.f32 %v5678_v57 }
0x2c29   : > { %v5681_v16 = vpop.xlane.xlu1 %5680 }
0x2c2a   : > { %10170 = vrcp.f32 %v5681_v16 }
0x2c2b   : > { %10172 = vrcp.f32 %v5684_v9 }
0x2c2d   : > { %v9939_v35 = vpop.permute.xlu1 %9938 }
0x2c2e   : > { %v9941_v5 = vunpack.i.h.bf16 %v9939_v35  ;;  %v9940_v19 = vunpack.i.l.bf16 %v9939_v35 }
0x2c30   : > { %v10167_v33 = vpop.eup %10166  ;;  %v9554_v34 = vpack.c.bf16 %v9941_v5, %v9940_v19 }
0x2c31   : > { %v5413_v31 = vmul.f32 %v10167_v33, %v10155_v60  ;;  %v10169_v13 = vpop.eup %10168  ;;  %v9558_v60 = vpack.c.bf16 %v7924_v4, %v7923_v53 }
0x2c32   : > { %9555 = vmatprep.subr.bf16.mxu0 %v9554_v34  ;;  %v5690_v10 = vmul.f32 %v10169_v13, %v11518_v30 }
0x2c33   : > { %8951 = vmatprep.mubr.msk.f32.mxu0 %vm1170_vm0, %v5413_v31  ;;  %9557 = vmatpush3.bf16.msra.mxu0 %v9554_v34 }
0x2c34   : > { %v10171_v42 = vpop.eup %10170  ;;  %8952 = vmatmul.mubr.msk.f32.gmra.mrb[70].mxu0 %vm1170_vm0, %v5414_v7  ;;  %9559 = vmatprep.subr.bf16.mxu0 %v9558_v60 }
0x2c35   : > { %8976 = vmatprep.mubr.msk.f32.mxu0 %vm1170_vm0, %v5689_v17  ;;  %v10173_v41 = vpop.eup %10172  ;;  %v5691_v26 = vmul.f32 %v10171_v42, %v10157_v25 }
0x2c36   : > { %v5692_v61 = vmul.f32 %v10173_v41, %v11526_v0 }
0x2c38   : > { %8977 = vmatmul.mubr.msk.f32.vlgmr.msra.gmra.mrb[72].mxu0 %vm1170_vm0, %v5690_v10 }
0x2c39   : > { %8979 = vmatprep.mubr.msk.f32.mxu0 %vm1170_vm0, %v5691_v26  ;;  %9561 = vmatpush3.bf16.msra.mxu0 %v9558_v60 }
0x2c3a   : > { %9563 = vmatprep.subr.bf16.mxu0 %v9562_v11 }
0x2c3c   : > { %8980 = vmatmul.mubr.msk.f32.gmra.mrb[74].mxu0 %vm1170_vm0, %v5692_v61 }
0x2c3d   : > { %9565 = vmatpush3.bf16.msra.mxu0 %v9562_v11 }
0x2ce0   : > { %v8950_v30 = vpop.f32.mrb[68].mxu0 }
0x2ce1   : > { %v5505_v25 = vpop.f32.mrb[69].mxu0 }
0x2d07   : > { %v8953_v28 = vpop.f32.mrb[70].mxu0 }
0x2d08   : > { %v5515_v3 = vpop.f32.mrb[71].mxu0 }
0x2d0b   : > { %v8978_v63 = vpop.f32.mrb[72].mxu0 }
0x2d0c   : > { %5808 = vrot.lane.b32.xlu1 %v8978_v63, %s11962_s2  ;;  %v5783_v0 = vpop.f32.mrb[73].mxu0 }
0x2d0d   : > { %5806 = vrot.lane.b32.xlu0 %v5783_v0, %s11962_s2  ;;  %v7931_v0 = vld [vmem:[%s11961_s7 + $0x20] sm:$0xff] }
0x2d0f   : > { %v8981_v57 = vpop.f32.mrb[74].mxu0 }
0x2d10   : > { %5812 = vrot.lane.b32.xlu1 %v8981_v57, %s11962_s2  ;;  %v5793_v62 = vpop.f32.mrb[75].mxu0  ;;  %v7932_v57 = vld [vmem:[%s11961_s7 + $0x28] sm:$0xff] }
0x2d11   : > { %5810 = vrot.lane.b32.xlu0 %v5793_v62, %s11962_s2  ;;  %v9566_v62 = vpack.c.bf16 %v7932_v57, %v7931_v0  ;;  %v5995_v0 = vrot.slane %v11570_v45, %v10515_v14 }
0x2d13   : > { %9567 = vmatprep.subr.bf16.mxu1 %v9566_v62 }
0x2d14   : > { %9569 = vmatpush3.bf16.msra.mxu1 %v9566_v62 }
0x2d7e   : > { %v5809_v2 = vpop.permute.xlu1 %5808 }
0x2d7f   : > { %v5807_v1 = vpop.permute.xlu0 %5806  ;;  %v5819_v51 = vsel %vm1280_vm1, %v8950_v30, %v5809_v2  ;;  %v7933_v2 = vld [vmem:[%s11961_s7 + $0x30] sm:$0xff] }
0x2d80   : > { %v5818_v9 = vsel %vm1280_vm1, %v5505_v25, %v5807_v1  ;;  %v7934_v1 = vld [vmem:[%s11961_s7 + $0x38] sm:$0xff] }
0x2d81   : > { %8990 = vmatprep.mubr.msk.f32.mxu0 %vm1170_vm0, %v5818_v9  ;;  %v9570_v9 = vpack.c.bf16 %v7934_v1, %v7933_v2 }
0x2d82   : > { %8991 = vmatmul.mubr.msk.f32.vlgmr.msra.gmra.mrb[76].mxu0 %vm1170_vm0, %v5819_v51  ;;  %v5813_v29 = vpop.permute.xlu1 %5812  ;;  %v7941_v51 = vld [vmem:[%s10473_s23 + $0x80] sm:$0xff] }
0x2d83   : > { %v5811_v12 = vpop.permute.xlu0 %5810  ;;  %v5821_v43 = vsel %vm1280_vm1, %v8953_v28, %v5813_v29  ;;  %9571 = vmatprep.subr.bf16.mxu1 %v9570_v9  ;;  %v7942_v29 = vld [vmem:[%s10473_s23 + $0x88] sm:$0xff] }
0x2d84   : > { %v5820_v56 = vsel %vm1280_vm1, %v5515_v3, %v5811_v12  ;;  %9573 = vmatpush3.bf16.msra.mxu1 %v9570_v9  ;;  %v7943_v12 = vld [vmem:[%s10473_s23 + $0x90] sm:$0xff] }
0x2d85   : > { %8993 = vmatprep.mubr.msk.f32.mxu0 %vm1170_vm0, %v5820_v56  ;;  %v9574_v56 = vpack.c.bf16 %v7942_v29, %v7941_v51 }
0x2d86   : > { %8994 = vmatmul.mubr.msk.f32.gmra.mrb[78].mxu0 %vm1170_vm0, %v5821_v43  ;;  %v7944_v43 = vld [vmem:[%s10473_s23 + $0x98] sm:$0xff] }
0x2d87   : > { %9575 = vmatprep.subr.bf16.mxu0 %v9574_v56 }
0x2d88   : > { %9577 = vmatpush3.bf16.msra.mxu0 %v9574_v56 }
0x2e55   : > { %v8992_v15 = vpop.f32.mrb[76].mxu0 }
0x2e56   : > { %v5915_v39 = vadd.f32 %v8992_v15, %v5830_v27  ;;  %v5909_v23 = vpop.f32.mrb[77].mxu0  ;;  %v7945_v15 = vld [vmem:[%s10473_s23 + $0xa0] sm:$0xff] }
0x2e57   : > { %v5910_v48 = vadd.f32 %v5909_v23, %v5830_v27 }
0x2e58   : > { %v5929_v16 = vadd.f32 %v5915_v39, %v11418_v59  ;;  %v7946_v39 = vld [vmem:[%s10473_s23 + $0xa8] sm:$0xff] }
0x2e59   : > { %v5928_v35 = vadd.f32 %v5910_v48, %v11416_v24  ;;  %v8995_v55 = vpop.f32.mrb[78].mxu0  ;;  %v9582_v23 = vpack.c.bf16 %v7946_v39, %v7945_v15  ;;  %v7947_v48 = vld [vmem:[%s10473_s23 + $0xb0] sm:$0xff]  ;;  %v7956_v15 = vld [vmem:[%s10473_s23 + $0xf8] sm:$0xff]  ;;  %v7936_v39 = vld [vmem:[%s10468_s15 + $0x1] ss:$0 sm:$0xff] }
0x2e5a   : > { %v5919_v5 = vpop.f32.mrb[79].mxu0  ;;  %v5935_v19 = vsel %vm1170_vm0, %v5929_v16, 0.0  ;;  %v5925_v58 = vadd.f32 %v8995_v55, %v5830_v27  ;;  %v7949_v55 = vld [vmem:[%s10473_s23 + $0xc0] sm:$0xff] }
0x2e5b   : > { %v5920_v33 = vadd.f32 %v5919_v5, %v5830_v27  ;;  %5936 = vadd.xlane.f32.xlu1 %v5935_v19  ;;  %v5932_v34 = vsel %vm1170_vm0, %v5928_v35, 0.0  ;;  %v9578_v27 = vpack.c.bf16 %v7944_v43, %v7943_v12  ;;  %v7950_v5 = vld [vmem:[%s10473_s23 + $0xc8] sm:$0xff] }
0x2e5c   : > { %5933 = vadd.xlane.f32.xlu0 %v5932_v34  ;;  %v5931_v7 = vadd.f32 %v5925_v58, %v11426_v21  ;;  %v9590_v19 = vpack.c.bf16 %v7950_v5, %v7949_v55  ;;  %v7951_v58 = vld [vmem:[%s10473_s23 + $0xd0] sm:$0xff] }
0x2e5d   : > { %v5930_v31 = vadd.f32 %v5920_v33, %v11424_v54  ;;  %9579 = vmatprep.subr.bf16.mxu0 %v9578_v27  ;;  %v7952_v33 = vld [vmem:[%s10473_s23 + $0xd8] sm:$0xff] }
0x2e5e   : > { %v5941_v59 = vsel %vm1170_vm0, %v5931_v7, 0.0  ;;  %9581 = vmatpush3.bf16.msra.mxu0 %v9578_v27  ;;  %v9594_v34 = vpack.c.bf16 %v7952_v33, %v7951_v58  ;;  %v7955_v27 = vld [vmem:[%s10473_s23 + $0xf0] sm:$0xff] }
0x2e5f   : > { %v5938_v13 = vsel %vm1170_vm0, %v5930_v31, 0.0  ;;  %9583 = vmatprep.subr.bf16.mxu0 %v9582_v23 }
0x2e60   : > { %5939 = vadd.xlane.f32.xlu0 %v5938_v13 }
0x2e62   : > { %9585 = vmatpush3.bf16.msra.mxu0 %v9582_v23 }
0x2e64   : > { %5942 = vadd.xlane.f32.xlu0 %v5941_v59 }
0x2ee8   : > { %v5937_v24 = vpop.xlane.xlu1 %5936 }
0x2ee9   : > { %v5945_v17 = vmul.f32 0.03125, %v5937_v24  ;;  %v5934_v42 = vpop.xlane.xlu0 %5933 }
0x2eea   : > { %v5944_v10 = vmul.f32 0.03125, %v5934_v42 }
0x2eeb   : > { %v11582_v41 = vsub.f32 %v5929_v16, %v5945_v17  ;;  %v7948_v16 = vld [vmem:[%s10473_s23 + $0xb8] sm:$0xff] }
0x2eec   : > { %v11584_v26 = vsub.f32 %v5928_v35, %v5944_v10  ;;  %v9586_v35 = vpack.c.bf16 %v7948_v16, %v7947_v48 }
0x2eed   : > { %v5940_v61 = vpop.xlane.xlu0 %5939  ;;  %v5953_v54 = vmul.f32 %v11582_v41, %v11582_v41 }
0x2eee   : > { %v5946_v53 = vmul.f32 0.03125, %v5940_v61  ;;  %v5952_v21 = vmul.f32 %v11584_v26, %v11584_v26  ;;  %9587 = vmatprep.subr.bf16.mxu0 %v9586_v35 }
0x2eef   : > { %v5959_v4 = vsel %vm1170_vm0, %v5953_v54, 0.0  ;;  %9589 = vmatpush3.bf16.msra.mxu0 %v9586_v35 }
0x2ef0   : > { %v11591_v6 = vsub.f32 %v5930_v31, %v5946_v53  ;;  %5960 = vadd.xlane.f32.xlu0 %v5959_v4  ;;  %v5956_v60 = vsel %vm1170_vm0, %v5952_v21, 0.0  ;;  %9591 = vmatprep.subr.bf16.mxu0 %v9590_v19  ;;  %v7953_v31 = vld [vmem:[%s10473_s23 + $0xe0] sm:$0xff] }
0x2ef1   : > { %5957 = vadd.xlane.f32.xlu1 %v5956_v60  ;;  %v5943_v44 = vpop.xlane.xlu0 %5942 }
0x2ef2   : > { %v5947_v11 = vmul.f32 0.03125, %v5943_v44  ;;  %v5954_v30 = vmul.f32 %v11591_v6, %v11591_v6 }
0x2ef3   : > { %9593 = vmatpush3.bf16.msra.mxu0 %v9590_v19 }
0x2ef4   : > { %v11596_v25 = vsub.f32 %v5931_v7, %v5947_v11  ;;  %v5962_v28 = vsel %vm1170_vm0, %v5954_v30, 0.0  ;;  %v7954_v7 = vld [vmem:[%s10473_s23 + $0xe8] sm:$0xff]  ;;  %9595 = vmatprep.subr.bf16.mxu0 %v9594_v34  ;;  %v5987_v11 = vrot.slane %v11570_v45, %v10794_v8 }
0x2ef5   : > { %5963 = vadd.xlane.f32.xlu1 %v5962_v28  ;;  %v9598_v13 = vpack.c.bf16 %v7954_v7, %v7953_v31  ;;  %v6134_v7 = vrot.slane %v11570_v45, %v10812_v32 }
0x2ef6   : > { %v5955_v3 = vmul.f32 %v11596_v25, %v11596_v25 }
0x2ef7   : > { %9597 = vmatpush3.bf16.msra.mxu0 %v9594_v34 }
0x2ef8   : > { %v5965_v63 = vsel %vm1170_vm0, %v5955_v3, 0.0  ;;  %9599 = vmatprep.subr.bf16.mxu0 %v9598_v13 }
0x2ef9   : > { %5966 = vadd.xlane.f32.xlu0 %v5965_v63 }
0x2efb   : > { %9601 = vmatpush3.bf16.msra.mxu0 %v9598_v13 }
0x2f7d   : > { %v5961_v59 = vpop.xlane.xlu0 %5960 }
0x2f7e   : > { %v5969_v24 = vmul.f32 0.03125, %v5961_v59  ;;  %v5958_v17 = vpop.xlane.xlu1 %5957 }
0x2f7f   : > { %v5968_v42 = vmul.f32 0.03125, %v5958_v17 }
0x2f80   : > { %v5973_v10 = vadd.f32 1e-05, %v5969_v24 }
0x2f81   : > { %v5972_v61 = vadd.f32 1e-05, %v5968_v42 }
0x2f82   : > { %10174 = vrsqrt.f32 %v5973_v10  ;;  %v5964_v54 = vpop.xlane.xlu1 %5963 }
0x2f83   : > { %10176 = vrsqrt.f32 %v5972_v61  ;;  %v5970_v53 = vmul.f32 0.03125, %v5964_v54 }
0x2f85   : > { %v5974_v21 = vadd.f32 1e-05, %v5970_v53 }
0x2f86   : > { %v5967_v4 = vpop.xlane.xlu0 %5966 }
0x2f87   : > { %10178 = vrsqrt.f32 %v5974_v21  ;;  %v5971_v60 = vmul.f32 0.03125, %v5967_v4 }
0x2f89   : > { %v5975_v44 = vadd.f32 1e-05, %v5971_v60 }
0x2f8b   : > { %10180 = vrsqrt.f32 %v5975_v44 }
0x2f8c   : > { %v10175_v30 = vpop.eup %10174 }
0x2f8d   : > { %v10177_v28 = vpop.eup %10176  ;;  %v5981_v3 = vmul.f32 %v10175_v30, %v11582_v41 }
0x2f8e   : > { %v5980_v63 = vmul.f32 %v10177_v28, %v11584_v26 }
0x2f8f   : > { %v5989_v57 = vmul.f32 %v5987_v11, %v5981_v3 }
0x2f90   : > { %v5988_v62 = vmul.f32 %v5987_v11, %v5980_v63 }
0x2f91   : > { %v10179_v2 = vpop.eup %10178  ;;  %v5997_v51 = vadd.f32 %v5995_v0, %v5989_v57 }
0x2f92   : > { %v5996_v1 = vadd.f32 %v5995_v0, %v5988_v62  ;;  %v5982_v9 = vmul.f32 %v10179_v2, %v11591_v6  ;;  %v9602_v6 = vpack.c.bf16 %v7956_v15, %v7955_v27 }
0x2f94   : > { %9004 = vmatprep.mubr.msk.f32.mxu1 %vm1170_vm0, %v5996_v1  ;;  %v5990_v29 = vmul.f32 %v5987_v11, %v5982_v9  ;;  %9603 = vmatprep.subr.bf16.mxu0 %v9602_v6 }
0x2f95   : > { %v10181_v12 = vpop.eup %10180  ;;  %9005 = vmatmul.mubr.msk.f32.vlgmr.msra.gmra.mrb[56].mxu1 %vm1170_vm0, %v5997_v51  ;;  %9605 = vmatpush3.bf16.msra.mxu0 %v9602_v6 }
0x2f96   : > { %v5998_v41 = vadd.f32 %v5995_v0, %v5990_v29  ;;  %v5983_v26 = vmul.f32 %v10181_v12, %v11596_v25 }
0x2f98   : > { %9007 = vmatprep.mubr.msk.f32.mxu1 %vm1170_vm0, %v5998_v41  ;;  %v5991_v56 = vmul.f32 %v5987_v11, %v5983_v26 }
0x2f9a   : > { %v5999_v43 = vadd.f32 %v5995_v0, %v5991_v56 }
0x2f9c   : > { %9008 = vmatmul.mubr.msk.f32.gmra.mrb[58].mxu1 %vm1170_vm0, %v5999_v43 }
0x3068   : > { %v9006_v23 = vpop.f32.mrb[56].mxu1 }
0x3069   : > { %v6097_v48 = vadd.f32 %v9006_v23, %v7936_v39  ;;  %v6091_v16 = vpop.f32.mrb[57].mxu1 }
0x306a   : > { %v6092_v35 = vadd.f32 %v7936_v39, %v6091_v16  ;;  %v7959_v16 = vld [vmem:[%s11957_s5 + $0x48] sm:$0xff] }
0x306b   : > { %v6111_v5 = vmax.f32 %v6097_v48, 0.0  ;;  %v7958_v48 = vld [vmem:[%s11957_s5 + $0x40] sm:$0xff] }
0x306c   : > { %v6110_v55 = vmax.f32 %v6092_v35, 0.0  ;;  %v9606_v35 = vpack.c.bf16 %v7959_v16, %v7958_v48 }
0x306e   : > { %9042 = vmatprep.mubr.f32.mxu0 %v6110_v55  ;;  %9607 = vmatprep.subr.bf16.mxu1 %v9606_v35  ;;  %v7960_v55 = vld [vmem:[%s11957_s5 + $0x50] sm:$0xff] }
0x306f   : > { %v9009_v25 = vpop.f32.mrb[58].mxu1  ;;  %9043 = vmatmul.mubr.f32.vlgmr.msra.gmra.mrb[80].mxu0 %v6111_v5  ;;  %v7961_v5 = vld [vmem:[%s11957_s5 + $0x58] sm:$0xff]  ;;  %9609 = vmatpush3.bf16.msra.mxu1 %v9606_v35 }
0x3070   : > { %v6107_v19 = vadd.f32 %v9009_v25, %v7936_v39  ;;  %v6101_v58 = vpop.f32.mrb[59].mxu1  ;;  %v9610_v25 = vpack.c.bf16 %v7961_v5, %v7960_v55 }
0x3071   : > { %v6102_v33 = vadd.f32 %v7936_v39, %v6101_v58 }
0x3072   : > { %v6113_v31 = vmax.f32 %v6107_v19, 0.0  ;;  %9611 = vmatprep.subr.bf16.mxu1 %v9610_v25 }
0x3073   : > { %v6112_v34 = vmax.f32 %v6102_v33, 0.0  ;;  %9613 = vmatpush3.bf16.msra.mxu1 %v9610_v25 }
0x3075   : > { %9045 = vmatprep.mubr.f32.mxu0 %v6112_v34 }
0x3076   : > { %9046 = vmatmul.mubr.f32.gmra.mrb[82].mxu0 %v6113_v31 }
0x3142   : > { %v9044_v13 = vpop.f32.mrb[80].mxu0 }
0x3143   : > { %v6207_v59 = vadd.f32 %v9044_v13, %v6134_v7  ;;  %v6201_v24 = vpop.f32.mrb[81].mxu0 }
0x3144   : > { %v6202_v17 = vadd.f32 %v6201_v24, %v6134_v7 }
0x3145   : > { %v6221_v42 = vadd.f32 %v6207_v59, %v5997_v51 }
0x3146   : > { %v6220_v10 = vadd.f32 %v6202_v17, %v5996_v1 }
0x3147   : > { %v6227_v61 = vsel %vm1170_vm0, %v6221_v42, 0.0 }
0x3148   : > { %6228 = vadd.xlane.f32.xlu0 %v6227_v61  ;;  %v6224_v54 = vsel %vm1170_vm0, %v6220_v10, 0.0  ;;  %v6279_v61 = vrot.slane %v11570_v45, %v10829_v22 }
0x3149   : > { %6225 = vadd.xlane.f32.xlu1 %v6224_v54  ;;  %v9047_v53 = vpop.f32.mrb[82].mxu0 }
0x314a   : > { %v6217_v21 = vadd.f32 %v9047_v53, %v6134_v7  ;;  %v6211_v4 = vpop.f32.mrb[83].mxu0 }
0x314b   : > { %v6212_v60 = vadd.f32 %v6211_v4, %v6134_v7 }
0x314c   : > { %v6223_v44 = vadd.f32 %v6217_v21, %v5999_v43 }
0x314d   : > { %v6222_v11 = vadd.f32 %v6212_v60, %v5998_v41  ;;  %v6287_v60 = vrot.slane %v11570_v45, %v10832_v38 }
0x314e   : > { %v6233_v30 = vsel %vm1170_vm0, %v6223_v44, 0.0 }
0x314f   : > { %6234 = vadd.xlane.f32.xlu0 %v6233_v30  ;;  %v6230_v28 = vsel %vm1170_vm0, %v6222_v11, 0.0 }
0x3150   : > { %6231 = vadd.xlane.f32.xlu1 %v6230_v28 }
0x31d5   : > { %v6229_v3 = vpop.xlane.xlu0 %6228 }
0x31d6   : > { %v6237_v63 = vmul.f32 0.03125, %v6229_v3  ;;  %v6226_v0 = vpop.xlane.xlu1 %6225 }
0x31d7   : > { %v6236_v57 = vmul.f32 0.03125, %v6226_v0 }
0x31d8   : > { %v6241_v62 = vsub.f32 %v6221_v42, %v6237_v63 }
0x31d9   : > { %v6240_v2 = vsub.f32 %v6220_v10, %v6236_v57 }
0x31da   : > { %v6245_v1 = vmul.f32 %v6241_v62, %v6241_v62 }
0x31db   : > { %v6244_v9 = vmul.f32 %v6240_v2, %v6240_v2 }
0x31dc   : > { %v6235_v51 = vpop.xlane.xlu0 %6234  ;;  %v6251_v29 = vsel %vm1170_vm0, %v6245_v1, 0.0 }
0x31dd   : > { %v6239_v12 = vmul.f32 0.03125, %v6235_v51  ;;  %v6232_v41 = vpop.xlane.xlu1 %6231  ;;  %6252 = vadd.xlane.f32.xlu0 %v6251_v29  ;;  %v6248_v26 = vsel %vm1170_vm0, %v6244_v9, 0.0  ;;  %v7963_v9 = vld [vmem:[%s11959_s16 + $0x2] ss:$0 sm:$0xff] }
0x31de   : > { %v6238_v56 = vmul.f32 0.03125, %v6232_v41  ;;  %6249 = vadd.xlane.f32.xlu1 %v6248_v26 }
0x31df   : > { %v6243_v43 = vsub.f32 %v6223_v44, %v6239_v12 }
0x31e0   : > { %v6242_v27 = vsub.f32 %v6222_v11, %v6238_v56 }
0x31e1   : > { %v6247_v15 = vmul.f32 %v6243_v43, %v6243_v43 }
0x31e2   : > { %v6246_v6 = vmul.f32 %v6242_v27, %v6242_v27 }
0x31e3   : > { %v6257_v39 = vsel %vm1170_vm0, %v6247_v15, 0.0 }
0x31e4   : > { %6258 = vadd.xlane.f32.xlu0 %v6257_v39  ;;  %v6254_v23 = vsel %vm1170_vm0, %v6246_v6, 0.0 }
0x31e5   : > { %6255 = vadd.xlane.f32.xlu1 %v6254_v23 }
0x326a   : > { %v6253_v19 = vpop.xlane.xlu0 %6252 }
0x326b   : > { %v6261_v58 = vmul.f32 0.03125, %v6253_v19  ;;  %v6250_v33 = vpop.xlane.xlu1 %6249 }
0x326c   : > { %v6260_v34 = vmul.f32 0.03125, %v6250_v33 }
0x326d   : > { %v6265_v31 = vadd.f32 1e-05, %v6261_v58 }
0x326e   : > { %v6264_v7 = vadd.f32 1e-05, %v6260_v34 }
0x326f   : > { %10182 = vrsqrt.f32 %v6265_v31 }
0x3270   : > { %10184 = vrsqrt.f32 %v6264_v7 }
0x3271   : > { %v6259_v13 = vpop.xlane.xlu0 %6258 }
0x3272   : > { %v6263_v59 = vmul.f32 0.03125, %v6259_v13  ;;  %v6256_v24 = vpop.xlane.xlu1 %6255 }
0x3273   : > { %v6262_v17 = vmul.f32 0.03125, %v6256_v24 }
0x3274   : > { %v6267_v42 = vadd.f32 1e-05, %v6263_v59 }
0x3275   : > { %v6266_v10 = vadd.f32 1e-05, %v6262_v17 }
0x3276   : > { %10186 = vrsqrt.f32 %v6267_v42 }
0x3277   : > { %10188 = vrsqrt.f32 %v6266_v10 }
0x3279   : > { %v10183_v54 = vpop.eup %10182 }
0x327a   : > { %v10185_v53 = vpop.eup %10184  ;;  %v6273_v21 = vmul.f32 %v10183_v54, %v6241_v62 }
0x327b   : > { %v6272_v4 = vmul.f32 %v10185_v53, %v6240_v2 }
0x327c   : > { %v6281_v44 = vmul.f32 %v6279_v61, %v6273_v21 }
0x327d   : > { %v6280_v11 = vmul.f32 %v6279_v61, %v6272_v4 }
0x327e   : > { %v11655_v3 = vadd.f32 %v6287_v60, %v6281_v44 }
0x327f   : > { %v11653_v30 = vadd.f32 %v6287_v60, %v6280_v11 }
0x3280   : > { %v10187_v28 = vpop.eup %10186 }
0x3281   : > { %v10189_v63 = vpop.eup %10188  ;;  %9056 = vmatprep.mubr.msk.f32.mxu1 %vm1170_vm0, %v11653_v30  ;;  %v6275_v0 = vmul.f32 %v10187_v28, %v6243_v43 }
0x3282   : > { %9057 = vmatmul.mubr.msk.f32.vlgmr.msra.gmra.mrb[60].mxu1 %vm1170_vm0, %v11655_v3  ;;  %v6274_v57 = vmul.f32 %v10189_v63, %v6242_v27 }
0x3283   : > { %v6283_v62 = vmul.f32 %v6279_v61, %v6275_v0 }
0x3284   : > { %v6282_v2 = vmul.f32 %v6279_v61, %v6274_v57 }
0x3285   : > { %v11663_v1 = vadd.f32 %v6287_v60, %v6283_v62 }
0x3286   : > { %v11661_v45 = vadd.f32 %v6287_v60, %v6282_v2 }
0x3288   : > { %9059 = vmatprep.mubr.msk.f32.mxu1 %vm1170_vm0, %v11661_v45 }
0x3289   : > { %9060 = vmatmul.mubr.msk.f32.gmra.mrb[62].mxu1 %vm1170_vm0, %v11663_v1 }
0x3355   : > { %v9058_v51 = vpop.f32.mrb[60].mxu1 }
0x3356   : > { %v6391_v29 = vadd.f32 %v9058_v51, %v7963_v9  ;;  %v6385_v12 = vpop.f32.mrb[61].mxu1 }
0x3357   : > { %v6386_v41 = vadd.f32 %v7963_v9, %v6385_v12 }
0x3359   : > { %9070 = vmatprep.mubr.msk.f32.mxu1 %vm1280_vm1, %v6386_v41  ;;  %v11671_v26 = vpack.i.bf16 %v6391_v29, %v6386_v41 }
0x335b   : > { %9943 = vrot.lane.b32.xlu1 %v11671_v26, %s10322_s19 }
0x335c   : > { %v9061_v56 = vpop.f32.mrb[62].mxu1 }
0x335d   : > { %v6401_v43 = vadd.f32 %v9061_v56, %v7963_v9  ;;  %v6395_v27 = vpop.f32.mrb[63].mxu1 }
0x335e   : > { %v6396_v15 = vadd.f32 %v7963_v9, %v6395_v27 }
0x335f   : > { %9953 = vrot.lane.b32.xlu1 %v11671_v26, %s10324_s20 }
0x3360   : > { %v11677_v6 = vpack.i.bf16 %v6401_v43, %v6396_v15 }
0x3362   : > { %9948 = vrot.lane.b32.xlu0 %v11677_v6, %s10322_s19  ;;  %s11963_s19 = smov 48  }
0x3363   : > { %9958 = vrot.lane.b32.xlu1 %v11677_v6, %s10324_s20  ;;  %s11965_s20 = sld [smem:[#allocation15_spill]] }
0x3366   : > { %6678 = vrot.lane.b32.xlu0 %v6386_v41, %s10325_s28 }
0x3367   : > { %6680 = vrot.lane.b32.xlu1 %v6391_v29, %s10325_s28 }
0x336a   : > { %6682 = vrot.lane.b32.xlu0 %v6396_v15, %s10325_s28 }
0x336b   : > { %6684 = vrot.lane.b32.xlu1 %v6401_v43, %s10325_s28  ;;  %s7622_s28 = sld [smem:[#allocation7]] }
0x33cd   : > { %v9944_v39 = vpop.permute.xlu1 %9943 }
0x33ce   : > { %v9946_v23 = vunpack.i.h.bf16 %v9944_v39  ;;  %v9945_v48 = vunpack.i.l.bf16 %v9944_v39 }
0x33d0   : > { %v9614_v16 = vpack.c.bf16 %v9946_v23, %v9945_v48 }
0x33d1   : > { %v9954_v35 = vpop.permute.xlu1 %9953 }
0x33d2   : > { %v9956_v55 = vunpack.i.h.bf16 %v9954_v35  ;;  %v9955_v5 = vunpack.i.l.bf16 %v9954_v35  ;;  %9616 = vmatprep.subr.msk.bf16.mxu1 %vm10617_vm2, %v9614_v16 }
0x33d3   : > { %9619 = vmatpush3.bf16.xpose.msk.msra.mxu1 %vm10617_vm2, %v9614_v16 }
0x33d4   : > { %v9634_v25 = vpack.c.bf16 %v9956_v55, %v9955_v5  ;;  %v9949_v19 = vpop.permute.xlu0 %9948 }
0x33d5   : > { %v9951_v58 = vunpack.i.h.bf16 %v9949_v19  ;;  %v9950_v33 = vunpack.i.l.bf16 %v9949_v19  ;;  %v9959_v34 = vpop.permute.xlu1 %9958 }
0x33d6   : > { %v9961_v31 = vunpack.i.h.bf16 %v9959_v34  ;;  %v9960_v7 = vunpack.i.l.bf16 %v9959_v34  ;;  %9636 = vmatprep.subr.msk.bf16.mxu0 %vm10617_vm2, %v9634_v25 }
0x33d7   : > { %v9620_v13 = vpack.c.bf16 %v9951_v58, %v9950_v33  ;;  %9639 = vmatpush3.bf16.xpose.msk.msra.mxu0 %vm10617_vm2, %v9634_v25 }
0x33d8   : > { %v9640_v59 = vpack.c.bf16 %v9961_v31, %v9960_v7  ;;  %v6679_v24 = vpop.permute.xlu0 %6678 }
0x33d9   : > { %9622 = vmatprep.subr.msk.bf16.mxu1 %vm10617_vm2, %v9620_v13  ;;  %9098 = vmatprep.mubr.msk.f32.mxu0 %vm1280_vm1, %v6679_v24  ;;  %v6681_v17 = vpop.permute.xlu1 %6680 }
0x33da   : > { %9642 = vmatprep.subr.msk.bf16.mxu0 %vm10617_vm2, %v9640_v59 }
0x33db   : > { %9625 = vmatpush3.bf16.xpose.msk.msra.mxu1 %vm10617_vm2, %v9620_v13 }
0x33dc   : > { %v6683_v42 = vpop.permute.xlu0 %6682 }
0x33dd   : > { %v6685_v10 = vpop.permute.xlu1 %6684 }
0x33df   : > { %9645 = vmatpush3.bf16.xpose.msk.msra.mxu0 %vm10617_vm2, %v9640_v59 }
0x33e2   : > { %9071 = vmatmul.mubr.msk.f32.vlgmr.msra.gmra.mrb[64].mxu1 %vm1280_vm1, %v6391_v29 }
0x33e3   : > { %9073 = vmatprep.mubr.msk.f32.mxu1 %vm1280_vm1, %v6396_v15  ;;  %v10276_v15 = vld [vmem:[%s10360_s21 + $0x10] sm:$0xff] }
0x33e6   : > { %9074 = vmatmul.mubr.msk.f32.gmra.mrb[66].mxu1 %vm1280_vm1, %v6401_v43  ;;  %9099 = vmatmul.mubr.msk.f32.vlgmr.msra.gmra.mrb[84].mxu0 %vm1280_vm1, %v6681_v17 }
0x33e7   : > { %9101 = vmatprep.mubr.msk.f32.mxu0 %vm1280_vm1, %v6683_v42 }
0x33ea   : > { %9102 = vmatmul.mubr.msk.f32.gmra.mrb[86].mxu0 %vm1280_vm1, %v6685_v10 }
0x34b5   : > { %v9072_v61 = vpop.f32.mrb[64].mxu1 }
0x34b6   : > { %v6518_v54 = vmul.f32 0.25, %v9072_v61  ;;  %v6498_v53 = vpop.f32.mrb[65].mxu1 }
0x34b7   : > { %v6517_v46 = vmul.f32 0.25, %v6498_v53 }
0x34b8   : > { %v6522_v21 = vadd.f32 %v11474_v18, %v6518_v54  ;;  %v10275_v18 = vld [vmem:[%s10360_s21] sm:$0xff] }
0x34b9   : > { %v6521_v4 = vadd.f32 %v11478_v47, %v6517_v46  ;;  %v9075_v60 = vpop.f32.mrb[66].mxu1  ;;  %v9100_v44 = vpop.f32.mrb[84].mxu0 }
0x34ba   : > { %v6508_v11 = vpop.f32.mrb[67].mxu1  ;;  %v6776_v28 = vpop.f32.mrb[85].mxu0  ;;  %v6528_v63 = vsel %vm1170_vm0, %v6522_v21, -inf  ;;  %v6520_v0 = vmul.f32 0.25, %v9075_v60  ;;  %v6796_v29 = vmul.f32 0.25, %v9100_v44 }
0x34bb   : > { %v6519_v57 = vmul.f32 0.25, %v6508_v11  ;;  %v6795_v62 = vmul.f32 0.25, %v6776_v28  ;;  %6529 = vmax.xlane.f32.xlu1 %v6528_v63  ;;  %v6525_v2 = vsel %vm1170_vm0, %v6521_v4, -inf }
0x34bc   : > { %6526 = vmax.xlane.f32.xlu0 %v6525_v2  ;;  %v6524_v41 = vadd.f32 %v11491_v37, %v6520_v0  ;;  %v10278_v37 = vld [vmem:[%s10360_s21 + $0x18] sm:$0xff] }
0x34bd   : > { %v11715_v9 = vadd.f32 %v11484_v52, %v6519_v57  ;;  %v6799_v47 = vadd.f32 %v10275_v18, %v6795_v62  ;;  %v9103_v51 = vpop.f32.mrb[86].mxu0  ;;  %v10277_v52 = vld [vmem:[%s10360_s21 + $0x8] sm:$0xff] }
0x34be   : > { %v6786_v12 = vpop.f32.mrb[87].mxu0  ;;  %v6800_v23 = vadd.f32 %v10277_v52, %v6796_v29  ;;  %v6798_v48 = vmul.f32 0.25, %v9103_v51  ;;  %v6534_v35 = vsel %vm1170_vm0, %v6524_v41, -inf }
0x34bf   : > { %v6797_v56 = vmul.f32 0.25, %v6786_v12  ;;  %v6803_v43 = vsel %vm1170_vm0, %v6799_v47, -inf  ;;  %v6531_v27 = vsel %vm1170_vm0, %v11715_v9, -inf }
0x34c0   : > { %6804 = vmax.xlane.f32.xlu1 %v6803_v43  ;;  %6532 = vmax.xlane.f32.xlu0 %v6531_v27  ;;  %v6802_v55 = vadd.f32 %v10278_v37, %v6798_v48  ;;  %v6806_v5 = vsel %vm1170_vm0, %v6800_v23, -inf }
0x34c1   : > { %v11723_v39 = vadd.f32 %v10276_v15, %v6797_v56 }
0x34c2   : > { %v6812_v25 = vsel %vm1170_vm0, %v6802_v55, -inf }
0x34c3   : > { %v6809_v16 = vsel %vm1170_vm0, %v11723_v39, -inf }
0x34c4   : > { %6810 = vmax.xlane.f32.xlu1 %v6809_v16  ;;  %6535 = vmax.xlane.f32.xlu0 %v6534_v35 }
0x34c8   : > { %6807 = vmax.xlane.f32.xlu0 %v6806_v5 }
0x34cc   : > { %6813 = vmax.xlane.f32.xlu0 %v6812_v25 }
0x34d5   : > { %9963 = vrot.lane.b32.xlu1 %v11671_v26, %s10323_s26 }
0x3548   : > { %v6530_v19 = vpop.xlane.xlu1 %6529 }
0x3549   : > { %v6538_v58 = vsub.f32 %v6522_v21, %v6530_v19  ;;  %v6527_v33 = vpop.xlane.xlu0 %6526 }
0x354a   : > { %v6537_v34 = vsub.f32 %v6521_v4, %v6527_v33 }
0x354b   : > { %v6543_v31 = vmul.f32 1.442695, %v6538_v58 }
0x354c   : > { %v6541_v7 = vmul.f32 1.442695, %v6537_v34 }
0x354d   : > { %10190 = vpow2.f32 %v6543_v31  ;;  %v6805_v13 = vpop.xlane.xlu1 %6804  ;;  %v6533_v59 = vpop.xlane.xlu0 %6532 }
0x354e   : > { %10192 = vpow2.f32 %v6541_v7  ;;  %v6815_v24 = vsub.f32 %v6799_v47, %v6805_v13  ;;  %v6539_v15 = vsub.f32 %v11715_v9, %v6533_v59 }
0x3550   : > { %v6819_v17 = vmul.f32 1.442695, %v6815_v24  ;;  %v6545_v52 = vmul.f32 1.442695, %v6539_v15  ;;  %v7995_v15 = vld [vmem:[%s11960_s18 + $0x58] sm:$0xff] }
0x3551   : > { %v6811_v42 = vpop.xlane.xlu1 %6810  ;;  %v6536_v10 = vpop.xlane.xlu0 %6535 }
0x3552   : > { %10194 = vpow2.f32 %v6819_v17  ;;  %v6540_v61 = vsub.f32 %v6524_v41, %v6536_v10 }
0x3554   : > { %v6547_v11 = vmul.f32 1.442695, %v6540_v61 }
0x3555   : > { %v9964_v54 = vpop.permute.xlu1 %9963  ;;  %v6808_v53 = vpop.xlane.xlu0 %6807 }
0x3556   : > { %v9966_v46 = vunpack.i.h.bf16 %v9964_v54  ;;  %v9965_v60 = vunpack.i.l.bf16 %v9964_v54  ;;  %v6816_v44 = vsub.f32 %v6800_v23, %v6808_v53  ;;  %v6817_v23 = vsub.f32 %v11723_v39, %v6811_v42 }
0x3557   : > { %v11734_v21 = vpop.eup %10190 }
0x3558   : > { %v10193_v4 = vpop.eup %10192  ;;  %v9626_v28 = vpack.c.bf16 %v9966_v46, %v9965_v60  ;;  %v6821_v63 = vmul.f32 1.442695, %v6816_v44  ;;  %v6552_v0 = vsel %vm1170_vm0, %v11734_v21, 0.0  ;;  %v6823_v48 = vmul.f32 1.442695, %v6817_v23 }
0x3559   : > { %6553 = vadd.xlane.f32.xlu0 %v6552_v0  ;;  %v6814_v57 = vpop.xlane.xlu0 %6813  ;;  %v6549_v62 = vsel %vm1170_vm0, %v10193_v4, 0.0 }
0x355a   : > { %10196 = vpow2.f32 %v6821_v63  ;;  %v6818_v2 = vsub.f32 %v6802_v55, %v6814_v57  ;;  %9627 = vmatprep.subr.bf16.mxu1 %v9626_v28  ;;  %6550 = vadd.xlane.f32.xlu1 %v6549_v62 }
0x355b   : > { %9629 = vmatpush3.bf16.msra.mxu1 %v9626_v28  ;;  %10198 = vpow2.f32 %v6547_v11 }
0x355c   : > { %v11739_v18 = vpop.eup %10194  ;;  %v6825_v47 = vmul.f32 1.442695, %v6818_v2 }
0x355d   : > { %v6827_v51 = vsel %vm1170_vm0, %v11739_v18, 0.0 }
0x355e   : > { %6828 = vadd.xlane.f32.xlu1 %v6827_v51  ;;  %10200 = vpow2.f32 %v6825_v47 }
0x355f   : > { %10202 = vpow2.f32 %v6545_v52 }
0x3560   : > { %10204 = vpow2.f32 %v6823_v48 }
0x3564   : > { %v11743_v29 = vpop.eup %10196 }
0x3565   : > { %v6830_v12 = vsel %vm1170_vm0, %v11743_v29, 0.0  ;;  %v11747_v41 = vpop.eup %10198 }
0x3566   : > { %6831 = vadd.xlane.f32.xlu0 %v6830_v12  ;;  %v6558_v56 = vsel %vm1170_vm0, %v11747_v41, 0.0 }
0x3568   : > { %v11751_v43 = vpop.eup %10200 }
0x3569   : > { %v6836_v27 = vsel %vm1170_vm0, %v11751_v43, 0.0  ;;  %v10203_v16 = vpop.eup %10202 }
0x356a   : > { %6559 = vadd.xlane.f32.xlu0 %v6558_v56  ;;  %v6555_v35 = vsel %vm1170_vm0, %v10203_v16, 0.0  ;;  %v10205_v37 = vpop.eup %10204  ;;  %v7993_v56 = vld [vmem:[%s11960_s18 + $0x48] sm:$0xff] }
0x356b   : > { %v6833_v55 = vsel %vm1170_vm0, %v10205_v37, 0.0 }
0x356e   : > { %6837 = vadd.xlane.f32.xlu0 %v6836_v27 }
0x356f   : > { %9973 = vrot.lane.b32.xlu1 %v11671_v26, %s11963_s19 }
0x3584   : > { %9968 = vrot.lane.b32.xlu0 %v11677_v6, %s10323_s26  ;;  %s11964_s26 = sld [smem:[#allocation14_spill]] }
0x3593   : > { %6556 = vadd.xlane.f32.xlu1 %v6555_v35 }
0x3597   : > { %6834 = vadd.xlane.f32.xlu1 %v6833_v55 }
0x35a8   : > { %9978 = vrot.lane.b32.xlu1 %v11677_v6, %s11963_s19 }
0x35e6   : > { %v6554_v9 = vpop.xlane.xlu0 %6553 }
0x35e7   : > { %v6551_v26 = vpop.xlane.xlu1 %6550 }
0x35e8   : > { %10206 = vrcp.f32 %v6551_v26 }
0x35e9   : > { %10208 = vrcp.f32 %v6554_v9 }
0x35eb   : > { %v6829_v19 = vpop.xlane.xlu1 %6828 }
0x35ec   : > { %10210 = vrcp.f32 %v6829_v19 }
0x35ef   : > { %v9974_v34 = vpop.permute.xlu1 %9973 }
0x35f0   : > { %v9976_v7 = vunpack.i.h.bf16 %v9974_v34  ;;  %v9975_v13 = vunpack.i.l.bf16 %v9974_v34  ;;  %v11795_v34 = vld [vmem:[%s10478_s14 + $0x10] sm:$0x3f] }
0x35f2   : > { %v10207_v39 = vpop.eup %10206  ;;  %v9646_v42 = vpack.c.bf16 %v9976_v7, %v9975_v13 }
0x35f3   : > { %v6832_v5 = vpop.xlane.xlu0 %6831  ;;  %v6565_v25 = vmul.f32 %v10207_v39, %v10193_v4  ;;  %v10209_v6 = vpop.eup %10208 }
0x35f4   : > { %v6566_v10 = vmul.f32 %v10209_v6, %v11734_v21 }
0x35f5   : > { %9084 = vmatprep.mubr.msk.f32.mxu1 %vm1170_vm0, %v6565_v25 }
0x35f6   : > { %v10211_v46 = vpop.eup %10210 }
0x35f7   : > { %v6560_v58 = vpop.xlane.xlu0 %6559  ;;  %v6843_v57 = vmul.f32 %v10211_v46, %v11739_v18  ;;  %v7994_v18 = vld [vmem:[%s11960_s18 + $0x50] sm:$0xff] }
0x35f8   : > { %10212 = vrcp.f32 %v6560_v58  ;;  %v9658_v52 = vpack.c.bf16 %v7995_v15, %v7994_v18 }
0x35fb   : > { %v6838_v33 = vpop.xlane.xlu0 %6837 }
0x35ff   : > { %v9969_v31 = vpop.permute.xlu0 %9968 }
0x3600   : > { %v9971_v59 = vunpack.i.h.bf16 %v9969_v31  ;;  %v9970_v24 = vunpack.i.l.bf16 %v9969_v31  ;;  %v6984_v31 = vrot.slane %v11795_v34, %v10740_v20 }
0x3602   : > { %v9630_v17 = vpack.c.bf16 %v9971_v59, %v9970_v24  ;;  %v10213_v4 = vpop.eup %10212 }
0x3603   : > { %v6568_v63 = vmul.f32 %v10213_v4, %v11747_v41  ;;  %v7992_v41 = vld [vmem:[%s11960_s18 + $0x40] sm:$0xff] }
0x3604   : > { %9631 = vmatprep.subr.bf16.mxu1 %v9630_v17  ;;  %v9654_v27 = vpack.c.bf16 %v7993_v56, %v7992_v41 }
0x3605   : > { %9633 = vmatpush3.bf16.msra.mxu1 %v9630_v17 }
0x3606   : > { %9647 = vmatprep.subr.bf16.mxu1 %v9646_v42 }
0x3608   : > { %9085 = vmatmul.mubr.msk.f32.vlgmr.msra.gmra.mrb[68].mxu1 %vm1170_vm0, %v6566_v10 }
0x3609   : > { %9649 = vmatpush3.bf16.msra.mxu1 %v9646_v42 }
0x3620   : > { %v6557_v61 = vpop.xlane.xlu1 %6556 }
0x3621   : > { %10214 = vrcp.f32 %v6557_v61 }
0x3622   : > { %10216 = vrcp.f32 %v6832_v5 }
0x3624   : > { %v6835_v54 = vpop.xlane.xlu1 %6834 }
0x3625   : > { %10218 = vrcp.f32 %v6835_v54 }
0x3626   : > { %10220 = vrcp.f32 %v6838_v33 }
0x3628   : > { %v9979_v53 = vpop.permute.xlu1 %9978 }
0x3629   : > { %v9981_v60 = vunpack.i.h.bf16 %v9979_v53  ;;  %v9980_v44 = vunpack.i.l.bf16 %v9979_v53 }
0x362b   : > { %v10215_v11 = vpop.eup %10214  ;;  %v9650_v28 = vpack.c.bf16 %v9981_v60, %v9980_v44 }
0x362c   : > { %v6567_v21 = vmul.f32 %v10215_v11, %v10203_v16  ;;  %v10217_v0 = vpop.eup %10216 }
0x362d   : > { %9651 = vmatprep.subr.bf16.mxu1 %v9650_v28  ;;  %v6844_v2 = vmul.f32 %v10217_v0, %v11743_v29 }
0x362e   : > { %9087 = vmatprep.mubr.msk.f32.mxu1 %vm1170_vm0, %v6567_v21  ;;  %9653 = vmatpush3.bf16.msra.mxu1 %v9650_v28 }
0x362f   : > { %v10219_v62 = vpop.eup %10218  ;;  %9088 = vmatmul.mubr.msk.f32.gmra.mrb[70].mxu1 %vm1170_vm0, %v6568_v63  ;;  %9655 = vmatprep.subr.bf16.mxu1 %v9654_v27 }
0x3630   : > { %9112 = vmatprep.mubr.msk.f32.mxu1 %vm1170_vm0, %v6843_v57  ;;  %v10221_v47 = vpop.eup %10220  ;;  %v6845_v51 = vmul.f32 %v10219_v62, %v10205_v37 }
0x3631   : > { %v6846_v12 = vmul.f32 %v10221_v47, %v11751_v43 }
0x3633   : > { %9113 = vmatmul.mubr.msk.f32.vlgmr.msra.gmra.mrb[72].mxu1 %vm1170_vm0, %v6844_v2 }
0x3634   : > { %9115 = vmatprep.mubr.msk.f32.mxu1 %vm1170_vm0, %v6845_v51  ;;  %9657 = vmatpush3.bf16.msra.mxu1 %v9654_v27 }
0x3635   : > { %9659 = vmatprep.subr.bf16.mxu1 %v9658_v52 }
0x3637   : > { %9116 = vmatmul.mubr.msk.f32.gmra.mrb[74].mxu1 %vm1170_vm0, %v6846_v12 }
0x3638   : > { %9661 = vmatpush3.bf16.msra.mxu1 %v9658_v52  ;;  %v8000_v52 = vld [vmem:[%s11961_s7 + $0x40] sm:$0xff] }
0x36db   : > { %v9086_v29 = vpop.f32.mrb[68].mxu1 }
0x36dc   : > { %v6659_v23 = vpop.f32.mrb[69].mxu1 }
0x3702   : > { %v9089_v48 = vpop.f32.mrb[70].mxu1 }
0x3703   : > { %v6669_v16 = vpop.f32.mrb[71].mxu1 }
0x3706   : > { %v9114_v35 = vpop.f32.mrb[72].mxu1 }
0x3707   : > { %6962 = vrot.lane.b32.xlu1 %v9114_v35, %s11962_s2  ;;  %v6937_v43 = vpop.f32.mrb[73].mxu1 }
0x3708   : > { %6960 = vrot.lane.b32.xlu0 %v6937_v43, %s11962_s2  ;;  %v8010_v43 = vld [vmem:[%s10473_s23 + $0x100] sm:$0xff] }
0x370a   : > { %v9117_v37 = vpop.f32.mrb[74].mxu1 }
0x370b   : > { %6966 = vrot.lane.b32.xlu1 %v9117_v37, %s11962_s2  ;;  %v6947_v55 = vpop.f32.mrb[75].mxu1  ;;  %v8011_v37 = vld [vmem:[%s10473_s23 + $0x108] sm:$0xff] }
0x370c   : > { %6964 = vrot.lane.b32.xlu0 %v6947_v55, %s11962_s2  ;;  %v8012_v55 = vld [vmem:[%s10473_s23 + $0x110] sm:$0xff] }
0x3779   : > { %v6963_v26 = vpop.permute.xlu1 %6962 }
0x377a   : > { %v6961_v9 = vpop.permute.xlu0 %6960  ;;  %v6973_v5 = vsel %vm1280_vm1, %v9086_v29, %v6963_v26  ;;  %v8001_v29 = vld [vmem:[%s11961_s7 + $0x48] sm:$0xff]  ;;  %v9670_v26 = vpack.c.bf16 %v8011_v37, %v8010_v43 }
0x377b   : > { %v6972_v39 = vsel %vm1280_vm1, %v6659_v23, %v6961_v9  ;;  %v9662_v23 = vpack.c.bf16 %v8001_v29, %v8000_v52  ;;  %v8013_v9 = vld [vmem:[%s10473_s23 + $0x118] sm:$0xff] }
0x377c   : > { %9126 = vmatprep.mubr.msk.f32.mxu1 %vm1170_vm0, %v6972_v39  ;;  %v9674_v39 = vpack.c.bf16 %v8013_v9, %v8012_v55  ;;  %9671 = vmatprep.subr.bf16.mxu1 %v9670_v26 }
0x377d   : > { %9127 = vmatmul.mubr.msk.f32.vlgmr.msra.gmra.mrb[76].mxu1 %vm1170_vm0, %v6973_v5  ;;  %v6967_v25 = vpop.permute.xlu1 %6966  ;;  %9663 = vmatprep.subr.bf16.mxu0 %v9662_v23  ;;  %v8014_v5 = vld [vmem:[%s10473_s23 + $0x120] sm:$0xff] }
0x377e   : > { %v6965_v19 = vpop.permute.xlu0 %6964  ;;  %v6975_v33 = vsel %vm1280_vm1, %v9089_v48, %v6967_v25  ;;  %v8002_v48 = vld [vmem:[%s11961_s7 + $0x50] sm:$0xff]  ;;  %9665 = vmatpush3.bf16.msra.mxu0 %v9662_v23  ;;  %v8015_v25 = vld [vmem:[%s10473_s23 + $0x128] sm:$0xff]  ;;  %9673 = vmatpush3.bf16.msra.mxu1 %v9670_v26 }
0x377f   : > { %v6974_v58 = vsel %vm1280_vm1, %v6669_v16, %v6965_v19  ;;  %v8003_v16 = vld [vmem:[%s11961_s7 + $0x58] sm:$0xff]  ;;  %9675 = vmatprep.subr.bf16.mxu1 %v9674_v39  ;;  %v9678_v19 = vpack.c.bf16 %v8015_v25, %v8014_v5 }
0x3780   : > { %9129 = vmatprep.mubr.msk.f32.mxu1 %vm1170_vm0, %v6974_v58  ;;  %v9666_v35 = vpack.c.bf16 %v8003_v16, %v8002_v48  ;;  %v8016_v58 = vld [vmem:[%s10473_s23 + $0x130] sm:$0xff]  ;;  %v8025_v16 = vld [vmem:[%s10473_s23 + $0x178] sm:$0xff] }
0x3781   : > { %9130 = vmatmul.mubr.msk.f32.gmra.mrb[78].mxu1 %vm1170_vm0, %v6975_v33  ;;  %v8017_v33 = vld [vmem:[%s10473_s23 + $0x138] sm:$0xff]  ;;  %v8024_v48 = vld [vmem:[%s10473_s23 + $0x170] sm:$0xff] }
0x3782   : > { %9667 = vmatprep.subr.bf16.mxu0 %v9666_v35  ;;  %9677 = vmatpush3.bf16.msra.mxu1 %v9674_v39 }
0x3783   : > { %9669 = vmatpush3.bf16.msra.mxu0 %v9666_v35  ;;  %9679 = vmatprep.subr.bf16.mxu1 %v9678_v19  ;;  %v8005_v35 = vld [vmem:[%s10468_s15 + $0x2] ss:$0 sm:$0xff] }
0x3786   : > { %9681 = vmatpush3.bf16.msra.mxu1 %v9678_v19 }
0x3850   : > { %v9128_v7 = vpop.f32.mrb[76].mxu1 }
0x3851   : > { %v7069_v13 = vadd.f32 %v9128_v7, %v6984_v31  ;;  %v7063_v59 = vpop.f32.mrb[77].mxu1  ;;  %v8018_v7 = vld [vmem:[%s10473_s23 + $0x140] sm:$0xff] }
0x3852   : > { %v7064_v24 = vadd.f32 %v7063_v59, %v6984_v31 }
0x3853   : > { %v7083_v17 = vadd.f32 %v7069_v13, %v11655_v3  ;;  %v8019_v13 = vld [vmem:[%s10473_s23 + $0x148] sm:$0xff] }
0x3854   : > { %v7082_v6 = vadd.f32 %v7064_v24, %v11653_v30  ;;  %v9131_v42 = vpop.f32.mrb[78].mxu1  ;;  %v9686_v59 = vpack.c.bf16 %v8019_v13, %v8018_v7  ;;  %v8020_v24 = vld [vmem:[%s10473_s23 + $0x150] sm:$0xff] }
0x3855   : > { %v7073_v10 = vpop.f32.mrb[79].mxu1  ;;  %v7089_v61 = vsel %vm1170_vm0, %v7083_v17, 0.0  ;;  %v7079_v54 = vadd.f32 %v9131_v42, %v6984_v31  ;;  %v8022_v42 = vld [vmem:[%s10473_s23 + $0x160] sm:$0xff] }
0x3856   : > { %v7074_v53 = vadd.f32 %v7073_v10, %v6984_v31  ;;  %7090 = vadd.xlane.f32.xlu1 %v7089_v61  ;;  %v7086_v46 = vsel %vm1170_vm0, %v7082_v6, 0.0  ;;  %v9682_v31 = vpack.c.bf16 %v8017_v33, %v8016_v58  ;;  %v8023_v10 = vld [vmem:[%s10473_s23 + $0x168] sm:$0xff] }
0x3857   : > { %7087 = vadd.xlane.f32.xlu0 %v7086_v46  ;;  %v7085_v60 = vadd.f32 %v7079_v54, %v11663_v1  ;;  %v9694_v61 = vpack.c.bf16 %v8023_v10, %v8022_v42 }
0x3858   : > { %v7084_v20 = vadd.f32 %v7074_v53, %v11661_v45  ;;  %9683 = vmatprep.subr.bf16.mxu1 %v9682_v31 }
0x3859   : > { %v7095_v3 = vsel %vm1170_vm0, %v7085_v60, 0.0  ;;  %9685 = vmatpush3.bf16.msra.mxu1 %v9682_v31  ;;  %v7288_v31 = vrot.slane %v11795_v34, %v10812_v32 }
0x385a   : > { %v7092_v44 = vsel %vm1170_vm0, %v7084_v20, 0.0  ;;  %9687 = vmatprep.subr.bf16.mxu1 %v9686_v59 }
0x385b   : > { %7093 = vadd.xlane.f32.xlu0 %v7092_v44 }
0x385d   : > { %9689 = vmatpush3.bf16.msra.mxu1 %v9686_v59 }
0x385f   : > { %7096 = vadd.xlane.f32.xlu0 %v7095_v3 }
0x38e3   : > { %v7091_v30 = vpop.xlane.xlu1 %7090 }
0x38e4   : > { %v7099_v4 = vmul.f32 0.03125, %v7091_v30  ;;  %v7088_v11 = vpop.xlane.xlu0 %7087 }
0x38e5   : > { %v7098_v28 = vmul.f32 0.03125, %v7088_v11 }
0x38e6   : > { %v11807_v21 = vsub.f32 %v7083_v17, %v7099_v4  ;;  %v8021_v17 = vld [vmem:[%s10473_s23 + $0x158] sm:$0xff] }
0x38e7   : > { %v11809_v63 = vsub.f32 %v7082_v6, %v7098_v28  ;;  %v9690_v6 = vpack.c.bf16 %v8021_v17, %v8020_v24 }
0x38e8   : > { %v7094_v0 = vpop.xlane.xlu0 %7093  ;;  %v7107_v45 = vmul.f32 %v11807_v21, %v11807_v21 }
0x38e9   : > { %v7100_v57 = vmul.f32 0.03125, %v7094_v0  ;;  %v7106_v1 = vmul.f32 %v11809_v63, %v11809_v63  ;;  %9691 = vmatprep.subr.bf16.mxu1 %v9690_v6 }
0x38ea   : > { %v7113_v62 = vsel %vm1170_vm0, %v7107_v45, 0.0  ;;  %9693 = vmatpush3.bf16.msra.mxu1 %v9690_v6  ;;  %v7141_v45 = vrot.slane %v11795_v34, %v10794_v8 }
0x38eb   : > { %v11816_v2 = vsub.f32 %v7084_v20, %v7100_v57  ;;  %7114 = vadd.xlane.f32.xlu0 %v7113_v62  ;;  %v7110_v47 = vsel %vm1170_vm0, %v7106_v1, 0.0  ;;  %9695 = vmatprep.subr.bf16.mxu1 %v9694_v61 }
0x38ec   : > { %7111 = vadd.xlane.f32.xlu1 %v7110_v47  ;;  %v7097_v51 = vpop.xlane.xlu0 %7096 }
0x38ed   : > { %v7101_v12 = vmul.f32 0.03125, %v7097_v51  ;;  %v7108_v41 = vmul.f32 %v11816_v2, %v11816_v2  ;;  %v7149_v51 = vrot.slane %v11795_v34, %v10515_v14 }
0x38ee   : > { %9697 = vmatpush3.bf16.msra.mxu1 %v9694_v61 }
0x38ef   : > { %v11821_v56 = vsub.f32 %v7085_v60, %v7101_v12  ;;  %v7116_v18 = vsel %vm1170_vm0, %v7108_v41, 0.0 }
0x38f0   : > { %7117 = vadd.xlane.f32.xlu1 %v7116_v18 }
0x38f1   : > { %v7109_v27 = vmul.f32 %v11821_v56, %v11821_v56 }
0x38f3   : > { %v7119_v15 = vsel %vm1170_vm0, %v7109_v27, 0.0 }
0x38f4   : > { %7120 = vadd.xlane.f32.xlu0 %v7119_v15 }
0x3978   : > { %v7115_v54 = vpop.xlane.xlu0 %7114 }
0x3979   : > { %v7123_v53 = vmul.f32 0.03125, %v7115_v54  ;;  %v7112_v46 = vpop.xlane.xlu1 %7111 }
0x397a   : > { %v7122_v20 = vmul.f32 0.03125, %v7112_v46 }
0x397b   : > { %v7127_v60 = vadd.f32 1e-05, %v7123_v53 }
0x397c   : > { %v7126_v44 = vadd.f32 1e-05, %v7122_v20 }
0x397d   : > { %10222 = vrsqrt.f32 %v7127_v60  ;;  %v7118_v3 = vpop.xlane.xlu1 %7117 }
0x397e   : > { %10224 = vrsqrt.f32 %v7126_v44  ;;  %v7124_v30 = vmul.f32 0.03125, %v7118_v3 }
0x3980   : > { %v7128_v4 = vadd.f32 1e-05, %v7124_v30 }
0x3981   : > { %v7121_v11 = vpop.xlane.xlu0 %7120 }
0x3982   : > { %10226 = vrsqrt.f32 %v7128_v4  ;;  %v7125_v28 = vmul.f32 0.03125, %v7121_v11 }
0x3984   : > { %v7129_v0 = vadd.f32 1e-05, %v7125_v28 }
0x3986   : > { %10228 = vrsqrt.f32 %v7129_v0 }
0x3987   : > { %v10223_v57 = vpop.eup %10222 }
0x3988   : > { %v10225_v1 = vpop.eup %10224  ;;  %v7135_v62 = vmul.f32 %v10223_v57, %v11807_v21 }
0x3989   : > { %v7134_v47 = vmul.f32 %v10225_v1, %v11809_v63 }
0x398a   : > { %v7143_v12 = vmul.f32 %v7141_v45, %v7135_v62 }
0x398b   : > { %v7142_v41 = vmul.f32 %v7141_v45, %v7134_v47 }
0x398c   : > { %v10227_v18 = vpop.eup %10226  ;;  %v7151_v52 = vadd.f32 %v7149_v51, %v7143_v12 }
0x398d   : > { %v7150_v27 = vadd.f32 %v7149_v51, %v7142_v41  ;;  %v7136_v15 = vmul.f32 %v10227_v18, %v11816_v2  ;;  %v9698_v2 = vpack.c.bf16 %v8025_v16, %v8024_v48  ;;  %v7449_v48 = vld [vmem:[%s11964_s26 + $0x18] sm:$0xff] }
0x398f   : > { %9140 = vmatprep.mubr.msk.f32.mxu0 %vm1170_vm0, %v7150_v27  ;;  %v7144_v8 = vmul.f32 %v7141_v45, %v7136_v15  ;;  %9699 = vmatprep.subr.bf16.mxu1 %v9698_v2 }
0x3990   : > { %v10229_v29 = vpop.eup %10228  ;;  %9141 = vmatmul.mubr.msk.f32.vlgmr.msra.gmra.mrb[88].mxu0 %vm1170_vm0, %v7151_v52  ;;  %9701 = vmatpush3.bf16.msra.mxu1 %v9698_v2 }
0x3991   : > { %v7152_v21 = vadd.f32 %v7149_v51, %v7144_v8  ;;  %v7137_v63 = vmul.f32 %v10229_v29, %v11821_v56 }
0x3993   : > { %9143 = vmatprep.mubr.msk.f32.mxu0 %vm1170_vm0, %v7152_v21  ;;  %v7145_v14 = vmul.f32 %v7141_v45, %v7137_v63  ;;  %v7447_v63 = vld [vmem:[%s11964_s26 + $0x8] sm:$0xff] }
0x3995   : > { %v7153_v23 = vadd.f32 %v7149_v51, %v7145_v14 }
0x3997   : > { %9144 = vmatmul.mubr.msk.f32.gmra.mrb[90].mxu0 %vm1170_vm0, %v7153_v23 }
0x3a63   : > { %v9142_v43 = vpop.f32.mrb[88].mxu0 }
0x3a64   : > { %v7251_v37 = vadd.f32 %v9142_v43, %v8005_v35  ;;  %v7245_v55 = vpop.f32.mrb[89].mxu0 }
0x3a65   : > { %v7246_v26 = vadd.f32 %v8005_v35, %v7245_v55 }
0x3a66   : > { %v7265_v39 = vmax.f32 %v7251_v37, 0.0 }
0x3a67   : > { %v7264_v9 = vmax.f32 %v7246_v26, 0.0 }
0x3a69   : > { %9178 = vmatprep.mubr.f32.mxu1 %v7264_v9 }
0x3a6a   : > { %v9145_v56 = vpop.f32.mrb[90].mxu0  ;;  %9179 = vmatmul.mubr.f32.vlgmr.msra.gmra.mrb[80].mxu1 %v7265_v39 }
0x3a6b   : > { %v7261_v5 = vadd.f32 %v9145_v56, %v8005_v35  ;;  %v7255_v25 = vpop.f32.mrb[91].mxu0 }
0x3a6c   : > { %v7256_v19 = vadd.f32 %v8005_v35, %v7255_v25 }
0x3a6d   : > { %v7267_v33 = vmax.f32 %v7261_v5, 0.0 }
0x3a6e   : > { %v7266_v58 = vmax.f32 %v7256_v19, 0.0 }
0x3a70   : > { %9181 = vmatprep.mubr.f32.mxu1 %v7266_v58  ;;  %v7433_v58 = vrot.slane %v11795_v34, %v10829_v22 }
0x3a71   : > { %9182 = vmatmul.mubr.f32.gmra.mrb[82].mxu1 %v7267_v33 }
0x3b3d   : > { %v9180_v7 = vpop.f32.mrb[80].mxu1 }
0x3b3e   : > { %v7361_v13 = vadd.f32 %v9180_v7, %v7288_v31  ;;  %v7355_v59 = vpop.f32.mrb[81].mxu1 }
0x3b3f   : > { %v7356_v24 = vadd.f32 %v7355_v59, %v7288_v31  ;;  %v7441_v59 = vrot.slane %v11795_v34, %v10832_v38  ;;  %v8026_v38 = vld [vmem:[%s11965_s20] ss:$0 sm:$0xff] }
0x3b40   : > { %v7375_v17 = vadd.f32 %v7361_v13, %v7151_v52 }
0x3b41   : > { %v7374_v6 = vadd.f32 %v7356_v24, %v7150_v27 }
0x3b42   : > { %v7381_v42 = vsel %vm1170_vm0, %v7375_v17, 0.0 }
0x3b43   : > { %7382 = vadd.xlane.f32.xlu0 %v7381_v42  ;;  %v7378_v10 = vsel %vm1170_vm0, %v7374_v6, 0.0 }
0x3b44   : > { %7379 = vadd.xlane.f32.xlu1 %v7378_v10  ;;  %v9183_v61 = vpop.f32.mrb[82].mxu1 }
0x3b45   : > { %v7371_v54 = vadd.f32 %v9183_v61, %v7288_v31  ;;  %v7365_v53 = vpop.f32.mrb[83].mxu1 }
0x3b46   : > { %v7366_v46 = vadd.f32 %v7365_v53, %v7288_v31 }
0x3b47   : > { %v7377_v20 = vadd.f32 %v7371_v54, %v7153_v23  ;;  %v7448_v23 = vld [vmem:[%s11964_s26 + $0x10] sm:$0xff] }
0x3b48   : > { %v7376_v60 = vadd.f32 %v7366_v46, %v7152_v21  ;;  %v7446_v21 = vld [vmem:[%s11964_s26] sm:$0xff]  ;;  %v9706_v16 = vpack.c.bf16 %v7449_v48, %v7448_v23 }
0x3b49   : > { %v7387_v32 = vsel %vm1170_vm0, %v7377_v20, 0.0  ;;  %v9702_v14 = vpack.c.bf16 %v7447_v63, %v7446_v21 }
0x3b4a   : > { %7388 = vadd.xlane.f32.xlu0 %v7387_v32  ;;  %v7384_v44 = vsel %vm1170_vm0, %v7376_v60, 0.0 }
0x3b4b   : > { %7385 = vadd.xlane.f32.xlu1 %v7384_v44  ;;  %9703 = vmatprep.subr.bf16.mxu0 %v9702_v14 }
0x3b4c   : > { %9705 = vmatpush3.bf16.msra.mxu0 %v9702_v14 }
0x3b4d   : > { %9707 = vmatprep.subr.bf16.mxu0 %v9706_v16 }
0x3b50   : > { %9709 = vmatpush3.bf16.msra.mxu0 %v9706_v16 }
0x3bd0   : > { %v7383_v3 = vpop.xlane.xlu0 %7382 }
0x3bd1   : > { %v7391_v30 = vmul.f32 0.03125, %v7383_v3  ;;  %v7380_v4 = vpop.xlane.xlu1 %7379 }
0x3bd2   : > { %v7390_v11 = vmul.f32 0.03125, %v7380_v4 }
0x3bd3   : > { %v7395_v28 = vsub.f32 %v7375_v17, %v7391_v30 }
0x3bd4   : > { %v7394_v0 = vsub.f32 %v7374_v6, %v7390_v11 }
0x3bd5   : > { %v7399_v45 = vmul.f32 %v7395_v28, %v7395_v28 }
0x3bd6   : > { %v7398_v57 = vmul.f32 %v7394_v0, %v7394_v0 }
0x3bd7   : > { %v7389_v1 = vpop.xlane.xlu0 %7388  ;;  %v7405_v62 = vsel %vm1170_vm0, %v7399_v45, 0.0 }
0x3bd8   : > { %v7393_v47 = vmul.f32 0.03125, %v7389_v1  ;;  %v7386_v51 = vpop.xlane.xlu1 %7385  ;;  %7406 = vadd.xlane.f32.xlu0 %v7405_v62  ;;  %v7402_v12 = vsel %vm1170_vm0, %v7398_v57, 0.0 }
0x3bd9   : > { %v7392_v41 = vmul.f32 0.03125, %v7386_v51  ;;  %7403 = vadd.xlane.f32.xlu1 %v7402_v12 }
0x3bda   : > { %v7397_v18 = vsub.f32 %v7377_v20, %v7393_v47 }
0x3bdb   : > { %v7396_v27 = vsub.f32 %v7376_v60, %v7392_v41 }
0x3bdc   : > { %v7401_v15 = vmul.f32 %v7397_v18, %v7397_v18 }
0x3bdd   : > { %v7400_v52 = vmul.f32 %v7396_v27, %v7396_v27 }
0x3bde   : > { %v7411_v8 = vsel %vm1170_vm0, %v7401_v15, 0.0 }
0x3bdf   : > { %7412 = vadd.xlane.f32.xlu0 %v7411_v8  ;;  %v7408_v29 = vsel %vm1170_vm0, %v7400_v52, 0.0 }
0x3be0   : > { %7409 = vadd.xlane.f32.xlu1 %v7408_v29 }
0x3c65   : > { %v7407_v2 = vpop.xlane.xlu0 %7406 }
0x3c66   : > { %v7415_v35 = vmul.f32 0.03125, %v7407_v2  ;;  %v7404_v43 = vpop.xlane.xlu1 %7403 }
0x3c67   : > { %v7414_v37 = vmul.f32 0.03125, %v7404_v43 }
0x3c68   : > { %v7419_v55 = vadd.f32 1e-05, %v7415_v35 }
0x3c69   : > { %v7418_v26 = vadd.f32 1e-05, %v7414_v37 }
0x3c6a   : > { %10230 = vrsqrt.f32 %v7419_v55 }
0x3c6b   : > { %10232 = vrsqrt.f32 %v7418_v26 }
0x3c6c   : > { %v7413_v9 = vpop.xlane.xlu0 %7412 }
0x3c6d   : > { %v7417_v39 = vmul.f32 0.03125, %v7413_v9  ;;  %v7410_v56 = vpop.xlane.xlu1 %7409 }
0x3c6e   : > { %v7416_v5 = vmul.f32 0.03125, %v7410_v56  ;;  %v7599_v56 = vld [vmem:[%s10483_s10 + $0x8] sm:$0xff] }
0x3c6f   : > { %v7421_v25 = vadd.f32 1e-05, %v7417_v39 }
0x3c70   : > { %v7420_v19 = vadd.f32 1e-05, %v7416_v5 }
0x3c71   : > { %10234 = vrsqrt.f32 %v7421_v25 }
0x3c72   : > { %10236 = vrsqrt.f32 %v7420_v19  ;;  %v7598_v19 = vld [vmem:[%s10483_s10] sm:$0xff] }
0x3c74   : > { %v10231_v33 = vpop.eup %10230 }
0x3c75   : > { %v10233_v31 = vpop.eup %10232  ;;  %v7427_v7 = vmul.f32 %v10231_v33, %v7395_v28 }
0x3c76   : > { %v7426_v13 = vmul.f32 %v10233_v31, %v7394_v0 }
0x3c77   : > { %v7435_v24 = vmul.f32 %v7433_v58, %v7427_v7 }
0x3c78   : > { %v7434_v17 = vmul.f32 %v7433_v58, %v7426_v13 }
0x3c79   : > { %v7443_v10 = vadd.f32 %v7441_v59, %v7435_v24  ;;  %v7601_v24 = vld [vmem:[%s10483_s10 + $0x18] sm:$0xff] }
0x3c7a   : > { %v7442_v6 = vadd.f32 %v7441_v59, %v7434_v17 }
0x3c7b   : > { %v10235_v42 = vpop.eup %10234 }
0x3c7c   : > { %v10237_v61 = vpop.eup %10236  ;;  %9192 = vmatprep.mubr.msk.f32.mxu0 %vm1170_vm0, %v7442_v6  ;;  %v7429_v54 = vmul.f32 %v10235_v42, %v7397_v18  ;;  %v7600_v6 = vld [vmem:[%s10483_s10 + $0x10] sm:$0xff] }
0x3c7d   : > { %9193 = vmatmul.mubr.msk.f32.vlgmr.msra.gmra.mrb[92].mxu0 %vm1170_vm0, %v7443_v10  ;;  %v7428_v22 = vmul.f32 %v10237_v61, %v7396_v27 }
0x3c7e   : > { %v7437_v53 = vmul.f32 %v7433_v58, %v7429_v54 }
0x3c7f   : > { %v7436_v46 = vmul.f32 %v7433_v58, %v7428_v22  ;;  %v7623_v22 = vstv %s7622_s28 }
0x3c80   : > { %v7445_v60 = vadd.f32 %v7441_v59, %v7437_v53 }
0x3c81   : > { %v7444_v20 = vadd.f32 %v7441_v59, %v7436_v46 }
0x3c83   : > { %9195 = vmatprep.mubr.msk.f32.mxu0 %vm1170_vm0, %v7444_v20 }
0x3c84   : > { %9196 = vmatmul.mubr.msk.f32.gmra.mrb[94].mxu0 %vm1170_vm0, %v7445_v60 }
0x3d50   : > { %v9194_v34 = vpop.f32.mrb[92].mxu0 }
0x3d51   : > { %v7541_v32 = vadd.f32 %v9194_v34, %v8026_v38  ;;  %v7535_v44 = vpop.f32.mrb[93].mxu0 }
0x3d52   : > { %v7536_v3 = vadd.f32 %v8026_v38, %v7535_v44 }
0x3d53   : > { %v7557_v30 = vsel %vm3824_vm4, %v7541_v32, -inf }
0x3d54   : > { %7558 = vmax.xlane.f32.xlu0 %v7557_v30  ;;  %v7554_v4 = vsel %vm3824_vm4, %v7536_v3, -inf }
0x3d55   : > { %7555 = vmax.xlane.f32.xlu1 %v7554_v4 }
0x3d57   : > { %v9197_v11 = vpop.f32.mrb[94].mxu0 }
0x3d58   : > { %v7551_v28 = vadd.f32 %v9197_v11, %v8026_v38  ;;  %v7545_v0 = vpop.f32.mrb[95].mxu0 }
0x3d59   : > { %v7546_v45 = vadd.f32 %v8026_v38, %v7545_v0 }
0x3d5a   : > { %v7563_v57 = vsel %vm3824_vm4, %v7551_v28, -inf }
0x3d5b   : > { %7564 = vmax.xlane.f32.xlu0 %v7563_v57  ;;  %v7560_v1 = vsel %vm3824_vm4, %v7546_v45, -inf }
0x3d5c   : > { %7561 = vmax.xlane.f32.xlu1 %v7560_v1 }
0x3de1   : > { %v7559_v62 = vpop.xlane.xlu0 %7558 }
0x3de2   : > { %v7567_v47 = vsub.f32 %v7541_v32, %v7559_v62  ;;  %v7556_v51 = vpop.xlane.xlu1 %7555 }
0x3de3   : > { %v7566_v12 = vsub.f32 %v7536_v3, %v7556_v51 }
0x3de4   : > { %v7572_v41 = vmul.f32 1.442695, %v7567_v47 }
0x3de5   : > { %v7570_v18 = vmul.f32 1.442695, %v7566_v12 }
0x3de6   : > { %10238 = vpow2.f32 %v7572_v41 }
0x3de7   : > { %10240 = vpow2.f32 %v7570_v18 }
0x3de8   : > { %v7565_v27 = vpop.xlane.xlu0 %7564 }
0x3de9   : > { %v7569_v15 = vsub.f32 %v7551_v28, %v7565_v27  ;;  %v7562_v52 = vpop.xlane.xlu1 %7561 }
0x3dea   : > { %v7568_v8 = vsub.f32 %v7546_v45, %v7562_v52 }
0x3deb   : > { %v7576_v29 = vmul.f32 1.442695, %v7569_v15 }
0x3dec   : > { %v7574_v21 = vmul.f32 1.442695, %v7568_v8 }
0x3ded   : > { %10242 = vpow2.f32 %v7576_v29 }
0x3dee   : > { %10244 = vpow2.f32 %v7574_v21 }
0x3df0   : > { %v10239_v63 = vpop.eup %10238 }
0x3df1   : > { %v10241_v14 = vpop.eup %10240  ;;  %v7581_v23 = vsel %vm3824_vm4, %v10239_v63, 0.0 }
0x3df2   : > { %7582 = vadd.xlane.f32.xlu0 %v7581_v23  ;;  %v7578_v48 = vsel %vm3824_vm4, %v10241_v14, 0.0 }
0x3df3   : > { %7579 = vadd.xlane.f32.xlu1 %v7578_v48 }
0x3df7   : > { %v10243_v16 = vpop.eup %10242 }
0x3df8   : > { %v10245_v2 = vpop.eup %10244  ;;  %v7587_v35 = vsel %vm3824_vm4, %v10243_v16, 0.0 }
0x3df9   : > { %7588 = vadd.xlane.f32.xlu0 %v7587_v35  ;;  %v7584_v43 = vsel %vm3824_vm4, %v10245_v2, 0.0 }
0x3dfa   : > { %7585 = vadd.xlane.f32.xlu1 %v7584_v43 }
0x3e7f   : > { %v7583_v37 = vpop.xlane.xlu0 %7582 }
0x3e80   : > { %10246 = vrcp.f32 %v7583_v37  ;;  %v7580_v55 = vpop.xlane.xlu1 %7579 }
0x3e81   : > { %10248 = vrcp.f32 %v7580_v55 }
0x3e86   : > { %v7589_v26 = vpop.xlane.xlu0 %7588 }
0x3e87   : > { %10250 = vrcp.f32 %v7589_v26  ;;  %v7586_v9 = vpop.xlane.xlu1 %7585 }
0x3e88   : > { %10252 = vrcp.f32 %v7586_v9 }
0x3e8a   : > { %v10247_v39 = vpop.eup %10246 }
0x3e8b   : > { %v10249_v5 = vpop.eup %10248  ;;  %v7593_v25 = vmul.f32 %v10247_v39, %v10239_v63 }
0x3e8c   : > { %v7591_v58 = vmul.f32 %v10249_v5, %v10241_v14 }
0x3e8d   : > { %v7603_v33 = vsel %vm1027_vm12, %v7599_v56, %v7593_v25 }
0x3e8e   : > { %v7613_v31 = vsel %vm3824_vm4, %v7603_v33, -inf  ;;  %7607 = vst.msk [vmem:[%s10483_s10 + $0x8] sm:$0xff] %vm3824_vm4, %v7603_v33  ;;  %v7602_v7 = vsel %vm1026_vm13, %v7598_v19, %v7591_v58 }
0x3e8f   : > { %7614 = vmax.xlane.f32.xlu0 %v7613_v31  ;;  %v7610_v13 = vsel %vm3824_vm4, %v7602_v7, -inf  ;;  %7606 = vst.msk [vmem:[%s10483_s10] sm:$0xff] %vm3824_vm4, %v7602_v7 }
0x3e90   : > { %7611 = vmax.xlane.f32.xlu1 %v7610_v13 }
0x3e91   : > { %v10251_v59 = vpop.eup %10250 }
0x3e92   : > { %v10253_v17 = vpop.eup %10252  ;;  %v7597_v40 = vmul.f32 %v10251_v59, %v10243_v16 }
0x3e93   : > { %v7595_v42 = vmul.f32 %v10253_v17, %v10245_v2 }
0x3e94   : > { %v7605_v10 = vsel %vm1029_vm14, %v7601_v24, %v7597_v40 }
0x3e95   : > { %v7619_v61 = vsel %vm3824_vm4, %v7605_v10, -inf  ;;  %7609 = vst.msk [vmem:[%s10483_s10 + $0x18] sm:$0xff] %vm3824_vm4, %v7605_v10  ;;  %v7604_v36 = vsel %vm1028_vm15, %v7600_v6, %v7595_v42 }
0x3e96   : > { %7620 = vmax.xlane.f32.xlu0 %v7619_v61  ;;  %v7616_v54 = vsel %vm3824_vm4, %v7604_v36, -inf  ;;  %7608 = vst.msk [vmem:[%s10483_s10 + $0x10] sm:$0xff] %vm3824_vm4, %v7604_v36 }
0x3e97   : > { %7617 = vmax.xlane.f32.xlu1 %v7616_v54 }
0x3f1c   : > { %v7615_v53 = vpop.xlane.xlu0 %7614 }
0x3f1d   : > { %vm7625_vm12 = vcmp.gt.f32.partialorder %v7615_v53, %v7623_v22  ;;  %v7612_v46 = vpop.xlane.xlu1 %7611 }
0x3f1e   : > { %v8032_v20 = vsel %vm7625_vm12, 1.0, %v10331_v49  ;;  %vm7624_vm13 = vcmp.gt.f32.partialorder %v7612_v46, %v7623_v22 }
0x3f1f   : > { %7637 = vst.msk [vmem:[#allocation2 + $0x8] sm:$0xff] %vm3590_vm3, %v8032_v20  ;;  %v8031_v60 = vsel %vm7624_vm13, 1.0, %v10331_v49  ;;  %v7641_v50 = vsel %vm3590_vm3, %v8032_v20, 0.0 }
0x3f20   : > { %7636 = vst.msk [vmem:[#allocation2] sm:$0xff] %vm3590_vm3, %v8031_v60  ;;  %v7640_v38 = vsel %vm3590_vm3, %v8031_v60, 0.0 }
0x3f21   : > { %v7642_v3 = vadd.f32 %v7641_v50, %v7640_v38 }
0x3f23   : > { %v7621_v34 = vpop.xlane.xlu0 %7620 }
0x3f24   : > { %vm7627_vm14 = vcmp.gt.f32.partialorder %v7621_v34, %v7623_v22  ;;  %v7618_v32 = vpop.xlane.xlu1 %7617 }
0x3f25   : > { %v8034_v44 = vsel %vm7627_vm14, 1.0, %v10331_v49  ;;  %vm7626_vm15 = vcmp.gt.f32.partialorder %v7618_v32, %v7623_v22 }
0x3f26   : > { %7639 = vst.msk [vmem:[#allocation2 + $0x18] sm:$0xff] %vm3590_vm3, %v8034_v44  ;;  %v8033_v30 = vsel %vm7626_vm15, 1.0, %v10331_v49  ;;  %v7645_v28 = vsel %vm3590_vm3, %v8034_v44, 0.0 }
0x3f27   : > { %7638 = vst.msk [vmem:[#allocation2 + $0x10] sm:$0xff] %vm3590_vm3, %v8033_v30  ;;  %v7643_v4 = vsel %vm3590_vm3, %v8033_v30, 0.0 }
0x3f28   : > { %v7644_v11 = vadd.f32 %v7643_v4, %v7642_v3 }
0x3f2a   : > { %v7646_v0 = vadd.f32 %v7645_v28, %v7644_v11 }
0x3f2c   : > { %7647 = vadd.xlane.f32.xlu1 %v7646_v0 }
0x3fb9   : > { %v7648_v45 = vpop.xlane.xlu1 %7647 }
0x3fba   : > { %v7649_v57 = vrot.slane %v7648_v45, 4 }
0x3fbc   : > { %v7650_v1 = vadd.f32 %v7649_v57, %v7648_v45 }
0x3fbe   : > { %v7651_v62 = vrot.slane %v7650_v1, 2 }
0x3fc0   : > { %v7652_v47 = vadd.f32 %v7651_v62, %v7650_v1 }
0x3fc2   : > { %v7653_v51 = vrot.slane %v7652_v47, 1 }
0x3fc4   : > { %v7654_v12 = vadd.f32 %v7653_v51, %v7652_v47 }
0x3fc6   : > { %9710 = vpush %v7654_v12 }
0x3ff7   : > { %s9711_s2 = spop %9710 }
0x3ff8   : > { %p9712_p6 = scmp.lt.s32.totalorder %s9711_s2, 0  ;;  %s9713_s19 = sceil.f32 %s9711_s2 }
0x3ff9   : > { %s9714_s20 = sfloor.f32 %s9711_s2 }
0x3ffa   : > { %s11967_s19 = smov (!%p9712_p6, %s9713_s19), %s9714_s20 }
0x3ffb   : > { %s9716_s28 = scvt.f32.s32 %s11967_s19 }
0x3ffd   : > { %7658 = sst [smem:[#allocation6]] %s9716_s28 }
0x3ffe PF: > { %s72_s25 = sadd.s32 1, %s10285_s25  }
0x3fff   : > { %p69_p7 = scmp.ge.s32.totalorder %s72_s25, 10  }
0x4001   :  { %71 = sbr.rel (!%p69_p7) target bundleno = 43 (0x2b), region = 222 }

</bundles_post_ra>
